<compile_context>
chip_gen: v7x
topology: tpu7x:2x2x1
jax: 0.10.0
libtpu: 0.0.40
codegen_flags: <defaults>
</compile_context>

<pallas_src>
import functools
import itertools
import math

import jax
import jax.numpy as jnp
from jax.experimental import pallas as pl
from jax.experimental.pallas import tpu as pltpu


# ---------------------------------------------------------------------------
# In-kernel math helpers
# ---------------------------------------------------------------------------
def _gelu(x):
    # tanh-form GELU (EUP transcendental).
    c = math.sqrt(2.0 / math.pi)
    return 0.5 * x * (1.0 + jnp.tanh(c * (x + 0.044715 * x * x * x)))


# ---------------------------------------------------------------------------
# Fused kernel: one grid step = `bb` batch elements, everything stays in VMEM
# ---------------------------------------------------------------------------
def _fused_block_kernel(x_ref, vecs_ref, pww_ref, dww_ref, masks_ref, ab_ref,
                        projw_ref, fc1w_ref, fc2w_ref,
                        out_ref,
                        pad_ref, qkv_ref, o_ref, *,
                        num_heads, key_dim, d_v, res, n_tok, bb, dim, dim_h,
                        hidden, eps_ln):
    nh_kd = num_heads * key_dim
    qk_dim = 2 * nh_kd
    v_dim = num_heads * d_v
    margin = res + 1                       # >= max |row offset| of a 3x3 tap
    stride = n_tok + margin                # per-image row stride in pad_ref
    l_acc = bb * stride - margin           # rows covered by the slab-wide conv
    pad_rows = pad_ref.shape[0]

    # -- packed 1-row vector constants (one operand instead of nine) ---------
    ln1_g = vecs_ref[0:1, 0:dim]
    ln1_b = vecs_ref[1:2, 0:dim]
    pw_b = vecs_ref[2:3, 0:dim_h]          # q-scale already folded in
    bn_b = vecs_ref[3:4, 0:v_dim]          # BatchNorm shift (folded)
    proj_b = vecs_ref[4:5, 0:dim]
    ln2_g = vecs_ref[5:6, 0:dim]
    ln2_b = vecs_ref[6:7, 0:dim]
    fc1_b = vecs_ref[7:8, 0:hidden]
    fc2_b = vecs_ref[8:9, 0:dim]

    # ---- LayerNorm1 + pointwise 1x1 conv: ONE (M, dim) @ (dim, dim_h) dot --
    x = x_ref[0]                                              # (M, dim)
    mu = jnp.mean(x, axis=-1, keepdims=True)
    xc = x - mu
    var = jnp.mean(xc * xc, axis=-1, keepdims=True)
    xn = xc * jax.lax.rsqrt(var + eps_ln) * ln1_g + ln1_b
    qkv_ref[...] = (jnp.dot(xn, pww_ref[...],
                            preferred_element_type=jnp.float32) + pw_b)

    # ---- depthwise 3x3 conv (pad=1, BN folded) on the flat token layout ----
    # Each image occupies rows [margin + b*stride, margin + b*stride + N) of
    # pad_ref; the `margin`-row gaps stay zero so vertical taps that fall off
    # an image read zeros.  Only the margin rows are zeroed (data rows are
    # always fully overwritten).
    zrow = jnp.zeros((margin, v_dim), jnp.float32)
    for b in range(bb):
        pad_ref[b * stride:b * stride + margin, :] = zrow
    pad_ref[bb * stride:pad_rows, :] = jnp.zeros(
        (pad_rows - bb * stride, v_dim), jnp.float32)
    for b in range(bb):
        pad_ref[margin + b * stride:margin + b * stride + n_tok, :] = \
            qkv_ref[b * n_tok:(b + 1) * n_tok, qk_dim:qk_dim + v_dim]

    # Slab-wide 9-tap accumulation over ALL images at once: each tap is a
    # single static row-shifted slice; two column masks kill the row-wrap terms.
    ml = masks_ref[:, 0:1]                                    # col > 0
    mr = masks_ref[:, 1:2]                                    # col < res-1
    wk = dww_ref[...]                                         # (9, v_dim), BN-scaled
    acc = jnp.zeros((l_acc, v_dim), jnp.float32)
    for ki in range(3):
        for kj in range(3):
            off = margin + (ki - 1) * res + (kj - 1)
            t = pad_ref[off:off + l_acc, :]
            if kj == 0:
                t = t * ml
            elif kj == 2:
                t = t * mr
            idx = ki * 3 + kj
            acc = acc + t * wk[idx:idx + 1, :]

    # v_new = v1 + GELU(conv + bn_shift), written back in place over v1.
    for b in range(bb):
        p0 = margin + b * stride
        pad_ref[p0:p0 + n_tok, :] = (
            pad_ref[p0:p0 + n_tok, :]
            + _gelu(acc[b * stride:b * stride + n_tok, :] + bn_b))

    # ---- attention: per-(image, head) scores/softmax; head outputs gathered
    #      into o_ref so the output projection is ONE merged matmul.
    for b in range(bb):
        r0 = b * n_tok
        p0 = margin + b * stride
        for h in range(num_heads):
            qh = qkv_ref[r0:r0 + n_tok, h * key_dim:(h + 1) * key_dim]
            kh = qkv_ref[r0:r0 + n_tok,
                         nh_kd + h * key_dim:nh_kd + (h + 1) * key_dim]
            s = jax.lax.dot_general(qh, kh, (((1,), (1,)), ((), ())),
                                    preferred_element_type=jnp.float32)
            s = s + ab_ref[h]                                 # scale already folded
            m = jnp.max(s, axis=-1, keepdims=True)
            e = jnp.exp(s - m)
            p = e * pl.reciprocal(jnp.sum(e, axis=-1, keepdims=True), approx=True)
            vh = pad_ref[p0:p0 + n_tok, h * d_v:(h + 1) * d_v]
            o_ref[r0:r0 + n_tok, h * d_v:(h + 1) * d_v] = jnp.dot(
                p, vh, preferred_element_type=jnp.float32)

    # ---- merged output projection (contraction = v_dim) + residual ---------
    x1 = (x_ref[0]
          + jnp.dot(o_ref[...], projw_ref[...],
                    preferred_element_type=jnp.float32)
          + proj_b)

    # ---- LayerNorm2 + MLP + residual ----
    mu2 = jnp.mean(x1, axis=-1, keepdims=True)
    xc2 = x1 - mu2
    var2 = jnp.mean(xc2 * xc2, axis=-1, keepdims=True)
    xn2 = xc2 * jax.lax.rsqrt(var2 + eps_ln) * ln2_g + ln2_b
    hdn = _gelu(jnp.dot(xn2, fc1w_ref[...],
                        preferred_element_type=jnp.float32) + fc1_b)
    out_ref[...] = (x1
                    + jnp.dot(hdn, fc2w_ref[...],
                              preferred_element_type=jnp.float32)
                    + fc2_b)[None]


# ---------------------------------------------------------------------------
# One-time parameter preparation (transposes, BN fold, scale fold, bias gather,
# packing of the 1-row vector constants)
# ---------------------------------------------------------------------------
def prepare_kernel_params(p, *, key_dim, num_heads, attn_ratio, resolution):
    del resolution  # bias table gather only needs the precomputed idxs
    nh_kd = key_dim * num_heads
    d_v = int(attn_ratio * key_dim)
    v_dim = d_v * num_heads
    dim = p["pw_w"].shape[1]
    dim_h = p["pw_w"].shape[0]
    hidden = p["fc1_w"].shape[0]

    # Fold inference BatchNorm into the depthwise conv weights.
    bn_scale = p["bn_g"] / jnp.sqrt(p["bn_var"] + 1e-5)
    bn_shift = p["bn_b"] - p["bn_mean"] * bn_scale
    dw = (p["dw_w"] * bn_scale[:, None, None]).transpose(1, 2, 0).reshape(9, v_dim)

    # Fold the attention scale into the q columns of the 1x1-conv weight/bias.
    scale = key_dim ** -0.5
    col_scale = jnp.concatenate([
        jnp.full((nh_kd,), scale, jnp.float32),
        jnp.ones((nh_kd,), jnp.float32),
        jnp.ones((v_dim,), jnp.float32)])
    pw_w = p["pw_w"].T * col_scale[None, :]
    pw_b = p["pw_b"] * col_scale

    # Gather the attention-bias table ONCE.
    ab = p["attention_biases"][:, p["bias_idxs"]]             # (H, N, N)

    # Pack the nine 1-row vector constants into one (9, VW) operand.
    vw = max(dim, dim_h, v_dim, hidden)
    rows = [p["ln1_g"], p["ln1_b"], pw_b, bn_shift, p["proj_b"],
            p["ln2_g"], p["ln2_b"], p["fc1_b"], p["fc2_b"]]
    vecs = jnp.stack(
        [jnp.pad(r.astype(jnp.float32), (0, vw - r.shape[0])) for r in rows])

    return dict(vecs=vecs, pw_w=pw_w, dw_w=dw, ab=ab,
                proj_w=p["proj_w"].T, fc1_w=p["fc1_w"].T, fc2_w=p["fc2_w"].T)


def modified_transformer_forward(x, kp, *, key_dim, num_heads, attn_ratio,
                                 resolution, batch_block=None):
    B, N, C = x.shape
    assert N == resolution ** 2
    d_v = int(attn_ratio * key_dim)
    v_dim = d_v * num_heads
    dim_h = kp["pw_w"].shape[1]
    hidden = kp["fc1_w"].shape[1]

    if batch_block is None:
        # Whole batch per grid step (best on single-TC v5e/v6e).  On v7x pass
        # batch_block = ceil(B/2) to keep a 2-wide parallel grid for both TCs.
        batch_block = B
    assert B % batch_block == 0
    steps = B // batch_block
    M = batch_block * N

    # Padded-layout geometry for the depthwise conv + column masks.
    margin = resolution + 1
    stride = N + margin
    l_acc = batch_block * stride - margin
    pad_rows = -(-(batch_block * stride + margin) // 8) * 8

    pos = jnp.arange(l_acc, dtype=jnp.int32) % stride
    col = pos % resolution
    in_img = pos < N
    mask_l = jnp.where(in_img & (col > 0), 1.0, 0.0).astype(jnp.float32)
    mask_r = jnp.where(in_img & (col < resolution - 1), 1.0, 0.0).astype(jnp.float32)
    masks = jnp.stack([mask_l, mask_r], axis=1)               # (l_acc, 2)

    consts = [kp["vecs"], kp["pw_w"], kp["dw_w"], masks, kp["ab"],
              kp["proj_w"], kp["fc1_w"], kp["fc2_w"]]

    def const_spec(a):
        nd = a.ndim
        return pl.BlockSpec(a.shape, lambda g, _nd=nd: (0,) * _nd)

    kernel = functools.partial(
        _fused_block_kernel, num_heads=num_heads, key_dim=key_dim, d_v=d_v,
        res=resolution, n_tok=N, bb=batch_block, dim=C, dim_h=dim_h,
        hidden=hidden, eps_ln=1e-6)

    out = pl.pallas_call(
        kernel,
        out_shape=jax.ShapeDtypeStruct((steps, M, C), jnp.float32),
        grid=(steps,),
        in_specs=([pl.BlockSpec((1, M, C), lambda g: (g, 0, 0))]
                  + [const_spec(a) for a in consts]),
        out_specs=pl.BlockSpec((1, M, C), lambda g: (g, 0, 0)),
        scratch_shapes=[pltpu.VMEM((pad_rows, v_dim), jnp.float32),   # conv pad
                        pltpu.VMEM((M, dim_h), jnp.float32),          # qkv
                        pltpu.VMEM((M, v_dim), jnp.float32)],         # head outs
        compiler_params=pltpu.CompilerParams(
            dimension_semantics=("parallel",)),
    )(x.reshape(steps, M, C), *consts)
    return out.reshape(B, N, C)


# ---------------------------------------------------------------------------
# Deterministic parameter construction (shapes from the module's __init__)
# ---------------------------------------------------------------------------
def make_params(key, dim, key_dim, num_heads, attn_ratio, mlp_ratio, resolution):
    nh_kd = key_dim * num_heads
    qk_dim = 2 * nh_kd
    d_v = int(attn_ratio * key_dim)
    v_dim = d_v * num_heads
    dim_h = qk_dim + v_dim
    hidden = int(dim * mlp_ratio)
    N = resolution ** 2

    ks = jax.random.split(key, 10)
    nrm = lambda k, s, sc=0.1: jax.random.normal(k, s, jnp.float32) * sc

    points = list(itertools.product(range(resolution), range(resolution)))
    attention_offsets = {}
    idxs = []
    for p1 in points:
        for p2 in points:
            off = (abs(p1[0] - p2[0]), abs(p1[1] - p2[1]))
            if off not in attention_offsets:
                attention_offsets[off] = len(attention_offsets)
            idxs.append(attention_offsets[off])
    bias_idxs = jnp.array(idxs, dtype=jnp.int32).reshape(N, N)

    return dict(
        ln1_g=jnp.ones((dim,), jnp.float32),
        ln1_b=jnp.zeros((dim,), jnp.float32),
        pw_w=nrm(ks[0], (dim_h, dim)),          # Conv2d(dim, dim_h, 1) weight
        pw_b=nrm(ks[1], (dim_h,)),
        dw_w=nrm(ks[2], (v_dim, 3, 3)),         # depthwise Conv2d (C,1,3,3) squeezed
        bn_g=jnp.ones((v_dim,), jnp.float32),
        bn_b=jnp.zeros((v_dim,), jnp.float32),
        bn_mean=jnp.zeros((v_dim,), jnp.float32),
        bn_var=jnp.ones((v_dim,), jnp.float32),
        attention_biases=nrm(ks[3], (num_heads, len(attention_offsets))),
        bias_idxs=bias_idxs,
        proj_w=nrm(ks[4], (dim, v_dim)),
        proj_b=nrm(ks[5], (dim,)),
        ln2_g=jnp.ones((dim,), jnp.float32),
        ln2_b=jnp.zeros((dim,), jnp.float32),
        fc1_w=nrm(ks[6], (hidden, dim)),
        fc1_b=nrm(ks[7], (hidden,)),
        fc2_w=nrm(ks[8], (dim, hidden)),
        fc2_b=nrm(ks[9], (dim,)),
    )


# ---------------------------------------------------------------------------
# Pure-JAX reference (exact-GELU / HIGHEST precision) for numerical checking
# ---------------------------------------------------------------------------
def reference_forward(x, p, *, key_dim, num_heads, attn_ratio, resolution):
    hp = jax.lax.Precision.HIGHEST
    B, N, C = x.shape
    h = w = resolution
    nh_kd = key_dim * num_heads
    qk_dim = 2 * nh_kd
    d_v = int(attn_ratio * key_dim)
    v_dim = d_v * num_heads
    scale = key_dim ** -0.5
    gelu = lambda t: jax.nn.gelu(t, approximate=False)

    def ln(t, g, b, eps):
        mu = t.mean(-1, keepdims=True)
        var = ((t - mu) ** 2).mean(-1, keepdims=True)
        return (t - mu) / jnp.sqrt(var + eps) * g + b

    xn = ln(x, p["ln1_g"], p["ln1_b"], 1e-6)
    qkv = jnp.einsum("bnc,oc->bno", xn, p["pw_w"], precision=hp) + p["pw_b"]
    q = qkv[..., :nh_kd].reshape(B, N, num_heads, key_dim).transpose(0, 2, 1, 3)
    k = qkv[..., nh_kd:qk_dim].reshape(B, N, num_heads, key_dim).transpose(0, 2, 1, 3)
    v1 = qkv[..., qk_dim:].transpose(0, 2, 1).reshape(B, v_dim, h, w)
    conv = jax.lax.conv_general_dilated(v1, p["dw_w"][:, None, :, :], (1, 1),
                                        ((1, 1), (1, 1)),
                                        feature_group_count=v_dim, precision=hp)
    bn = ((conv - p["bn_mean"][None, :, None, None])
          / jnp.sqrt(p["bn_var"][None, :, None, None] + 1e-5)
          * p["bn_g"][None, :, None, None] + p["bn_b"][None, :, None, None])
    v1 = v1 + gelu(bn)
    v_heads = v1.reshape(B, num_heads, d_v, N).transpose(0, 1, 3, 2)
    ab = p["attention_biases"][:, p["bias_idxs"]]
    s = jnp.einsum("bhnk,bhmk->bhnm", q, k, precision=hp) * scale + ab[None]
    a = jax.nn.softmax(s, axis=-1)
    o = jnp.einsum("bhnm,bhmd->bhnd", a, v_heads, precision=hp)
    o = o.transpose(0, 2, 1, 3).reshape(B, N, v_dim)
    x1 = x + jnp.einsum("bnv,ov->bno", o, p["proj_w"], precision=hp) + p["proj_b"]
    xn2 = ln(x1, p["ln2_g"], p["ln2_b"], 1e-6)
    hdn = gelu(jnp.einsum("bnc,oc->bno", xn2, p["fc1_w"], precision=hp) + p["fc1_b"])
    return x1 + jnp.einsum("bnh,oh->bno", hdn, p["fc2_w"], precision=hp) + p["fc2_b"]


if __name__ == "__main__":
    dim, key_dim, num_heads, attn_ratio, mlp_ratio, resolution = 32, 8, 4, 2, 4, 7
    B = 2
    N = resolution ** 2

    key = jax.random.PRNGKey(0)
    kx, kp = jax.random.split(key)
    params = make_params(kp, dim, key_dim, num_heads, attn_ratio, mlp_ratio,
                         resolution)
    x = jax.random.normal(kx, (B, N, dim), jnp.float32)

    # One-time weight transforms (transpose / BN+scale fold / bias gather / pack).
    kparams = prepare_kernel_params(params, key_dim=key_dim, num_heads=num_heads,
                                    attn_ratio=attn_ratio, resolution=resolution)

    fwd = jax.jit(functools.partial(modified_transformer_forward,
                                    key_dim=key_dim, num_heads=num_heads,
                                    attn_ratio=attn_ratio, resolution=resolution))
    out = fwd(x, kparams)
    out = jax.block_until_ready(out)
    assert out.shape == (B, N, dim)

    ref = reference_forward(x, params, key_dim=key_dim, num_heads=num_heads,
                            attn_ratio=attn_ratio, resolution=resolution)
    err = float(jnp.max(jnp.abs(out - ref)))
    if not err < 5e-3:
        raise SystemExit(f"mismatch vs JAX reference: max abs err = {err}")
    print("KERNEL_OK")
</pallas_src>

<mosaic_0001>
module attributes {stable_mosaic.version = 11 : i64} {
  func.func @_fused_block_kernel(%arg0: i32, %arg1: memref<1x98x32xf32, #tpu.memory_space<vmem>>, %arg2: memref<9x128xf32, #tpu.memory_space<vmem>>, %arg3: memref<32x128xf32, #tpu.memory_space<vmem>>, %arg4: memref<9x64xf32, #tpu.memory_space<vmem>>, %arg5: memref<106x2xf32, #tpu.memory_space<vmem>>, %arg6: memref<4x49x49xf32, #tpu.memory_space<vmem>>, %arg7: memref<64x32xf32, #tpu.memory_space<vmem>>, %arg8: memref<32x128xf32, #tpu.memory_space<vmem>>, %arg9: memref<128x32xf32, #tpu.memory_space<vmem>>, %arg10: memref<1x98x32xf32, #tpu.memory_space<vmem>>, %arg11: memref<128x64xf32, #tpu.memory_space<vmem>>, %arg12: memref<98x128xf32, #tpu.memory_space<vmem>>, %arg13: memref<98x64xf32, #tpu.memory_space<vmem>>) attributes {dimension_semantics = [#tpu.dimension_semantics<parallel>], iteration_bounds = array<i64: 1>, scalar_prefetch = 0 : i64, scratch_operands = 3 : i64, tpu.core_type = #tpu.core_type<tc>, window_params = [{transform_indices = @transform_0, window_bounds = array<i64: 1, 98, 32>}, {pipeline_mode = #tpu.pipeline_mode<synchronous>, transform_indices = @transform_1, window_bounds = array<i64: 9, 128>}, {pipeline_mode = #tpu.pipeline_mode<synchronous>, transform_indices = @transform_2, window_bounds = array<i64: 32, 128>}, {pipeline_mode = #tpu.pipeline_mode<synchronous>, transform_indices = @transform_3, window_bounds = array<i64: 9, 64>}, {pipeline_mode = #tpu.pipeline_mode<synchronous>, transform_indices = @transform_4, window_bounds = array<i64: 106, 2>}, {pipeline_mode = #tpu.pipeline_mode<synchronous>, transform_indices = @transform_5, window_bounds = array<i64: 4, 49, 49>}, {pipeline_mode = #tpu.pipeline_mode<synchronous>, transform_indices = @transform_6, window_bounds = array<i64: 64, 32>}, {pipeline_mode = #tpu.pipeline_mode<synchronous>, transform_indices = @transform_7, window_bounds = array<i64: 32, 128>}, {pipeline_mode = #tpu.pipeline_mode<synchronous>, transform_indices = @transform_8, window_bounds = array<i64: 128, 32>}, {transform_indices = @transform_9, window_bounds = array<i64: 1, 98, 32>}]} {
    %c0 = arith.constant 0 : index
    %c0_0 = arith.constant 0 : index
    %0 = vector.load %arg2[%c0, %c0_0] : memref<9x128xf32, #tpu.memory_space<vmem>>, vector<1x32xf32>
    %c1 = arith.constant 1 : index
    %c0_1 = arith.constant 0 : index
    %1 = vector.load %arg2[%c1, %c0_1] : memref<9x128xf32, #tpu.memory_space<vmem>>, vector<1x32xf32>
    %c2 = arith.constant 2 : index
    %c0_2 = arith.constant 0 : index
    %2 = vector.load %arg2[%c2, %c0_2] : memref<9x128xf32, #tpu.memory_space<vmem>>, vector<1x128xf32>
    %c3 = arith.constant 3 : index
    %c0_3 = arith.constant 0 : index
    %3 = vector.load %arg2[%c3, %c0_3] : memref<9x128xf32, #tpu.memory_space<vmem>>, vector<1x64xf32>
    %c4 = arith.constant 4 : index
    %c0_4 = arith.constant 0 : index
    %4 = vector.load %arg2[%c4, %c0_4] : memref<9x128xf32, #tpu.memory_space<vmem>>, vector<1x32xf32>
    %c5 = arith.constant 5 : index
    %c0_5 = arith.constant 0 : index
    %5 = vector.load %arg2[%c5, %c0_5] : memref<9x128xf32, #tpu.memory_space<vmem>>, vector<1x32xf32>
    %c6 = arith.constant 6 : index
    %c0_6 = arith.constant 0 : index
    %6 = vector.load %arg2[%c6, %c0_6] : memref<9x128xf32, #tpu.memory_space<vmem>>, vector<1x32xf32>
    %c7 = arith.constant 7 : index
    %c0_7 = arith.constant 0 : index
    %7 = vector.load %arg2[%c7, %c0_7] : memref<9x128xf32, #tpu.memory_space<vmem>>, vector<1x128xf32>
    %c8 = arith.constant 8 : index
    %c0_8 = arith.constant 0 : index
    %8 = vector.load %arg2[%c8, %c0_8] : memref<9x128xf32, #tpu.memory_space<vmem>>, vector<1x32xf32>
    %c0_9 = arith.constant 0 : index
    %c0_10 = arith.constant 0 : index
    %c0_11 = arith.constant 0 : index
    %9 = vector.load %arg1[%c0_9, %c0_10, %c0_11] : memref<1x98x32xf32, #tpu.memory_space<vmem>>, vector<1x98x32xf32>
    %10 = vector.shape_cast %9 : vector<1x98x32xf32> to vector<98x32xf32>
    %cst = arith.constant dense<0.000000e+00> : vector<98xf32>
    %11 = vector.multi_reduction <add>, %10, %cst [1] : vector<98x32xf32> to vector<98xf32>
    %12 = vector.shape_cast %11 : vector<98xf32> to vector<98x1xf32>
    %cst_12 = arith.constant 3.200000e+01 : f32
    %13 = vector.broadcast %cst_12 : f32 to vector<98x1xf32>
    %14 = arith.divf %12, %13 : vector<98x1xf32>
    %15 = vector.broadcast %14 : vector<98x1xf32> to vector<98x32xf32>
    %16 = arith.subf %10, %15 : vector<98x32xf32>
    %17 = arith.mulf %16, %16 : vector<98x32xf32>
    %cst_13 = arith.constant dense<0.000000e+00> : vector<98xf32>
    %18 = vector.multi_reduction <add>, %17, %cst_13 [1] : vector<98x32xf32> to vector<98xf32>
    %19 = vector.shape_cast %18 : vector<98xf32> to vector<98x1xf32>
    %cst_14 = arith.constant 3.200000e+01 : f32
    %20 = vector.broadcast %cst_14 : f32 to vector<98x1xf32>
    %21 = arith.divf %19, %20 : vector<98x1xf32>
    %cst_15 = arith.constant 9.99999997E-7 : f32
    %22 = vector.broadcast %cst_15 : f32 to vector<98x1xf32>
    %23 = arith.addf %21, %22 : vector<98x1xf32>
    %24 = math.rsqrt %23 : vector<98x1xf32>
    %25 = vector.broadcast %24 : vector<98x1xf32> to vector<98x32xf32>
    %26 = arith.mulf %16, %25 : vector<98x32xf32>
    %27 = vector.broadcast %0 : vector<1x32xf32> to vector<98x32xf32>
    %28 = arith.mulf %26, %27 : vector<98x32xf32>
    %29 = vector.broadcast %1 : vector<1x32xf32> to vector<98x32xf32>
    %30 = arith.addf %28, %29 : vector<98x32xf32>
    %c0_16 = arith.constant 0 : index
    %c0_17 = arith.constant 0 : index
    %31 = vector.load %arg3[%c0_16, %c0_17] : memref<32x128xf32, #tpu.memory_space<vmem>>, vector<32x128xf32>
    %cst_18 = arith.constant dense<0.000000e+00> : vector<98x128xf32>
    %32 = tpu.matmul %30, %31, %cst_18 {dimension_numbers = #tpu.dot_dimension_numbers<[1], [0], [0], [1], [0, 0, 1, 1], [], []>} : vector<98x32xf32>, vector<32x128xf32>, vector<98x128xf32> -> vector<98x128xf32>
    %33 = vector.broadcast %2 : vector<1x128xf32> to vector<98x128xf32>
    %34 = arith.addf %32, %33 : vector<98x128xf32>
    %c0_19 = arith.constant 0 : index
    %c0_20 = arith.constant 0 : index
    %35 = vector.load %arg12[%c0_19, %c0_20] : memref<98x128xf32, #tpu.memory_space<vmem>>, vector<98x128xf32>
    tpu.vector_store %arg12[%c0_19, %c0_20], %34 {strides = array<i32>} : memref<98x128xf32, #tpu.memory_space<vmem>>, vector<98x128xf32>,
    %cst_21 = arith.constant 0.000000e+00 : f32
    %36 = vector.broadcast %cst_21 : f32 to vector<8x64xf32>
    %c0_22 = arith.constant 0 : index
    %c0_23 = arith.constant 0 : index
    %37 = vector.load %arg11[%c0_22, %c0_23] : memref<128x64xf32, #tpu.memory_space<vmem>>, vector<8x64xf32>
    tpu.vector_store %arg11[%c0_22, %c0_23], %36 {strides = array<i32>} : memref<128x64xf32, #tpu.memory_space<vmem>>, vector<8x64xf32>,
    %c57 = arith.constant 57 : index
    %c0_24 = arith.constant 0 : index
    %38 = vector.load %arg11[%c57, %c0_24] : memref<128x64xf32, #tpu.memory_space<vmem>>, vector<8x64xf32>
    tpu.vector_store %arg11[%c57, %c0_24], %36 {strides = array<i32>} : memref<128x64xf32, #tpu.memory_space<vmem>>, vector<8x64xf32>,
    %cst_25 = arith.constant 0.000000e+00 : f32
    %39 = vector.broadcast %cst_25 : f32 to vector<14x64xf32>
    %c114 = arith.constant 114 : index
    %c0_26 = arith.constant 0 : index
    %40 = vector.load %arg11[%c114, %c0_26] : memref<128x64xf32, #tpu.memory_space<vmem>>, vector<14x64xf32>
    tpu.vector_store %arg11[%c114, %c0_26], %39 {strides = array<i32>} : memref<128x64xf32, #tpu.memory_space<vmem>>, vector<14x64xf32>,
    %c0_27 = arith.constant 0 : index
    %c64 = arith.constant 64 : index
    %41 = vector.load %arg12[%c0_27, %c64] : memref<98x128xf32, #tpu.memory_space<vmem>>, vector<49x64xf32>
    %c8_28 = arith.constant 8 : index
    %c0_29 = arith.constant 0 : index
    %42 = vector.load %arg11[%c8_28, %c0_29] : memref<128x64xf32, #tpu.memory_space<vmem>>, vector<49x64xf32>
    tpu.vector_store %arg11[%c8_28, %c0_29], %41 {strides = array<i32>} : memref<128x64xf32, #tpu.memory_space<vmem>>, vector<49x64xf32>,
    %c49 = arith.constant 49 : index
    %c64_30 = arith.constant 64 : index
    %43 = vector.load %arg12[%c49, %c64_30] : memref<98x128xf32, #tpu.memory_space<vmem>>, vector<49x64xf32>
    %c65 = arith.constant 65 : index
    %c0_31 = arith.constant 0 : index
    %44 = vector.load %arg11[%c65, %c0_31] : memref<128x64xf32, #tpu.memory_space<vmem>>, vector<49x64xf32>
    tpu.vector_store %arg11[%c65, %c0_31], %43 {strides = array<i32>} : memref<128x64xf32, #tpu.memory_space<vmem>>, vector<49x64xf32>,
    %c0_32 = arith.constant 0 : index
    %c0_33 = arith.constant 0 : index
    %45 = vector.load %arg5[%c0_32, %c0_33] : memref<106x2xf32, #tpu.memory_space<vmem>>, vector<106x1xf32>
    %c0_34 = arith.constant 0 : index
    %c1_35 = arith.constant 1 : index
    %46 = vector.load %arg5[%c0_34, %c1_35] : memref<106x2xf32, #tpu.memory_space<vmem>>, vector<106x1xf32>
    %c0_36 = arith.constant 0 : index
    %c0_37 = arith.constant 0 : index
    %47 = vector.load %arg4[%c0_36, %c0_37] : memref<9x64xf32, #tpu.memory_space<vmem>>, vector<9x64xf32>
    %cst_38 = arith.constant 0.000000e+00 : f32
    %48 = vector.broadcast %cst_38 : f32 to vector<106x64xf32>
    %c0_39 = arith.constant 0 : index
    %c0_40 = arith.constant 0 : index
    %49 = vector.load %arg11[%c0_39, %c0_40] : memref<128x64xf32, #tpu.memory_space<vmem>>, vector<106x64xf32>
    %50 = vector.broadcast %45 : vector<106x1xf32> to vector<106x64xf32>
    %51 = arith.mulf %49, %50 : vector<106x64xf32>
    %52 = vector.extract_strided_slice %47 {offsets = [0, 0], sizes = [1, 64], strides = [1, 1]} : vector<9x64xf32> to vector<1x64xf32>
    %53 = vector.broadcast %52 : vector<1x64xf32> to vector<106x64xf32>
    %54 = arith.mulf %51, %53 : vector<106x64xf32>
    %55 = arith.addf %48, %54 : vector<106x64xf32>
    %c1_41 = arith.constant 1 : index
    %c0_42 = arith.constant 0 : index
    %56 = vector.load %arg11[%c1_41, %c0_42] : memref<128x64xf32, #tpu.memory_space<vmem>>, vector<106x64xf32>
    %57 = vector.extract_strided_slice %47 {offsets = [1, 0], sizes = [1, 64], strides = [1, 1]} : vector<9x64xf32> to vector<1x64xf32>
    %58 = vector.broadcast %57 : vector<1x64xf32> to vector<106x64xf32>
    %59 = arith.mulf %56, %58 : vector<106x64xf32>
    %60 = arith.addf %55, %59 : vector<106x64xf32>
    %c2_43 = arith.constant 2 : index
    %c0_44 = arith.constant 0 : index
    %61 = vector.load %arg11[%c2_43, %c0_44] : memref<128x64xf32, #tpu.memory_space<vmem>>, vector<106x64xf32>
    %62 = vector.broadcast %46 : vector<106x1xf32> to vector<106x64xf32>
    %63 = arith.mulf %61, %62 : vector<106x64xf32>
    %64 = vector.extract_strided_slice %47 {offsets = [2, 0], sizes = [1, 64], strides = [1, 1]} : vector<9x64xf32> to vector<1x64xf32>
    %65 = vector.broadcast %64 : vector<1x64xf32> to vector<106x64xf32>
    %66 = arith.mulf %63, %65 : vector<106x64xf32>
    %67 = arith.addf %60, %66 : vector<106x64xf32>
    %c7_45 = arith.constant 7 : index
    %c0_46 = arith.constant 0 : index
    %68 = vector.load %arg11[%c7_45, %c0_46] : memref<128x64xf32, #tpu.memory_space<vmem>>, vector<106x64xf32>
    %69 = vector.broadcast %45 : vector<106x1xf32> to vector<106x64xf32>
    %70 = arith.mulf %68, %69 : vector<106x64xf32>
    %71 = vector.extract_strided_slice %47 {offsets = [3, 0], sizes = [1, 64], strides = [1, 1]} : vector<9x64xf32> to vector<1x64xf32>
    %72 = vector.broadcast %71 : vector<1x64xf32> to vector<106x64xf32>
    %73 = arith.mulf %70, %72 : vector<106x64xf32>
    %74 = arith.addf %67, %73 : vector<106x64xf32>
    %c8_47 = arith.constant 8 : index
    %c0_48 = arith.constant 0 : index
    %75 = vector.load %arg11[%c8_47, %c0_48] : memref<128x64xf32, #tpu.memory_space<vmem>>, vector<106x64xf32>
    %76 = vector.extract_strided_slice %47 {offsets = [4, 0], sizes = [1, 64], strides = [1, 1]} : vector<9x64xf32> to vector<1x64xf32>
    %77 = vector.broadcast %76 : vector<1x64xf32> to vector<106x64xf32>
    %78 = arith.mulf %75, %77 : vector<106x64xf32>
    %79 = arith.addf %74, %78 : vector<106x64xf32>
    %c9 = arith.constant 9 : index
    %c0_49 = arith.constant 0 : index
    %80 = vector.load %arg11[%c9, %c0_49] : memref<128x64xf32, #tpu.memory_space<vmem>>, vector<106x64xf32>
    %81 = vector.broadcast %46 : vector<106x1xf32> to vector<106x64xf32>
    %82 = arith.mulf %80, %81 : vector<106x64xf32>
    %83 = vector.extract_strided_slice %47 {offsets = [5, 0], sizes = [1, 64], strides = [1, 1]} : vector<9x64xf32> to vector<1x64xf32>
    %84 = vector.broadcast %83 : vector<1x64xf32> to vector<106x64xf32>
    %85 = arith.mulf %82, %84 : vector<106x64xf32>
    %86 = arith.addf %79, %85 : vector<106x64xf32>
    %c14 = arith.constant 14 : index
    %c0_50 = arith.constant 0 : index
    %87 = vector.load %arg11[%c14, %c0_50] : memref<128x64xf32, #tpu.memory_space<vmem>>, vector<106x64xf32>
    %88 = vector.broadcast %45 : vector<106x1xf32> to vector<106x64xf32>
    %89 = arith.mulf %87, %88 : vector<106x64xf32>
    %90 = vector.extract_strided_slice %47 {offsets = [6, 0], sizes = [1, 64], strides = [1, 1]} : vector<9x64xf32> to vector<1x64xf32>
    %91 = vector.broadcast %90 : vector<1x64xf32> to vector<106x64xf32>
    %92 = arith.mulf %89, %91 : vector<106x64xf32>
    %93 = arith.addf %86, %92 : vector<106x64xf32>
    %c15 = arith.constant 15 : index
    %c0_51 = arith.constant 0 : index
    %94 = vector.load %arg11[%c15, %c0_51] : memref<128x64xf32, #tpu.memory_space<vmem>>, vector<106x64xf32>
    %95 = vector.extract_strided_slice %47 {offsets = [7, 0], sizes = [1, 64], strides = [1, 1]} : vector<9x64xf32> to vector<1x64xf32>
    %96 = vector.broadcast %95 : vector<1x64xf32> to vector<106x64xf32>
    %97 = arith.mulf %94, %96 : vector<106x64xf32>
    %98 = arith.addf %93, %97 : vector<106x64xf32>
    %c16 = arith.constant 16 : index
    %c0_52 = arith.constant 0 : index
    %99 = vector.load %arg11[%c16, %c0_52] : memref<128x64xf32, #tpu.memory_space<vmem>>, vector<106x64xf32>
    %100 = vector.broadcast %46 : vector<106x1xf32> to vector<106x64xf32>
    %101 = arith.mulf %99, %100 : vector<106x64xf32>
    %102 = vector.extract_strided_slice %47 {offsets = [8, 0], sizes = [1, 64], strides = [1, 1]} : vector<9x64xf32> to vector<1x64xf32>
    %103 = vector.broadcast %102 : vector<1x64xf32> to vector<106x64xf32>
    %104 = arith.mulf %101, %103 : vector<106x64xf32>
    %105 = arith.addf %98, %104 : vector<106x64xf32>
    %c8_53 = arith.constant 8 : index
    %c0_54 = arith.constant 0 : index
    %106 = vector.load %arg11[%c8_53, %c0_54] : memref<128x64xf32, #tpu.memory_space<vmem>>, vector<49x64xf32>
    %107 = vector.extract_strided_slice %105 {offsets = [0, 0], sizes = [49, 64], strides = [1, 1]} : vector<106x64xf32> to vector<49x64xf32>
    %108 = vector.broadcast %3 : vector<1x64xf32> to vector<49x64xf32>
    %109 = arith.addf %107, %108 : vector<49x64xf32>
    %cst_55 = arith.constant 5.000000e-01 : f32
    %110 = vector.broadcast %cst_55 : f32 to vector<49x64xf32>
    %111 = arith.mulf %110, %109 : vector<49x64xf32>
    %cst_56 = arith.constant 4.471500e-02 : f32
    %112 = vector.broadcast %cst_56 : f32 to vector<49x64xf32>
    %113 = arith.mulf %112, %109 : vector<49x64xf32>
    %114 = arith.mulf %113, %109 : vector<49x64xf32>
    %115 = arith.mulf %114, %109 : vector<49x64xf32>
    %116 = arith.addf %109, %115 : vector<49x64xf32>
    %cst_57 = arith.constant 0.797884583 : f32
    %117 = vector.broadcast %cst_57 : f32 to vector<49x64xf32>
    %118 = arith.mulf %117, %116 : vector<49x64xf32>
    %119 = math.tanh %118 : vector<49x64xf32>
    %cst_58 = arith.constant 1.000000e+00 : f32
    %120 = vector.broadcast %cst_58 : f32 to vector<49x64xf32>
    %121 = arith.addf %120, %119 : vector<49x64xf32>
    %122 = arith.mulf %111, %121 : vector<49x64xf32>
    %123 = arith.addf %106, %122 : vector<49x64xf32>
    %c8_59 = arith.constant 8 : index
    %c0_60 = arith.constant 0 : index
    %124 = vector.load %arg11[%c8_59, %c0_60] : memref<128x64xf32, #tpu.memory_space<vmem>>, vector<49x64xf32>
    tpu.vector_store %arg11[%c8_59, %c0_60], %123 {strides = array<i32>} : memref<128x64xf32, #tpu.memory_space<vmem>>, vector<49x64xf32>,
    %c65_61 = arith.constant 65 : index
    %c0_62 = arith.constant 0 : index
    %125 = vector.load %arg11[%c65_61, %c0_62] : memref<128x64xf32, #tpu.memory_space<vmem>>, vector<49x64xf32>
    %126 = vector.extract_strided_slice %105 {offsets = [57, 0], sizes = [49, 64], strides = [1, 1]} : vector<106x64xf32> to vector<49x64xf32>
    %127 = vector.broadcast %3 : vector<1x64xf32> to vector<49x64xf32>
    %128 = arith.addf %126, %127 : vector<49x64xf32>
    %cst_63 = arith.constant 5.000000e-01 : f32
    %129 = vector.broadcast %cst_63 : f32 to vector<49x64xf32>
    %130 = arith.mulf %129, %128 : vector<49x64xf32>
    %cst_64 = arith.constant 4.471500e-02 : f32
    %131 = vector.broadcast %cst_64 : f32 to vector<49x64xf32>
    %132 = arith.mulf %131, %128 : vector<49x64xf32>
    %133 = arith.mulf %132, %128 : vector<49x64xf32>
    %134 = arith.mulf %133, %128 : vector<49x64xf32>
    %135 = arith.addf %128, %134 : vector<49x64xf32>
    %cst_65 = arith.constant 0.797884583 : f32
    %136 = vector.broadcast %cst_65 : f32 to vector<49x64xf32>
    %137 = arith.mulf %136, %135 : vector<49x64xf32>
    %138 = math.tanh %137 : vector<49x64xf32>
    %cst_66 = arith.constant 1.000000e+00 : f32
    %139 = vector.broadcast %cst_66 : f32 to vector<49x64xf32>
    %140 = arith.addf %139, %138 : vector<49x64xf32>
    %141 = arith.mulf %130, %140 : vector<49x64xf32>
    %142 = arith.addf %125, %141 : vector<49x64xf32>
    %c65_67 = arith.constant 65 : index
    %c0_68 = arith.constant 0 : index
    %143 = vector.load %arg11[%c65_67, %c0_68] : memref<128x64xf32, #tpu.memory_space<vmem>>, vector<49x64xf32>
    tpu.vector_store %arg11[%c65_67, %c0_68], %142 {strides = array<i32>} : memref<128x64xf32, #tpu.memory_space<vmem>>, vector<49x64xf32>,
    %c0_69 = arith.constant 0 : index
    %c0_70 = arith.constant 0 : index
    %144 = vector.load %arg12[%c0_69, %c0_70] : memref<98x128xf32, #tpu.memory_space<vmem>>, vector<49x8xf32>
    %c0_71 = arith.constant 0 : index
    %c32 = arith.constant 32 : index
    %145 = vector.load %arg12[%c0_71, %c32] : memref<98x128xf32, #tpu.memory_space<vmem>>, vector<49x8xf32>
    %cst_72 = arith.constant dense<0.000000e+00> : vector<49x49xf32>
    %146 = tpu.matmul %144, %145, %cst_72 {dimension_numbers = #tpu.dot_dimension_numbers<[1], [1], [0], [0], [0, 0, 1, 0], [], []>} : vector<49x8xf32>, vector<49x8xf32>, vector<49x49xf32> -> vector<49x49xf32>
    %c0_73 = arith.constant 0 : index
    %c0_74 = arith.constant 0 : index
    %c0_75 = arith.constant 0 : index
    %147 = vector.load %arg6[%c0_73, %c0_74, %c0_75] : memref<4x49x49xf32, #tpu.memory_space<vmem>>, vector<1x49x49xf32>
    %148 = vector.shape_cast %147 : vector<1x49x49xf32> to vector<49x49xf32>
    %149 = arith.addf %146, %148 : vector<49x49xf32>
    %cst_76 = arith.constant dense<0xFF800000> : vector<49xf32>
    %150 = vector.multi_reduction <maximumf>, %149, %cst_76 [1] : vector<49x49xf32> to vector<49xf32>
    %151 = vector.shape_cast %150 : vector<49xf32> to vector<49x1xf32>
    %152 = vector.broadcast %151 : vector<49x1xf32> to vector<49x49xf32>
    %153 = arith.subf %149, %152 : vector<49x49xf32>
    %154 = math.exp %153 : vector<49x49xf32>
    %cst_77 = arith.constant dense<0.000000e+00> : vector<49xf32>
    %155 = vector.multi_reduction <add>, %154, %cst_77 [1] : vector<49x49xf32> to vector<49xf32>
    %156 = vector.shape_cast %155 : vector<49xf32> to vector<49x1xf32>
    %157 = tpu.reciprocal %156 {approx = true} : vector<49x1xf32> -> vector<49x1xf32>
    %158 = vector.broadcast %157 : vector<49x1xf32> to vector<49x49xf32>
    %159 = arith.mulf %154, %158 : vector<49x49xf32>
    %c8_78 = arith.constant 8 : index
    %c0_79 = arith.constant 0 : index
    %160 = vector.load %arg11[%c8_78, %c0_79] : memref<128x64xf32, #tpu.memory_space<vmem>>, vector<49x16xf32>
    %cst_80 = arith.constant dense<0.000000e+00> : vector<49x16xf32>
    %161 = tpu.matmul %159, %160, %cst_80 {dimension_numbers = #tpu.dot_dimension_numbers<[1], [0], [0], [1], [0, 0, 1, 1], [], []>} : vector<49x49xf32>, vector<49x16xf32>, vector<49x16xf32> -> vector<49x16xf32>
    %c0_81 = arith.constant 0 : index
    %c0_82 = arith.constant 0 : index
    %162 = vector.load %arg13[%c0_81, %c0_82] : memref<98x64xf32, #tpu.memory_space<vmem>>, vector<49x16xf32>
    tpu.vector_store %arg13[%c0_81, %c0_82], %161 {strides = array<i32>} : memref<98x64xf32, #tpu.memory_space<vmem>>, vector<49x16xf32>,
    %c0_83 = arith.constant 0 : index
    %c8_84 = arith.constant 8 : index
    %163 = vector.load %arg12[%c0_83, %c8_84] : memref<98x128xf32, #tpu.memory_space<vmem>>, vector<49x8xf32>
    %c0_85 = arith.constant 0 : index
    %c40 = arith.constant 40 : index
    %164 = vector.load %arg12[%c0_85, %c40] : memref<98x128xf32, #tpu.memory_space<vmem>>, vector<49x8xf32>
    %cst_86 = arith.constant dense<0.000000e+00> : vector<49x49xf32>
    %165 = tpu.matmul %163, %164, %cst_86 {dimension_numbers = #tpu.dot_dimension_numbers<[1], [1], [0], [0], [0, 0, 1, 0], [], []>} : vector<49x8xf32>, vector<49x8xf32>, vector<49x49xf32> -> vector<49x49xf32>
    %c1_87 = arith.constant 1 : index
    %c0_88 = arith.constant 0 : index
    %c0_89 = arith.constant 0 : index
    %166 = vector.load %arg6[%c1_87, %c0_88, %c0_89] : memref<4x49x49xf32, #tpu.memory_space<vmem>>, vector<1x49x49xf32>
    %167 = vector.shape_cast %166 : vector<1x49x49xf32> to vector<49x49xf32>
    %168 = arith.addf %165, %167 : vector<49x49xf32>
    %cst_90 = arith.constant dense<0xFF800000> : vector<49xf32>
    %169 = vector.multi_reduction <maximumf>, %168, %cst_90 [1] : vector<49x49xf32> to vector<49xf32>
    %170 = vector.shape_cast %169 : vector<49xf32> to vector<49x1xf32>
    %171 = vector.broadcast %170 : vector<49x1xf32> to vector<49x49xf32>
    %172 = arith.subf %168, %171 : vector<49x49xf32>
    %173 = math.exp %172 : vector<49x49xf32>
    %cst_91 = arith.constant dense<0.000000e+00> : vector<49xf32>
    %174 = vector.multi_reduction <add>, %173, %cst_91 [1] : vector<49x49xf32> to vector<49xf32>
    %175 = vector.shape_cast %174 : vector<49xf32> to vector<49x1xf32>
    %176 = tpu.reciprocal %175 {approx = true} : vector<49x1xf32> -> vector<49x1xf32>
    %177 = vector.broadcast %176 : vector<49x1xf32> to vector<49x49xf32>
    %178 = arith.mulf %173, %177 : vector<49x49xf32>
    %c8_92 = arith.constant 8 : index
    %c16_93 = arith.constant 16 : index
    %179 = vector.load %arg11[%c8_92, %c16_93] : memref<128x64xf32, #tpu.memory_space<vmem>>, vector<49x16xf32>
    %cst_94 = arith.constant dense<0.000000e+00> : vector<49x16xf32>
    %180 = tpu.matmul %178, %179, %cst_94 {dimension_numbers = #tpu.dot_dimension_numbers<[1], [0], [0], [1], [0, 0, 1, 1], [], []>} : vector<49x49xf32>, vector<49x16xf32>, vector<49x16xf32> -> vector<49x16xf32>
    %c0_95 = arith.constant 0 : index
    %c16_96 = arith.constant 16 : index
    %181 = vector.load %arg13[%c0_95, %c16_96] : memref<98x64xf32, #tpu.memory_space<vmem>>, vector<49x16xf32>
    tpu.vector_store %arg13[%c0_95, %c16_96], %180 {strides = array<i32>} : memref<98x64xf32, #tpu.memory_space<vmem>>, vector<49x16xf32>,
    %c0_97 = arith.constant 0 : index
    %c16_98 = arith.constant 16 : index
    %182 = vector.load %arg12[%c0_97, %c16_98] : memref<98x128xf32, #tpu.memory_space<vmem>>, vector<49x8xf32>
    %c0_99 = arith.constant 0 : index
    %c48 = arith.constant 48 : index
    %183 = vector.load %arg12[%c0_99, %c48] : memref<98x128xf32, #tpu.memory_space<vmem>>, vector<49x8xf32>
    %cst_100 = arith.constant dense<0.000000e+00> : vector<49x49xf32>
    %184 = tpu.matmul %182, %183, %cst_100 {dimension_numbers = #tpu.dot_dimension_numbers<[1], [1], [0], [0], [0, 0, 1, 0], [], []>} : vector<49x8xf32>, vector<49x8xf32>, vector<49x49xf32> -> vector<49x49xf32>
    %c2_101 = arith.constant 2 : index
    %c0_102 = arith.constant 0 : index
    %c0_103 = arith.constant 0 : index
    %185 = vector.load %arg6[%c2_101, %c0_102, %c0_103] : memref<4x49x49xf32, #tpu.memory_space<vmem>>, vector<1x49x49xf32>
    %186 = vector.shape_cast %185 : vector<1x49x49xf32> to vector<49x49xf32>
    %187 = arith.addf %184, %186 : vector<49x49xf32>
    %cst_104 = arith.constant dense<0xFF800000> : vector<49xf32>
    %188 = vector.multi_reduction <maximumf>, %187, %cst_104 [1] : vector<49x49xf32> to vector<49xf32>
    %189 = vector.shape_cast %188 : vector<49xf32> to vector<49x1xf32>
    %190 = vector.broadcast %189 : vector<49x1xf32> to vector<49x49xf32>
    %191 = arith.subf %187, %190 : vector<49x49xf32>
    %192 = math.exp %191 : vector<49x49xf32>
    %cst_105 = arith.constant dense<0.000000e+00> : vector<49xf32>
    %193 = vector.multi_reduction <add>, %192, %cst_105 [1] : vector<49x49xf32> to vector<49xf32>
    %194 = vector.shape_cast %193 : vector<49xf32> to vector<49x1xf32>
    %195 = tpu.reciprocal %194 {approx = true} : vector<49x1xf32> -> vector<49x1xf32>
    %196 = vector.broadcast %195 : vector<49x1xf32> to vector<49x49xf32>
    %197 = arith.mulf %192, %196 : vector<49x49xf32>
    %c8_106 = arith.constant 8 : index
    %c32_107 = arith.constant 32 : index
    %198 = vector.load %arg11[%c8_106, %c32_107] : memref<128x64xf32, #tpu.memory_space<vmem>>, vector<49x16xf32>
    %cst_108 = arith.constant dense<0.000000e+00> : vector<49x16xf32>
    %199 = tpu.matmul %197, %198, %cst_108 {dimension_numbers = #tpu.dot_dimension_numbers<[1], [0], [0], [1], [0, 0, 1, 1], [], []>} : vector<49x49xf32>, vector<49x16xf32>, vector<49x16xf32> -> vector<49x16xf32>
    %c0_109 = arith.constant 0 : index
    %c32_110 = arith.constant 32 : index
    %200 = vector.load %arg13[%c0_109, %c32_110] : memref<98x64xf32, #tpu.memory_space<vmem>>, vector<49x16xf32>
    tpu.vector_store %arg13[%c0_109, %c32_110], %199 {strides = array<i32>} : memref<98x64xf32, #tpu.memory_space<vmem>>, vector<49x16xf32>,
    %c0_111 = arith.constant 0 : index
    %c24 = arith.constant 24 : index
    %201 = vector.load %arg12[%c0_111, %c24] : memref<98x128xf32, #tpu.memory_space<vmem>>, vector<49x8xf32>
    %c0_112 = arith.constant 0 : index
    %c56 = arith.constant 56 : index
    %202 = vector.load %arg12[%c0_112, %c56] : memref<98x128xf32, #tpu.memory_space<vmem>>, vector<49x8xf32>
    %cst_113 = arith.constant dense<0.000000e+00> : vector<49x49xf32>
    %203 = tpu.matmul %201, %202, %cst_113 {dimension_numbers = #tpu.dot_dimension_numbers<[1], [1], [0], [0], [0, 0, 1, 0], [], []>} : vector<49x8xf32>, vector<49x8xf32>, vector<49x49xf32> -> vector<49x49xf32>
    %c3_114 = arith.constant 3 : index
    %c0_115 = arith.constant 0 : index
    %c0_116 = arith.constant 0 : index
    %204 = vector.load %arg6[%c3_114, %c0_115, %c0_116] : memref<4x49x49xf32, #tpu.memory_space<vmem>>, vector<1x49x49xf32>
    %205 = vector.shape_cast %204 : vector<1x49x49xf32> to vector<49x49xf32>
    %206 = arith.addf %203, %205 : vector<49x49xf32>
    %cst_117 = arith.constant dense<0xFF800000> : vector<49xf32>
    %207 = vector.multi_reduction <maximumf>, %206, %cst_117 [1] : vector<49x49xf32> to vector<49xf32>
    %208 = vector.shape_cast %207 : vector<49xf32> to vector<49x1xf32>
    %209 = vector.broadcast %208 : vector<49x1xf32> to vector<49x49xf32>
    %210 = arith.subf %206, %209 : vector<49x49xf32>
    %211 = math.exp %210 : vector<49x49xf32>
    %cst_118 = arith.constant dense<0.000000e+00> : vector<49xf32>
    %212 = vector.multi_reduction <add>, %211, %cst_118 [1] : vector<49x49xf32> to vector<49xf32>
    %213 = vector.shape_cast %212 : vector<49xf32> to vector<49x1xf32>
    %214 = tpu.reciprocal %213 {approx = true} : vector<49x1xf32> -> vector<49x1xf32>
    %215 = vector.broadcast %214 : vector<49x1xf32> to vector<49x49xf32>
    %216 = arith.mulf %211, %215 : vector<49x49xf32>
    %c8_119 = arith.constant 8 : index
    %c48_120 = arith.constant 48 : index
    %217 = vector.load %arg11[%c8_119, %c48_120] : memref<128x64xf32, #tpu.memory_space<vmem>>, vector<49x16xf32>
    %cst_121 = arith.constant dense<0.000000e+00> : vector<49x16xf32>
    %218 = tpu.matmul %216, %217, %cst_121 {dimension_numbers = #tpu.dot_dimension_numbers<[1], [0], [0], [1], [0, 0, 1, 1], [], []>} : vector<49x49xf32>, vector<49x16xf32>, vector<49x16xf32> -> vector<49x16xf32>
    %c0_122 = arith.constant 0 : index
    %c48_123 = arith.constant 48 : index
    %219 = vector.load %arg13[%c0_122, %c48_123] : memref<98x64xf32, #tpu.memory_space<vmem>>, vector<49x16xf32>
    tpu.vector_store %arg13[%c0_122, %c48_123], %218 {strides = array<i32>} : memref<98x64xf32, #tpu.memory_space<vmem>>, vector<49x16xf32>,
    %c49_124 = arith.constant 49 : index
    %c0_125 = arith.constant 0 : index
    %220 = vector.load %arg12[%c49_124, %c0_125] : memref<98x128xf32, #tpu.memory_space<vmem>>, vector<49x8xf32>
    %c49_126 = arith.constant 49 : index
    %c32_127 = arith.constant 32 : index
    %221 = vector.load %arg12[%c49_126, %c32_127] : memref<98x128xf32, #tpu.memory_space<vmem>>, vector<49x8xf32>
    %cst_128 = arith.constant dense<0.000000e+00> : vector<49x49xf32>
    %222 = tpu.matmul %220, %221, %cst_128 {dimension_numbers = #tpu.dot_dimension_numbers<[1], [1], [0], [0], [0, 0, 1, 0], [], []>} : vector<49x8xf32>, vector<49x8xf32>, vector<49x49xf32> -> vector<49x49xf32>
    %c0_129 = arith.constant 0 : index
    %c0_130 = arith.constant 0 : index
    %c0_131 = arith.constant 0 : index
    %223 = vector.load %arg6[%c0_129, %c0_130, %c0_131] : memref<4x49x49xf32, #tpu.memory_space<vmem>>, vector<1x49x49xf32>
    %224 = vector.shape_cast %223 : vector<1x49x49xf32> to vector<49x49xf32>
    %225 = arith.addf %222, %224 : vector<49x49xf32>
    %cst_132 = arith.constant dense<0xFF800000> : vector<49xf32>
    %226 = vector.multi_reduction <maximumf>, %225, %cst_132 [1] : vector<49x49xf32> to vector<49xf32>
    %227 = vector.shape_cast %226 : vector<49xf32> to vector<49x1xf32>
    %228 = vector.broadcast %227 : vector<49x1xf32> to vector<49x49xf32>
    %229 = arith.subf %225, %228 : vector<49x49xf32>
    %230 = math.exp %229 : vector<49x49xf32>
    %cst_133 = arith.constant dense<0.000000e+00> : vector<49xf32>
    %231 = vector.multi_reduction <add>, %230, %cst_133 [1] : vector<49x49xf32> to vector<49xf32>
    %232 = vector.shape_cast %231 : vector<49xf32> to vector<49x1xf32>
    %233 = tpu.reciprocal %232 {approx = true} : vector<49x1xf32> -> vector<49x1xf32>
    %234 = vector.broadcast %233 : vector<49x1xf32> to vector<49x49xf32>
    %235 = arith.mulf %230, %234 : vector<49x49xf32>
    %c65_134 = arith.constant 65 : index
    %c0_135 = arith.constant 0 : index
    %236 = vector.load %arg11[%c65_134, %c0_135] : memref<128x64xf32, #tpu.memory_space<vmem>>, vector<49x16xf32>
    %cst_136 = arith.constant dense<0.000000e+00> : vector<49x16xf32>
    %237 = tpu.matmul %235, %236, %cst_136 {dimension_numbers = #tpu.dot_dimension_numbers<[1], [0], [0], [1], [0, 0, 1, 1], [], []>} : vector<49x49xf32>, vector<49x16xf32>, vector<49x16xf32> -> vector<49x16xf32>
    %c49_137 = arith.constant 49 : index
    %c0_138 = arith.constant 0 : index
    %238 = vector.load %arg13[%c49_137, %c0_138] : memref<98x64xf32, #tpu.memory_space<vmem>>, vector<49x16xf32>
    tpu.vector_store %arg13[%c49_137, %c0_138], %237 {strides = array<i32>} : memref<98x64xf32, #tpu.memory_space<vmem>>, vector<49x16xf32>,
    %c49_139 = arith.constant 49 : index
    %c8_140 = arith.constant 8 : index
    %239 = vector.load %arg12[%c49_139, %c8_140] : memref<98x128xf32, #tpu.memory_space<vmem>>, vector<49x8xf32>
    %c49_141 = arith.constant 49 : index
    %c40_142 = arith.constant 40 : index
    %240 = vector.load %arg12[%c49_141, %c40_142] : memref<98x128xf32, #tpu.memory_space<vmem>>, vector<49x8xf32>
    %cst_143 = arith.constant dense<0.000000e+00> : vector<49x49xf32>
    %241 = tpu.matmul %239, %240, %cst_143 {dimension_numbers = #tpu.dot_dimension_numbers<[1], [1], [0], [0], [0, 0, 1, 0], [], []>} : vector<49x8xf32>, vector<49x8xf32>, vector<49x49xf32> -> vector<49x49xf32>
    %c1_144 = arith.constant 1 : index
    %c0_145 = arith.constant 0 : index
    %c0_146 = arith.constant 0 : index
    %242 = vector.load %arg6[%c1_144, %c0_145, %c0_146] : memref<4x49x49xf32, #tpu.memory_space<vmem>>, vector<1x49x49xf32>
    %243 = vector.shape_cast %242 : vector<1x49x49xf32> to vector<49x49xf32>
    %244 = arith.addf %241, %243 : vector<49x49xf32>
    %cst_147 = arith.constant dense<0xFF800000> : vector<49xf32>
    %245 = vector.multi_reduction <maximumf>, %244, %cst_147 [1] : vector<49x49xf32> to vector<49xf32>
    %246 = vector.shape_cast %245 : vector<49xf32> to vector<49x1xf32>
    %247 = vector.broadcast %246 : vector<49x1xf32> to vector<49x49xf32>
    %248 = arith.subf %244, %247 : vector<49x49xf32>
    %249 = math.exp %248 : vector<49x49xf32>
    %cst_148 = arith.constant dense<0.000000e+00> : vector<49xf32>
    %250 = vector.multi_reduction <add>, %249, %cst_148 [1] : vector<49x49xf32> to vector<49xf32>
    %251 = vector.shape_cast %250 : vector<49xf32> to vector<49x1xf32>
    %252 = tpu.reciprocal %251 {approx = true} : vector<49x1xf32> -> vector<49x1xf32>
    %253 = vector.broadcast %252 : vector<49x1xf32> to vector<49x49xf32>
    %254 = arith.mulf %249, %253 : vector<49x49xf32>
    %c65_149 = arith.constant 65 : index
    %c16_150 = arith.constant 16 : index
    %255 = vector.load %arg11[%c65_149, %c16_150] : memref<128x64xf32, #tpu.memory_space<vmem>>, vector<49x16xf32>
    %cst_151 = arith.constant dense<0.000000e+00> : vector<49x16xf32>
    %256 = tpu.matmul %254, %255, %cst_151 {dimension_numbers = #tpu.dot_dimension_numbers<[1], [0], [0], [1], [0, 0, 1, 1], [], []>} : vector<49x49xf32>, vector<49x16xf32>, vector<49x16xf32> -> vector<49x16xf32>
    %c49_152 = arith.constant 49 : index
    %c16_153 = arith.constant 16 : index
    %257 = vector.load %arg13[%c49_152, %c16_153] : memref<98x64xf32, #tpu.memory_space<vmem>>, vector<49x16xf32>
    tpu.vector_store %arg13[%c49_152, %c16_153], %256 {strides = array<i32>} : memref<98x64xf32, #tpu.memory_space<vmem>>, vector<49x16xf32>,
    %c49_154 = arith.constant 49 : index
    %c16_155 = arith.constant 16 : index
    %258 = vector.load %arg12[%c49_154, %c16_155] : memref<98x128xf32, #tpu.memory_space<vmem>>, vector<49x8xf32>
    %c49_156 = arith.constant 49 : index
    %c48_157 = arith.constant 48 : index
    %259 = vector.load %arg12[%c49_156, %c48_157] : memref<98x128xf32, #tpu.memory_space<vmem>>, vector<49x8xf32>
    %cst_158 = arith.constant dense<0.000000e+00> : vector<49x49xf32>
    %260 = tpu.matmul %258, %259, %cst_158 {dimension_numbers = #tpu.dot_dimension_numbers<[1], [1], [0], [0], [0, 0, 1, 0], [], []>} : vector<49x8xf32>, vector<49x8xf32>, vector<49x49xf32> -> vector<49x49xf32>
    %c2_159 = arith.constant 2 : index
    %c0_160 = arith.constant 0 : index
    %c0_161 = arith.constant 0 : index
    %261 = vector.load %arg6[%c2_159, %c0_160, %c0_161] : memref<4x49x49xf32, #tpu.memory_space<vmem>>, vector<1x49x49xf32>
    %262 = vector.shape_cast %261 : vector<1x49x49xf32> to vector<49x49xf32>
    %263 = arith.addf %260, %262 : vector<49x49xf32>
    %cst_162 = arith.constant dense<0xFF800000> : vector<49xf32>
    %264 = vector.multi_reduction <maximumf>, %263, %cst_162 [1] : vector<49x49xf32> to vector<49xf32>
    %265 = vector.shape_cast %264 : vector<49xf32> to vector<49x1xf32>
    %266 = vector.broadcast %265 : vector<49x1xf32> to vector<49x49xf32>
    %267 = arith.subf %263, %266 : vector<49x49xf32>
    %268 = math.exp %267 : vector<49x49xf32>
    %cst_163 = arith.constant dense<0.000000e+00> : vector<49xf32>
    %269 = vector.multi_reduction <add>, %268, %cst_163 [1] : vector<49x49xf32> to vector<49xf32>
    %270 = vector.shape_cast %269 : vector<49xf32> to vector<49x1xf32>
    %271 = tpu.reciprocal %270 {approx = true} : vector<49x1xf32> -> vector<49x1xf32>
    %272 = vector.broadcast %271 : vector<49x1xf32> to vector<49x49xf32>
    %273 = arith.mulf %268, %272 : vector<49x49xf32>
    %c65_164 = arith.constant 65 : index
    %c32_165 = arith.constant 32 : index
    %274 = vector.load %arg11[%c65_164, %c32_165] : memref<128x64xf32, #tpu.memory_space<vmem>>, vector<49x16xf32>
    %cst_166 = arith.constant dense<0.000000e+00> : vector<49x16xf32>
    %275 = tpu.matmul %273, %274, %cst_166 {dimension_numbers = #tpu.dot_dimension_numbers<[1], [0], [0], [1], [0, 0, 1, 1], [], []>} : vector<49x49xf32>, vector<49x16xf32>, vector<49x16xf32> -> vector<49x16xf32>
    %c49_167 = arith.constant 49 : index
    %c32_168 = arith.constant 32 : index
    %276 = vector.load %arg13[%c49_167, %c32_168] : memref<98x64xf32, #tpu.memory_space<vmem>>, vector<49x16xf32>
    tpu.vector_store %arg13[%c49_167, %c32_168], %275 {strides = array<i32>} : memref<98x64xf32, #tpu.memory_space<vmem>>, vector<49x16xf32>,
    %c49_169 = arith.constant 49 : index
    %c24_170 = arith.constant 24 : index
    %277 = vector.load %arg12[%c49_169, %c24_170] : memref<98x128xf32, #tpu.memory_space<vmem>>, vector<49x8xf32>
    %c49_171 = arith.constant 49 : index
    %c56_172 = arith.constant 56 : index
    %278 = vector.load %arg12[%c49_171, %c56_172] : memref<98x128xf32, #tpu.memory_space<vmem>>, vector<49x8xf32>
    %cst_173 = arith.constant dense<0.000000e+00> : vector<49x49xf32>
    %279 = tpu.matmul %277, %278, %cst_173 {dimension_numbers = #tpu.dot_dimension_numbers<[1], [1], [0], [0], [0, 0, 1, 0], [], []>} : vector<49x8xf32>, vector<49x8xf32>, vector<49x49xf32> -> vector<49x49xf32>
    %c3_174 = arith.constant 3 : index
    %c0_175 = arith.constant 0 : index
    %c0_176 = arith.constant 0 : index
    %280 = vector.load %arg6[%c3_174, %c0_175, %c0_176] : memref<4x49x49xf32, #tpu.memory_space<vmem>>, vector<1x49x49xf32>
    %281 = vector.shape_cast %280 : vector<1x49x49xf32> to vector<49x49xf32>
    %282 = arith.addf %279, %281 : vector<49x49xf32>
    %cst_177 = arith.constant dense<0xFF800000> : vector<49xf32>
    %283 = vector.multi_reduction <maximumf>, %282, %cst_177 [1] : vector<49x49xf32> to vector<49xf32>
    %284 = vector.shape_cast %283 : vector<49xf32> to vector<49x1xf32>
    %285 = vector.broadcast %284 : vector<49x1xf32> to vector<49x49xf32>
    %286 = arith.subf %282, %285 : vector<49x49xf32>
    %287 = math.exp %286 : vector<49x49xf32>
    %cst_178 = arith.constant dense<0.000000e+00> : vector<49xf32>
    %288 = vector.multi_reduction <add>, %287, %cst_178 [1] : vector<49x49xf32> to vector<49xf32>
    %289 = vector.shape_cast %288 : vector<49xf32> to vector<49x1xf32>
    %290 = tpu.reciprocal %289 {approx = true} : vector<49x1xf32> -> vector<49x1xf32>
    %291 = vector.broadcast %290 : vector<49x1xf32> to vector<49x49xf32>
    %292 = arith.mulf %287, %291 : vector<49x49xf32>
    %c65_179 = arith.constant 65 : index
    %c48_180 = arith.constant 48 : index
    %293 = vector.load %arg11[%c65_179, %c48_180] : memref<128x64xf32, #tpu.memory_space<vmem>>, vector<49x16xf32>
    %cst_181 = arith.constant dense<0.000000e+00> : vector<49x16xf32>
    %294 = tpu.matmul %292, %293, %cst_181 {dimension_numbers = #tpu.dot_dimension_numbers<[1], [0], [0], [1], [0, 0, 1, 1], [], []>} : vector<49x49xf32>, vector<49x16xf32>, vector<49x16xf32> -> vector<49x16xf32>
    %c49_182 = arith.constant 49 : index
    %c48_183 = arith.constant 48 : index
    %295 = vector.load %arg13[%c49_182, %c48_183] : memref<98x64xf32, #tpu.memory_space<vmem>>, vector<49x16xf32>
    tpu.vector_store %arg13[%c49_182, %c48_183], %294 {strides = array<i32>} : memref<98x64xf32, #tpu.memory_space<vmem>>, vector<49x16xf32>,
    %c0_184 = arith.constant 0 : index
    %c0_185 = arith.constant 0 : index
    %c0_186 = arith.constant 0 : index
    %296 = vector.load %arg1[%c0_184, %c0_185, %c0_186] : memref<1x98x32xf32, #tpu.memory_space<vmem>>, vector<1x98x32xf32>
    %297 = vector.shape_cast %296 : vector<1x98x32xf32> to vector<98x32xf32>
    %c0_187 = arith.constant 0 : index
    %c0_188 = arith.constant 0 : index
    %298 = vector.load %arg13[%c0_187, %c0_188] : memref<98x64xf32, #tpu.memory_space<vmem>>, vector<98x64xf32>
    %c0_189 = arith.constant 0 : index
    %c0_190 = arith.constant 0 : index
    %299 = vector.load %arg7[%c0_189, %c0_190] : memref<64x32xf32, #tpu.memory_space<vmem>>, vector<64x32xf32>
    %cst_191 = arith.constant dense<0.000000e+00> : vector<98x32xf32>
    %300 = tpu.matmul %298, %299, %cst_191 {dimension_numbers = #tpu.dot_dimension_numbers<[1], [0], [0], [1], [0, 0, 1, 1], [], []>} : vector<98x64xf32>, vector<64x32xf32>, vector<98x32xf32> -> vector<98x32xf32>
    %301 = arith.addf %297, %300 : vector<98x32xf32>
    %302 = vector.broadcast %4 : vector<1x32xf32> to vector<98x32xf32>
    %303 = arith.addf %301, %302 : vector<98x32xf32>
    %cst_192 = arith.constant dense<0.000000e+00> : vector<98xf32>
    %304 = vector.multi_reduction <add>, %303, %cst_192 [1] : vector<98x32xf32> to vector<98xf32>
    %305 = vector.shape_cast %304 : vector<98xf32> to vector<98x1xf32>
    %cst_193 = arith.constant 3.200000e+01 : f32
    %306 = vector.broadcast %cst_193 : f32 to vector<98x1xf32>
    %307 = arith.divf %305, %306 : vector<98x1xf32>
    %308 = vector.broadcast %307 : vector<98x1xf32> to vector<98x32xf32>
    %309 = arith.subf %303, %308 : vector<98x32xf32>
    %310 = arith.mulf %309, %309 : vector<98x32xf32>
    %cst_194 = arith.constant dense<0.000000e+00> : vector<98xf32>
    %311 = vector.multi_reduction <add>, %310, %cst_194 [1] : vector<98x32xf32> to vector<98xf32>
    %312 = vector.shape_cast %311 : vector<98xf32> to vector<98x1xf32>
    %cst_195 = arith.constant 3.200000e+01 : f32
    %313 = vector.broadcast %cst_195 : f32 to vector<98x1xf32>
    %314 = arith.divf %312, %313 : vector<98x1xf32>
    %cst_196 = arith.constant 9.99999997E-7 : f32
    %315 = vector.broadcast %cst_196 : f32 to vector<98x1xf32>
    %316 = arith.addf %314, %315 : vector<98x1xf32>
    %317 = math.rsqrt %316 : vector<98x1xf32>
    %318 = vector.broadcast %317 : vector<98x1xf32> to vector<98x32xf32>
    %319 = arith.mulf %309, %318 : vector<98x32xf32>
    %320 = vector.broadcast %5 : vector<1x32xf32> to vector<98x32xf32>
    %321 = arith.mulf %319, %320 : vector<98x32xf32>
    %322 = vector.broadcast %6 : vector<1x32xf32> to vector<98x32xf32>
    %323 = arith.addf %321, %322 : vector<98x32xf32>
    %c0_197 = arith.constant 0 : index
    %c0_198 = arith.constant 0 : index
    %324 = vector.load %arg8[%c0_197, %c0_198] : memref<32x128xf32, #tpu.memory_space<vmem>>, vector<32x128xf32>
    %cst_199 = arith.constant dense<0.000000e+00> : vector<98x128xf32>
    %325 = tpu.matmul %323, %324, %cst_199 {dimension_numbers = #tpu.dot_dimension_numbers<[1], [0], [0], [1], [0, 0, 1, 1], [], []>} : vector<98x32xf32>, vector<32x128xf32>, vector<98x128xf32> -> vector<98x128xf32>
    %326 = vector.broadcast %7 : vector<1x128xf32> to vector<98x128xf32>
    %327 = arith.addf %325, %326 : vector<98x128xf32>
    %cst_200 = arith.constant 5.000000e-01 : f32
    %328 = vector.broadcast %cst_200 : f32 to vector<98x128xf32>
    %329 = arith.mulf %328, %327 : vector<98x128xf32>
    %cst_201 = arith.constant 4.471500e-02 : f32
    %330 = vector.broadcast %cst_201 : f32 to vector<98x128xf32>
    %331 = arith.mulf %330, %327 : vector<98x128xf32>
    %332 = arith.mulf %331, %327 : vector<98x128xf32>
    %333 = arith.mulf %332, %327 : vector<98x128xf32>
    %334 = arith.addf %327, %333 : vector<98x128xf32>
    %cst_202 = arith.constant 0.797884583 : f32
    %335 = vector.broadcast %cst_202 : f32 to vector<98x128xf32>
    %336 = arith.mulf %335, %334 : vector<98x128xf32>
    %337 = math.tanh %336 : vector<98x128xf32>
    %cst_203 = arith.constant 1.000000e+00 : f32
    %338 = vector.broadcast %cst_203 : f32 to vector<98x128xf32>
    %339 = arith.addf %338, %337 : vector<98x128xf32>
    %340 = arith.mulf %329, %339 : vector<98x128xf32>
    %c0_204 = arith.constant 0 : index
    %c0_205 = arith.constant 0 : index
    %341 = vector.load %arg9[%c0_204, %c0_205] : memref<128x32xf32, #tpu.memory_space<vmem>>, vector<128x32xf32>
    %cst_206 = arith.constant dense<0.000000e+00> : vector<98x32xf32>
    %342 = tpu.matmul %340, %341, %cst_206 {dimension_numbers = #tpu.dot_dimension_numbers<[1], [0], [0], [1], [0, 0, 1, 1], [], []>} : vector<98x128xf32>, vector<128x32xf32>, vector<98x32xf32> -> vector<98x32xf32>
    %343 = arith.addf %303, %342 : vector<98x32xf32>
    %344 = vector.broadcast %8 : vector<1x32xf32> to vector<98x32xf32>
    %345 = arith.addf %343, %344 : vector<98x32xf32>
    %346 = vector.shape_cast %345 : vector<98x32xf32> to vector<1x98x32xf32>
    %c0_207 = arith.constant 0 : index
    %c0_208 = arith.constant 0 : index
    %c0_209 = arith.constant 0 : index
    %347 = vector.load %arg10[%c0_207, %c0_208, %c0_209] : memref<1x98x32xf32, #tpu.memory_space<vmem>>, vector<1x98x32xf32>
    tpu.vector_store %arg10[%c0_207, %c0_208, %c0_209], %346 {strides = array<i32>} : memref<1x98x32xf32, #tpu.memory_space<vmem>>, vector<1x98x32xf32>,
    return
  }
  func.func @transform_0(%arg0: i32) -> (i32, i32, i32) {
    %c0_i32 = arith.constant 0 : i32
    %c0_i32_0 = arith.constant 0 : i32
    %c0_i32_1 = arith.constant 0 : i32
    return %arg0, %c0_i32, %c0_i32_0 : i32, i32, i32
  }
  func.func @transform_1(%arg0: i32) -> (i32, i32) {
    %c0_i32 = arith.constant 0 : i32
    %c0_i32_0 = arith.constant 0 : i32
    %c0_i32_1 = arith.constant 0 : i32
    return %c0_i32, %c0_i32_0 : i32, i32
  }
  func.func @transform_2(%arg0: i32) -> (i32, i32) {
    %c0_i32 = arith.constant 0 : i32
    %c0_i32_0 = arith.constant 0 : i32
    %c0_i32_1 = arith.constant 0 : i32
    return %c0_i32, %c0_i32_0 : i32, i32
  }
  func.func @transform_3(%arg0: i32) -> (i32, i32) {
    %c0_i32 = arith.constant 0 : i32
    %c0_i32_0 = arith.constant 0 : i32
    %c0_i32_1 = arith.constant 0 : i32
    return %c0_i32, %c0_i32_0 : i32, i32
  }
  func.func @transform_4(%arg0: i32) -> (i32, i32) {
    %c0_i32 = arith.constant 0 : i32
    %c0_i32_0 = arith.constant 0 : i32
    %c0_i32_1 = arith.constant 0 : i32
    return %c0_i32, %c0_i32_0 : i32, i32
  }
  func.func @transform_5(%arg0: i32) -> (i32, i32, i32) {
    %c0_i32 = arith.constant 0 : i32
    %c0_i32_0 = arith.constant 0 : i32
    %c0_i32_1 = arith.constant 0 : i32
    %c0_i32_2 = arith.constant 0 : i32
    return %c0_i32, %c0_i32_0, %c0_i32_1 : i32, i32, i32
  }
  func.func @transform_6(%arg0: i32) -> (i32, i32) {
    %c0_i32 = arith.constant 0 : i32
    %c0_i32_0 = arith.constant 0 : i32
    %c0_i32_1 = arith.constant 0 : i32
    return %c0_i32, %c0_i32_0 : i32, i32
  }
  func.func @transform_7(%arg0: i32) -> (i32, i32) {
    %c0_i32 = arith.constant 0 : i32
    %c0_i32_0 = arith.constant 0 : i32
    %c0_i32_1 = arith.constant 0 : i32
    return %c0_i32, %c0_i32_0 : i32, i32
  }
  func.func @transform_8(%arg0: i32) -> (i32, i32) {
    %c0_i32 = arith.constant 0 : i32
    %c0_i32_0 = arith.constant 0 : i32
    %c0_i32_1 = arith.constant 0 : i32
    return %c0_i32, %c0_i32_0 : i32, i32
  }
  func.func @transform_9(%arg0: i32) -> (i32, i32, i32) {
    %c0_i32 = arith.constant 0 : i32
    %c0_i32_0 = arith.constant 0 : i32
    %c0_i32_1 = arith.constant 0 : i32
    return %arg0, %c0_i32, %c0_i32_0 : i32, i32, i32
  }
}

</mosaic_0001>

<bundles_post_ra>
// kernel: modified_transformer_forward.1
= control target key start
LH: loop header
LB: loop body
LE: loop exit
PB: predicated region body
PF: predicated region fallthrough
CT: control target
= control target key end

     0   :  { %vm54_vm0 = vcmask 261120   ;;  %vm91_vm1 = vcmask 254976   ;;  %vm7896_vm2 = vmmov 0   ;;  %vm450_vm3 = vcmask 523264   ;;  %s7900_s20 = smov 120   ;;  %s7901_s21 = smov 112   ;;  %s11491_s0 = inlined_call_operand.vmem [shape: f32[1,98,32], index: 0, kind: input, shape index: {}]   ;;  %s11492_s2 = inlined_call_operand.vmem [shape: f32[32,128], index: 2, kind: input, shape index: {}]   ;;  %s11493_s1 = inlined_call_operand.vmem [shape: f32[9,128], index: 1, kind: input, shape index: {}]   ;;  %s11494_s4 = inlined_call_operand.vmem [shape: f32[106,2], index: 4, kind: input, shape index: {}]   ;;  %s11495_s3 = inlined_call_operand.vmem [shape: f32[9,64], index: 3, kind: input, shape index: {}]   ;;  %s11496_s5 = inlined_call_operand.vmem [shape: f32[4,49,49], index: 5, kind: input, shape index: {}]   ;;  %s11497_s6 = inlined_call_operand.vmem [shape: f32[64,32], index: 6, kind: input, shape index: {}]   ;;  %s11498_s7 = inlined_call_operand.vmem [shape: f32[32,128], index: 7, kind: input, shape index: {}]   ;;  %s11499_s8 = inlined_call_operand.vmem [shape: f32[128,32], index: 8, kind: input, shape index: {}]   ;;  %s11500_s9 = inlined_call_operand.vmem [shape: f32[1,98,32], index: 9, kind: output, shape index: {}]  }
   0x1   :  { %v41_v0 = vld [vmem:[%s11491_s0] sm:$0xff]  ;;  %v43_v1 = vld [vmem:[%s11491_s0 + $0x10] sm:$0xff]  ;;  %v42_v2 = vld [vmem:[%s11491_s0 + $0x8] sm:$0xff]  ;;  %s7903_s22 = smov 64   ;;  %s7904_s23 = smov 72   ;;  %vm1400_vm4 = vcmask 64512  }
   0x2   :  { %v55_v3 = vsel %vm54_vm0, %v41_v0, 0.0  ;;  %v61_v4 = vsel %vm54_vm0, %v43_v1, 0.0  ;;  %v44_v5 = vld [vmem:[%s11491_s0 + $0x18] sm:$0xff]  ;;  %v58_v6 = vsel %vm54_vm0, %v42_v2, 0.0  ;;  %v45_v8 = vld [vmem:[%s11491_s0 + $0x20] sm:$0xff]  ;;  %v46_v9 = vld [vmem:[%s11491_s0 + $0x28] sm:$0xff] }
   0x3   :  { %56 = vadd.xlane.f32.xlu0 %v55_v3  ;;  %62 = vadd.xlane.f32.xlu1 %v61_v4  ;;  %v64_v7 = vsel %vm54_vm0, %v44_v5, 0.0  ;;  %v67_v10 = vsel %vm54_vm0, %v45_v8, 0.0  ;;  %v70_v11 = vsel %vm54_vm0, %v46_v9, 0.0  ;;  %v47_v12 = vld [vmem:[%s11491_s0 + $0x30] sm:$0xff]  ;;  %v8026_v48 = vld [vmem:[%s11491_s0 + $0x38] sm:$0xff]  ;;  %v8031_v49 = vld [vmem:[%s11491_s0 + $0x40] sm:$0xff] }
   0x4   :  { %v73_v13 = vsel %vm54_vm0, %v47_v12, 0.0  ;;  %v76_v51 = vsel %vm54_vm0, %v8026_v48, 0.0  ;;  %v79_v52 = vsel %vm54_vm0, %v8031_v49, 0.0  ;;  %v8041_v53 = vld [vmem:[%s11491_s0 + $0x48] sm:$0xff]  ;;  %v8046_v54 = vld [vmem:[%s11491_s0 + $0x50] sm:$0xff]  ;;  %v8055_v57 = vld [vmem:[%s11491_s0 + $0x58] sm:$0xff] }
   0x5   :  { %v82_v55 = vsel %vm54_vm0, %v8041_v53, 0.0  ;;  %v85_v56 = vsel %vm54_vm0, %v8046_v54, 0.0  ;;  %v8060_v58 = vld [vmem:[%s11491_s0 + $0x60] sm:$0x3]  ;;  %v88_v59 = vsel %vm54_vm0, %v8055_v57, 0.0  ;;  %v261_v62 = vld [vmem:[%s11492_s2 + $0x8] sm:$0xff]  ;;  %vm8316_vm5 = vmpackc.low %vm1400_vm4, %vm1400_vm4 }
   0x6   :  { %v92_v60 = vsel %vm91_vm1, %v8060_v58, 0.0  ;;  %v260_v61 = vld [vmem:[%s11492_s2] sm:$0xff]  ;;  %v11501_v4 = vmov 0.0   ;;  %s7905_s24 = smov 96   ;;  %s7906_s25 = smov 88   ;;  %vm497_vm6 = vcmask 516096  }
   0x7   :  { %59 = vadd.xlane.f32.xlu0 %v58_v6  ;;  %65 = vadd.xlane.f32.xlu1 %v64_v7  ;;  %v7091_v63 = vpack.c.bf16 %v261_v62, %v260_v61  ;;  %451 = vst.msk [vmem:[#allocation2] sm:$0xff] %vm450_vm3, %v11501_v4  ;;  %452 = vst.msk [vmem:[#allocation2 + $0x39] sm:$0xff] %vm450_vm3, %v11501_v4  ;;  %s7907_s26 = smov 80   ;;  %vm1330_vm7 = vcmask 1046528   ;;  %vm1636_vm8 = vcmask 1040384   ;;  %vm1529_vm9 = vcmask 400384  }
   0x8   :  { %6318 = vmatprep.mubr.msk.f32.mxu0 %vm7896_vm2, %v11501_v4  ;;  %6339 = vmatprep.mubr.msk.f32.mxu1 %vm7896_vm2, %v11501_v4  ;;  %453 = vst.msk [vmem:[#allocation2 + $0x72] sm:$0xff] %vm450_vm3, %v11501_v4  ;;  %vm1548_vm10 = vcmask 393216   ;;  %vm1740_vm11 = vcmask 130048   ;;  %vm1747_vm12 = vcmask 122880   ;;  %vm2189_vm13 = vcmask 261248  }
   0x9   :  { %vm2196_vm14 = vcmask 254080   ;;  %vm2638_vm15 = vcmask 392448  }
   0xb   :  { %68 = vadd.xlane.f32.xlu0 %v67_v10  ;;  %71 = vadd.xlane.f32.xlu1 %v70_v11 }
   0xf   :  { %74 = vadd.xlane.f32.xlu0 %v73_v13 }
  0x90   :  { %v57_v14 = vpop.xlane.xlu0 %56  ;;  %v63_v15 = vpop.xlane.xlu1 %62 }
  0x91   :  { %v96_v16 = vmul.f32 0.03125, %v57_v14  ;;  %v98_v17 = vmul.f32 0.03125, %v63_v15 }
  0x93   :  { %v7989_v18 = vsub.f32 %v41_v0, %v96_v16  ;;  %v7991_v19 = vsub.f32 %v43_v1, %v98_v17  ;;  %v11503_v0 = vmov 0.0|0.0   ;;  %v262_v1 = vld [vmem:[%s11492_s2 + $0x10] sm:$0xff] }
  0x94   :  { %v60_v20 = vpop.xlane.xlu0 %59  ;;  %v66_v21 = vpop.xlane.xlu1 %65  ;;  %7090 = vmatprep.subr.bf16.mxu0 %v11503_v0  ;;  %7306 = vmatprep.subr.bf16.mxu1 %v11503_v0 }
  0x95   :  { %v97_v22 = vmul.f32 0.03125, %v60_v20  ;;  %v99_v23 = vmul.f32 0.03125, %v66_v21  ;;  %v122_v24 = vmul.f32 %v7989_v18, %v7989_v18  ;;  %v124_v25 = vmul.f32 %v7991_v19, %v7991_v19  ;;  %7092 = vmatpush3.bf16.msra.mxu0 %v7091_v63  ;;  %7308 = vmatpush3.bf16.msra.mxu1 %v7091_v63 }
  0x96   :  { %7093 = vmatprep.subr.bf16.mxu0 %v11503_v0  ;;  %7307 = vmatprep.subr.bf16.mxu1 %v11503_v0 }
  0x97   :  { %v7997_v26 = vsub.f32 %v42_v2, %v97_v22  ;;  %v7999_v27 = vsub.f32 %v44_v5, %v99_v23  ;;  %v135_v28 = vsel %vm54_vm0, %v122_v24, 0.0  ;;  %v141_v31 = vsel %vm54_vm0, %v124_v25, 0.0  ;;  %v263_v2 = vld [vmem:[%s11492_s2 + $0x18] sm:$0xff]  ;;  %s7902_s2 = smov 104  }
  0x98   :  { %136 = vadd.xlane.f32.xlu1 %v135_v28  ;;  %v69_v29 = vpop.xlane.xlu0 %68  ;;  %v72_v30 = vpop.xlane.xlu1 %71  ;;  %v7094_v3 = vpack.c.bf16 %v263_v2, %v262_v1  ;;  %v8091_v28 = vld [vmem:[%s11493_s1] ss:$0 sm:$0xff] }
  0x99   :  { %v100_v32 = vmul.f32 0.03125, %v69_v29  ;;  %v101_v33 = vmul.f32 0.03125, %v72_v30  ;;  %v123_v34 = vmul.f32 %v7997_v26, %v7997_v26  ;;  %v125_v35 = vmul.f32 %v7999_v27, %v7999_v27 }
  0x9a   :  { %7095 = vmatpush3.bf16.msra.mxu0 %v7094_v3  ;;  %7309 = vmatpush3.bf16.msra.mxu1 %v7094_v3 }
  0x9b   :  { %v8007_v36 = vsub.f32 %v45_v8, %v100_v32  ;;  %v8009_v37 = vsub.f32 %v46_v9, %v101_v33  ;;  %v138_v38 = vsel %vm54_vm0, %v123_v34, 0.0  ;;  %v144_v41 = vsel %vm54_vm0, %v125_v35, 0.0  ;;  %7096 = vmatprep.subr.bf16.mxu1 %v11503_v0  ;;  %7117 = vmatprep.subr.bf16.mxu0 %v11503_v0 }
  0x9c   :  { %142 = vadd.xlane.f32.xlu1 %v141_v31  ;;  %139 = vadd.xlane.f32.xlu0 %v138_v38  ;;  %v75_v39 = vpop.xlane.xlu0 %74  ;;  %v8097_v38 = vld [vmem:[%s11493_s1 + $0x1] ss:$0 sm:$0xff] }
  0x9d   :  { %v102_v40 = vmul.f32 0.03125, %v75_v39  ;;  %v126_v42 = vmul.f32 %v8007_v36, %v8007_v36  ;;  %v127_v43 = vmul.f32 %v8009_v37, %v8009_v37 }
  0x9f   :  { %v8017_v44 = vsub.f32 %v47_v12, %v102_v40  ;;  %v147_v45 = vsel %vm54_vm0, %v126_v42, 0.0  ;;  %v150_v46 = vsel %vm54_vm0, %v127_v43, 0.0 }
  0xa0   :  { %145 = vadd.xlane.f32.xlu0 %v144_v41  ;;  %148 = vadd.xlane.f32.xlu1 %v147_v45 }
  0xa1   :  { %v128_v47 = vmul.f32 %v8017_v44, %v8017_v44 }
  0xa3   :  { %v153_v50 = vsel %vm54_vm0, %v128_v47, 0.0 }
  0xa4   :  { %151 = vadd.xlane.f32.xlu0 %v150_v46  ;;  %154 = vadd.xlane.f32.xlu1 %v153_v50 }
  0xa8   :  { %77 = vadd.xlane.f32.xlu0 %v76_v51  ;;  %80 = vadd.xlane.f32.xlu1 %v79_v52 }
  0xac   :  { %83 = vadd.xlane.f32.xlu0 %v82_v55  ;;  %86 = vadd.xlane.f32.xlu1 %v85_v56 }
  0xb0   :  { %89 = vadd.xlane.f32.xlu0 %v88_v59  ;;  %93 = vadd.xlane.f32.xlu1 %v92_v60 }
 0x125   :  { %v137_v5 = vpop.xlane.xlu1 %136 }
 0x126   :  { %v174_v6 = vmul.f32 0.03125, %v137_v5 }
 0x128   :  { %v187_v7 = vadd.f32 1e-06, %v174_v6 }
 0x129   :  { %v143_v8 = vpop.xlane.xlu1 %142  ;;  %v140_v9 = vpop.xlane.xlu0 %139 }
 0x12a   :  { %7550 = vrsqrt.f32 %v187_v7  ;;  %v176_v10 = vmul.f32 0.03125, %v143_v8  ;;  %v175_v11 = vmul.f32 0.03125, %v140_v9 }
 0x12c   :  { %v189_v12 = vadd.f32 1e-06, %v176_v10  ;;  %v188_v13 = vadd.f32 1e-06, %v175_v11 }
 0x12d   :  { %v149_v14 = vpop.xlane.xlu1 %148  ;;  %v146_v15 = vpop.xlane.xlu0 %145 }
 0x12e   :  { %7552 = vrsqrt.f32 %v189_v12  ;;  %v178_v16 = vmul.f32 0.03125, %v149_v14  ;;  %v177_v17 = vmul.f32 0.03125, %v146_v15 }
 0x12f   :  { %7554 = vrsqrt.f32 %v188_v13 }
 0x130   :  { %v190_v20 = vadd.f32 1e-06, %v177_v17  ;;  %v191_v23 = vadd.f32 1e-06, %v178_v16 }
 0x131   :  { %v155_v21 = vpop.xlane.xlu1 %154  ;;  %v152_v22 = vpop.xlane.xlu0 %151 }
 0x132   :  { %v179_v24 = vmul.f32 0.03125, %v152_v22  ;;  %7556 = vrsqrt.f32 %v190_v20  ;;  %v180_v29 = vmul.f32 0.03125, %v155_v21 }
 0x133   :  { %7558 = vrsqrt.f32 %v191_v23 }
 0x134   :  { %v7551_v25 = vpop.eup %7550  ;;  %v192_v30 = vadd.f32 1e-06, %v179_v24  ;;  %v193_v45 = vadd.f32 1e-06, %v180_v29 }
 0x135   :  { %v81_v31 = vpop.xlane.xlu1 %80  ;;  %v78_v32 = vpop.xlane.xlu0 %77  ;;  %v213_v33 = vmul.f32 %v7551_v25, %v7989_v18 }
 0x136   :  { %v104_v34 = vmul.f32 0.03125, %v81_v31  ;;  %v103_v35 = vmul.f32 0.03125, %v78_v32  ;;  %7560 = vrsqrt.f32 %v192_v30  ;;  %v541_v30 = vld [vmem:[%s11494_s4] sm:$0xff]  ;;  %v11507_v31 = vmov 1  }
 0x137   :  { %v230_v39 = vmul.f32 %v8091_v28, %v213_v33  ;;  %7562 = vrsqrt.f32 %v193_v45  ;;  %v8186_v32 = vld [vmem:[%s11494_s4 + $0x20] sm:$0xff]  ;;  %v8192_v33 = vld [vmem:[%s11494_s4 + $0x8] sm:$0xff] }
 0x138   :  { %v7553_v40 = vpop.eup %7552  ;;  %v8101_v41 = vsub.f32 %v8031_v49, %v104_v34  ;;  %v8104_v42 = vsub.f32 %v8026_v48, %v103_v35  ;;  %v546_v34 = vld [vmem:[%s11494_s4 + $0x28] sm:$0xff]  ;;  %v8202_v35 = vld [vmem:[%s11494_s4 + $0x10] sm:$0xff] }
 0x139   :  { %v7555_v43 = vpop.eup %7554  ;;  %v87_v18 = vpop.xlane.xlu1 %86  ;;  %v247_v47 = vadd.f32 %v8097_v38, %v230_v39  ;;  %v215_v49 = vmul.f32 %v7553_v40, %v7991_v19  ;;  %v547_v39 = vld [vmem:[%s11494_s4 + $0x30] sm:$0xff]  ;;  %v8211_v40 = vld [vmem:[%s11494_s4 + $0x18] sm:$0xff] }
 0x13a   :  { %v84_v46 = vpop.xlane.xlu0 %83  ;;  %v106_v50 = vmul.f32 0.03125, %v87_v18  ;;  %v130_v52 = vmul.f32 %v8101_v41, %v8101_v41  ;;  %v129_v55 = vmul.f32 %v8104_v42, %v8104_v42  ;;  %v214_v48 = vmul.f32 %v7555_v43, %v7997_v26 }
 0x13b   :  { %v105_v51 = vmul.f32 0.03125, %v84_v46  ;;  %6319 = vmatmul.mubr.msk.f32.vlgmr.msra.gmra.mrb[0].mxu0 %vm54_vm0, %v247_v47  ;;  %v232_v5 = vmul.f32 %v8091_v28, %v215_v49 }
 0x13c   :  { %v8115_v56 = vsub.f32 %v8046_v54, %v106_v50  ;;  %v159_v60 = vsel %vm54_vm0, %v130_v52, 0.0  ;;  %v156_v61 = vsel %vm54_vm0, %v129_v55, 0.0  ;;  %6321 = vmatprep.mubr.msk.f32.mxu0 %vm7896_vm2, %v11501_v4  ;;  %v7557_v62 = vpop.eup %7556  ;;  %v231_v19 = vmul.f32 %v8091_v28, %v214_v48 }
 0x13d   :  { %v8118_v59 = vsub.f32 %v8041_v53, %v105_v51  ;;  %160 = vadd.xlane.f32.xlu1 %v159_v60  ;;  %v94_v63 = vpop.xlane.xlu1 %93  ;;  %157 = vadd.xlane.f32.xlu0 %v156_v61  ;;  %v216_v6 = vmul.f32 %v7557_v62, %v7999_v27  ;;  %v7559_v7 = vpop.eup %7558 }
 0x13e   :  { %v90_v26 = vpop.xlane.xlu0 %89  ;;  %v108_v54 = vmul.f32 0.03125, %v94_v63  ;;  %v132_v53 = vmul.f32 %v8115_v56, %v8115_v56  ;;  %v248_v3 = vadd.f32 %v8097_v38, %v231_v19  ;;  %v217_v14 = vmul.f32 %v7559_v7, %v8007_v36 }
 0x13f   :  { %v107_v1 = vmul.f32 0.03125, %v90_v26  ;;  %v131_v2 = vmul.f32 %v8118_v59, %v8118_v59  ;;  %v233_v13 = vmul.f32 %v8091_v28, %v216_v6 }
 0x140   :  { %v8133_v8 = vsub.f32 %v8060_v58, %v108_v54  ;;  %v165_v10 = vsel %vm54_vm0, %v132_v53, 0.0  ;;  %6322 = vmatmul.mubr.msk.f32.gmra.mrb[2].mxu0 %vm54_vm0, %v248_v3  ;;  %v7561_v12 = vpop.eup %7560  ;;  %v234_v21 = vmul.f32 %v8091_v28, %v217_v14 }
 0x141   :  { %v8136_v9 = vsub.f32 %v8055_v57, %v107_v1  ;;  %v162_v11 = vsel %vm54_vm0, %v131_v2, 0.0  ;;  %166 = vadd.xlane.f32.xlu1 %v165_v10  ;;  %6324 = vmatprep.mubr.msk.f32.mxu0 %vm7896_vm2, %v11501_v4  ;;  %v249_v57 = vadd.f32 %v8097_v38, %v232_v5  ;;  %v7563_v17 = vpop.eup %7562  ;;  %v250_v20 = vadd.f32 %v8097_v38, %v233_v13 }
 0x142   :  { %163 = vadd.xlane.f32.xlu0 %v162_v11  ;;  %v134_v27 = vmul.f32 %v8133_v8, %v8133_v8  ;;  %v218_v22 = vmul.f32 %v7561_v12, %v8009_v37  ;;  %v251_v36 = vadd.f32 %v8097_v38, %v234_v21  ;;  %v219_v24 = vmul.f32 %v7563_v17, %v8017_v44 }
 0x143   :  { %v133_v58 = vmul.f32 %v8136_v9, %v8136_v9  ;;  %v11505_v44 = vmov 0  }
 0x144   :  { %v171_v15 = vsel %vm91_vm1, %v134_v27, 0.0  ;;  %6325 = vmatmul.mubr.msk.f32.gmra.mrb[4].mxu0 %vm54_vm0, %v249_v57  ;;  %v235_v23 = vmul.f32 %v8091_v28, %v218_v22  ;;  %v236_v37 = vmul.f32 %v8091_v28, %v219_v24  ;;  %7326 = vset.pattern.permute.xlu1 %v11505_v44 }
 0x145   :  { %v168_v16 = vsel %vm54_vm0, %v133_v58, 0.0  ;;  %172 = vadd.xlane.f32.xlu1 %v171_v15  ;;  %6327 = vmatprep.mubr.msk.f32.mxu0 %vm7896_vm2, %v11501_v4 }
 0x146   :  { %169 = vadd.xlane.f32.xlu0 %v168_v16  ;;  %v252_v25 = vadd.f32 %v8097_v38, %v235_v23  ;;  %v253_v29 = vadd.f32 %v8097_v38, %v236_v37 }
 0x147   :  { %7327 = vset.pattern.permute.xlu0 %v11505_v44 }
 0x148   :  { %6328 = vmatmul.mubr.msk.f32.gmra.mrb[6].mxu0 %vm54_vm0, %v250_v20 }
 0x149   :  { %6330 = vmatprep.mubr.msk.f32.mxu0 %vm7896_vm2, %v11501_v4 }
 0x14c   :  { %6331 = vmatmul.mubr.msk.f32.gmra.mrb[8].mxu0 %vm54_vm0, %v251_v36 }
 0x14d   :  { %6333 = vmatprep.mubr.msk.f32.mxu0 %vm7896_vm2, %v11501_v4 }
 0x150   :  { %6334 = vmatmul.mubr.msk.f32.gmra.mrb[10].mxu0 %vm54_vm0, %v252_v25 }
 0x151   :  { %6336 = vmatprep.mubr.msk.f32.mxu0 %vm7896_vm2, %v11501_v4 }
 0x154   :  { %6337 = vmatmul.mubr.msk.f32.gmra.mrb[12].mxu0 %vm54_vm0, %v253_v29 }
 0x155   :  { %6441 = vmatprep.mubr.msk.f32.mxu0 %vm7896_vm2, %v11501_v4 }
 0x156   :  { %573 = vperm.xlu1 %7326, %v541_v30  }
 0x15a   :  { %7328 = vset.pattern.permute.xlu1 %v11507_v31 }
 0x15b   :  { %748 = vperm.xlu1 %7328, %v541_v30  }
 0x15c   :  { %578 = vperm.xlu0 %7327, %v8192_v33  }
 0x15f   :  { %7329 = vset.pattern.permute.xlu1 %v11505_v44 }
 0x160   :  { %593 = vperm.xlu1 %7329, %v8186_v32   ;;  %583 = vperm.xlu0 %7327, %v8202_v35  }
 0x164   :  { %7330 = vset.pattern.permute.xlu1 %v11507_v31  ;;  %588 = vperm.xlu0 %7327, %v8211_v40  }
 0x165   :  { %768 = vperm.xlu1 %7330, %v546_v34  }
 0x168   :  { %598 = vperm.xlu0 %7327, %v546_v34  }
 0x169   :  { %7331 = vset.pattern.permute.xlu1 %v11505_v44 }
 0x16a   :  { %603 = vperm.xlu1 %7331, %v547_v39  }
 0x16e   :  { %7332 = vset.pattern.permute.xlu1 %v11507_v31 }
 0x16f   :  { %772 = vperm.xlu1 %7332, %v547_v39  }
 0x173   :  { %7433 = vset.pattern.permute.xlu1 %v11505_v44 }
 0x1ca   :  { %v161_v43 = vpop.xlane.xlu1 %160  ;;  %v158_v45 = vpop.xlane.xlu0 %157 }
 0x1cb   :  { %v182_v18 = vmul.f32 0.03125, %v161_v43  ;;  %v181_v46 = vmul.f32 0.03125, %v158_v45 }
 0x1cd   :  { %v195_v47 = vadd.f32 1e-06, %v182_v18  ;;  %v194_v50 = vadd.f32 1e-06, %v181_v46 }
 0x1ce   :  { %v167_v51 = vpop.xlane.xlu1 %166 }
 0x1cf   :  { %7564 = vrsqrt.f32 %v195_v47  ;;  %v184_v52 = vmul.f32 0.03125, %v167_v51  ;;  %v164_v55 = vpop.xlane.xlu0 %163 }
 0x1d0   :  { %7566 = vrsqrt.f32 %v194_v50  ;;  %v183_v48 = vmul.f32 0.03125, %v164_v55 }
 0x1d1   :  { %v197_v49 = vadd.f32 1e-06, %v184_v52 }
 0x1d2   :  { %v196_v60 = vadd.f32 1e-06, %v183_v48  ;;  %v173_v61 = vpop.xlane.xlu1 %172 }
 0x1d3   :  { %v170_v62 = vpop.xlane.xlu0 %169  ;;  %v186_v26 = vmul.f32 0.03125, %v173_v61 }
 0x1d4   :  { %7568 = vrsqrt.f32 %v196_v60  ;;  %v185_v63 = vmul.f32 0.03125, %v170_v62 }
 0x1d5   :  { %7570 = vrsqrt.f32 %v197_v49  ;;  %v199_v53 = vadd.f32 1e-06, %v186_v26 }
 0x1d6   :  { %v198_v19 = vadd.f32 1e-06, %v185_v63 }
 0x1d8   :  { %7572 = vrsqrt.f32 %v198_v19 }
 0x1d9   :  { %v7565_v54 = vpop.eup %7564  ;;  %7574 = vrsqrt.f32 %v199_v53 }
 0x1da   :  { %v7567_v1 = vpop.eup %7566  ;;  %v221_v3 = vmul.f32 %v7565_v54, %v8101_v41 }
 0x1db   :  { %v220_v2 = vmul.f32 %v7567_v1, %v8104_v42  ;;  %v8303_v48 = vpop.permute.xlu0 %578 }
 0x1dc   :  { %v238_v10 = vmul.f32 %v8091_v28, %v221_v3 }
 0x1dd   :  { %v237_v5 = vmul.f32 %v8091_v28, %v220_v2 }
 0x1de   :  { %v7569_v6 = vpop.eup %7568  ;;  %v255_v42 = vadd.f32 %v8097_v38, %v238_v10 }
 0x1df   :  { %v254_v7 = vadd.f32 %v8097_v38, %v237_v5  ;;  %v222_v11 = vmul.f32 %v7569_v6, %v8118_v59  ;;  %v7571_v27 = vpop.eup %7570  ;;  %v8305_v49 = vpop.permute.xlu0 %583 }
 0x1e0   :  { %v223_v58 = vmul.f32 %v7571_v27, %v8115_v56 }
 0x1e1   :  { %6340 = vmatmul.mubr.msk.f32.vlgmr.msra.gmra.mrb[0].mxu1 %vm54_vm0, %v254_v7  ;;  %v239_v41 = vmul.f32 %v8091_v28, %v222_v11 }
 0x1e2   :  { %6342 = vmatprep.mubr.msk.f32.mxu1 %vm7896_vm2, %v11501_v4  ;;  %v7573_v12 = vpop.eup %7572  ;;  %v240_v57 = vmul.f32 %v8091_v28, %v223_v58 }
 0x1e3   :  { %v256_v59 = vadd.f32 %v8097_v38, %v239_v41  ;;  %v224_v13 = vmul.f32 %v7573_v12, %v8136_v9  ;;  %v7575_v14 = vpop.eup %7574  ;;  %v8307_v60 = vpop.permute.xlu0 %588 }
 0x1e4   :  { %v257_v56 = vadd.f32 %v8097_v38, %v240_v57  ;;  %v225_v16 = vmul.f32 %v7575_v14, %v8133_v8  ;;  %v8262_v8 = vld [vmem:[%s11493_s1 + $0x2] ss:$0 sm:$0xff] }
 0x1e5   :  { %6343 = vmatmul.mubr.msk.f32.gmra.mrb[2].mxu1 %vm54_vm0, %v255_v42  ;;  %v241_v15 = vmul.f32 %v8091_v28, %v224_v13 }
 0x1e6   :  { %6345 = vmatprep.mubr.msk.f32.mxu1 %vm7896_vm2, %v11501_v4  ;;  %v242_v9 = vmul.f32 %v8091_v28, %v225_v16 }
 0x1e7   :  { %v258_v17 = vadd.f32 %v8097_v38, %v241_v15  ;;  %v8309_v61 = vpop.permute.xlu0 %598 }
 0x1e8   :  { %v259_v20 = vadd.f32 %v8097_v38, %v242_v9  ;;  %11569 = vst [vmem:[#allocation5_spill] sm:$0xff] %v8309_v61 }
 0x1e9   :  { %6346 = vmatmul.mubr.msk.f32.gmra.mrb[4].mxu1 %vm54_vm0, %v256_v59 }
 0x1ea   :  { %6348 = vmatprep.mubr.msk.f32.mxu1 %vm7896_vm2, %v11501_v4 }
 0x1ed   :  { %6349 = vmatmul.mubr.msk.f32.gmra.mrb[6].mxu1 %vm54_vm0, %v257_v56 }
 0x1ee   :  { %6351 = vmatprep.mubr.msk.f32.mxu1 %vm7896_vm2, %v11501_v4 }
 0x1f1   :  { %6352 = vmatmul.mubr.msk.f32.gmra.mrb[8].mxu1 %vm54_vm0, %v258_v17 }
 0x1f2   :  { %6354 = vmatprep.mubr.msk.f32.mxu1 %vm7896_vm2, %v11501_v4 }
 0x1f5   :  { %6355 = vmatmul.mubr.msk.f32.gmra.mrb[10].mxu1 %vm54_vm0, %v259_v20 }
 0x1f6   :  { %6371 = vmatprep.mubr.msk.f32.mxu1 %vm7896_vm2, %v11501_v4 }
 0x20e   :  { %v373_v21 = vpop.f32.mrb[0].mxu0 }
 0x20f   :  { %v8265_v28 = vadd.f32 %v8262_v8, %v373_v21  ;;  %v6320_v22 = vpop.f32.mrb[1].mxu0 }
 0x211   :  { %1771 = vrot.lane.b32.xlu1 %v8265_v28, %s7900_s20  ;;  %2220 = vrot.lane.b32.xlu0 %v8265_v28, %s7901_s21 }
 0x213   :  { %v378_v38 = vpop.f32.mrb[2].mxu0 }
 0x214   :  { %v8272_v36 = vadd.f32 %v8262_v8, %v378_v38  ;;  %v6323_v23 = vpop.f32.mrb[3].mxu0 }
 0x215   :  { %2669 = vrot.lane.b32.xlu1 %v8265_v28, %s7902_s2  ;;  %470 = vrot.lane.b32.xlu0 %v8265_v28, %s7903_s22 }
 0x216   :  { %v7338_v24 = vpack.i.bf16 %v8272_v36, %v8265_v28 }
 0x217   :  { %v383_v25 = vpop.f32.mrb[4].mxu0 }
 0x218   :  { %v8281_v37 = vadd.f32 %v8262_v8, %v383_v25  ;;  %v6326_v29 = vpop.f32.mrb[5].mxu0  ;;  %v8392_v25 = vpop.permute.xlu1 %573 }
 0x219   :  { %7349 = vrot.lane.b32.xlu1 %v7338_v24, %s7904_s23  ;;  %7334 = vrot.lane.b32.xlu0 %v7338_v24, %s7905_s24 }
 0x21b   :  { %v388_v30 = vpop.f32.mrb[6].mxu0 }
 0x21c   :  { %v8286_v34 = vadd.f32 %v8262_v8, %v388_v30  ;;  %v6329_v39 = vpop.f32.mrb[7].mxu0  ;;  %v8402_v29 = vpop.permute.xlu1 %748 }
 0x21d   :  { %2222 = vrot.lane.b32.xlu1 %v8272_v36, %s7901_s21  ;;  %7339 = vrot.lane.b32.xlu0 %v7338_v24, %s7906_s25 }
 0x21f   :  { %v393_v43 = vpop.f32.mrb[8].mxu0 }
 0x220   :  { %v8292_v45 = vadd.f32 %v8262_v8, %v393_v43  ;;  %v6332_v18 = vpop.f32.mrb[9].mxu0  ;;  %v8409_v39 = vpop.permute.xlu1 %593 }
 0x221   :  { %7344 = vrot.lane.b32.xlu0 %v7338_v24, %s7907_s26 }
 0x223   :  { %v398_v46 = vpop.f32.mrb[10].mxu0 }
 0x224   :  { %v8296_v47 = vadd.f32 %v8262_v8, %v398_v46  ;;  %v6335_v50 = vpop.f32.mrb[11].mxu0  ;;  %v8418_v18 = vpop.permute.xlu1 %768 }
 0x225   :  { %1773 = vrot.lane.b32.xlu0 %v8272_v36, %s7900_s20  ;;  %11572 = vst [vmem:[#allocation6_spill] sm:$0xff] %v8418_v18 }
 0x226   :  { %v7403_v30 = vpack.i.bf16 %v8296_v47, %v8292_v45 }
 0x227   :  { %v403_v51 = vpop.f32.mrb[12].mxu0 }
 0x228   :  { %v404_v52 = vadd.f32 %v8262_v8, %v403_v51  ;;  %v6338_v55 = vpop.f32.mrb[13].mxu0  ;;  %v8425_v50 = vpop.permute.xlu1 %603 }
 0x229   :  { %2671 = vrot.lane.b32.xlu0 %v8272_v36, %s7902_s2  ;;  %11573 = vst [vmem:[#allocation7_spill] sm:$0xff] %v8425_v50 }
 0x22a   :  { %443 = vst [vmem:[#allocation3 + $0x30] sm:$0xff] %v404_v52 }
 0x22c   :  { %v8432_v52 = vpop.permute.xlu1 %772 }
 0x22d   :  { %11574 = vst [vmem:[#allocation8_spill] sm:$0xff] %v8432_v52 }
 0x283   :  { %v8311_v62 = vpop.permute.xlu0 %2220 }
 0x287   :  { %v471_v63 = vpop.permute.xlu0 %470 }
 0x288   :  { %491 = vst.msk [vmem:[#allocation2 + $0x8] sm:$0xff] %vm450_vm3, %v471_v63 }
 0x28b   :  { %v7335_v26 = vpop.permute.xlu0 %7334 }
 0x28c   :  { %v7337_v19 = vunpack.i.h.bf16 %v7335_v26  ;;  %v7336_v54 = vunpack.i.l.bf16 %v7335_v26  ;;  %v8437_v26 = vpop.permute.xlu1 %1771 }
 0x28e   :  { %v7097_v53 = vpack.c.bf16 %v7337_v19, %v7336_v54  ;;  %v655_v19 = vlaneseq }
 0x28f   :  { %v7340_v2 = vpop.permute.xlu0 %7339 }
 0x290   :  { %v7342_v3 = vunpack.i.h.bf16 %v7340_v2  ;;  %7099 = vmatpush3.bf16.xpose.msk.msra.mxu1 %vm8316_vm5, %v7097_v53  ;;  %v7341_v5 = vunpack.i.l.bf16 %v7340_v2  ;;  %v8443_v54 = vpop.permute.xlu1 %2669 }
 0x291   :  { %7100 = vmatprep.subr.bf16.mxu1 %v11503_v0  ;;  %11575 = vst [vmem:[#allocation9_spill] sm:$0xff] %v8443_v54 }
 0x292   :  { %v7118_v6 = vpack.c.bf16 %v7342_v3, %v7341_v5  ;;  %v8450_v3 = vshrl.u32 %v655_v19, 7  ;;  %v8452_v5 = vld [vmem:[#allocation3 + $0x30] sm:$0x1] }
 0x293   :  { %v8445_v53 = vpop.permute.xlu0 %7344 }
 0x294   :  { %7120 = vmatpush3.bf16.xpose.msk.msra.mxu0 %vm8316_vm5, %v7118_v6  ;;  %v8454_v6 = vpop.permute.xlu1 %7349 }
 0x295   :  { %7121 = vmatprep.subr.bf16.mxu0 %v11503_v0 }
 0x2b4   :  { %v408_v7 = vpop.f32.mrb[0].mxu1 }
 0x2b5   :  { %v409_v10 = vadd.f32 %v8262_v8, %v408_v7  ;;  %v6341_v11 = vpop.f32.mrb[1].mxu1  ;;  %v8456_v7 = vpop.permute.xlu0 %1773 }
 0x2b6   :  { %v703_v11 = vsub.s32 1, %v8450_v3 }
 0x2b7   :  { %444 = vst [vmem:[#allocation3 + $0x38] sm:$0xff] %v409_v10  ;;  %v657_v10 = vsub.s32 0, %v8450_v3 }
 0x2b8   :  { %v413_v27 = vpop.f32.mrb[2].mxu1 }
 0x2b9   :  { %v414_v42 = vadd.f32 %v8262_v8, %v413_v27  ;;  %v6344_v41 = vpop.f32.mrb[3].mxu1  ;;  %v8466_v27 = vld [vmem:[%s11495_s3] sm:$0xff] }
 0x2ba   :  { %v1755_v41 = vld [vmem:[#allocation3 + $0x30] sm:$0x1] }
 0x2bb   :  { %445 = vst [vmem:[#allocation3 + $0x40] sm:$0xff] %v414_v42  ;;  %v557_v42 = vld [vmem:[#allocation2] sm:$0xff] }
 0x2bc   :  { %v418_v58 = vpop.f32.mrb[4].mxu1 }
 0x2bd   :  { %v419_v12 = vadd.f32 %v8262_v8, %v418_v58  ;;  %v6347_v59 = vpop.f32.mrb[5].mxu1  ;;  %v8472_v58 = vrot.slane %v8466_v27, %v657_v10 }
 0x2be   :  { %v8476_v59 = vrot.slane %v8466_v27, %v703_v11 }
 0x2bf   :  { %446 = vst [vmem:[#allocation3 + $0x48] sm:$0xff] %v419_v12  ;;  %v641_v12 = vmul.f32 %v8392_v25, %v557_v42 }
 0x2c0   :  { %v423_v57 = vpop.f32.mrb[6].mxu1 }
 0x2c1   :  { %v424_v13 = vadd.f32 %v8262_v8, %v423_v57  ;;  %v6350_v14 = vpop.f32.mrb[7].mxu1  ;;  %v819_v57 = vsub.s32 2, %v8450_v3 }
 0x2c2   :  { %v8330_v56 = vld [vmem:[#allocation3 + $0x39] sm:$0xff]  ;;  %v733_v14 = vld [vmem:[#allocation2 + $0x2] sm:$0xff] }
 0x2c3   :  { %447 = vst [vmem:[#allocation3 + $0x50] sm:$0xff] %v424_v13  ;;  %3943 = vrot.lane.b32.xlu0 %v8330_v56, %s7901_s21  ;;  %3497 = vrot.lane.b32.xlu1 %v8330_v56, %s7900_s20  ;;  %v687_v13 = vld [vmem:[#allocation2 + $0x1] sm:$0xff] }
 0x2c4   :  { %v428_v15 = vpop.f32.mrb[8].mxu1 }
 0x2c5   :  { %v429_v16 = vadd.f32 %v8262_v8, %v428_v15  ;;  %v6353_v17 = vpop.f32.mrb[9].mxu1  ;;  %v8479_v15 = vpop.permute.xlu1 %2222 }
 0x2c6   :  { %v8346_v22 = vld [vmem:[#allocation3 + $0x41] sm:$0xff]  ;;  %v659_v17 = vmul.f32 %v8472_v58, %v641_v12  ;;  %v925_v12 = vsub.s32 4, %v8450_v3 }
 0x2c7   :  { %448 = vst [vmem:[#allocation3 + $0x58] sm:$0xff] %v429_v16  ;;  %4389 = vrot.lane.b32.xlu0 %v8330_v56, %s7902_s2  ;;  %472 = vrot.lane.b32.xlu1 %v8272_v36, %s7903_s22  ;;  %v8481_v16 = vpop.permute.xlu0 %2671 }
 0x2c8   :  { %v433_v9 = vpop.f32.mrb[10].mxu1  ;;  %11576 = vst [vmem:[#allocation10_spill] sm:$0xff] %v8481_v16  ;;  %v8605_v16 = vld [vmem:[#allocation3 + $0x31] sm:$0xff] }
 0x2c9   :  { %v434_v20 = vadd.f32 %v8262_v8, %v433_v9  ;;  %v6356_v21 = vpop.f32.mrb[11].mxu1  ;;  %v7358_v8 = vpack.i.bf16 %v8286_v34, %v8281_v37  ;;  %v8488_v9 = vrot.slane %v8466_v27, %v819_v57  ;;  %v550_v57 = vld [vmem:[%s11494_s4 + $0x48] sm:$0xff] }
 0x2ca   :  { %v8363_v38 = vld [vmem:[#allocation3 + $0x49] sm:$0xff]  ;;  %v803_v21 = vmul.f32 %v8402_v29, %v733_v14  ;;  %v985_v14 = vsub.s32 5, %v8450_v3 }
 0x2cb   :  { %449 = vst [vmem:[#allocation3 + $0x60] sm:$0x3] %v434_v20  ;;  %1775 = vrot.lane.b32.xlu0 %v8281_v37, %s7900_s20  ;;  %2224 = vrot.lane.b32.xlu1 %v8281_v37, %s7901_s21  ;;  %v7378_v23 = vpack.i.bf16 %v8363_v38, %v8346_v22  ;;  %v705_v20 = vmul.f32 %v8476_v59, %v687_v13 }
 0x2cc   :  { %v821_v19 = vmul.f32 %v8488_v9, %v803_v21  ;;  %v1045_v21 = vsub.s32 6, %v8450_v3  ;;  %v8540_v4 = vrot.slane %v8466_v27, %v985_v14 }
 0x2ce   :  { %v8390_v24 = vld [vmem:[#allocation3 + $0x51] sm:$0xff] }
 0x2cf   :  { %2673 = vrot.lane.b32.xlu0 %v8281_v37, %s7902_s2  ;;  %3499 = vrot.lane.b32.xlu1 %v8346_v22, %s7900_s20 }
 0x2d2   :  { %v8413_v43 = vld [vmem:[#allocation3 + $0x59] sm:$0xff]  ;;  %v3102_v51 = vld [vmem:[#allocation3 + $0x61] sm:$0x1] }
 0x2d3   :  { %3945 = vrot.lane.b32.xlu0 %v8346_v22, %s7901_s21  ;;  %4391 = vrot.lane.b32.xlu1 %v8346_v22, %s7902_s2  ;;  %v7418_v46 = vpack.i.bf16 %v8413_v43, %v8390_v24  ;;  %v3480_v55 = vld [vmem:[#allocation3 + $0x61] sm:$0x1] }
 0x2d4   :  { %v3926_v63 = vld [vmem:[#allocation3 + $0x61] sm:$0x1] }
 0x2d5   :  { %v4372_v2 = vld [vmem:[#allocation3 + $0x61] sm:$0x1] }
 0x2d7   :  { %474 = vrot.lane.b32.xlu0 %v8281_v37, %s7903_s22  ;;  %7354 = vrot.lane.b32.xlu1 %v7358_v8, %s7905_s24 }
 0x2db   :  { %7369 = vrot.lane.b32.xlu0 %v7358_v8, %s7904_s23  ;;  %7359 = vrot.lane.b32.xlu1 %v7358_v8, %s7906_s25 }
 0x2df   :  { %2226 = vrot.lane.b32.xlu0 %v8286_v34, %s7901_s21  ;;  %7364 = vrot.lane.b32.xlu1 %v7358_v8, %s7907_s26  ;;  %v8495_v8 = vld [vmem:[%s11494_s4 + $0x38] sm:$0xff] }
 0x2e3   :  { %1777 = vrot.lane.b32.xlu1 %v8286_v34, %s7900_s20  ;;  %7379 = vrot.lane.b32.xlu0 %v7378_v23, %s7906_s25 }
 0x2e7   :  { %7384 = vrot.lane.b32.xlu0 %v7378_v23, %s7907_s26  ;;  %7374 = vrot.lane.b32.xlu1 %v7378_v23, %s7905_s24 }
 0x2eb   :  { %3501 = vrot.lane.b32.xlu0 %v8363_v38, %s7900_s20  ;;  %2675 = vrot.lane.b32.xlu1 %v8286_v34, %s7902_s2 }
 0x2ef   :  { %4393 = vrot.lane.b32.xlu0 %v8363_v38, %s7902_s2  ;;  %7389 = vrot.lane.b32.xlu1 %v7378_v23, %s7904_s23 }
 0x2f3   :  { %476 = vrot.lane.b32.xlu0 %v8286_v34, %s7903_s22  ;;  %3947 = vrot.lane.b32.xlu1 %v8363_v38, %s7901_s21 }
 0x2f7   :  { %2228 = vrot.lane.b32.xlu0 %v8292_v45, %s7901_s21  ;;  %1779 = vrot.lane.b32.xlu1 %v8292_v45, %s7900_s20 }
 0x2fb   :  { %2677 = vrot.lane.b32.xlu1 %v8292_v45, %s7902_s2  ;;  %3503 = vrot.lane.b32.xlu0 %v8390_v24, %s7900_s20 }
 0x2ff   :  { %3949 = vrot.lane.b32.xlu1 %v8390_v24, %s7901_s21  ;;  %478 = vrot.lane.b32.xlu0 %v8292_v45, %s7903_s22 }
 0x303   :  { %4395 = vrot.lane.b32.xlu1 %v8390_v24, %s7902_s2  ;;  %7399 = vrot.lane.b32.xlu0 %v7403_v30, %s7906_s25 }
 0x307   :  { %7394 = vrot.lane.b32.xlu1 %v7403_v30, %s7905_s24  ;;  %7404 = vrot.lane.b32.xlu0 %v7403_v30, %s7907_s26 }
 0x30b   :  { %7409 = vrot.lane.b32.xlu1 %v7403_v30, %s7904_s23  ;;  %1781 = vrot.lane.b32.xlu0 %v8296_v47, %s7900_s20 }
 0x30f   :  { %2230 = vrot.lane.b32.xlu1 %v8296_v47, %s7901_s21  ;;  %7414 = vrot.lane.b32.xlu0 %v7418_v46, %s7905_s24 }
 0x313   :  { %7419 = vrot.lane.b32.xlu1 %v7418_v46, %s7906_s25  ;;  %2679 = vrot.lane.b32.xlu0 %v8296_v47, %s7902_s2 }
 0x317   :  { %7424 = vrot.lane.b32.xlu1 %v7418_v46, %s7907_s26  ;;  %3129 = vrot.lane.b32.xlu0 %v3102_v51, %s7905_s24  ;;  %v879_v51 = vsub.s32 3, %v8450_v3 }
 0x31b   :  { %3505 = vrot.lane.b32.xlu1 %v8413_v43, %s7900_s20  ;;  %3521 = vrot.lane.b32.xlu0 %v3480_v55, %s7906_s25 }
 0x31f   :  { %3967 = vrot.lane.b32.xlu1 %v3926_v63, %s7907_s26  ;;  %3507 = vrot.lane.b32.xlu0 %v3480_v55, %s7900_s20  ;;  %v849_v55 = vld [vmem:[#allocation2 + $0x7] sm:$0xff] }
 0x320   :  { %v863_v42 = vmul.f32 %v849_v55, %v8392_v25 }
 0x323   :  { %3953 = vrot.lane.b32.xlu1 %v3926_v63, %s7901_s21  ;;  %7429 = vrot.lane.b32.xlu0 %v7418_v46, %s7904_s23  ;;  %v8501_v46 = vld [vmem:[#allocation3 + $0x30] sm:$0x1]  ;;  %v719_v63 = vadd.f32 %v705_v20, %v659_v17 }
 0x325   :  { %v835_v13 = vadd.f32 %v821_v19, %v719_v63  ;;  %v1079_v63 = vsub.s32 7, %v8450_v3 }
 0x327   :  { %4399 = vrot.lane.b32.xlu1 %v4372_v2, %s7902_s2  ;;  %3951 = vrot.lane.b32.xlu0 %v8413_v43, %s7901_s21 }
 0x32b   :  { %1398 = vrot.lane.b32.xlu1 %v8452_v5, %s7905_s24  ;;  %4413 = vrot.lane.b32.xlu0 %v4372_v2, %s7904_s23  ;;  %v549_v2 = vld [vmem:[%s11494_s4 + $0x40] sm:$0xff] }
 0x32f   :  { %1797 = vrot.lane.b32.xlu1 %v1755_v41, %s7906_s25  ;;  %4397 = vrot.lane.b32.xlu0 %v8413_v43, %s7902_s2 }
 0x333   :  { %1783 = vrot.lane.b32.xlu1 %v1755_v41, %s7900_s20  ;;  %480 = vrot.lane.b32.xlu0 %v8296_v47, %s7903_s22  ;;  %v8516_v41 = vrot.slane %v8466_v27, %v879_v51  ;;  %v8531_v51 = vrot.slane %v8466_v27, %v925_v12 }
 0x335   :  { %v8497_v23 = vpop.permute.xlu1 %3497  ;;  %v8499_v30 = vpop.permute.xlu0 %3943  ;;  %v881_v55 = vmul.f32 %v8516_v41, %v863_v42  ;;  %v8549_v42 = vrot.slane %v8466_v27, %v1045_v21  ;;  %v552_v21 = vld [vmem:[%s11494_s4 + $0x58] sm:$0xff] }
 0x336   :  { %11577 = vst [vmem:[#allocation11_spill] sm:$0xff] %v8497_v23  ;;  %11578 = vst [vmem:[#allocation12_spill] sm:$0xff] %v8499_v30 }
 0x337   :  { %608 = vperm.xlu1 %7433, %v8495_v8   ;;  %2246 = vrot.lane.b32.xlu0 %v8501_v46, %s7907_s26  ;;  %v895_v19 = vadd.f32 %v881_v55, %v835_v13  ;;  %v11582_v13 = vmov 1   ;;  %v8565_v55 = vrot.slane %v8466_v27, %v1079_v63  ;;  %v8580_v27 = vld [vmem:[%s11495_s3 + $0x8] ss:$0 sm:$0xff] }
 0x338   :  { %11585 = vst [vmem:[#allocation18_spill] sm:$0xff] %v8580_v27 }
 0x339   :  { %v473_v10 = vpop.permute.xlu1 %472  ;;  %v8511_v11 = vpop.permute.xlu0 %4389 }
 0x33a   :  { %11579 = vst [vmem:[#allocation13_spill] sm:$0xff] %v8511_v11  ;;  %492 = vst.msk [vmem:[#allocation2 + $0x10] sm:$0xff] %vm450_vm3, %v473_v10  ;;  %v8534_v10 = vld [vmem:[#allocation2 + $0x8] sm:$0xff] }
 0x33b   :  { %613 = vperm.xlu1 %7433, %v549_v2   ;;  %515 = vrot.lane.b32.xlu0 %v8330_v56, %s7903_s22  ;;  %v927_v11 = vmul.f32 %v8531_v51, %v8534_v10 }
 0x33d   :  { %v8525_v17 = vpop.permute.xlu1 %2224  ;;  %v8527_v20 = vpop.permute.xlu0 %1775  ;;  %v941_v30 = vadd.f32 %v927_v11, %v895_v19 }
 0x33f   :  { %618 = vperm.xlu1 %7433, %v550_v57   ;;  %517 = vrot.lane.b32.xlu0 %v8346_v22, %s7903_s22 }
 0x341   :  { %v8542_v0 = vld [vmem:[#allocation2 + $0x9] sm:$0xff]  ;;  %v8544_v31 = vpop.permute.xlu1 %3499  ;;  %v8546_v12 = vpop.permute.xlu0 %2673 }
 0x342   :  { %v1015_v44 = vld [vmem:[#allocation2 + $0xe] sm:$0xff]  ;;  %11580 = vst [vmem:[#allocation14_spill] sm:$0xff] %v8544_v31  ;;  %11581 = vst [vmem:[#allocation15_spill] sm:$0xff] %v8546_v12  ;;  %v969_v22 = vmul.f32 %v8542_v0, %v8402_v29 }
 0x343   :  { %v1029_v3 = vmul.f32 %v1015_v44, %v8392_v25  ;;  %7434 = vset.pattern.permute.xlu1 %v11582_v13  ;;  %519 = vrot.lane.b32.xlu0 %v8363_v38, %s7903_s22  ;;  %v8559_v14 = vld [vmem:[#allocation2 + $0x10] sm:$0xff] }
 0x344   :  { %780 = vperm.xlu1 %7434, %v549_v2   ;;  %v987_v31 = vmul.f32 %v8540_v4, %v969_v22  ;;  %v8572_v25 = vld [vmem:[#allocation2 + $0xf] sm:$0xff]  ;;  %v1111_v2 = vmul.f32 %v8559_v14, %v8402_v29 }
 0x345   :  { %v8568_v23 = vpop.permute.xlu1 %4391  ;;  %v8570_v44 = vpop.permute.xlu0 %3945  ;;  %v1047_v12 = vmul.f32 %v8549_v42, %v1029_v3  ;;  %v1081_v63 = vmul.f32 %v8565_v55, %v8572_v25  ;;  %v551_v29 = vld [vmem:[%s11494_s4 + $0x50] sm:$0xff] }
 0x346   :  { %11583 = vst [vmem:[#allocation16_spill] sm:$0xff] %v8568_v23  ;;  %11584 = vst [vmem:[#allocation17_spill] sm:$0xff] %v8570_v44  ;;  %v1001_v38 = vadd.f32 %v987_v31, %v941_v30  ;;  %v1129_v3 = vmul.f32 %v8580_v27, %v1111_v2 }
 0x347   :  { %628 = vperm.xlu0 %7327, %v552_v21  }
 0x348   :  { %784 = vperm.xlu1 %7434, %v550_v57   ;;  %v1061_v11 = vadd.f32 %v1047_v12, %v1001_v38  ;;  %v11586_v12 = vmov 0   ;;  %v8595_v38 = vld [vmem:[%s11493_s1 + $0x3] ss:$0 sm:$0xff] }
 0x349   :  { %v7355_v19 = vpop.permute.xlu1 %7354  ;;  %v475_v22 = vpop.permute.xlu0 %474  ;;  %11587 = vst [vmem:[#allocation19_spill] sm:$0xff] %v8595_v38 }
 0x34a   :  { %v7357_v23 = vunpack.i.h.bf16 %v7355_v19  ;;  %v7356_v31 = vunpack.i.l.bf16 %v7355_v19  ;;  %493 = vst.msk [vmem:[#allocation2 + $0x18] sm:$0xff] %vm450_vm3, %v475_v22  ;;  %v1095_v30 = vadd.f32 %v1081_v63, %v1061_v11 }
 0x34b   :  { %7436 = vset.pattern.permute.xlu0 %v11582_v13 }
 0x34c   :  { %v7101_v57 = vpack.c.bf16 %v7357_v23, %v7356_v31  ;;  %7435 = vset.pattern.permute.xlu1 %v11586_v12  ;;  %752 = vperm.xlu0 %7436, %v8192_v33   ;;  %v1143_v19 = vadd.f32 %v1129_v3, %v1095_v30  ;;  %v11588_v23 = vmov 0.0|0.0   ;;  %v2653_v31 = vld [vmem:[#allocation3 + $0x30] sm:$0x1] }
 0x34d   :  { %v7360_v22 = vpop.permute.xlu1 %7359  ;;  %623 = vperm.xlu1 %7435, %v551_v29   ;;  %v8597_v44 = vpop.permute.xlu0 %7369 }
 0x34e   :  { %v7362_v11 = vunpack.i.h.bf16 %v7360_v22  ;;  %v7361_v63 = vunpack.i.l.bf16 %v7360_v22  ;;  %7103 = vmatpush3.bf16.xpose.msk.msra.mxu1 %vm8316_vm5, %v7101_v57  ;;  %v1162_v2 = vadd.f32 %v8595_v38, %v1143_v19  ;;  %v8614_v57 = vpack.i.bf16 %v8330_v56, %v8605_v16 }
 0x34f   :  { %7104 = vmatprep.subr.bf16.mxu1 %v11588_v23 }
 0x350   :  { %v7122_v33 = vpack.c.bf16 %v7362_v11, %v7361_v63  ;;  %2232 = vrot.lane.b32.xlu0 %v8501_v46, %s7901_s21  ;;  %v1176_v22 = vmul.f32 0.044715, %v1162_v2 }
 0x351   :  { %v8607_v30 = vpop.permute.xlu1 %7364  ;;  %2695 = vrot.lane.b32.xlu1 %v2653_v31, %s7904_s23  ;;  %v8610_v3 = vpop.permute.xlu0 %2226 }
 0x352   :  { %7124 = vmatpush3.bf16.xpose.msk.msra.mxu0 %vm8316_vm5, %v7122_v33  ;;  %7442 = vset.pattern.permute.xlu1 %v11582_v13  ;;  %v1183_v46 = vmul.f32 %v1176_v22, %v1162_v2 }
 0x353   :  { %7125 = vmatprep.subr.bf16.mxu0 %v11588_v23 }
 0x354   :  { %7438 = vrot.lane.b32.xlu0 %v8614_v57, %s7905_s24  ;;  %v1190_v56 = vmul.f32 %v1183_v46, %v1162_v2 }
 0x355   :  { %v8622_v19 = vpop.permute.xlu1 %1777  ;;  %521 = vrot.lane.b32.xlu1 %v8390_v24, %s7903_s22  ;;  %v8626_v11 = vpop.permute.xlu0 %7379 }
 0x356   :  { %v1197_v63 = vadd.f32 %v1190_v56, %v1162_v2 }
 0x358   :  { %756 = vperm.xlu0 %7436, %v8202_v35   ;;  %v1204_v22 = vmul.f32 0.7978846, %v1197_v63  ;;  %v553_v35 = vld [vmem:[%s11494_s4 + $0x60] sm:$0xff]  ;;  %v1169_v63 = vmul.f32 0.5, %v1162_v2 }
 0x359   :  { %v8629_v33 = vpop.permute.xlu1 %7374  ;;  %792 = vperm.xlu1 %7442, %v552_v21   ;;  %v8631_v38 = vpop.permute.xlu0 %7384 }
 0x35a   :  { %7576 = vtanh.f32 %v1204_v22 }
 0x35c   :  { %760 = vperm.xlu0 %7436, %v8211_v40   ;;  %v554_v40 = vld [vmem:[%s11494_s4 + $0x68] sm:$0x3] }
 0x35d   :  { %v8634_v54 = vpop.permute.xlu1 %2675  ;;  %523 = vrot.lane.b32.xlu1 %v8413_v43, %s7903_s22  ;;  %v8638_v24 = vpop.permute.xlu0 %3501 }
 0x35e   :  { %11589 = vst [vmem:[#allocation20_spill] sm:$0xff] %v8634_v54  ;;  %11590 = vst [vmem:[#allocation21_spill] sm:$0xff] %v8638_v24  ;;  %7443 = vset.pattern.permute.xlu1 %v11586_v12  ;;  %v8662_v24 = vld [vmem:[#allocation2 + $0xa] sm:$0xff] }
 0x360   :  { %764 = vperm.xlu0 %7436, %v8186_v32  }
 0x361   :  { %v8645_v21 = vpop.permute.xlu1 %7389  ;;  %633 = vperm.xlu1 %7443, %v553_v35   ;;  %v8647_v46 = vpop.permute.xlu0 %4393 }
 0x362   :  { %11591 = vst [vmem:[#allocation22_spill] sm:$0xff] %v8645_v21  ;;  %11592 = vst [vmem:[#allocation23_spill] sm:$0xff] %v8647_v46 }
 0x364   :  { %776 = vperm.xlu0 %7436, %v8495_v8   ;;  %v7577_v43 = vpop.eup %7576 }
 0x365   :  { %v8653_v56 = vpop.permute.xlu1 %3947  ;;  %638 = vperm.xlu1 %7443, %v554_v40   ;;  %v477_v12 = vpop.permute.xlu0 %476  ;;  %v1218_v32 = vadd.f32 1.0, %v7577_v43 }
 0x366   :  { %11593 = vst [vmem:[#allocation24_spill] sm:$0xff] %v8653_v56  ;;  %494 = vst.msk [vmem:[#allocation2 + $0x20] sm:$0xff] %vm450_vm3, %v477_v12 }
 0x367   :  { %v1225_v22 = vmul.f32 %v1218_v32, %v1169_v63  ;;  %v462_v32 = vld [vmem:[#allocation3 + $0x30] sm:$0x1] }
 0x368   :  { %788 = vperm.xlu0 %7436, %v551_v29   ;;  %v505_v29 = vld [vmem:[#allocation3 + $0x61] sm:$0x1] }
 0x369   :  { %v8656_v21 = vpop.permute.xlu1 %1779  ;;  %7444 = vset.pattern.permute.xlu1 %v11582_v13  ;;  %v8659_v46 = vpop.permute.xlu0 %2228  ;;  %v1232_v8 = vadd.f32 %v1225_v22, %v8534_v10 }
 0x36a   :  { %796 = vperm.xlu1 %7444, %v553_v35  }
 0x36b   :  { %1239 = vst.msk [vmem:[#allocation2 + $0x8] sm:$0xff] %vm450_vm3, %v1232_v8 }
 0x36c   :  { %800 = vperm.xlu0 %7436, %v554_v40  }
 0x36d   :  { %v8665_v56 = vpop.permute.xlu1 %2677  ;;  %v8667_v2 = vpop.permute.xlu0 %3503 }
 0x36e   :  { %11594 = vst [vmem:[#allocation25_spill] sm:$0xff] %v8665_v56  ;;  %11595 = vst [vmem:[#allocation26_spill] sm:$0xff] %v8667_v2  ;;  %525 = vrot.lane.b32.xlu1 %v505_v29, %s7903_s22 }
 0x370   :  { %3495 = vrot.lane.b32.xlu0 %v8605_v16, %s7900_s20 }
 0x371   :  { %v8672_v13 = vpop.permute.xlu1 %3949  ;;  %v479_v35 = vpop.permute.xlu0 %478 }
 0x372   :  { %11596 = vst [vmem:[#allocation27_spill] sm:$0xff] %v8672_v13  ;;  %495 = vst.msk [vmem:[#allocation2 + $0x28] sm:$0xff] %vm450_vm3, %v479_v35  ;;  %2681 = vrot.lane.b32.xlu1 %v2653_v31, %s7902_s2 }
 0x374   :  { %7456 = vrot.lane.b32.xlu0 %v8614_v57, %s7904_s23 }
 0x375   :  { %v8678_v40 = vpop.permute.xlu1 %4395  ;;  %v7400_v43 = vpop.permute.xlu0 %7399 }
 0x376   :  { %11597 = vst [vmem:[#allocation28_spill] sm:$0xff] %v8678_v40  ;;  %v7402_v12 = vunpack.i.h.bf16 %v7400_v43  ;;  %v7401_v63 = vunpack.i.l.bf16 %v7400_v43  ;;  %7446 = vrot.lane.b32.xlu1 %v8614_v57, %s7906_s25  ;;  %v11598_v40 = vmov 0.0  }
 0x378   :  { %v7126_v22 = vpack.c.bf16 %v7402_v12, %v7401_v63  ;;  %482 = vrot.lane.b32.xlu0 %v462_v32, %s7903_s22 }
 0x379   :  { %v7395_v8 = vpop.permute.xlu1 %7394  ;;  %v8683_v29 = vpop.permute.xlu0 %7404 }
 0x37a   :  { %v7397_v35 = vunpack.i.h.bf16 %v7395_v8  ;;  %v7396_v31 = vunpack.i.l.bf16 %v7395_v8  ;;  %7451 = vrot.lane.b32.xlu1 %v8614_v57, %s7907_s26  ;;  %7128 = vmatpush3.bf16.xpose.msk.msra.mxu0 %vm8316_vm5, %v7126_v22 }
 0x37b   :  { %6439 = vmatprep.subr.mxu0 %v11598_v40 }
 0x37c   :  { %v7105_v43 = vpack.c.bf16 %v7397_v35, %v7396_v31  ;;  %513 = vrot.lane.b32.xlu0 %v8605_v16, %s7903_s22 }
 0x37d   :  { %v8692_v12 = vpop.permute.xlu1 %7409  ;;  %v8694_v63 = vpop.permute.xlu0 %1781 }
 0x37e   :  { %3941 = vrot.lane.b32.xlu1 %v8605_v16, %s7901_s21  ;;  %7107 = vmatpush3.bf16.xpose.msk.msra.mxu1 %vm8316_vm5, %v7105_v43 }
 0x37f   :  { %6369 = vmatprep.subr.mxu1 %v11598_v40 }
 0x381   :  { %v8701_v57 = vpop.permute.xlu1 %2230  ;;  %v8703_v32 = vpop.permute.xlu0 %7414 }
 0x382   :  { %11599 = vst [vmem:[#allocation29_spill] sm:$0xff] %v8701_v57  ;;  %4387 = vrot.lane.b32.xlu1 %v8605_v16, %s7902_s2 }
 0x385   :  { %v8707_v22 = vpop.permute.xlu1 %7419  ;;  %v8709_v8 = vpop.permute.xlu0 %2679 }
 0x386   :  { %11600 = vst [vmem:[#allocation30_spill] sm:$0xff] %v8709_v8 }
 0x389   :  { %v8711_v35 = vpop.permute.xlu1 %7424  ;;  %v8713_v31 = vpop.permute.xlu0 %3129 }
 0x38a   :  { %11601 = vst [vmem:[#allocation31_spill] sm:$0xff] %v8711_v35  ;;  %11602 = vst [vmem:[#allocation32_spill] sm:$0xff] %v8713_v31 }
 0x38d   :  { %v8715_v13 = vpop.permute.xlu1 %3505  ;;  %v8717_v43 = vpop.permute.xlu0 %3521 }
 0x38e   :  { %11603 = vst [vmem:[#allocation33_spill] sm:$0xff] %v8715_v13  ;;  %11604 = vst [vmem:[#allocation34_spill] sm:$0xff] %v8717_v43  ;;  %v7347_v13 = vunpack.i.h.bf16 %v8445_v53 }
 0x391   :  { %v8719_v2 = vpop.permute.xlu1 %3967  ;;  %v8721_v56 = vpop.permute.xlu0 %3507 }
 0x392   :  { %11605 = vst [vmem:[#allocation35_spill] sm:$0xff] %v8719_v2  ;;  %11606 = vst [vmem:[#allocation36_spill] sm:$0xff] %v8721_v56  ;;  %v7346_v2 = vunpack.i.l.bf16 %v8445_v53 }
 0x395   :  { %v8723_v54 = vpop.permute.xlu1 %3953  ;;  %v8725_v27 = vpop.permute.xlu0 %7429 }
 0x396   :  { %11607 = vst [vmem:[#allocation37_spill] sm:$0xff] %v8723_v54  ;;  %11608 = vst [vmem:[#allocation38_spill] sm:$0xff] %v8725_v27  ;;  %v7386_v54 = vunpack.i.l.bf16 %v8631_v38  ;;  %v1017_v27 = vld [vmem:[#allocation2 + $0x1e] sm:$0xff] }
 0x399   :  { %v8727_v16 = vpop.permute.xlu1 %4399  ;;  %v8729_v57 = vpop.permute.xlu0 %3951 }
 0x39a   :  { %11609 = vst [vmem:[#allocation39_spill] sm:$0xff] %v8727_v16  ;;  %11610 = vst [vmem:[#allocation40_spill] sm:$0xff] %v8729_v57 }
 0x39d   :  { %v1399_v8 = vpop.permute.xlu1 %1398  ;;  %v8731_v35 = vpop.permute.xlu0 %4413 }
 0x39e   :  { %11611 = vst [vmem:[#allocation41_spill] sm:$0xff] %v8731_v35  ;;  %6370 = vmatpush3.xpose.msk.msra.mxu1 %vm1400_vm4, %v1399_v8  ;;  %v7139_v8 = vpack.c.bf16 %v7347_v13, %v7346_v2  ;;  %v961_v2 = vld [vmem:[#allocation2 + $0x39] sm:$0xff]  ;;  %v7387_v35 = vunpack.i.h.bf16 %v8631_v38 }
 0x39f   :  { %7108 = vmatprep.subr.bf16.mxu1 %v11588_v23 }
 0x3a1   :  { %v1798_v56 = vpop.permute.xlu1 %1797  ;;  %v8737_v43 = vpop.permute.xlu0 %4397  ;;  %6372 = vmatmul.mubr.msk.f32.vlgmr.msra.gmra.mrb[12].mxu1 %vm1400_vm4, %v8265_v28  ;;  %v7367_v28 = vunpack.i.h.bf16 %v8607_v30 }
 0x3a2   :  { %11612 = vst [vmem:[#allocation42_spill] sm:$0xff] %v8737_v43  ;;  %6440 = vmatpush3.xpose.msk.msra.mxu0 %vm1400_vm4, %v1798_v56  ;;  %6374 = vmatprep.mubr.msk.f32.mxu1 %vm7896_vm2, %v11598_v40  ;;  %v7376_v43 = vunpack.i.l.bf16 %v8629_v33 }
 0x3a3   :  { %7138 = vmatprep.subr.bf16.mxu0 %v11588_v23 }
 0x3a5   :  { %v481_v16 = vpop.permute.xlu0 %480  ;;  %6375 = vmatmul.mubr.msk.f32.gmra.mrb[14].mxu1 %vm1400_vm4, %v8272_v36  ;;  %6442 = vmatmul.mubr.msk.f32.vlgmr.msra.gmra.mrb[14].mxu0 %vm1400_vm4, %v8437_v26  ;;  %v7366_v36 = vunpack.i.l.bf16 %v8607_v30 }
 0x3a6   :  { %496 = vst.msk [vmem:[#allocation2 + $0x30] sm:$0xff] %vm450_vm3, %v481_v16  ;;  %7141 = vmatpush3.bf16.xpose.msk.msra.mxu0 %vm8316_vm5, %v7139_v8  ;;  %6377 = vmatprep.mubr.msk.f32.mxu1 %vm7896_vm2, %v11598_v40  ;;  %v706_v16 = vmul.f32 %v8542_v0, %v8476_v59  ;;  %v864_v8 = vmul.f32 %v8572_v25, %v8303_v48 }
 0x3a7   :  { %6444 = vmatprep.mubr.msk.f32.mxu0 %vm7896_vm2, %v11598_v40  ;;  %7142 = vmatprep.subr.bf16.mxu0 %v11588_v23  ;;  %v7143_v26 = vpack.c.bf16 %v7367_v28, %v7366_v36  ;;  %v7371_v28 = vunpack.i.l.bf16 %v8597_v44 }
 0x3a9   :  { %v8759_v53 = vpop.permute.xlu0 %2246  ;;  %6378 = vmatmul.mubr.msk.f32.gmra.mrb[16].mxu1 %vm1400_vm4, %v8281_v37  ;;  %6445 = vmatmul.mubr.msk.f32.gmra.mrb[16].mxu0 %vm1400_vm4, %v8456_v7  ;;  %v7407_v37 = vunpack.i.h.bf16 %v8683_v29 }
 0x3aa   :  { %6380 = vmatprep.mubr.msk.f32.mxu1 %vm7896_vm2, %v11598_v40  ;;  %6447 = vmatprep.mubr.msk.f32.mxu0 %vm7896_vm2, %v11598_v40 }
 0x3ad   :  { %v516_v56 = vpop.permute.xlu0 %515  ;;  %6381 = vmatmul.mubr.msk.f32.gmra.mrb[18].mxu1 %vm1400_vm4, %v8286_v34  ;;  %6448 = vmatmul.mubr.msk.f32.gmra.mrb[18].mxu0 %vm1400_vm4, %v8527_v20  ;;  %v7406_v34 = vunpack.i.l.bf16 %v8683_v29  ;;  %v1784_v20 = vpop.permute.xlu1 %1783  ;;  %v7351_v29 = vunpack.i.l.bf16 %v8454_v6 }
 0x3ae   :  { %535 = vst.msk [vmem:[#allocation2 + $0x49] sm:$0xff] %vm450_vm3, %v516_v56  ;;  %7145 = vmatpush3.bf16.xpose.msk.msra.mxu0 %vm8316_vm5, %v7143_v26  ;;  %6383 = vmatprep.mubr.msk.f32.mxu1 %vm7896_vm2, %v11598_v40  ;;  %v8837_v26 = vld [vmem:[#allocation2 + $0x11] sm:$0xff] }
 0x3af   :  { %6450 = vmatprep.mubr.msk.f32.mxu0 %vm7896_vm2, %v11598_v40  ;;  %7146 = vmatprep.subr.bf16.mxu0 %v11588_v23  ;;  %v7147_v30 = vpack.c.bf16 %v7407_v37, %v7406_v34  ;;  %v1016_v56 = vld [vmem:[#allocation2 + $0x16] sm:$0xff] }
 0x3b1   :  { %v518_v7 = vpop.permute.xlu0 %517  ;;  %6384 = vmatmul.mubr.msk.f32.gmra.mrb[20].mxu1 %vm1400_vm4, %v8292_v45  ;;  %6451 = vmatmul.mubr.msk.f32.gmra.mrb[20].mxu0 %vm1400_vm4, %v8622_v19  ;;  %v975_v19 = vmul.f32 %v961_v2, %v8432_v52  ;;  %v8849_v2 = vld [vmem:[#allocation2 + $0x29] sm:$0xff] }
 0x3b2   :  { %536 = vst.msk [vmem:[#allocation2 + $0x51] sm:$0xff] %vm450_vm3, %v518_v7  ;;  %6386 = vmatprep.mubr.msk.f32.mxu1 %vm7896_vm2, %v11598_v40  ;;  %6453 = vmatprep.mubr.msk.f32.mxu0 %vm7896_vm2, %v11598_v40  ;;  %v8843_v7 = vmul.f32 %v8516_v41, %v864_v8  ;;  %11617 = vst [vmem:[#allocation47_spill] sm:$0xff] %v8849_v2  ;;  %v7382_v8 = vunpack.i.h.bf16 %v8626_v11 }
 0x3b3   :  { %v8833_v25 = vmul.f32 %v8540_v4, %v975_v19 }
 0x3b5   :  { %v520_v13 = vpop.permute.xlu0 %519  ;;  %6387 = vmatmul.mubr.msk.f32.gmra.mrb[22].mxu1 %vm1400_vm4, %v8296_v47  ;;  %6454 = vmatmul.mubr.msk.f32.gmra.mrb[22].mxu0 %vm1400_vm4, %v8656_v21  ;;  %v642_v47 = vmul.f32 %v8534_v10, %v8303_v48  ;;  %v7352_v21 = vunpack.i.h.bf16 %v8454_v6  ;;  %v7372_v10 = vunpack.i.h.bf16 %v8597_v44  ;;  %v851_v6 = vld [vmem:[#allocation2 + $0x17] sm:$0xff]  ;;  %11616 = vst [vmem:[#allocation46_spill] sm:$0xff] %v8833_v25 }
 0x3b6   :  { %537 = vst.msk [vmem:[#allocation2 + $0x59] sm:$0xff] %vm450_vm3, %v520_v13  ;;  %v8797_v45 = vpop.permute.xlu1 %608  ;;  %7149 = vmatpush3.bf16.xpose.msk.msra.mxu0 %vm8316_vm5, %v7147_v30  ;;  %6389 = vmatprep.mubr.msk.f32.mxu1 %vm7896_vm2, %v11598_v40  ;;  %v8835_v44 = vld [vmem:[#allocation2 + $0x18] sm:$0xff]  ;;  %v8847_v30 = vmul.f32 %v8531_v51, %v8559_v14  ;;  %v738_v13 = vld [vmem:[#allocation2 + $0x2a] sm:$0xff] }
 0x3b7   :  { %11613 = vst [vmem:[#allocation43_spill] sm:$0xff] %v8797_v45  ;;  %6456 = vmatprep.mubr.msk.f32.mxu0 %vm7896_vm2, %v11598_v40  ;;  %6509 = vmatprep.subr.mxu0 %v11598_v40  ;;  %v660_v0 = vmul.f32 %v8472_v58, %v642_v47  ;;  %v7160_v37 = vpack.c.bf16 %v7352_v21, %v7351_v29  ;;  %v8913_v45 = vld [vmem:[#allocation2 + $0x21] sm:$0xff] }
 0x3b8   :  { %v8851_v47 = vpack.c.bf16 %v7372_v10, %v7371_v28  ;;  %v707_v29 = vmul.f32 %v8837_v26, %v8476_v59  ;;  %v7381_v10 = vunpack.i.l.bf16 %v8626_v11  ;;  %v852_v28 = vld [vmem:[#allocation2 + $0x1f] sm:$0xff]  ;;  %v8887_v11 = vmul.f32 %v8565_v55, %v851_v6 }
 0x3b9   :  { %6390 = vmatmul.mubr.msk.f32.gmra.mrb[24].mxu1 %vm1400_vm4, %v8452_v5  ;;  %6457 = vmatmul.mubr.msk.f32.gmra.mrb[24].mxu0 %vm1400_vm4, %v8694_v63  ;;  %v643_v5 = vmul.f32 %v8559_v14, %v8305_v49  ;;  %v8830_v63 = vld [vmem:[#allocation2 + $0x28] sm:$0xff]  ;;  %v8840_v34 = vadd.f32 %v706_v16, %v660_v0  ;;  %v1030_v14 = vmul.f32 %v1016_v56, %v8303_v48  ;;  %v7377_v56 = vunpack.i.h.bf16 %v8629_v33 }
 0x3ba   :  { %v8821_v36 = vpop.permute.xlu1 %613  ;;  %6459 = vmatprep.mubr.msk.f32.mxu0 %vm7896_vm2, %v11598_v40  ;;  %6406 = vmatprep.mubr.msk.f32.mxu1 %vm7896_vm2, %v11598_v40  ;;  %11615 = vst [vmem:[#allocation45_spill] sm:$0xff] %v8830_v63  ;;  %v646_v21 = vmul.f32 %v8830_v63, %v8309_v61  ;;  %v865_v16 = vmul.f32 %v851_v6, %v8305_v49 }
 0x3bb   :  { %11614 = vst [vmem:[#allocation44_spill] sm:$0xff] %v8821_v36  ;;  %v710_v0 = vmul.f32 %v8476_v59, %v8849_v2  ;;  %v808_v48 = vmul.f32 %v8418_v18, %v738_v13  ;;  %v8891_v13 = vmul.f32 %v8531_v51, %v8835_v44  ;;  %v866_v25 = vmul.f32 %v852_v28, %v8307_v60  ;;  %v8907_v18 = vld [vmem:[#allocation2 + $0x2f] sm:$0xff] }
 0x3bc   :  { %v664_v33 = vmul.f32 %v8472_v58, %v646_v21  ;;  %v8910_v21 = vmul.f32 %v8516_v41, %v865_v16  ;;  %v8916_v31 = vpack.c.bf16 %v7382_v8, %v7381_v10  ;;  %v8918_v2 = vpack.c.bf16 %v7377_v56, %v7376_v43  ;;  %v8952_v56 = vld [vmem:[#allocation2 + $0x30] sm:$0xff] }
 0x3bd   :  { %6460 = vmatmul.mubr.msk.f32.gmra.mrb[26].mxu0 %vm1400_vm4, %v1784_v20  ;;  %v661_v20 = vmul.f32 %v8472_v58, %v643_v5  ;;  %v8871_v5 = vld [vmem:[#allocation2 + $0x19] sm:$0xff]  ;;  %11619 = vst [vmem:[#allocation49_spill] sm:$0xff] %v8891_v13  ;;  %v8920_v13 = vpack.c.bf16 %v7387_v35, %v7386_v54  ;;  %v8925_v16 = vmul.f32 %v8565_v55, %v852_v28 }
 0x3be   :  { %v8853_v19 = vpop.permute.xlu1 %618  ;;  %6510 = vmatpush3.xpose.msk.msra.mxu0 %vm1400_vm4, %v8759_v53  ;;  %6511 = vmatprep.mubr.msk.f32.mxu0 %vm7896_vm2, %v11598_v40  ;;  %v644_v53 = vmul.f32 %v8835_v44, %v8307_v60  ;;  %v708_v6 = vmul.f32 %v8871_v5, %v8476_v59  ;;  %11621 = vst [vmem:[#allocation51_spill] sm:$0xff] %v8910_v21  ;;  %11622 = vst [vmem:[#allocation52_spill] sm:$0xff] %v8916_v31  ;;  %v853_v21 = vld [vmem:[#allocation2 + $0x27] sm:$0xff] }
 0x3bf   :  { %11618 = vst [vmem:[#allocation48_spill] sm:$0xff] %v8853_v19  ;;  %7159 = vmatprep.subr.bf16.mxu0 %v11588_v23  ;;  %v8900_v38 = vadd.f32 %v707_v29, %v661_v20  ;;  %v724_v20 = vadd.f32 %v710_v0, %v664_v33  ;;  %v826_v29 = vmul.f32 %v8488_v9, %v808_v48  ;;  %11623 = vst [vmem:[#allocation53_spill] sm:$0xff] %v8918_v2  ;;  %v1019_v31 = vld [vmem:[#allocation2 + $0x2e] sm:$0xff] }
 0x3c0   :  { %v662_v52 = vmul.f32 %v8472_v58, %v644_v53  ;;  %11624 = vst [vmem:[#allocation54_spill] sm:$0xff] %v8920_v13  ;;  %11625 = vst [vmem:[#allocation55_spill] sm:$0xff] %v8925_v16  ;;  %v1031_v0 = vmul.f32 %v1017_v27, %v8305_v49  ;;  %v8945_v10 = vmul.f32 %v8516_v41, %v866_v25  ;;  %v7412_v27 = vunpack.i.h.bf16 %v8692_v12 }
 0x3c1   :  { %6512 = vmatmul.mubr.msk.f32.vlgmr.msra.gmra.mrb[28].mxu0 %vm1400_vm4, %v8311_v62  ;;  %v8898_v62 = vmul.f32 %v8549_v42, %v1030_v14  ;;  %v1018_v14 = vld [vmem:[#allocation2 + $0x26] sm:$0xff]  ;;  %v709_v49 = vmul.f32 %v8913_v45, %v8476_v59  ;;  %v7411_v48 = vunpack.i.l.bf16 %v8692_v12  ;;  %v840_v33 = vadd.f32 %v826_v29, %v724_v20  ;;  %v1023_v20 = vld [vmem:[#allocation2 + $0x4e] sm:$0xff] }
 0x3c2   :  { %7162 = vmatpush3.bf16.xpose.msk.msra.mxu0 %vm8316_vm5, %v7160_v37  ;;  %6514 = vmatprep.mubr.msk.f32.mxu0 %vm7896_vm2, %v11598_v40  ;;  %v8902_v37 = vld [vmem:[#allocation2 + $0x20] sm:$0xff]  ;;  %v8942_v8 = vadd.f32 %v708_v6, %v662_v52  ;;  %v1032_v28 = vmul.f32 %v1018_v14, %v8307_v60  ;;  %v867_v13 = vmul.f32 %v853_v21, %v8409_v39  ;;  %v7417_v52 = vunpack.i.h.bf16 %v8703_v32 }
 0x3c3   :  { %v8894_v57 = vpop.permute.xlu1 %780  ;;  %7163 = vmatprep.subr.bf16.mxu0 %v11588_v23  ;;  %v8934_v43 = vmul.f32 %v8531_v51, %v8902_v37  ;;  %v645_v54 = vmul.f32 %v8902_v37, %v8409_v39  ;;  %v7416_v25 = vunpack.i.l.bf16 %v8703_v32  ;;  %v7422_v6 = vunpack.i.h.bf16 %v8707_v22 }
 0x3c4   :  { %11620 = vst [vmem:[#allocation50_spill] sm:$0xff] %v8894_v57  ;;  %v7421_v60 = vunpack.i.l.bf16 %v8707_v22  ;;  %v8967_v12 = vmul.f32 %v8549_v42, %v1031_v0  ;;  %v647_v22 = vmul.f32 %v8425_v50, %v8952_v56  ;;  %v1033_v0 = vmul.f32 %v1019_v31, %v8409_v39 }
 0x3c5   :  { %6515 = vmatmul.mubr.msk.f32.gmra.mrb[30].mxu0 %vm1400_vm4, %v8479_v15  ;;  %11626 = vst [vmem:[#allocation56_spill] sm:$0xff] %v8934_v43  ;;  %v868_v15 = vmul.f32 %v8907_v18, %v8309_v61  ;;  %v663_v14 = vmul.f32 %v8472_v58, %v645_v54  ;;  %v1076_v54 = vld [vmem:[#allocation2 + $0x77] sm:$0x3]  ;;  %v8989_v50 = vmul.f32 %v8549_v42, %v1032_v28  ;;  %v858_v28 = vld [vmem:[#allocation2 + $0x4f] sm:$0xff] }
 0x3c6   :  { %v8927_v53 = vpop.permute.xlu0 %628  ;;  %6517 = vmatprep.mubr.msk.f32.mxu0 %vm7896_vm2, %v11598_v40  ;;  %11627 = vst [vmem:[#allocation57_spill] sm:$0xff] %v8967_v12  ;;  %v8993_v43 = vpack.c.bf16 %v7417_v52, %v7416_v25  ;;  %v8995_v12 = vpack.c.bf16 %v7422_v6, %v7421_v60  ;;  %v9000_v39 = vmul.f32 %v8516_v41, %v867_v13  ;;  %v1024_v13 = vld [vmem:[#allocation2 + $0x56] sm:$0xff] }
 0x3c7   :  { %v8940_v35 = vpop.permute.xlu1 %784  ;;  %v886_v32 = vmul.f32 %v8516_v41, %v868_v15  ;;  %v8991_v2 = vadd.f32 %v709_v49, %v663_v14  ;;  %v1037_v31 = vmul.f32 %v1023_v20, %v8821_v36  ;;  %v918_v49 = vld [vmem:[#allocation2 + $0x50] sm:$0xff]  ;;  %v9015_v25 = vmul.f32 %v8549_v42, %v1033_v0 }
 0x3c8   :  { %11630 = vst [vmem:[#allocation60_spill] sm:$0xff] %v8995_v12  ;;  %v9019_v6 = vmul.f32 %v8565_v55, %v8907_v18  ;;  %v9036_v18 = vmul.f32 %v8565_v55, %v858_v28  ;;  %v568_v12 = vld [vmem:[#allocation2 + $0x58] sm:$0xff] }
 0x3c9   :  { %6518 = vmatmul.mubr.msk.f32.gmra.mrb[32].mxu0 %vm1400_vm4, %v8525_v17  ;;  %v8977_v17 = vmul.f32 %v8565_v55, %v853_v21  ;;  %v900_v16 = vadd.f32 %v886_v32, %v840_v33  ;;  %v694_v21 = vld [vmem:[#allocation2 + $0x39] sm:$0xff] }
 0x3ca   :  { %7166 = vmatpush3.bf16.xpose.msk.msra.mxu0 %vm8316_vm5, %v8851_v47  ;;  %6520 = vmatprep.mubr.msk.f32.mxu0 %vm7896_vm2, %v11598_v40  ;;  %v8981_v47 = vmul.f32 %v8531_v51, %v8830_v63  ;;  %v9022_v60 = vmul.f32 %v8476_v59, %v694_v21  ;;  %v9027_v32 = vld [vmem:[#allocation2 + $0x59] sm:$0xff]  ;;  %11633 = vst [vmem:[#allocation63_spill] sm:$0xff] %v9036_v18 }
 0x3cb   :  { %v8973_v29 = vpop.permute.xlu0 %752  ;;  %7167 = vmatprep.subr.bf16.mxu0 %v11588_v23  ;;  %11628 = vst [vmem:[#allocation58_spill] sm:$0xff] %v8977_v17  ;;  %v7168_v17 = vpack.c.bf16 %v7412_v27, %v7411_v48  ;;  %v932_v27 = vmul.f32 %v8531_v51, %v8952_v56  ;;  %v9009_v48 = vmul.f32 %v8565_v55, %v1076_v54  ;;  %v859_v36 = vld [vmem:[#allocation2 + $0x57] sm:$0xff] }
 0x3cc   :  { %11629 = vst [vmem:[#allocation59_spill] sm:$0xff] %v8981_v47  ;;  %v804_v15 = vmul.f32 %v8973_v29, %v8662_v24  ;;  %v8986_v61 = vpop.permute.xlu1 %623  ;;  %v696_v47 = vld [vmem:[#allocation2 + $0x49] sm:$0xff]  ;;  %v1248_v24 = vld [vmem:[#allocation2 + $0x51] sm:$0xff]  ;;  %v970_v20 = vmul.f32 %v8837_v26, %v8973_v29  ;;  %v9039_v21 = vmul.f32 %v8531_v51, %v918_v49  ;;  %v9047_v26 = vmul.f32 %v8549_v42, %v1037_v31 }
 0x3cd   :  { %6521 = vmatmul.mubr.msk.f32.gmra.mrb[34].mxu0 %vm1400_vm4, %v8610_v3  ;;  %v9012_v3 = vmul.f32 %v8472_v58, %v647_v22  ;;  %v9025_v14 = vmul.f32 %v8476_v59, %v696_v47  ;;  %v9032_v0 = vadd.f32 %v932_v27, %v900_v16  ;;  %v652_v31 = vmul.f32 %v8927_v53, %v568_v12 }
 0x3ce   :  { %v822_v33 = vmul.f32 %v8488_v9, %v804_v15  ;;  %6523 = vmatprep.mubr.msk.f32.mxu0 %vm7896_vm2, %v11598_v40  ;;  %v872_v15 = vmul.f32 %v858_v28, %v8853_v19  ;;  %11634 = vst [vmem:[#allocation64_spill] sm:$0xff] %v9039_v21  ;;  %11635 = vst [vmem:[#allocation65_spill] sm:$0xff] %v9047_v26  ;;  %v977_v28 = vmul.f32 %v8894_v57, %v696_v47 }
 0x3cf   :  { %v2233_v52 = vpop.permute.xlu0 %2232  ;;  %11631 = vst [vmem:[#allocation61_spill] sm:$0xff] %v9025_v14  ;;  %11632 = vst [vmem:[#allocation62_spill] sm:$0xff] %v9032_v0  ;;  %v9042_v14 = vmul.f32 %v1248_v24, %v8476_v59  ;;  %v9067_v47 = vmul.f32 %v8531_v51, %v568_v12 }
 0x3d0   :  { %v836_v22 = vadd.f32 %v822_v33, %v8840_v34  ;;  %v2696_v54 = vpop.permute.xlu1 %2695  ;;  %v1038_v34 = vmul.f32 %v1024_v13, %v8853_v19  ;;  %v1119_v33 = vmul.f32 %v918_v49, %v8894_v57  ;;  %v742_v13 = vld [vmem:[#allocation2 + $0x4a] sm:$0xff]  ;;  %v9070_v26 = vmul.f32 %v8516_v41, %v872_v15 }
 0x3d1   :  { %6524 = vmatmul.mubr.msk.f32.gmra.mrb[36].mxu0 %vm1400_vm4, %v8659_v46  ;;  %v716_v46 = vmul.f32 %v8476_v59, %v9027_v32  ;;  %v812_v21 = vmul.f32 %v8940_v35, %v742_v13  ;;  %v978_v57 = vmul.f32 %v1248_v24, %v8940_v35  ;;  %v651_v19 = vmul.f32 %v918_v49, %v8986_v61  ;;  %v11641_v49 = vld [vmem:[#allocation18_spill] sm:$0xff] }
 0x3d2   :  { %v896_v16 = vadd.f32 %v8843_v7, %v836_v22  ;;  %7170 = vmatpush3.bf16.xpose.msk.msra.mxu0 %vm8316_vm5, %v7168_v17  ;;  %6526 = vmatprep.mubr.msk.f32.mxu0 %vm7896_vm2, %v11598_v40  ;;  %v988_v17 = vmul.f32 %v8540_v4, %v970_v20  ;;  %v9064_v22 = vmul.f32 %v8565_v55, %v859_v36 }
 0x3d3   :  { %v7439_v27 = vpop.permute.xlu0 %7438  ;;  %6579 = vmatprep.subr.mxu0 %v11598_v40  ;;  %11637 = vst [vmem:[#allocation67_spill] sm:$0xff] %v9070_v26  ;;  %v9079_v20 = vmul.f32 %v8549_v42, %v1038_v34  ;;  %v1112_v15 = vmul.f32 %v8835_v44, %v8973_v29  ;;  %v9087_v24 = vmul.f32 %v8540_v4, %v977_v28 }
 0x3d4   :  { %v942_v7 = vadd.f32 %v8847_v30, %v896_v16  ;;  %11636 = vst [vmem:[#allocation66_spill] sm:$0xff] %v9064_v22  ;;  %v522_v18 = vpop.permute.xlu1 %521  ;;  %v11638_v30 = vld [vmem:[#allocation29_spill] sm:$0xff]  ;;  %v1120_v16 = vmul.f32 %v8940_v35, %v568_v12  ;;  %v670_v13 = vmul.f32 %v8472_v58, %v652_v31  ;;  %v873_v34 = vmul.f32 %v859_v36, %v8986_v61 }
 0x3d5   :  { %538 = vst.msk [vmem:[#allocation2 + $0x61] sm:$0xff] %vm450_vm3, %v522_v18  ;;  %6527 = vmatmul.mubr.msk.f32.gmra.mrb[38].mxu0 %vm1400_vm4, %v11638_v30  ;;  %11639 = vst [vmem:[#allocation29_spill] sm:$0xff] %v9079_v20  ;;  %v9090_v18 = vmul.f32 %v11641_v49, %v1119_v33  ;;  %v735_v30 = vld [vmem:[#allocation2 + $0x12] sm:$0xff]  ;;  %v7441_v12 = vunpack.i.h.bf16 %v7439_v27  ;;  %v9098_v26 = vmul.f32 %v8488_v9, %v812_v21 }
 0x3d6   :  { %v1002_v22 = vadd.f32 %v988_v17, %v942_v7  ;;  %6529 = vmatprep.mubr.msk.f32.mxu0 %vm7896_vm2, %v11598_v40  ;;  %11640 = vst [vmem:[#allocation68_spill] sm:$0xff] %v9087_v24  ;;  %v7440_v7 = vunpack.i.l.bf16 %v7439_v27  ;;  %v9101_v28 = vmul.f32 %v8540_v4, %v978_v57  ;;  %v669_v33 = vmul.f32 %v8472_v58, %v651_v19 }
 0x3d7   :  { %11642 = vst [vmem:[#allocation18_spill] sm:$0xff] %v9090_v18  ;;  %v757_v20 = vpop.permute.xlu0 %756  ;;  %11643 = vst [vmem:[#allocation69_spill] sm:$0xff] %v9098_v26  ;;  %v9107_v36 = vmul.f32 %v11641_v49, %v1120_v16  ;;  %v1130_v27 = vmul.f32 %v11641_v49, %v1112_v15  ;;  %v730_v21 = vadd.f32 %v716_v46, %v670_v13  ;;  %v737_v18 = vld [vmem:[#allocation2 + $0x22] sm:$0xff]  ;;  %v11652_v26 = vld [vmem:[#allocation10_spill] sm:$0xff] }
 0x3d8   :  { %v1062_v35 = vadd.f32 %v8898_v62, %v1002_v22  ;;  %v805_v29 = vmul.f32 %v757_v20, %v735_v30  ;;  %v9095_v17 = vpop.permute.xlu1 %792  ;;  %11644 = vst [vmem:[#allocation70_spill] sm:$0xff] %v9101_v28  ;;  %v971_v31 = vmul.f32 %v8871_v5, %v757_v20  ;;  %v9114_v57 = vmul.f32 %v8516_v41, %v873_v34  ;;  %v736_v5 = vld [vmem:[#allocation2 + $0x1a] sm:$0xff] }
 0x3d9   :  { %6530 = vmatmul.mubr.msk.f32.gmra.mrb[40].mxu0 %vm1400_vm4, %v2233_v52  ;;  %11645 = vst [vmem:[#allocation71_spill] sm:$0xff] %v9107_v36  ;;  %v1113_v19 = vmul.f32 %v8902_v37, %v757_v20  ;;  %v7181_v52 = vpack.c.bf16 %v7441_v12, %v7440_v7  ;;  %v9126_v20 = vadd.f32 %v9042_v14, %v669_v33  ;;  %v11648_v7 = vld [vmem:[#allocation19_spill] sm:$0xff] }
 0x3da   :  { %v1096_v62 = vadd.f32 %v8887_v11, %v1062_v35  ;;  %v823_v22 = vmul.f32 %v8488_v9, %v805_v29  ;;  %6580 = vmatpush3.xpose.msk.msra.mxu0 %vm1400_vm4, %v2696_v54  ;;  %6581 = vmatprep.mubr.msk.f32.mxu0 %vm7896_vm2, %v11598_v40  ;;  %v989_v35 = vmul.f32 %v8540_v4, %v971_v31  ;;  %v11651_v28 = vld [vmem:[#allocation47_spill] sm:$0xff] }
 0x3db   :  { %v761_v30 = vpop.permute.xlu0 %760  ;;  %7180 = vmatprep.subr.bf16.mxu0 %v11588_v23  ;;  %v1131_v31 = vmul.f32 %v11641_v49, %v1113_v19 }
 0x3dc   :  { %v1144_v11 = vadd.f32 %v1130_v27, %v1096_v62  ;;  %v9120_v16 = vld [vmem:[#allocation2 + $0x61] sm:$0xff]  ;;  %v837_v15 = vadd.f32 %v823_v22, %v8900_v38  ;;  %v806_v13 = vmul.f32 %v761_v30, %v736_v5  ;;  %v524_v34 = vpop.permute.xlu1 %523  ;;  %v11647_v38 = vld [vmem:[#allocation9_spill] sm:$0xff] }
 0x3dd   :  { %11646 = vst [vmem:[#allocation72_spill] sm:$0xff] %v9120_v16  ;;  %v744_v54 = vld [vmem:[#allocation2 + $0x5a] sm:$0xff]  ;;  %539 = vst.msk [vmem:[#allocation2 + $0x69] sm:$0xff] %vm450_vm3, %v524_v34  ;;  %6582 = vmatmul.mubr.msk.f32.vlgmr.msra.gmra.mrb[42].mxu0 %vm1400_vm4, %v11647_v38  ;;  %v980_v14 = vmul.f32 %v9120_v16, %v9095_v17  ;;  %v972_v34 = vmul.f32 %v8913_v45, %v761_v30  ;;  %v1114_v38 = vmul.f32 %v8830_v63, %v761_v30 }
 0x3de   :  { %v9123_v46 = vld [vmem:[#allocation2 + $0x5f] sm:$0xff]  ;;  %v814_v29 = vmul.f32 %v9095_v17, %v744_v54  ;;  %v1163_v27 = vadd.f32 %v11648_v7, %v1144_v11  ;;  %v824_v33 = vmul.f32 %v8488_v9, %v806_v13  ;;  %7183 = vmatpush3.bf16.xpose.msk.msra.mxu0 %vm8316_vm5, %v7181_v52  ;;  %6584 = vmatprep.mubr.msk.f32.mxu0 %vm7896_vm2, %v11598_v40 }
 0x3df   :  { %v874_v62 = vmul.f32 %v9123_v46, %v8927_v53  ;;  %v9132_v12 = vld [vmem:[#allocation2 + $0x60] sm:$0xff]  ;;  %v765_v36 = vpop.permute.xlu0 %764  ;;  %7184 = vmatprep.subr.bf16.mxu0 %v11588_v23  ;;  %v998_v0 = vmul.f32 %v8540_v4, %v980_v14 }
 0x3e0   :  { %v11649_v22 = vld [vmem:[#allocation51_spill] sm:$0xff]  ;;  %v832_v54 = vmul.f32 %v8488_v9, %v814_v29  ;;  %v1177_v11 = vmul.f32 0.044715, %v1163_v27  ;;  %v938_v13 = vmul.f32 %v8531_v51, %v9132_v12  ;;  %v838_v52 = vadd.f32 %v824_v33, %v8942_v8  ;;  %v9154_v19 = vpop.permute.xlu1 %633 }
 0x3e1   :  { %v897_v5 = vadd.f32 %v11649_v22, %v837_v15  ;;  %v11650_v15 = vld [vmem:[#allocation49_spill] sm:$0xff]  ;;  %v892_v30 = vmul.f32 %v8516_v41, %v874_v62  ;;  %v807_v29 = vmul.f32 %v765_v36, %v737_v18  ;;  %v973_v24 = vmul.f32 %v765_v36, %v11651_v28  ;;  %6585 = vmatmul.mubr.msk.f32.gmra.mrb[44].mxu0 %vm1400_vm4, %v11652_v26 }
 0x3e2   :  { %v846_v45 = vadd.f32 %v832_v54, %v730_v21  ;;  %v898_v8 = vadd.f32 %v8945_v10, %v838_v52  ;;  %6587 = vmatprep.mubr.msk.f32.mxu0 %vm7896_vm2, %v11598_v40  ;;  %v990_v21 = vmul.f32 %v8540_v4, %v972_v34  ;;  %v1115_v18 = vmul.f32 %v765_v36, %v8952_v56  ;;  %v11654_v54 = vld [vmem:[#allocation57_spill] sm:$0xff]  ;;  %v11656_v36 = vld [vmem:[#allocation15_spill] sm:$0xff] }
 0x3e3   :  { %v943_v22 = vadd.f32 %v11650_v15, %v897_v5  ;;  %v1184_v5 = vmul.f32 %v1177_v11, %v1163_v27  ;;  %v825_v62 = vmul.f32 %v8488_v9, %v807_v29  ;;  %v9168_v28 = vpop.permute.xlu0 %776  ;;  %v9170_v26 = vmul.f32 0.5, %v1163_v27  ;;  %v11655_v11 = vld [vmem:[#allocation56_spill] sm:$0xff] }
 0x3e4   :  { %v906_v33 = vadd.f32 %v892_v30, %v846_v45  ;;  %11653 = vst [vmem:[#allocation9_spill] sm:$0xff] %v9168_v28  ;;  %v944_v10 = vadd.f32 %v11655_v11, %v898_v8  ;;  %v639_v52 = vpop.permute.xlu1 %638  ;;  %v1132_v45 = vmul.f32 %v11641_v49, %v1114_v38  ;;  %v991_v30 = vmul.f32 %v8540_v4, %v973_v24  ;;  %v9177_v56 = vld [vmem:[#allocation2 + $0x68] sm:$0xff] }
 0x3e5   :  { %v1003_v15 = vadd.f32 %v989_v35, %v943_v22  ;;  %v1191_v35 = vmul.f32 %v1184_v5, %v1163_v27  ;;  %v861_v22 = vld [vmem:[#allocation2 + $0x67] sm:$0xff]  ;;  %v839_v34 = vadd.f32 %v825_v62, %v8991_v2  ;;  %6588 = vmatmul.mubr.msk.f32.gmra.mrb[46].mxu0 %vm1400_vm4, %v11656_v36  ;;  %v653_v8 = vmul.f32 %v9132_v12, %v9154_v19  ;;  %v862_v11 = vld [vmem:[#allocation2 + $0x6f] sm:$0x3] }
 0x3e6   :  { %v952_v63 = vadd.f32 %v938_v13, %v906_v33  ;;  %v11657_v5 = vld [vmem:[#allocation55_spill] sm:$0xff]  ;;  %v11658_v13 = vld [vmem:[#allocation53_spill] sm:$0xff]  ;;  %v1133_v24 = vmul.f32 %v11641_v49, %v1115_v18  ;;  %v717_v38 = vmul.f32 %v9120_v16, %v8476_v59  ;;  %6590 = vmatprep.mubr.msk.f32.mxu0 %vm7896_vm2, %v11598_v40  ;;  %v875_v36 = vmul.f32 %v861_v22, %v9154_v19 }
 0x3e7   :  { %v1063_v14 = vadd.f32 %v11654_v54, %v1003_v15  ;;  %v1198_v29 = vadd.f32 %v1191_v35, %v1163_v27  ;;  %v1004_v15 = vadd.f32 %v990_v21, %v944_v10  ;;  %v1026_v54 = vld [vmem:[#allocation2 + $0x66] sm:$0xff]  ;;  %7187 = vmatpush3.bf16.xpose.msk.msra.mxu0 %vm8316_vm5, %v11658_v13  ;;  %v899_v2 = vadd.f32 %v9000_v39, %v839_v34  ;;  %v9192_v33 = vpop.permute.xlu0 %788  ;;  %v1028_v13 = vld [vmem:[#allocation2 + $0x76] sm:$0x3] }
 0x3e8   :  { %v1092_v27 = vmul.f32 %v8565_v55, %v861_v22  ;;  %v570_v39 = vld [vmem:[#allocation2 + $0x68] sm:$0x3]  ;;  %7188 = vmatprep.subr.bf16.mxu0 %v11588_v23  ;;  %v1012_v18 = vadd.f32 %v998_v0, %v952_v63  ;;  %v11659_v10 = vld [vmem:[#allocation59_spill] sm:$0xff] }
 0x3e9   :  { %v1097_v28 = vadd.f32 %v11657_v5, %v1063_v14  ;;  %v1205_v21 = vmul.f32 0.7978846, %v1198_v29  ;;  %v1064_v35 = vadd.f32 %v8989_v50, %v1004_v15  ;;  %v1122_v14 = vmul.f32 %v9177_v56, %v9095_v17  ;;  %v9203_v16 = vpop.permute.xlu1 %796  ;;  %v11661_v17 = vld [vmem:[#allocation58_spill] sm:$0xff] }
 0x3ea   :  { %v945_v34 = vadd.f32 %v11659_v10, %v899_v2  ;;  %v1040_v5 = vmul.f32 %v1026_v54, %v8927_v53  ;;  %v671_v29 = vmul.f32 %v8472_v58, %v653_v8  ;;  %v700_v53 = vld [vmem:[#allocation2 + $0x69] sm:$0x3]  ;;  %v654_v22 = vmul.f32 %v639_v52, %v570_v39 }
 0x3eb   :  { %v1145_v62 = vadd.f32 %v1131_v31, %v1097_v28  ;;  %v11660_v31 = vld [vmem:[#allocation20_spill] sm:$0xff]  ;;  %7578 = vtanh.f32 %v1205_v21  ;;  %v1098_v28 = vadd.f32 %v11661_v17, %v1064_v35  ;;  %v876_v15 = vmul.f32 %v862_v11, %v639_v52  ;;  %v9213_v54 = vpop.permute.xlu0 %800  ;;  %v11662_v17 = vld [vmem:[#allocation25_spill] sm:$0xff] }
 0x3ec   :  { %6591 = vmatmul.mubr.msk.f32.gmra.mrb[48].mxu0 %vm1400_vm4, %v11660_v31  ;;  %v1005_v63 = vadd.f32 %v991_v30, %v945_v34  ;;  %v1058_v0 = vmul.f32 %v8549_v42, %v1040_v5  ;;  %v1140_v21 = vmul.f32 %v11641_v49, %v1122_v14  ;;  %v9218_v8 = vmul.f32 %v8516_v41, %v875_v36  ;;  %v1025_v34 = vld [vmem:[#allocation2 + $0x5e] sm:$0xff] }
 0x3ed   :  { %v1164_v50 = vadd.f32 %v11648_v7, %v1145_v62  ;;  %6593 = vmatprep.mubr.msk.f32.mxu0 %vm7896_vm2, %v11598_v40  ;;  %v1146_v10 = vadd.f32 %v1132_v45, %v1098_v28  ;;  %v1042_v62 = vmul.f32 %v1028_v13, %v639_v52  ;;  %v672_v30 = vmul.f32 %v8472_v58, %v654_v22  ;;  %v526_v5 = vpop.permute.xlu1 %525 }
 0x3ee   :  { %v1065_v35 = vadd.f32 %v9015_v25, %v1005_v63  ;;  %v1072_v31 = vadd.f32 %v1058_v0, %v1012_v18  ;;  %v9224_v45 = vadd.f32 %v717_v38, %v671_v29  ;;  %v718_v49 = vmul.f32 %v8476_v59, %v700_v53  ;;  %540 = vst.msk [vmem:[#allocation2 + $0x71] sm:$0x1] %vm497_vm6, %v526_v5  ;;  %v743_v29 = vld [vmem:[#allocation2 + $0x52] sm:$0xff] }
 0x3ef   :  { %v1178_v2 = vmul.f32 0.044715, %v1164_v50  ;;  %v1165_v11 = vadd.f32 %v11648_v7, %v1146_v10  ;;  %7191 = vmatpush3.bf16.xpose.msk.msra.mxu0 %vm8316_vm5, %v8993_v43  ;;  %v9231_v25 = vmul.f32 0.5, %v1164_v50  ;;  %v9235_v18 = vmul.f32 %v8516_v41, %v876_v15  ;;  %v9237_v36 = vpop.permute.xlu0 %3495  ;;  %v11663_v53 = vld [vmem:[#allocation30_spill] sm:$0xff] }
 0x3f0   :  { %6594 = vmatmul.mubr.msk.f32.gmra.mrb[50].mxu0 %vm1400_vm4, %v11662_v17  ;;  %v1099_v52 = vadd.f32 %v9019_v6, %v1065_v35  ;;  %v1106_v14 = vadd.f32 %v1092_v27, %v1072_v31  ;;  %v9242_v28 = vmul.f32 %v8549_v42, %v1042_v62  ;;  %v1039_v43 = vmul.f32 %v1025_v34, %v8986_v61  ;;  %v745_v62 = vld [vmem:[#allocation2 + $0x62] sm:$0xff] }
 0x3f1   :  { %v1185_v39 = vmul.f32 %v1178_v2, %v1164_v50  ;;  %6596 = vmatprep.mubr.msk.f32.mxu0 %vm7896_vm2, %v11598_v40  ;;  %v1179_v13 = vmul.f32 0.044715, %v1165_v11  ;;  %6649 = vmatprep.subr.mxu0 %v11598_v40  ;;  %v9246_v63 = vadd.f32 %v718_v49, %v672_v30  ;;  %v813_v0 = vmul.f32 %v9192_v33, %v743_v29  ;;  %v2682_v17 = vpop.permute.xlu1 %2681 }
 0x3f2   :  { %v1147_v6 = vadd.f32 %v1133_v24, %v1099_v52  ;;  %v1154_v27 = vadd.f32 %v1140_v21, %v1106_v14  ;;  %v9251_v15 = vmul.f32 0.5, %v1165_v11  ;;  %v9255_v10 = vmul.f32 %v8565_v55, %v9123_v46  ;;  %v9265_v24 = vld [vmem:[%s11493_s1 + $0x3] ss:$0 sm:$0xff] }
 0x3f3   :  { %v1192_v38 = vmul.f32 %v1185_v39, %v1164_v50  ;;  %v1186_v2 = vmul.f32 %v1179_v13, %v1165_v11  ;;  %v831_v21 = vmul.f32 %v8488_v9, %v813_v0  ;;  %v979_v46 = vmul.f32 %v9192_v33, %v9027_v32  ;;  %v9273_v35 = vpop.permute.xlu0 %7456 }
 0x3f4   :  { %6597 = vmatmul.mubr.msk.f32.gmra.mrb[52].mxu0 %vm1400_vm4, %v11663_v53  ;;  %v9260_v61 = vadd.f32 %v11648_v7, %v1147_v6  ;;  %v1057_v34 = vmul.f32 %v8549_v42, %v1039_v43  ;;  %v815_v5 = vmul.f32 %v9203_v16, %v745_v62  ;;  %v1121_v52 = vmul.f32 %v9132_v12, %v9192_v33  ;;  %v11664_v43 = vld [vmem:[#allocation32_spill] sm:$0xff] }
 0x3f5   :  { %v1199_v22 = vadd.f32 %v1192_v38, %v1164_v50  ;;  %6599 = vmatprep.mubr.msk.f32.mxu0 %vm7896_vm2, %v11598_v40  ;;  %v9268_v50 = vadd.f32 %v9265_v24, %v1154_v27  ;;  %v7579_v31 = vpop.eup %7578  ;;  %v1193_v7 = vmul.f32 %v1186_v2, %v1165_v11  ;;  %v939_v14 = vmul.f32 %v8531_v51, %v9177_v56  ;;  %v746_v27 = vld [vmem:[#allocation2 + $0x6a] sm:$0x3] }
 0x3f6   :  { %v1219_v39 = vadd.f32 1.0, %v7579_v31  ;;  %v1180_v49 = vmul.f32 0.044715, %v9260_v61  ;;  %v845_v29 = vadd.f32 %v831_v21, %v9126_v20  ;;  %v997_v56 = vmul.f32 %v8540_v4, %v979_v46  ;;  %v9294_v20 = vld [vmem:[#allocation2 + $0x69] sm:$0xff] }
 0x3f7   :  { %v1206_v30 = vmul.f32 0.7978846, %v1199_v22  ;;  %v1200_v38 = vadd.f32 %v1193_v7, %v1165_v11  ;;  %v1271_v13 = vmul.f32 0.044715, %v9268_v50  ;;  %6650 = vmatpush3.xpose.msk.msra.mxu0 %vm1400_vm4, %v11664_v43  ;;  %v833_v33 = vmul.f32 %v8488_v9, %v815_v5  ;;  %v483_v11 = vpop.permute.xlu0 %482  ;;  %v7881_v21 = vld [vmem:[#allocation2 + $0x10] sm:$0xff] }
 0x3f8   :  { %6600 = vmatmul.mubr.msk.f32.gmra.mrb[54].mxu0 %vm1400_vm4, %v2682_v17  ;;  %v1226_v6 = vmul.f32 %v1219_v39, %v9170_v26  ;;  %v1187_v12 = vmul.f32 %v1180_v49, %v9260_v61  ;;  %7201 = vmatprep.subr.bf16.mxu0 %v11588_v23  ;;  %v905_v22 = vadd.f32 %v9114_v57, %v845_v29  ;;  %v922_v26 = vld [vmem:[#allocation2 + $0x70] sm:$0x3] }
 0x3f9   :  { %7580 = vtanh.f32 %v1206_v30  ;;  %6651 = vmatprep.mubr.msk.f32.mxu0 %vm7896_vm2, %v11598_v40  ;;  %v1207_v0 = vmul.f32 0.7978846, %v1200_v38  ;;  %v1278_v53 = vmul.f32 %v1271_v13, %v9268_v50  ;;  %v816_v2 = vmul.f32 %v9213_v54, %v746_v27  ;;  %498 = vst.msk [vmem:[#allocation2 + $0x38] sm:$0x1] %vm497_vm6, %v483_v11  ;;  %v968_v7 = vld [vmem:[#allocation2 + $0x71] sm:$0x3] }
 0x3fa   :  { %v1233_v46 = vadd.f32 %v7881_v21, %v1226_v6  ;;  %v1194_v62 = vmul.f32 %v1187_v12, %v9260_v61  ;;  %v847_v31 = vadd.f32 %v833_v33, %v9224_v45  ;;  %v981_v30 = vmul.f32 %v9294_v20, %v9203_v16  ;;  %v7882_v5 = vld [vmem:[#allocation3 + $0x31] sm:$0xff]  ;;  %v9315_v38 = vld [vmem:[%s11495_s3 + $0x8] ss:$0 sm:$0xff] }
 0x3fb   :  { %7582 = vtanh.f32 %v1207_v0  ;;  %v1285_v57 = vmul.f32 %v1278_v53, %v9268_v50  ;;  %v951_v17 = vadd.f32 %v9067_v47, %v905_v22  ;;  %v834_v39 = vmul.f32 %v8488_v9, %v816_v2  ;;  %v1027_v49 = vld [vmem:[#allocation2 + $0x6e] sm:$0xff]  ;;  %v514_v43 = vpop.permute.xlu0 %513 }
 0x3fc   :  { %6652 = vmatmul.mubr.msk.f32.vlgmr.msra.gmra.mrb[56].mxu0 %vm1400_vm4, %v7882_v5  ;;  %1240 = vst.msk [vmem:[#allocation2 + $0x10] sm:$0xff] %vm450_vm3, %v1233_v46  ;;  %v1201_v45 = vadd.f32 %v1194_v62, %v9260_v61  ;;  %v1139_v13 = vmul.f32 %v9315_v38, %v1121_v52  ;;  %v907_v29 = vadd.f32 %v9218_v8, %v847_v31  ;;  %534 = vst.msk [vmem:[#allocation2 + $0x41] sm:$0xff] %vm450_vm3, %v514_v43  ;;  %v1109_v22 = vld [vmem:[#allocation2 + $0x70] sm:$0xff]  ;;  %v7884_v8 = vld [vmem:[#allocation3 + $0x39] sm:$0xff]  ;;  %v7447_v31 = vpop.permute.xlu1 %7446 }
 0x3fd   :  { %6654 = vmatprep.mubr.msk.f32.mxu0 %vm7896_vm2, %v11598_v40  ;;  %v940_v47 = vmul.f32 %v8531_v51, %v922_v26  ;;  %v1292_v6 = vadd.f32 %v1285_v57, %v9268_v50  ;;  %v1011_v12 = vadd.f32 %v997_v56, %v951_v17  ;;  %v848_v33 = vadd.f32 %v834_v39, %v9246_v63  ;;  %v1075_v21 = vld [vmem:[#allocation2 + $0x6f] sm:$0xff] }
 0x3fe   :  { %v982_v27 = vmul.f32 %v968_v7, %v9213_v54  ;;  %v1208_v11 = vmul.f32 0.7978846, %v1201_v45  ;;  %v953_v0 = vadd.f32 %v939_v14, %v907_v29  ;;  %v999_v53 = vmul.f32 %v8540_v4, %v981_v30  ;;  %v7885_v45 = vld [vmem:[#allocation3 + $0x41] sm:$0xff] }
 0x3ff   :  { %v1041_v52 = vmul.f32 %v1027_v49, %v9154_v19  ;;  %v1299_v2 = vmul.f32 0.7978846, %v1292_v6  ;;  %v1071_v26 = vadd.f32 %v1057_v34, %v1011_v12  ;;  %v908_v56 = vadd.f32 %v9235_v18, %v848_v33  ;;  %v1110_v19 = vld [vmem:[#allocation2 + $0x78] sm:$0x3] }
 0x400   :  { %6655 = vmatmul.mubr.msk.f32.gmra.mrb[58].mxu0 %vm1400_vm4, %v7884_v8  ;;  %v1000_v63 = vmul.f32 %v8540_v4, %v982_v27  ;;  %v9332_v14 = vmul.f32 0.5, %v9260_v61  ;;  %7584 = vtanh.f32 %v1208_v11  ;;  %v1013_v46 = vadd.f32 %v999_v53, %v953_v0  ;;  %v9341_v39 = vld [vmem:[#allocation2 + $0x38] sm:$0xff] }
 0x401   :  { %6657 = vmatprep.mubr.msk.f32.mxu0 %vm7896_vm2, %v11598_v40  ;;  %v1059_v62 = vmul.f32 %v8549_v42, %v1041_v52  ;;  %7586 = vtanh.f32 %v1299_v2  ;;  %v1105_v34 = vadd.f32 %v9255_v10, %v1071_v26  ;;  %v954_v18 = vadd.f32 %v940_v47, %v908_v56  ;;  %v9343_v49 = vld [vmem:[#allocation2 + $0x31] sm:$0xff]  ;;  %v7886_v26 = vld [vmem:[#allocation3 + $0x49] sm:$0xff] }
 0x402   :  { %v1123_v7 = vmul.f32 %v1109_v22, %v9203_v16  ;;  %v9338_v57 = vmul.f32 0.5, %v9268_v50  ;;  %v1093_v61 = vmul.f32 %v8565_v55, %v1075_v21  ;;  %v1124_v10 = vmul.f32 %v1110_v19, %v9213_v54  ;;  %v739_v53 = vld [vmem:[#allocation2 + $0x32] sm:$0xff] }
 0x403   :  { %v7581_v30 = vpop.eup %7580  ;;  %v1073_v17 = vadd.f32 %v1059_v62, %v1013_v46  ;;  %v1153_v29 = vadd.f32 %v1139_v13, %v1105_v34  ;;  %v1014_v47 = vadd.f32 %v1000_v63, %v954_v18  ;;  %v7449_v43 = vunpack.i.h.bf16 %v7447_v31  ;;  %v11665_v13 = vld [vmem:[#allocation43_spill] sm:$0xff]  ;;  %v9358_v2 = vld [vmem:[#allocation2 + $0x37] sm:$0xff]  ;;  %v11666_v62 = vld [vmem:[#allocation8_spill] sm:$0xff] }
 0x404   :  { %v1220_v5 = vadd.f32 1.0, %v7581_v30  ;;  %6658 = vmatmul.mubr.msk.f32.gmra.mrb[60].mxu0 %vm1400_vm4, %v7885_v45  ;;  %v1141_v6 = vmul.f32 %v9315_v38, %v1123_v7  ;;  %v7448_v12 = vunpack.i.l.bf16 %v7447_v31  ;;  %v648_v0 = vmul.f32 %v11665_v13, %v9341_v39  ;;  %v11667_v18 = vld [vmem:[#allocation7_spill] sm:$0xff]  ;;  %v7887_v45 = vld [vmem:[#allocation3 + $0x51] sm:$0xff] }
 0x405   :  { %6660 = vmatprep.mubr.msk.f32.mxu0 %vm7896_vm2, %v11598_v40  ;;  %v1107_v50 = vadd.f32 %v1093_v61, %v1073_v17  ;;  %v7583_v33 = vpop.eup %7582  ;;  %v1256_v27 = vadd.f32 %v9265_v24, %v1153_v29  ;;  %v1074_v11 = vadd.f32 %v9242_v28, %v1014_v47  ;;  %v711_v54 = vmul.f32 %v8476_v59, %v9343_v49 }
 0x406   :  { %v1227_v16 = vmul.f32 %v1220_v5, %v9231_v25  ;;  %v1221_v22 = vadd.f32 1.0, %v7583_v33  ;;  %v7202_v8 = vpack.c.bf16 %v7449_v43, %v7448_v12  ;;  %v1142_v28 = vmul.f32 %v9315_v38, %v1124_v10  ;;  %v1020_v12 = vld [vmem:[#allocation2 + $0x36] sm:$0xff] }
 0x407   :  { %v1155_v25 = vadd.f32 %v1141_v6, %v1107_v50  ;;  %v1270_v56 = vmul.f32 0.044715, %v1256_v27  ;;  %v1108_v63 = vadd.f32 %v9009_v48, %v1074_v11  ;;  %v666_v21 = vmul.f32 %v8472_v58, %v648_v0 }
 0x408   :  { %v1234_v52 = vadd.f32 %v1227_v16, %v8835_v44  ;;  %6661 = vmatmul.mubr.msk.f32.gmra.mrb[62].mxu0 %vm1400_vm4, %v7886_v26  ;;  %v1228_v44 = vmul.f32 %v1221_v22, %v9251_v15  ;;  %v725_v19 = vadd.f32 %v711_v54, %v9012_v3  ;;  %v809_v31 = vmul.f32 %v11666_v62, %v739_v53  ;;  %v7888_v26 = vld [vmem:[#allocation3 + $0x59] sm:$0xff] }
 0x409   :  { %6663 = vmatprep.mubr.msk.f32.mxu0 %vm7896_vm2, %v11598_v40  ;;  %v1258_v46 = vadd.f32 %v9265_v24, %v1155_v25  ;;  %7204 = vmatpush3.bf16.xpose.msk.msra.mxu0 %vm8316_vm5, %v7202_v8  ;;  %v9373_v30 = vmul.f32 0.5, %v1256_v27  ;;  %v1277_v48 = vmul.f32 %v1270_v56, %v1256_v27  ;;  %v1156_v34 = vadd.f32 %v1142_v28, %v1108_v63  ;;  %v11668_v25 = vld [vmem:[#allocation6_spill] sm:$0xff]  ;;  %v11669_v56 = vld [vmem:[#allocation45_spill] sm:$0xff] }
 0x40a   :  { %1241 = vst.msk [vmem:[#allocation2 + $0x18] sm:$0xff] %vm450_vm3, %v1234_v52  ;;  %v869_v7 = vmul.f32 %v9358_v2, %v11667_v18  ;;  %7205 = vmatprep.subr.bf16.mxu0 %v11588_v23  ;;  %v7585_v15 = vpop.eup %7584  ;;  %v1235_v5 = vadd.f32 %v1228_v44, %v8902_v37  ;;  %v9380_v3 = vadd.f32 %v9022_v60, %v666_v21 }
 0x40b   :  { %v1272_v17 = vmul.f32 0.044715, %v1258_v46  ;;  %v827_v61 = vmul.f32 %v8488_v9, %v809_v31  ;;  %v7587_v29 = vpop.eup %7586  ;;  %v1222_v10 = vadd.f32 1.0, %v7585_v15  ;;  %v1284_v47 = vmul.f32 %v1277_v48, %v1256_v27  ;;  %v7452_v48 = vpop.permute.xlu1 %7451 }
 0x40c   :  { %6664 = vmatmul.mubr.msk.f32.gmra.mrb[64].mxu0 %vm1400_vm4, %v7887_v45  ;;  %v1259_v43 = vadd.f32 %v9265_v24, %v1156_v34  ;;  %v9385_v16 = vmul.f32 0.5, %v1258_v46  ;;  %1242 = vst.msk [vmem:[#allocation2 + $0x20] sm:$0xff] %vm450_vm3, %v1235_v5  ;;  %v1313_v37 = vadd.f32 1.0, %v7587_v29  ;;  %v887_v6 = vmul.f32 %v8516_v41, %v869_v7  ;;  %v11671_v34 = vld [vmem:[#allocation52_spill] sm:$0xff] }
 0x40d   :  { %6666 = vmatprep.mubr.msk.f32.mxu0 %vm7896_vm2, %v11598_v40  ;;  %v1279_v60 = vmul.f32 %v1272_v17, %v1258_v46  ;;  %v841_v50 = vadd.f32 %v827_v61, %v725_v19  ;;  %v1229_v33 = vmul.f32 %v1222_v10, %v9332_v14  ;;  %v1291_v11 = vadd.f32 %v1284_v47, %v1256_v27  ;;  %v11670_v27 = vld [vmem:[#allocation5_spill] sm:$0xff]  ;;  %v9415_v17 = vld [vmem:[#allocation2 + $0x48] sm:$0xff]  ;;  %v11672_v61 = vld [vmem:[#allocation62_spill] sm:$0xff] }
 0x40e   :  { %v1273_v0 = vmul.f32 0.044715, %v1259_v43  ;;  %v933_v54 = vmul.f32 %v8531_v51, %v9341_v39  ;;  %v9395_v53 = vmul.f32 %v1313_v37, %v9338_v57  ;;  %v974_v8 = vmul.f32 %v11668_v25, %v9343_v49  ;;  %v9407_v49 = vld [vmem:[#allocation2 + $0x40] sm:$0xff] }
 0x40f   :  { %v1286_v52 = vmul.f32 %v1279_v60, %v1258_v46  ;;  %v901_v22 = vadd.f32 %v887_v6, %v841_v50  ;;  %v1236_v28 = vadd.f32 %v1229_v33, %v11669_v56  ;;  %v1298_v63 = vmul.f32 0.7978846, %v1291_v11  ;;  %v9423_v47 = vld [vmem:[#allocation2 + $0x41] sm:$0xff]  ;;  %v11673_v50 = vld [vmem:[#allocation46_spill] sm:$0xff] }
 0x410   :  { %6667 = vmatmul.mubr.msk.f32.gmra.mrb[66].mxu0 %vm1400_vm4, %v7888_v26  ;;  %v1280_v14 = vmul.f32 %v1273_v0, %v1259_v43  ;;  %v1034_v21 = vmul.f32 %v1020_v12, %v11670_v27  ;;  %v9404_v44 = vmul.f32 0.5, %v1259_v43  ;;  %v992_v31 = vmul.f32 %v8540_v4, %v974_v8  ;;  %v7889_v37 = vld [vmem:[#allocation3 + $0x61] sm:$0x1]  ;;  %v11674_v33 = vld [vmem:[#allocation44_spill] sm:$0xff]  ;;  %v11676_v27 = vld [vmem:[#allocation9_spill] sm:$0xff] }
 0x411   :  { %6669 = vmatprep.mubr.msk.f32.mxu0 %vm7896_vm2, %v11598_v40  ;;  %v1293_v57 = vadd.f32 %v1286_v52, %v1258_v46  ;;  %v947_v19 = vadd.f32 %v933_v54, %v901_v22  ;;  %7208 = vmatpush3.bf16.xpose.msk.msra.mxu0 %vm8316_vm5, %v11671_v34  ;;  %1243 = vst.msk [vmem:[#allocation2 + $0x28] sm:$0xff] %vm450_vm3, %v1236_v28  ;;  %v1338_v7 = vrot.slane %v9395_v53, 1  ;;  %7588 = vtanh.f32 %v1298_v63  ;;  %v740_v0 = vld [vmem:[#allocation2 + $0x3a] sm:$0xff]  ;;  %v741_v54 = vld [vmem:[#allocation2 + $0x42] sm:$0xff] }
 0x412   :  { %v1287_v15 = vmul.f32 %v1280_v14, %v1259_v43  ;;  %v1052_v5 = vmul.f32 %v8549_v42, %v1034_v21  ;;  %7209 = vmatprep.subr.bf16.mxu0 %v11588_v23  ;;  %v1006_v45 = vadd.f32 %v992_v31, %v11672_v61  ;;  %v1086_v29 = vmul.f32 %v8565_v55, %v9358_v2  ;;  %v11675_v52 = vld [vmem:[#allocation48_spill] sm:$0xff] }
 0x413   :  { %v1300_v46 = vmul.f32 0.7978846, %v1293_v57  ;;  %v1116_v10 = vmul.f32 %v11668_v25, %v9341_v39  ;;  %v1007_v6 = vadd.f32 %v11673_v50, %v947_v19  ;;  %v7454_v12 = vunpack.i.h.bf16 %v7452_v48  ;;  %v856_v25 = vld [vmem:[#allocation2 + $0x3f] sm:$0xff]  ;;  %v857_v8 = vld [vmem:[#allocation2 + $0x47] sm:$0xff] }
 0x414   :  { %6670 = vmatmul.mubr.msk.f32.gmra.mrb[68].mxu0 %vm1400_vm4, %v7889_v37  ;;  %v1294_v60 = vadd.f32 %v1287_v15, %v1259_v43  ;;  %v649_v11 = vmul.f32 %v11674_v33, %v9407_v49  ;;  %v1066_v2 = vadd.f32 %v1052_v5, %v1006_v45  ;;  %v7453_v39 = vunpack.i.l.bf16 %v7452_v48  ;;  %v11677_v57 = vld [vmem:[#allocation50_spill] sm:$0xff]  ;;  %v11678_v5 = vld [vmem:[#allocation61_spill] sm:$0xff] }
 0x415   :  { %6721 = vmatprep.mubr.msk.f32.mxu0 %vm7896_vm2, %v11598_v40  ;;  %7590 = vtanh.f32 %v1300_v46  ;;  %v650_v22 = vmul.f32 %v11675_v52, %v9415_v17  ;;  %v1134_v26 = vmul.f32 %v9315_v38, %v1116_v10  ;;  %v713_v28 = vmul.f32 %v8476_v59, %v9423_v47  ;;  %v1021_v45 = vld [vmem:[#allocation2 + $0x3e] sm:$0xff] }
 0x416   :  { %v1301_v43 = vmul.f32 0.7978846, %v1294_v60  ;;  %v667_v56 = vmul.f32 %v8472_v58, %v649_v11  ;;  %v1100_v63 = vadd.f32 %v1086_v29, %v1066_v2  ;;  %v810_v21 = vmul.f32 %v11676_v27, %v740_v0  ;;  %v11679_v29 = vld [vmem:[#allocation60_spill] sm:$0xff]  ;;  %v11680_v0 = vld [vmem:[#allocation69_spill] sm:$0xff] }
 0x417   :  { %v668_v14 = vmul.f32 %v8472_v58, %v650_v22  ;;  %v811_v19 = vmul.f32 %v11677_v57, %v741_v54  ;;  %v870_v48 = vmul.f32 %v856_v25, %v11665_v13  ;;  %v871_v34 = vmul.f32 %v857_v8, %v11674_v33  ;;  %v1022_v58 = vld [vmem:[#allocation2 + $0x46] sm:$0xff] }
 0x418   :  { %7592 = vtanh.f32 %v1301_v43  ;;  %v727_v31 = vadd.f32 %v713_v28, %v667_v56  ;;  %v1148_v15 = vadd.f32 %v1134_v26, %v1100_v63  ;;  %v828_v61 = vmul.f32 %v8488_v9, %v810_v21  ;;  %v11681_v28 = vld [vmem:[#allocation67_spill] sm:$0xff] }
 0x419   :  { %v728_v46 = vadd.f32 %v11678_v5, %v668_v14  ;;  %v829_v59 = vmul.f32 %v8488_v9, %v811_v19  ;;  %7212 = vmatpush3.bf16.xpose.msk.msra.mxu0 %vm8316_vm5, %v11679_v29  ;;  %v7223_v10 = vpack.c.bf16 %v7454_v12, %v7453_v39  ;;  %v888_v37 = vmul.f32 %v8516_v41, %v870_v48  ;;  %v11685_v29 = vld [vmem:[#allocation70_spill] sm:$0xff] }
 0x41a   :  { %v889_v60 = vmul.f32 %v8516_v41, %v871_v34  ;;  %v934_v50 = vmul.f32 %v8531_v51, %v9407_v49  ;;  %6719 = vmatprep.subr.mxu0 %v11598_v40  ;;  %v9454_v33 = vadd.f32 %v9265_v24, %v1148_v15  ;;  %v842_v9 = vadd.f32 %v828_v61, %v9380_v3  ;;  %v11682_v34 = vld [vmem:[#allocation64_spill] sm:$0xff] }
 0x41b   :  { %v843_v11 = vadd.f32 %v829_v59, %v727_v31  ;;  %v844_v54 = vadd.f32 %v11680_v0, %v728_v46  ;;  %v7589_v2 = vpop.eup %7588  ;;  %v935_v12 = vmul.f32 %v8531_v51, %v9415_v17  ;;  %v976_v41 = vmul.f32 %v11676_v27, %v9423_v47  ;;  %v11683_v59 = vld [vmem:[#allocation34_spill] sm:$0xff] }
 0x41c   :  { %v1035_v39 = vmul.f32 %v1021_v45, %v11667_v18  ;;  %v1036_v52 = vmul.f32 %v1022_v58, %v11665_v13  ;;  %v1312_v22 = vadd.f32 1.0, %v7589_v2  ;;  %v1181_v43 = vmul.f32 0.044715, %v9454_v33  ;;  %v11684_v58 = vld [vmem:[#allocation68_spill] sm:$0xff] }
 0x41d   :  { %v902_v26 = vadd.f32 %v888_v37, %v842_v9  ;;  %v1087_v3 = vmul.f32 %v8565_v55, %v856_v25  ;;  %v903_v56 = vadd.f32 %v889_v60, %v843_v11  ;;  %v904_v63 = vadd.f32 %v11681_v28, %v844_v54  ;;  %v11686_v11 = vld [vmem:[#allocation65_spill] sm:$0xff]  ;;  %v2902_v28 = vld [vmem:[#allocation2 + $0x8] sm:$0xff] }
 0x41e   :  { %v994_v14 = vmul.f32 %v8540_v4, %v976_v41  ;;  %v1053_v51 = vmul.f32 %v8549_v42, %v1035_v39  ;;  %v9470_v57 = vmul.f32 %v1312_v22, %v9373_v30  ;;  %v1188_v18 = vmul.f32 %v1181_v43, %v9454_v33  ;;  %v11687_v54 = vld [vmem:[#allocation29_spill] sm:$0xff]  ;;  %v11689_v43 = vld [vmem:[#allocation66_spill] sm:$0xff] }
 0x41f   :  { %v7591_v21 = vpop.eup %7590  ;;  %v948_v13 = vadd.f32 %v934_v50, %v902_v26  ;;  %v1054_v19 = vmul.f32 %v8549_v42, %v1036_v52  ;;  %v949_v48 = vadd.f32 %v935_v12, %v903_v56  ;;  %v950_v25 = vadd.f32 %v11682_v34, %v904_v63  ;;  %v2903_v22 = vld [vmem:[#allocation2 + $0x10] sm:$0xff] }
 0x420   :  { %v1314_v31 = vadd.f32 1.0, %v7591_v21  ;;  %v1067_v15 = vadd.f32 %v1053_v51, %v1007_v6  ;;  %v1336_v5 = vrot.slane %v9470_v57, 1  ;;  %v1195_v4 = vmul.f32 %v1188_v18, %v9454_v33  ;;  %v1252_v63 = vld [vmem:[#allocation2 + $0x71] sm:$0x1]  ;;  %v11692_v51 = vld [vmem:[#allocation71_spill] sm:$0xff] }
 0x421   :  { %v1008_v46 = vadd.f32 %v994_v14, %v948_v13  ;;  %v1088_v61 = vmul.f32 %v8565_v55, %v857_v8  ;;  %6720 = vmatpush3.xpose.msk.msra.mxu0 %vm1400_vm4, %v11683_v59  ;;  %v1009_v42 = vadd.f32 %v11684_v58, %v949_v48  ;;  %v1010_v37 = vadd.f32 %v11685_v29, %v950_v25  ;;  %v2456_v13 = vld [vmem:[#allocation2 + $0x20] sm:$0xff]  ;;  %v11695_v29 = vld [vmem:[#allocation54_spill] sm:$0xff] }
 0x422   :  { %v7593_v30 = vpop.eup %7592  ;;  %v1321_v45 = vmul.f32 %v1314_v31, %v9385_v16  ;;  %v1101_v60 = vadd.f32 %v1087_v3, %v1067_v15  ;;  %7222 = vmatprep.subr.bf16.mxu0 %v11588_v23  ;;  %v1339_v6 = vsel %vm1330_vm7, %v1336_v5, %v1338_v7  ;;  %v1202_v8 = vadd.f32 %v1195_v4, %v9454_v33  ;;  %v2455_v4 = vld [vmem:[#allocation2 + $0x18] sm:$0xff] }
 0x423   :  { %v1315_v55 = vadd.f32 1.0, %v7593_v30  ;;  %v1068_v50 = vadd.f32 %v1054_v19, %v1008_v46  ;;  %v1354_v9 = vadd.f32 %v1339_v6, %v9027_v32  ;;  %v1069_v0 = vadd.f32 %v11686_v11, %v1009_v42  ;;  %v11693_v19 = vld [vmem:[#allocation11_spill] sm:$0xff]  ;;  %v11697_v11 = vld [vmem:[#allocation21_spill] sm:$0xff] }
 0x424   :  { %v1340_v16 = vrot.slane %v1321_v45, 1  ;;  %v1070_v2 = vadd.f32 %v11687_v54, %v1010_v37  ;;  %6722 = vmatmul.mubr.msk.f32.vlgmr.msra.gmra.mrb[70].mxu0 %vm1400_vm4, %v9237_v36  ;;  %v1209_v41 = vmul.f32 0.7978846, %v1202_v8  ;;  %v1117_v52 = vmul.f32 %v11666_v62, %v9407_v49  ;;  %v11688_v36 = vld [vmem:[#allocation63_spill] sm:$0xff]  ;;  %v11694_v45 = vld [vmem:[#allocation14_spill] sm:$0xff] }
 0x425   :  { %v1322_v12 = vmul.f32 %v1315_v55, %v9404_v44  ;;  %v1102_v39 = vadd.f32 %v1088_v61, %v1068_v50  ;;  %7225 = vmatpush3.bf16.xpose.msk.msra.mxu0 %vm8316_vm5, %v7223_v10  ;;  %6724 = vmatprep.mubr.msk.f32.mxu0 %vm7896_vm2, %v11598_v40  ;;  %1361 = vst.msk [vmem:[#allocation2 + $0x59] sm:$0xff] %vm450_vm3, %v1354_v9  ;;  %v11690_v10 = vld [vmem:[#allocation72_spill] sm:$0xff] }
 0x426   :  { %v1341_v32 = vsel %vm1330_vm7, %v1338_v7, %v1340_v16  ;;  %v1103_v44 = vadd.f32 %v11688_v36, %v1069_v0  ;;  %v1104_v26 = vadd.f32 %v11689_v43, %v1070_v2  ;;  %v1118_v62 = vmul.f32 %v11676_v27, %v9415_v17  ;;  %7226 = vmatprep.subr.bf16.mxu0 %v11588_v23  ;;  %v11691_v7 = vld [vmem:[#allocation18_spill] sm:$0xff] }
 0x427   :  { %v1342_v49 = vrot.slane %v1322_v12, 1  ;;  %v1355_v3 = vadd.f32 %v1341_v32, %v11690_v10  ;;  %7594 = vtanh.f32 %v1209_v41  ;;  %v1135_v56 = vmul.f32 %v9315_v38, %v1117_v52 }
 0x428   :  { %v1136_v53 = vmul.f32 %v9315_v38, %v1118_v62  ;;  %v1151_v14 = vadd.f32 %v11691_v7, %v1103_v44  ;;  %v1152_v21 = vadd.f32 %v11692_v51, %v1104_v26  ;;  %v7470_v18 = vpack.i.bf16 %v2903_v22, %v2902_v28  ;;  %6725 = vmatmul.mubr.msk.f32.gmra.mrb[72].mxu0 %vm1400_vm4, %v11693_v19  ;;  %v11699_v62 = vld [vmem:[#allocation26_spill] sm:$0xff]  ;;  %v11701_v7 = vld [vmem:[#allocation33_spill] sm:$0xff]  ;;  %v3942_v19 = vpop.permute.xlu1 %3941 }
 0x429   :  { %v1343_v17 = vsel %vm1330_vm7, %v1340_v16, %v1342_v49  ;;  %v1357_v27 = vadd.f32 %v1342_v49, %v1252_v63  ;;  %1362 = vst.msk [vmem:[#allocation2 + $0x61] sm:$0xff] %vm450_vm3, %v1355_v3  ;;  %v1149_v31 = vadd.f32 %v1135_v56, %v1101_v60  ;;  %v7109_v48 = vpack.c.bf16 %v2903_v22, %v2902_v28  ;;  %v11696_v60 = vld [vmem:[#allocation31_spill] sm:$0xff]  ;;  %v7890_v28 = vld [vmem:[#allocation2 + $0x30] sm:$0xff] }
 0x42a   :  { %6727 = vmatprep.mubr.msk.f32.mxu0 %vm7896_vm2, %v11598_v40  ;;  %v1356_v38 = vadd.f32 %v1343_v17, %v9294_v20  ;;  %v1150_v34 = vadd.f32 %v1136_v53, %v1102_v39  ;;  %v9524_v25 = vadd.f32 %v9265_v24, %v1151_v14  ;;  %v9527_v15 = vadd.f32 %v9265_v24, %v1152_v21  ;;  %v11702_v21 = vld [vmem:[#allocation36_spill] sm:$0xff] }
 0x42b   :  { %7471 = vrot.lane.b32.xlu1 %v7470_v18, %s7907_s26  ;;  %1364 = vst.msk [vmem:[#allocation2 + $0x71] sm:$0x1] %vm497_vm6, %v1357_v27  ;;  %v9532_v46 = vadd.f32 %v9265_v24, %v1149_v31  ;;  %7461 = vrot.lane.b32.xlu0 %v7470_v18, %s7901_s21  ;;  %v7480_v61 = vpack.i.bf16 %v2456_v13, %v2455_v4  ;;  %v7427_v6 = vunpack.i.h.bf16 %v11696_v60  ;;  %v7426_v55 = vunpack.i.l.bf16 %v11696_v60  ;;  %v2457_v17 = vld [vmem:[#allocation2 + $0x28] sm:$0xff] }
 0x42c   :  { %7110 = vmatpush3.bf16.msra.mxu1 %v7109_v48  ;;  %v7112_v20 = vpack.c.bf16 %v2456_v13, %v2455_v4  ;;  %1363 = vst.msk [vmem:[#allocation2 + $0x69] sm:$0xff] %vm450_vm3, %v1356_v38  ;;  %v9537_v59 = vadd.f32 %v9265_v24, %v1150_v34  ;;  %v1268_v30 = vmul.f32 0.044715, %v9524_v25  ;;  %6728 = vmatmul.mubr.msk.f32.gmra.mrb[74].mxu0 %vm1400_vm4, %v11694_v45  ;;  %v1269_v42 = vmul.f32 0.044715, %v9527_v15  ;;  %v9666_v1 = vld [vmem:[#allocation2 + $0x59] sm:$0xff] }
 0x42d   :  { %7111 = vmatprep.subr.bf16.mxu1 %v11588_v23  ;;  %v1182_v58 = vmul.f32 0.044715, %v9532_v46  ;;  %7229 = vmatpush3.bf16.xpose.msk.msra.mxu0 %vm8316_vm5, %v11695_v29  ;;  %v1174_v12 = vmul.f32 0.5, %v9454_v33  ;;  %v7231_v22 = vpack.c.bf16 %v7427_v6, %v7426_v55  ;;  %v7459_v14 = vunpack.i.h.bf16 %v9273_v35  ;;  %11714 = vst [vmem:[#allocation57_spill] sm:$0xff] %v9666_v1 }
 0x42e   :  { %6730 = vmatprep.mubr.msk.f32.mxu0 %vm7896_vm2, %v11598_v40  ;;  %v1267_v24 = vmul.f32 0.044715, %v9537_v59  ;;  %v1275_v37 = vmul.f32 %v1268_v30, %v9524_v25  ;;  %7230 = vmatprep.subr.bf16.mxu0 %v11588_v23  ;;  %v1276_v50 = vmul.f32 %v1269_v42, %v9527_v15  ;;  %v7458_v51 = vunpack.i.l.bf16 %v9273_v35 }
 0x42f   :  { %7481 = vrot.lane.b32.xlu1 %v7480_v61, %s7905_s24  ;;  %v1189_v8 = vmul.f32 %v1182_v58, %v9532_v46  ;;  %7466 = vrot.lane.b32.xlu0 %v7470_v18, %s7905_s24  ;;  %v11703_v18 = vld [vmem:[#allocation35_spill] sm:$0xff]  ;;  %v1261_v34 = vmul.f32 0.5, %v9524_v25  ;;  %v1175_v45 = vmul.f32 0.5, %v9532_v46  ;;  %v1260_v29 = vmul.f32 0.5, %v9537_v59 }
 0x430   :  { %7113 = vmatpush3.bf16.msra.mxu1 %v7112_v20  ;;  %v1274_v9 = vmul.f32 %v1267_v24, %v9537_v59  ;;  %v1282_v16 = vmul.f32 %v1275_v37, %v9524_v25  ;;  %6731 = vmatmul.mubr.msk.f32.gmra.mrb[76].mxu0 %vm1400_vm4, %v11697_v11  ;;  %v1283_v2 = vmul.f32 %v1276_v50, %v9527_v15  ;;  %v9580_v49 = vld [vmem:[#allocation2 + $0x61] sm:$0xff]  ;;  %v11704_v20 = vld [vmem:[#allocation22_spill] sm:$0xff]  ;;  %v1262_v6 = vmul.f32 0.5, %v9527_v15 }
 0x431   :  { %7114 = vmatprep.subr.bf16.mxu1 %v11588_v23  ;;  %v7595_v0 = vpop.eup %7594  ;;  %v1196_v54 = vmul.f32 %v1189_v8, %v9532_v46  ;;  %6733 = vmatprep.mubr.msk.f32.mxu0 %vm7896_vm2, %v11598_v40  ;;  %11700 = vst [vmem:[#allocation51_spill] sm:$0xff] %v9580_v49  ;;  %v7244_v13 = vpack.c.bf16 %v7459_v14, %v7458_v51  ;;  %v7392_v30 = vunpack.i.h.bf16 %v11704_v20  ;;  %v1157_v8 = vld [vmem:[#allocation2 + $0x38] sm:$0x1]  ;;  %v11713_v14 = vld [vmem:[#allocation40_spill] sm:$0xff] }
 0x432   :  { %v1223_v41 = vadd.f32 1.0, %v7595_v0  ;;  %v1281_v39 = vmul.f32 %v1274_v9, %v9537_v59  ;;  %v1289_v52 = vadd.f32 %v1282_v16, %v9524_v25  ;;  %v1290_v36 = vadd.f32 %v1283_v2, %v9527_v15  ;;  %v11706_v15 = vld [vmem:[#allocation17_spill] sm:$0xff] }
 0x433   :  { %7486 = vrot.lane.b32.xlu1 %v7480_v61, %s7907_s26  ;;  %v1203_v32 = vadd.f32 %v1196_v54, %v9532_v46  ;;  %7476 = vrot.lane.b32.xlu0 %v7480_v61, %s7901_s21  ;;  %v9575_v44 = vld [vmem:[#allocation2 + $0x69] sm:$0xff]  ;;  %v7391_v25 = vunpack.i.l.bf16 %v11704_v20 }
 0x434   :  { %11698 = vst [vmem:[#allocation19_spill] sm:$0xff] %v9575_v44  ;;  %v1230_v43 = vmul.f32 %v1223_v41, %v1174_v12  ;;  %v1288_v26 = vadd.f32 %v1281_v39, %v9537_v59  ;;  %v1296_v33 = vmul.f32 0.7978846, %v1289_v52  ;;  %6734 = vmatmul.mubr.msk.f32.gmra.mrb[78].mxu0 %vm1400_vm4, %v11699_v62  ;;  %v1297_v3 = vmul.f32 0.7978846, %v1290_v36  ;;  %v11705_v46 = vld [vmem:[#allocation12_spill] sm:$0xff] }
 0x435   :  { %v1210_v10 = vmul.f32 0.7978846, %v1203_v32  ;;  %7233 = vmatpush3.bf16.xpose.msk.msra.mxu0 %vm8316_vm5, %v7231_v22  ;;  %6736 = vmatprep.mubr.msk.f32.mxu0 %vm7896_vm2, %v11598_v40  ;;  %v7248_v11 = vpack.c.bf16 %v7392_v30, %v7391_v25  ;;  %v7891_v52 = vld [vmem:[#allocation2 + $0x49] sm:$0xff]  ;;  %v7892_v32 = vld [vmem:[#allocation2 + $0x51] sm:$0xff] }
 0x436   :  { %v1237_v63 = vadd.f32 %v7890_v28, %v1230_v43  ;;  %v1295_v53 = vmul.f32 0.7978846, %v1288_v26  ;;  %7596 = vtanh.f32 %v1296_v33  ;;  %6789 = vmatprep.subr.mxu0 %v11598_v40  ;;  %v11707_v43 = vld [vmem:[#allocation38_spill] sm:$0xff]  ;;  %v11708_v62 = vld [vmem:[#allocation24_spill] sm:$0xff] }
 0x437   :  { %7598 = vtanh.f32 %v1210_v10  ;;  %v7432_v26 = vunpack.i.h.bf16 %v11707_v43  ;;  %v7431_v33 = vunpack.i.l.bf16 %v11707_v43  ;;  %v9719_v30 = vld [vmem:[%s11496_s5 + $0x38] sm:$0xff] }
 0x438   :  { %1244 = vst.msk [vmem:[#allocation2 + $0x30] sm:$0xff] %vm450_vm3, %v1237_v63  ;;  %7600 = vtanh.f32 %v1295_v53  ;;  %6737 = vmatmul.mubr.msk.f32.gmra.mrb[80].mxu0 %vm1400_vm4, %v11701_v7 }
 0x439   :  { %7602 = vtanh.f32 %v1297_v3  ;;  %6739 = vmatprep.mubr.msk.f32.mxu0 %vm7896_vm2, %v11598_v40  ;;  %v11709_v3 = vld [vmem:[#allocation27_spill] sm:$0xff] }
 0x43c   :  { %6740 = vmatmul.mubr.msk.f32.gmra.mrb[82].mxu0 %vm1400_vm4, %v11702_v21 }
 0x43d   :  { %6790 = vmatpush3.xpose.msk.msra.mxu0 %vm1400_vm4, %v11703_v18  ;;  %6791 = vmatprep.mubr.msk.f32.mxu0 %vm7896_vm2, %v11598_v40  ;;  %v11715_v18 = vld [vmem:[#allocation37_spill] sm:$0xff] }
 0x43e   :  { %7243 = vmatprep.subr.bf16.mxu0 %v11588_v23 }
 0x43f   :  { %v2458_v27 = vld [vmem:[#allocation2 + $0x30] sm:$0xff] }
 0x440   :  { %v7597_v31 = vpop.eup %7596  ;;  %6792 = vmatmul.mubr.msk.f32.vlgmr.msra.gmra.mrb[84].mxu0 %vm1400_vm4, %v3942_v19  ;;  %v7495_v48 = vpack.i.bf16 %v2458_v27, %v2457_v17  ;;  %v7115_v35 = vpack.c.bf16 %v2458_v27, %v2457_v17  ;;  %v4388_v19 = vpop.permute.xlu1 %4387  ;;  %v11717_v17 = vld [vmem:[#allocation13_spill] sm:$0xff]  ;;  %v11718_v27 = vld [vmem:[#allocation16_spill] sm:$0xff] }
 0x441   :  { %v7599_v38 = vpop.eup %7598  ;;  %v1310_v4 = vadd.f32 1.0, %v7597_v31  ;;  %7246 = vmatpush3.bf16.xpose.msk.msra.mxu0 %vm8316_vm5, %v7244_v13  ;;  %6794 = vmatprep.mubr.msk.f32.mxu0 %vm7896_vm2, %v11598_v40  ;;  %v11716_v13 = vld [vmem:[#allocation41_spill] sm:$0xff]  ;;  %v11719_v31 = vld [vmem:[#allocation23_spill] sm:$0xff] }
 0x442   :  { %v7601_v61 = vpop.eup %7600  ;;  %v1224_v58 = vadd.f32 1.0, %v7599_v38  ;;  %7496 = vrot.lane.b32.xlu0 %v7495_v48, %s7905_s24  ;;  %7491 = vrot.lane.b32.xlu1 %v7495_v48, %s7901_s21  ;;  %v9707_v38 = vld [vmem:[%s11496_s5] sm:$0xff] }
 0x443   :  { %v7603_v42 = vpop.eup %7602  ;;  %v1309_v24 = vadd.f32 1.0, %v7601_v61  ;;  %v1317_v37 = vmul.f32 %v1310_v4, %v1261_v34  ;;  %7116 = vmatpush3.bf16.msra.mxu1 %v7115_v35  ;;  %7247 = vmatprep.subr.bf16.mxu0 %v11588_v23  ;;  %v11721_v35 = vld [vmem:[#allocation42_spill] sm:$0xff]  ;;  %v11722_v34 = vld [vmem:[#allocation39_spill] sm:$0xff] }
 0x444   :  { %v1231_v60 = vmul.f32 %v1224_v58, %v1175_v45  ;;  %v1311_v55 = vadd.f32 1.0, %v7603_v42  ;;  %6795 = vmatmul.mubr.msk.f32.gmra.mrb[86].mxu0 %vm1400_vm4, %v11705_v46  ;;  %6404 = vmatprep.subr.mxu1 %v11598_v40  ;;  %v9726_v42 = vld [vmem:[%s11496_s5 + $0x8] sm:$0xff]  ;;  %v9739_v46 = vld [vmem:[%s11496_s5 + $0x40] sm:$0xff] }
 0x445   :  { %v1316_v50 = vmul.f32 %v1309_v24, %v1260_v29  ;;  %v1332_v9 = vrot.slane %v1317_v37, 1  ;;  %6797 = vmatprep.mubr.msk.f32.mxu0 %vm7896_vm2, %v11598_v40 }
 0x446   :  { %v1238_v59 = vadd.f32 %v1231_v60, %v1157_v8  ;;  %v1318_v16 = vmul.f32 %v1311_v55, %v1262_v6  ;;  %7501 = vrot.lane.b32.xlu0 %v7495_v48, %s7907_s26  ;;  %v11720_v48 = vld [vmem:[#allocation28_spill] sm:$0xff] }
 0x447   :  { %v1331_v0 = vrot.slane %v1316_v50, 1 }
 0x448   :  { %v1334_v54 = vrot.slane %v1318_v16, 1  ;;  %1245 = vst.msk [vmem:[#allocation2 + $0x38] sm:$0x1] %vm497_vm6, %v1238_v59  ;;  %6798 = vmatmul.mubr.msk.f32.gmra.mrb[88].mxu0 %vm1400_vm4, %v11706_v15  ;;  %vm3094_vm6 = vcmask 516480  }
 0x449   :  { %v1333_v2 = vsel %vm1330_vm7, %v1331_v0, %v1332_v9  ;;  %7250 = vmatpush3.bf16.xpose.msk.msra.mxu0 %vm8316_vm5, %v7248_v11  ;;  %6800 = vmatprep.mubr.msk.f32.mxu0 %vm7896_vm2, %v11598_v40  ;;  %v9749_v11 = vld [vmem:[%s11496_s5 + $0x10] sm:$0xff] }
 0x44a   :  { %v1335_v12 = vsel %vm1330_vm7, %v1332_v9, %v1334_v54  ;;  %v1337_v41 = vsel %vm1330_vm7, %v1334_v54, %v1336_v5  ;;  %v1351_v39 = vadd.f32 %v1333_v2, %v9423_v47  ;;  %7251 = vmatprep.subr.bf16.mxu0 %v11588_v23  ;;  %v7252_v5 = vpack.c.bf16 %v7432_v26, %v7431_v33 }
 0x44b   :  { %v1352_v22 = vadd.f32 %v7891_v52, %v1335_v12  ;;  %v1353_v36 = vadd.f32 %v7892_v32, %v1337_v41  ;;  %v9754_v12 = vld [vmem:[%s11496_s5 + $0x20] sm:$0xff]  ;;  %v9764_v52 = vld [vmem:[%s11496_s5 + $0x48] sm:$0xff] }
 0x44c   :  { %1358 = vst.msk [vmem:[#allocation2 + $0x41] sm:$0xff] %vm450_vm3, %v1351_v39  ;;  %6801 = vmatmul.mubr.msk.f32.gmra.mrb[90].mxu0 %vm1400_vm4, %v11708_v62 }
 0x44d   :  { %1359 = vst.msk [vmem:[#allocation2 + $0x49] sm:$0xff] %vm450_vm3, %v1352_v22  ;;  %1360 = vst.msk [vmem:[#allocation2 + $0x51] sm:$0xff] %vm450_vm3, %v1353_v36  ;;  %6803 = vmatprep.mubr.msk.f32.mxu0 %vm7896_vm2, %v11598_v40 }
 0x44f   :  { %v2908_v47 = vld [vmem:[#allocation2 + $0x38] sm:$0x1] }
 0x450   :  { %v1614_v57 = vld [vmem:[#allocation2 + $0x38] sm:$0x1]  ;;  %2928 = vrot.lane.b32.xlu1 %v2908_v47, %s7907_s26  ;;  %6804 = vmatmul.mubr.msk.f32.gmra.mrb[92].mxu0 %vm1400_vm4, %v11709_v3 }
 0x451   :  { %6405 = vmatpush3.msk.msra.mxu1 %vm1636_vm8, %v1614_v57  ;;  %v2010_v10 = vld [vmem:[#allocation2 + $0x38] sm:$0x1]  ;;  %7254 = vmatpush3.bf16.xpose.msk.msra.mxu0 %vm8316_vm5, %v7252_v5  ;;  %vm3087_vm5 = vcmask 523648  }
 0x452   :  { %2030 = vrot.lane.b32.xlu0 %v2010_v10, %s7901_s21  ;;  %6806 = vmatprep.mubr.msk.f32.mxu0 %vm7896_vm2, %v11598_v40  ;;  %v2459_v63 = vld [vmem:[#allocation2 + $0x38] sm:$0x1] }
 0x453   :  { %6859 = vmatprep.subr.mxu0 %v11598_v40  ;;  %v9656_v28 = vld [vmem:[#allocation2 + $0x41] sm:$0xff]  ;;  %7129 = vmatprep.subr.bf16.mxu1 %v11588_v23  ;;  %v9779_v57 = vld [vmem:[%s11496_s5 + $0x18] sm:$0xff] }
 0x454   :  { %11710 = vst [vmem:[#allocation49_spill] sm:$0xff] %v9656_v28  ;;  %v9659_v53 = vld [vmem:[#allocation2 + $0x51] sm:$0xff]  ;;  %v9661_v7 = vld [vmem:[#allocation2 + $0x49] sm:$0xff]  ;;  %6807 = vmatmul.mubr.msk.f32.gmra.mrb[94].mxu0 %vm1400_vm4, %v11713_v14  ;;  %v9784_v14 = vld [vmem:[%s11496_s5 + $0x60] sm:$0xff] }
 0x455   :  { %11711 = vst [vmem:[#allocation47_spill] sm:$0xff] %v9659_v53  ;;  %11712 = vst [vmem:[#allocation10_spill] sm:$0xff] %v9661_v7  ;;  %6809 = vmatprep.mubr.msk.f32.mxu0 %vm7896_vm2, %v11598_v40 }
 0x456   :  { %2479 = vrot.lane.b32.xlu0 %v2459_v63, %s7905_s24 }
 0x458   :  { %6810 = vmatmul.mubr.msk.f32.gmra.mrb[96].mxu0 %vm1400_vm4, %v11715_v18 }
 0x459   :  { %6860 = vmatpush3.xpose.msk.msra.mxu0 %vm1400_vm4, %v11716_v13  ;;  %6861 = vmatprep.mubr.msk.f32.mxu0 %vm7896_vm2, %v11598_v40 }
 0x45a   :  { %7264 = vmatprep.subr.bf16.mxu0 %v11588_v23 }
 0x45c   :  { %6862 = vmatmul.mubr.msk.f32.vlgmr.msra.gmra.mrb[98].mxu0 %vm1400_vm4, %v4388_v19  ;;  %v9794_v19 = vld [vmem:[%s11496_s5 + $0x50] sm:$0xff] }
 0x45d   :  { %6864 = vmatprep.mubr.msk.f32.mxu0 %vm7896_vm2, %v11598_v40 }
 0x460   :  { %6865 = vmatmul.mubr.msk.f32.gmra.mrb[100].mxu0 %vm1400_vm4, %v11717_v17 }
 0x461   :  { %6867 = vmatprep.mubr.msk.f32.mxu0 %vm7896_vm2, %v11598_v40 }
 0x464   :  { %6868 = vmatmul.mubr.msk.f32.gmra.mrb[102].mxu0 %vm1400_vm4, %v11718_v27  ;;  %v1378_v27 = vld [vmem:[%s11496_s5 + $0x30] sm:$0x1] }
 0x465   :  { %6870 = vmatprep.mubr.msk.f32.mxu0 %vm7896_vm2, %v11598_v40 }
 0x468   :  { %6871 = vmatmul.mubr.msk.f32.gmra.mrb[104].mxu0 %vm1400_vm4, %v11719_v31 }
 0x469   :  { %6873 = vmatprep.mubr.msk.f32.mxu0 %vm7896_vm2, %v11598_v40 }
 0x46c   :  { %6874 = vmatmul.mubr.msk.f32.gmra.mrb[106].mxu0 %vm1400_vm4, %v11720_v48 }
 0x46d   :  { %6876 = vmatprep.mubr.msk.f32.mxu0 %vm7896_vm2, %v11598_v40 }
 0x470   :  { %6877 = vmatmul.mubr.msk.f32.gmra.mrb[108].mxu0 %vm1400_vm4, %v11721_v35 }
 0x471   :  { %6879 = vmatprep.mubr.msk.f32.mxu0 %vm7896_vm2, %v11598_v40 }
 0x474   :  { %6880 = vmatmul.mubr.msk.f32.gmra.mrb[110].mxu0 %vm1400_vm4, %v11722_v34  ;;  %v1495_v4 = vpop.f32.mrb[12].mxu1  ;;  %vm2645_vm4 = vcmask 385280  }
 0x475   :  { %6933 = vmatprep.mubr.msk.f32.mxu0 %vm7896_vm2, %v11598_v40  ;;  %v9714_v61 = vadd.f32 %v1495_v4, %v9707_v38  ;;  %v6373_v20 = vpop.f32.mrb[13].mxu1 }
 0x477   :  { %v1530_v45 = vsel %vm1529_vm9, %v9714_v61, -inf }
 0x478   :  { %v1893_v58 = vpop.f32.mrb[14].mxu0  ;;  %1531 = vmax.xlane.f32.xlu0 %v1530_v45  ;;  %v1500_v25 = vpop.f32.mrb[14].mxu1 }
 0x479   :  { %v9729_v29 = vadd.f32 %v9719_v30, %v1893_v58  ;;  %v6376_v24 = vpop.f32.mrb[15].mxu1  ;;  %v6443_v37 = vpop.f32.mrb[15].mxu0  ;;  %v9732_v60 = vadd.f32 %v1500_v25, %v9726_v42  ;;  %v9814_v25 = vld [vmem:[%s11496_s5 + $0x58] sm:$0xff] }
 0x47b   :  { %v1927_v6 = vsel %vm1529_vm9, %v9729_v29, -inf  ;;  %v1533_v16 = vsel %vm1529_vm9, %v9732_v60, -inf }
 0x47c   :  { %1928 = vmax.xlane.f32.xlu1 %v1927_v6  ;;  %v1505_v55 = vpop.f32.mrb[16].mxu1  ;;  %v1898_v8 = vpop.f32.mrb[16].mxu0 }
 0x47d   :  { %v6379_v50 = vpop.f32.mrb[17].mxu1  ;;  %v6446_v9 = vpop.f32.mrb[17].mxu0  ;;  %v9742_v59 = vadd.f32 %v9739_v46, %v1898_v8  ;;  %v9757_v41 = vadd.f32 %v1505_v55, %v9749_v11 }
 0x47e   :  { %v9826_v50 = vld [vmem:[%s11496_s5 + $0x28] sm:$0xff] }
 0x47f   :  { %v1930_v39 = vsel %vm1529_vm9, %v9742_v59, -inf  ;;  %v1536_v62 = vsel %vm1529_vm9, %v9757_v41, -inf }
 0x480   :  { %v1903_v0 = vpop.f32.mrb[18].mxu0  ;;  %1534 = vmax.xlane.f32.xlu1 %v1533_v16  ;;  %v1510_v54 = vpop.f32.mrb[18].mxu1 }
 0x481   :  { %v6382_v15 = vpop.f32.mrb[19].mxu1  ;;  %v6449_v2 = vpop.f32.mrb[19].mxu0  ;;  %v9770_v33 = vadd.f32 %v9764_v52, %v1903_v0  ;;  %v9787_v18 = vadd.f32 %v1510_v54, %v9779_v57 }
 0x482   :  { %v5781_v15 = vld [vmem:[%s11496_s5 + $0x68] sm:$0x1] }
 0x483   :  { %v1933_v13 = vsel %vm1529_vm9, %v9770_v33, -inf  ;;  %v1539_v45 = vsel %vm1529_vm9, %v9787_v18, -inf }
 0x484   :  { %v1908_v22 = vpop.f32.mrb[20].mxu0  ;;  %1931 = vmax.xlane.f32.xlu1 %v1930_v39  ;;  %v1515_v32 = vpop.f32.mrb[20].mxu1 }
 0x485   :  { %v9767_v36 = vadd.f32 %v1515_v32, %v9754_v12  ;;  %v6385_v43 = vpop.f32.mrb[21].mxu1  ;;  %v6452_v26 = vpop.f32.mrb[21].mxu0  ;;  %v9803_v4 = vadd.f32 %v9794_v19, %v1908_v22 }
 0x486   :  { %v9843_v43 = vld [vmem:[%s11496_s5 + $0x70] sm:$0xff] }
 0x487   :  { %v1542_v47 = vsel %vm1529_vm9, %v9767_v36, -inf  ;;  %v1936_v55 = vsel %vm1529_vm9, %v9803_v4, -inf }
 0x488   :  { %v1913_v5 = vpop.f32.mrb[22].mxu0  ;;  %1537 = vmax.xlane.f32.xlu1 %v1536_v62  ;;  %1543 = vmax.xlane.f32.xlu0 %v1542_v47  ;;  %v1520_v10 = vpop.f32.mrb[22].mxu1 }
 0x489   :  { %v6388_v3 = vpop.f32.mrb[23].mxu1  ;;  %v6455_v63 = vpop.f32.mrb[23].mxu0  ;;  %v9817_v6 = vadd.f32 %v9814_v25, %v1913_v5  ;;  %v9829_v0 = vadd.f32 %v1520_v10, %v9826_v50  ;;  %v9853_v10 = vld [vmem:[%s11496_s5 + $0x78] sm:$0xff] }
 0x48b   :  { %v1939_v54 = vsel %vm1529_vm9, %v9817_v6, -inf  ;;  %v1545_v32 = vsel %vm1529_vm9, %v9829_v0, -inf }
 0x48c   :  { %v1918_v17 = vpop.f32.mrb[24].mxu0  ;;  %1934 = vmax.xlane.f32.xlu1 %v1933_v13  ;;  %v1525_v31 = vpop.f32.mrb[24].mxu1 }
 0x48d   :  { %v9800_v48 = vadd.f32 %v9784_v14, %v1918_v17  ;;  %v6391_v35 = vpop.f32.mrb[25].mxu1  ;;  %v6458_v34 = vpop.f32.mrb[25].mxu0  ;;  %v9805_v20 = vadd.f32 %v1525_v31, %v1378_v27  ;;  %v9863_v27 = vld [vmem:[%s11496_s5 + $0x80] sm:$0xff] }
 0x48f   :  { %v1942_v58 = vsel %vm1529_vm9, %v9800_v48, -inf  ;;  %v1549_v8 = vsel %vm1548_vm10, %v9805_v20, -inf }
 0x490   :  { %v1923_v24 = vpop.f32.mrb[26].mxu0  ;;  %1540 = vmax.xlane.f32.xlu1 %v1539_v45  ;;  %1943 = vmax.xlane.f32.xlu0 %v1942_v58  ;;  %v9873_v58 = vld [vmem:[%s11496_s5 + $0x88] sm:$0xff] }
 0x491   :  { %v6461_v37 = vpop.f32.mrb[27].mxu0  ;;  %v9836_v22 = vadd.f32 %v5781_v15, %v1923_v24 }
 0x493   :  { %v1945_v5 = vsel %vm1548_vm10, %v9836_v22, -inf }
 0x494   :  { %v2342_v9 = vpop.f32.mrb[28].mxu0  ;;  %1937 = vmax.xlane.f32.xlu1 %v1936_v55  ;;  %1550 = vmax.xlane.f32.xlu0 %v1549_v8  ;;  %v5810_v55 = vld [vmem:[%s11496_s5 + $0xa0] sm:$0x1] }
 0x495   :  { %v6513_v16 = vpop.f32.mrb[29].mxu0  ;;  %v9846_v47 = vadd.f32 %v9843_v43, %v2342_v9 }
 0x496   :  { %v9886_v16 = vld [vmem:[%s11496_s5 + $0x90] sm:$0xff] }
 0x497   :  { %v2376_v17 = vsel %vm1529_vm9, %v9846_v47, -inf }
 0x498   :  { %v2347_v2 = vpop.f32.mrb[30].mxu0  ;;  %1940 = vmax.xlane.f32.xlu1 %v1939_v54 }
 0x499   :  { %v6516_v39 = vpop.f32.mrb[31].mxu0  ;;  %v9856_v13 = vadd.f32 %v9853_v10, %v2347_v2 }
 0x49b   :  { %v2379_v45 = vsel %vm1529_vm9, %v9856_v13, -inf }
 0x49c   :  { %v2352_v26 = vpop.f32.mrb[32].mxu0  ;;  %1546 = vmax.xlane.f32.xlu1 %v1545_v32 }
 0x49d   :  { %v6519_v62 = vpop.f32.mrb[33].mxu0  ;;  %v9866_v34 = vadd.f32 %v9863_v27, %v2352_v26 }
 0x49e   :  { %v9900_v62 = vld [vmem:[%s11496_s5 + $0x98] sm:$0xff] }
 0x49f   :  { %v2382_v9 = vsel %vm1529_vm9, %v9866_v34, -inf }
 0x4a0   :  { %v2357_v3 = vpop.f32.mrb[34].mxu0  ;;  %1946 = vmax.xlane.f32.xlu1 %v1945_v5 }
 0x4a1   :  { %v6522_v63 = vpop.f32.mrb[35].mxu0  ;;  %v9879_v8 = vadd.f32 %v9873_v58, %v2357_v3 }
 0x4a3   :  { %v2385_v32 = vsel %vm1529_vm9, %v9879_v8, -inf }
 0x4a4   :  { %v2362_v31 = vpop.f32.mrb[36].mxu0  ;;  %2377 = vmax.xlane.f32.xlu1 %v2376_v17 }
 0x4a5   :  { %v6525_v35 = vpop.f32.mrb[37].mxu0  ;;  %v9891_v39 = vadd.f32 %v9886_v16, %v2362_v31  ;;  %v9910_v31 = vld [vmem:[%s11496_s5 + $0xa8] sm:$0xff] }
 0x4a7   :  { %v2388_v17 = vsel %vm1529_vm9, %v9891_v39, -inf }
 0x4a8   :  { %v2367_v24 = vpop.f32.mrb[38].mxu0  ;;  %2380 = vmax.xlane.f32.xlu1 %v2379_v45 }
 0x4a9   :  { %v6528_v37 = vpop.f32.mrb[39].mxu0  ;;  %v9903_v63 = vadd.f32 %v9900_v62, %v2367_v24  ;;  %v9920_v24 = vld [vmem:[%s11496_s5 + $0xb0] sm:$0xff] }
 0x4ac   :  { %v2372_v54 = vpop.f32.mrb[40].mxu0  ;;  %2383 = vmax.xlane.f32.xlu1 %v2382_v9 }
 0x4ad   :  { %v9888_v15 = vadd.f32 %v5810_v55, %v2372_v54  ;;  %v6531_v2 = vpop.f32.mrb[41].mxu0  ;;  %v2391_v55 = vsel %vm1529_vm9, %v9903_v63, -inf }
 0x4af   :  { %v2394_v26 = vsel %vm1548_vm10, %v9888_v15, -inf }
 0x4b0   :  { %v2791_v5 = vpop.f32.mrb[42].mxu0  ;;  %2386 = vmax.xlane.f32.xlu1 %v2385_v32  ;;  %2395 = vmax.xlane.f32.xlu0 %v2394_v26  ;;  %v9930_v26 = vld [vmem:[%s11496_s5 + $0xb8] sm:$0xff] }
 0x4b1   :  { %v6583_v3 = vpop.f32.mrb[43].mxu0  ;;  %v9913_v37 = vadd.f32 %v9910_v31, %v2791_v5 }
 0x4b3   :  { %v2825_v32 = vsel %vm1529_vm9, %v9913_v37, -inf }
 0x4b4   :  { %v2796_v35 = vpop.f32.mrb[44].mxu0  ;;  %2389 = vmax.xlane.f32.xlu1 %v2388_v17 }
 0x4b5   :  { %v6586_v45 = vpop.f32.mrb[45].mxu0  ;;  %v9923_v2 = vadd.f32 %v9920_v24, %v2796_v35  ;;  %v9940_v35 = vld [vmem:[%s11496_s5 + $0xc0] sm:$0xff] }
 0x4b7   :  { %v2828_v45 = vsel %vm1529_vm9, %v9923_v2, -inf }
 0x4b8   :  { %v2801_v9 = vpop.f32.mrb[46].mxu0  ;;  %2392 = vmax.xlane.f32.xlu1 %v2391_v55 }
 0x4b9   :  { %v6589_v54 = vpop.f32.mrb[47].mxu0  ;;  %v9933_v17 = vadd.f32 %v9930_v26, %v2801_v9  ;;  %v9950_v9 = vld [vmem:[%s11496_s5 + $0xc8] sm:$0xff] }
 0x4bb   :  { %11723 = vst [vmem:[#allocation56_spill] sm:$0xff] %v9933_v17 }
 0x4bc   :  { %2826 = vmax.xlane.f32.xlu1 %v2825_v32  ;;  %v2831_v32 = vsel %vm1529_vm9, %v9933_v17, -inf }
 0x4bf   :  { %v2806_v5 = vpop.f32.mrb[48].mxu0 }
 0x4c0   :  { %v6592_v3 = vpop.f32.mrb[49].mxu0  ;;  %2829 = vmax.xlane.f32.xlu1 %v2828_v45  ;;  %v9943_v56 = vadd.f32 %v9940_v35, %v2806_v5  ;;  %v9960_v5 = vld [vmem:[%s11496_s5 + $0xd0] sm:$0xff] }
 0x4c2   :  { %11724 = vst [vmem:[#allocation15_spill] sm:$0xff] %v9943_v56  ;;  %v2834_v45 = vsel %vm1529_vm9, %v9943_v56, -inf }
 0x4c3   :  { %v2811_v55 = vpop.f32.mrb[50].mxu0 }
 0x4c4   :  { %v6595_v54 = vpop.f32.mrb[51].mxu0  ;;  %2832 = vmax.xlane.f32.xlu1 %v2831_v32  ;;  %v9953_v51 = vadd.f32 %v9950_v9, %v2811_v55  ;;  %v5839_v55 = vld [vmem:[%s11496_s5 + $0xd8] sm:$0x1] }
 0x4c6   :  { %11725 = vst [vmem:[#allocation55_spill] sm:$0xff] %v9953_v51 }
 0x4c7   :  { %v2816_v3 = vpop.f32.mrb[52].mxu0 }
 0x4c8   :  { %v6598_v21 = vpop.f32.mrb[53].mxu0  ;;  %2835 = vmax.xlane.f32.xlu1 %v2834_v45  ;;  %v9963_v44 = vadd.f32 %v9960_v5, %v2816_v3 }
 0x4c9   :  { %v2837_v21 = vsel %vm1529_vm9, %v9953_v51, -inf }
 0x4ca   :  { %v2840_v56 = vsel %vm1529_vm9, %v9963_v44, -inf }
 0x4cb   :  { %v2821_v54 = vpop.f32.mrb[54].mxu0 }
 0x4cc   :  { %v6601_v49 = vpop.f32.mrb[55].mxu0  ;;  %2838 = vmax.xlane.f32.xlu1 %v2837_v21  ;;  %v9970_v23 = vadd.f32 %v5839_v55, %v2821_v54 }
 0x4ce   :  { %v2843_v17 = vsel %vm1548_vm10, %v9970_v23, -inf }
 0x4cf   :  { %v3225_v32 = vpop.f32.mrb[56].mxu0 }
 0x4d0   :  { %v6653_v40 = vpop.f32.mrb[57].mxu0  ;;  %2841 = vmax.xlane.f32.xlu1 %v2840_v56  ;;  %v9978_v51 = vadd.f32 %v3225_v32, %v9707_v38 }
 0x4d3   :  { %v3230_v45 = vpop.f32.mrb[58].mxu0 }
 0x4d4   :  { %v9975_v49 = vadd.f32 %v3230_v45, %v9726_v42  ;;  %v6656_v3 = vpop.f32.mrb[59].mxu0  ;;  %2844 = vmax.xlane.f32.xlu1 %v2843_v17  ;;  %v3259_v42 = vsel %vm1529_vm9, %v9978_v51, -inf }
 0x4d6   :  { %v3262_v40 = vsel %vm1529_vm9, %v9975_v49, -inf }
 0x4d7   :  { %v3235_v54 = vpop.f32.mrb[60].mxu0  ;;  %3263 = vmax.xlane.f32.xlu0 %v3262_v40 }
 0x4d8   :  { %v9985_v21 = vadd.f32 %v3235_v54, %v9749_v11  ;;  %v6659_v56 = vpop.f32.mrb[61].mxu0  ;;  %3260 = vmax.xlane.f32.xlu1 %v3259_v42 }
 0x4da   :  { %v3265_v38 = vsel %vm1529_vm9, %v9985_v21, -inf }
 0x4db   :  { %v3240_v55 = vpop.f32.mrb[62].mxu0  ;;  %3266 = vmax.xlane.f32.xlu0 %v3265_v38  ;;  %v3109_v38 = vld [vmem:[%s11496_s5 + $0x30] sm:$0x1] }
 0x4dc   :  { %v9992_v32 = vadd.f32 %v3240_v55, %v9779_v57  ;;  %v6662_v45 = vpop.f32.mrb[63].mxu0 }
 0x4de   :  { %v3268_v17 = vsel %vm1529_vm9, %v9992_v32, -inf }
 0x4df   :  { %v3245_v3 = vpop.f32.mrb[64].mxu0  ;;  %3269 = vmax.xlane.f32.xlu0 %v3268_v17 }
 0x4e0   :  { %v9997_v11 = vadd.f32 %v3245_v3, %v9754_v12  ;;  %v6665_v40 = vpop.f32.mrb[65].mxu0 }
 0x4e1   :  { %v10013_v40 = vpop.permute.xlu0 %7461 }
 0x4e2   :  { %11726 = vst [vmem:[#allocation53_spill] sm:$0xff] %v9997_v11  ;;  %v3271_v54 = vsel %vm1529_vm9, %v9997_v11, -inf  ;;  %11727 = vst [vmem:[#allocation59_spill] sm:$0xff] %v10013_v40 }
 0x4e3   :  { %v3250_v56 = vpop.f32.mrb[66].mxu0  ;;  %3272 = vmax.xlane.f32.xlu0 %v3271_v54 }
 0x4e4   :  { %v10002_v42 = vadd.f32 %v3250_v56, %v9826_v50  ;;  %v6668_v57 = vpop.f32.mrb[67].mxu0  ;;  %v10015_v50 = vpop.permute.xlu1 %7471 }
 0x4e5   :  { %11728 = vst [vmem:[#allocation20_spill] sm:$0xff] %v10015_v50  ;;  %v10017_v54 = vpop.permute.xlu0 %7466 }
 0x4e6   :  { %v3274_v55 = vsel %vm1529_vm9, %v10002_v42, -inf  ;;  %11729 = vst [vmem:[#allocation58_spill] sm:$0xff] %v10017_v54 }
 0x4e7   :  { %v3255_v45 = vpop.f32.mrb[68].mxu0  ;;  %3275 = vmax.xlane.f32.xlu1 %v3274_v55 }
 0x4e8   :  { %v10009_v12 = vadd.f32 %v3255_v45, %v3109_v38  ;;  %v6671_v17 = vpop.f32.mrb[69].mxu0  ;;  %v10019_v56 = vpop.permute.xlu1 %7481 }
 0x4e9   :  { %11730 = vst [vmem:[#allocation25_spill] sm:$0xff] %v10019_v56  ;;  %v10021_v11 = vpop.permute.xlu0 %7476 }
 0x4ea   :  { %v3277_v3 = vsel %vm1548_vm10, %v10009_v12, -inf  ;;  %11731 = vst [vmem:[#allocation30_spill] sm:$0xff] %v10021_v11 }
 0x4eb   :  { %3278 = vmax.xlane.f32.xlu0 %v3277_v3 }
 0x4ec   :  { %v10033_v40 = vpop.permute.xlu1 %7486 }
 0x4ed   :  { %v10028_v3 = vpop.permute.xlu0 %7496  ;;  %11734 = vst [vmem:[#allocation8_spill] sm:$0xff] %v10033_v40 }
 0x4ee   :  { %11733 = vst [vmem:[#allocation43_spill] sm:$0xff] %v10028_v3 }
 0x4f7   :  { %v3617_v57 = vpop.f32.mrb[70].mxu0 }
 0x4f8   :  { %v10024_v55 = vadd.f32 %v9719_v30, %v3617_v57  ;;  %v6723_v38 = vpop.f32.mrb[71].mxu0 }
 0x4f9   :  { %v10040_v38 = vpop.permute.xlu1 %7491 }
 0x4fa   :  { %11732 = vst [vmem:[#allocation32_spill] sm:$0xff] %v10024_v55  ;;  %v3651_v45 = vsel %vm1529_vm9, %v10024_v55, -inf  ;;  %11736 = vst [vmem:[#allocation6_spill] sm:$0xff] %v10040_v38 }
 0x4fb   :  { %v3622_v17 = vpop.f32.mrb[72].mxu0  ;;  %3652 = vmax.xlane.f32.xlu0 %v3651_v45  ;;  %v10042_v45 = vpop.permute.xlu0 %7501 }
 0x4fc   :  { %v10031_v50 = vadd.f32 %v9739_v46, %v3622_v17  ;;  %v6726_v54 = vpop.f32.mrb[73].mxu0  ;;  %11737 = vst [vmem:[#allocation45_spill] sm:$0xff] %v10042_v45 }
 0x4fd   :  { %v10051_v3 = vpop.permute.xlu1 %2928 }
 0x4fe   :  { %v3654_v56 = vsel %vm1529_vm9, %v10031_v50, -inf  ;;  %11738 = vst [vmem:[#allocation5_spill] sm:$0xff] %v10051_v3 }
 0x4ff   :  { %v3627_v11 = vpop.f32.mrb[74].mxu0  ;;  %3655 = vmax.xlane.f32.xlu1 %v3654_v56 }
 0x500   :  { %v10038_v30 = vadd.f32 %v9764_v52, %v3627_v11  ;;  %v6729_v57 = vpop.f32.mrb[75].mxu0  ;;  %v10053_v11 = vpop.permute.xlu0 %2030 }
 0x501   :  { %11739 = vst [vmem:[#allocation52_spill] sm:$0xff] %v10053_v11 }
 0x502   :  { %11735 = vst [vmem:[#allocation7_spill] sm:$0xff] %v10038_v30  ;;  %v3657_v46 = vsel %vm1529_vm9, %v10038_v30, -inf }
 0x503   :  { %v3632_v17 = vpop.f32.mrb[76].mxu0  ;;  %3658 = vmax.xlane.f32.xlu1 %v3657_v46 }
 0x504   :  { %v10047_v54 = vadd.f32 %v9794_v19, %v3632_v17  ;;  %v6732_v40 = vpop.f32.mrb[77].mxu0  ;;  %v10066_v3 = vpop.permute.xlu0 %2479 }
 0x505   :  { %11742 = vst [vmem:[#allocation44_spill] sm:$0xff] %v10066_v3 }
 0x506   :  { %v3660_v56 = vsel %vm1529_vm9, %v10047_v54, -inf }
 0x507   :  { %v3637_v52 = vpop.f32.mrb[78].mxu0  ;;  %3661 = vmax.xlane.f32.xlu1 %v3660_v56  ;;  %v5890_v56 = vld [vmem:[%s11496_s5 + $0x68] sm:$0x1] }
 0x508   :  { %v10056_v57 = vadd.f32 %v9814_v25, %v3637_v52  ;;  %v6735_v45 = vpop.f32.mrb[79].mxu0 }
 0x509   :  { %v1929_v19 = vpop.xlane.xlu1 %1928 }
 0x50a   :  { %11740 = vst [vmem:[#allocation62_spill] sm:$0xff] %v10056_v57  ;;  %v3663_v46 = vsel %vm1529_vm9, %v10056_v57, -inf  ;;  %v1948_v52 = vsub.f32 %v9729_v29, %v1929_v19 }
 0x50b   :  { %v3642_v38 = vpop.f32.mrb[80].mxu0  ;;  %3664 = vmax.xlane.f32.xlu1 %v3663_v46 }
 0x50c   :  { %v10061_v40 = vadd.f32 %v9784_v14, %v3642_v38  ;;  %v6738_v17 = vpop.f32.mrb[81].mxu0  ;;  %v1532_v38 = vpop.xlane.xlu0 %1531  ;;  %v1955_v57 = vmul.f32 1.442695, %v1948_v52 }
 0x50d   :  { %v1535_v11 = vpop.xlane.xlu1 %1534  ;;  %v1552_v29 = vsub.f32 %v9714_v61, %v1532_v38 }
 0x50e   :  { %11741 = vst [vmem:[#allocation46_spill] sm:$0xff] %v10061_v40  ;;  %v3666_v25 = vsel %vm1529_vm9, %v10061_v40, -inf  ;;  %7604 = vpow2.f32 %v1955_v57  ;;  %v1553_v38 = vsub.f32 %v9732_v60, %v1535_v11 }
 0x50f   :  { %v3647_v45 = vpop.f32.mrb[82].mxu0  ;;  %3667 = vmax.xlane.f32.xlu0 %v3666_v25 }
 0x510   :  { %v10071_v46 = vadd.f32 %v5890_v56, %v3647_v45  ;;  %v6741_v30 = vpop.f32.mrb[83].mxu0 }
 0x511   :  { %v1932_v55 = vpop.xlane.xlu1 %1931 }
 0x512   :  { %11743 = vst [vmem:[#allocation48_spill] sm:$0xff] %v10071_v46  ;;  %v3669_v14 = vsel %vm1548_vm10, %v10071_v46, -inf  ;;  %v1949_v25 = vsub.f32 %v9742_v59, %v1932_v55  ;;  %v1559_v46 = vmul.f32 1.442695, %v1552_v29 }
 0x513   :  { %v4063_v17 = vpop.f32.mrb[84].mxu0  ;;  %3670 = vmax.xlane.f32.xlu1 %v3669_v14 }
 0x514   :  { %v10076_v3 = vadd.f32 %v9843_v43, %v4063_v17  ;;  %v6793_v40 = vpop.f32.mrb[85].mxu0  ;;  %v1957_v56 = vmul.f32 1.442695, %v1949_v25 }
 0x515   :  { %v1538_v45 = vpop.xlane.xlu1 %1537 }
 0x516   :  { %v4097_v19 = vsel %vm1529_vm9, %v10076_v3, -inf  ;;  %7606 = vpow2.f32 %v1957_v56  ;;  %v1561_v56 = vmul.f32 1.442695, %v1553_v38 }
 0x517   :  { %v4068_v30 = vpop.f32.mrb[86].mxu0  ;;  %4098 = vmax.xlane.f32.xlu1 %v4097_v19  ;;  %7608 = vpow2.f32 %v1559_v46 }
 0x518   :  { %v10083_v14 = vadd.f32 %v9853_v10, %v4068_v30  ;;  %v6796_v52 = vpop.f32.mrb[87].mxu0 }
 0x519   :  { %v1935_v61 = vpop.xlane.xlu1 %1934 }
 0x51a   :  { %v4100_v43 = vsel %vm1529_vm9, %v10083_v14, -inf  ;;  %v1950_v57 = vsub.f32 %v9770_v33, %v1935_v61  ;;  %v1554_v61 = vsub.f32 %v9757_v41, %v1538_v45 }
 0x51b   :  { %v4073_v40 = vpop.f32.mrb[88].mxu0  ;;  %4101 = vmax.xlane.f32.xlu0 %v4100_v43 }
 0x51c   :  { %v10088_v59 = vadd.f32 %v9863_v27, %v4073_v40  ;;  %v6799_v55 = vpop.f32.mrb[89].mxu0  ;;  %v1959_v17 = vmul.f32 1.442695, %v1950_v57  ;;  %v10097_v27 = vpop.eup %7604 }
 0x51d   :  { %v1541_v29 = vpop.xlane.xlu1 %1540  ;;  %v1969_v46 = vsel %vm1529_vm9, %v10097_v27, 0.0 }
 0x51e   :  { %v4103_v10 = vsel %vm1529_vm9, %v10088_v59, -inf  ;;  %7610 = vpow2.f32 %v1959_v17  ;;  %v1555_v41 = vsub.f32 %v9787_v18, %v1541_v29 }
 0x51f   :  { %v4078_v25 = vpop.f32.mrb[90].mxu0  ;;  %4104 = vmax.xlane.f32.xlu1 %v4103_v10  ;;  %7612 = vpow2.f32 %v1561_v56 }
 0x520   :  { %v10095_v19 = vadd.f32 %v9873_v58, %v4078_v25  ;;  %v6802_v30 = vpop.f32.mrb[91].mxu0  ;;  %v10104_v43 = vpop.eup %7606 }
 0x521   :  { %v1938_v60 = vpop.xlane.xlu1 %1937  ;;  %v10112_v10 = vpop.eup %7608  ;;  %v1563_v30 = vmul.f32 1.442695, %v1554_v61  ;;  %v5919_v61 = vld [vmem:[%s11496_s5 + $0xa0] sm:$0x1] }
 0x522   :  { %v4106_v33 = vsel %vm1529_vm9, %v10095_v19, -inf  ;;  %v1951_v52 = vsub.f32 %v9803_v4, %v1938_v60  ;;  %v1972_v4 = vsel %vm1529_vm9, %v10104_v43, 0.0  ;;  %v1573_v56 = vsel %vm1529_vm9, %v10112_v10, 0.0 }
 0x523   :  { %4107 = vmax.xlane.f32.xlu1 %v4106_v33  ;;  %v4083_v11 = vpop.f32.mrb[92].mxu0 }
 0x524   :  { %v10107_v58 = vadd.f32 %v9886_v16, %v4083_v11  ;;  %v6805_v40 = vpop.f32.mrb[93].mxu0  ;;  %v1961_v55 = vmul.f32 1.442695, %v1951_v52  ;;  %v1565_v52 = vmul.f32 1.442695, %v1555_v41 }
 0x525   :  { %v1941_v38 = vpop.xlane.xlu1 %1940  ;;  %v1544_v40 = vpop.xlane.xlu0 %1543 }
 0x526   :  { %v4109_v57 = vsel %vm1529_vm9, %v10107_v58, -inf  ;;  %7614 = vpow2.f32 %v1961_v55 }
 0x527   :  { %1970 = vadd.xlane.f32.xlu1 %v1969_v46  ;;  %v4088_v17 = vpop.f32.mrb[94].mxu0  ;;  %4110 = vmax.xlane.f32.xlu0 %v4109_v57  ;;  %7616 = vpow2.f32 %v1563_v30  ;;  %v1556_v30 = vsub.f32 %v9767_v36, %v1544_v40 }
 0x528   :  { %v6808_v16 = vpop.f32.mrb[95].mxu0  ;;  %v10116_v25 = vpop.eup %7610  ;;  %v10120_v45 = vadd.f32 %v9900_v62, %v4088_v17  ;;  %7618 = vpow2.f32 %v1565_v52 }
 0x529   :  { %v10124_v33 = vpop.xlane.xlu1 %1546  ;;  %v1975_v11 = vsel %vm1529_vm9, %v10116_v25, 0.0  ;;  %v10130_v29 = vpop.eup %7612  ;;  %v1567_v52 = vmul.f32 1.442695, %v1556_v30 }
 0x52a   :  { %v4112_v18 = vsel %vm1529_vm9, %v10120_v45, -inf }
 0x52b   :  { %1973 = vadd.xlane.f32.xlu1 %v1972_v4  ;;  %v4093_v60 = vpop.f32.mrb[96].mxu0  ;;  %1574 = vadd.xlane.f32.xlu0 %v1573_v56 }
 0x52c   :  { %v6811_v46 = vpop.f32.mrb[97].mxu0  ;;  %v10142_v56 = vadd.f32 %v5919_v61, %v4093_v60  ;;  %v1952_v60 = vsub.f32 %v9817_v6, %v1941_v38 }
 0x52d   :  { %v1947_v62 = vpop.xlane.xlu1 %1946 }
 0x52e   :  { %v1954_v57 = vsub.f32 %v9836_v22, %v1947_v62  ;;  %v4115_v40 = vsel %vm1548_vm10, %v10142_v56, -inf }
 0x52f   :  { %1976 = vadd.xlane.f32.xlu1 %v1975_v11  ;;  %v4509_v55 = vpop.f32.mrb[98].mxu0  ;;  %4113 = vmax.xlane.f32.xlu0 %v4112_v18  ;;  %v1576_v11 = vsel %vm1529_vm9, %v10130_v29, 0.0 }
 0x530   :  { %v10137_v17 = vadd.f32 %v9910_v31, %v4509_v55  ;;  %v6863_v4 = vpop.f32.mrb[99].mxu0  ;;  %v10139_v16 = vpop.eup %7614  ;;  %v1967_v41 = vmul.f32 1.442695, %v1954_v57 }
 0x531   :  { %v10148_v18 = vpop.xlane.xlu1 %2377  ;;  %v1978_v36 = vsel %vm1529_vm9, %v10139_v16, 0.0  ;;  %v10155_v61 = vpop.eup %7616 }
 0x532   :  { %11744 = vst [vmem:[#allocation9_spill] sm:$0xff] %v10137_v17  ;;  %v4543_v46 = vsel %vm1529_vm9, %v10137_v17, -inf  ;;  %7620 = vpow2.f32 %v1967_v41  ;;  %v1963_v41 = vmul.f32 1.442695, %v1952_v60  ;;  %v1579_v30 = vsel %vm1529_vm9, %v10155_v61, 0.0 }
 0x533   :  { %v4514_v22 = vpop.f32.mrb[100].mxu0  ;;  %1577 = vadd.xlane.f32.xlu0 %v1576_v11  ;;  %4544 = vmax.xlane.f32.xlu1 %v4543_v46  ;;  %7622 = vpow2.f32 %v1567_v52  ;;  %v10160_v46 = vpop.eup %7618 }
 0x534   :  { %v6866_v31 = vpop.f32.mrb[101].mxu0  ;;  %v10167_v52 = vadd.f32 %v9920_v24, %v4514_v22  ;;  %v1582_v60 = vsel %vm1529_vm9, %v10160_v46, 0.0 }
 0x535   :  { %v2381_v62 = vpop.xlane.xlu1 %2380 }
 0x536   :  { %v2398_v57 = vsub.f32 %v9856_v13, %v2381_v62  ;;  %v1944_v13 = vpop.xlane.xlu0 %1943 }
 0x537   :  { %v4519_v55 = vpop.f32.mrb[102].mxu0  ;;  %4116 = vmax.xlane.f32.xlu0 %v4115_v40  ;;  %1979 = vadd.xlane.f32.xlu1 %v1978_v36  ;;  %v1557_v36 = vsub.f32 %v9829_v0, %v10124_v33  ;;  %v4546_v0 = vsel %vm1529_vm9, %v10167_v52, -inf }
 0x538   :  { %v6869_v4 = vpop.f32.mrb[103].mxu0  ;;  %v2406_v11 = vmul.f32 1.442695, %v2398_v57 }
 0x539   :  { %v1953_v4 = vsub.f32 %v9800_v48, %v1944_v13  ;;  %v10178_v22 = vpop.xlane.xlu1 %2383 }
 0x53a   :  { %7624 = vpow2.f32 %v2406_v11 }
 0x53b   :  { %v4524_v6 = vpop.f32.mrb[104].mxu0  ;;  %1580 = vadd.xlane.f32.xlu0 %v1579_v30  ;;  %7626 = vpow2.f32 %v1963_v41  ;;  %v1569_v41 = vmul.f32 1.442695, %v1557_v36 }
 0x53c   :  { %v6872_v38 = vpop.f32.mrb[105].mxu0  ;;  %v10162_v31 = vpop.eup %7620 }
 0x53d   :  { %11745 = vst [vmem:[#allocation50_spill] sm:$0xff] %v10162_v31  ;;  %v1987_v40 = vsel %vm1548_vm10, %v10162_v31, 0.0  ;;  %v10176_v33 = vpop.eup %7622  ;;  %v1965_v38 = vmul.f32 1.442695, %v1953_v4  ;;  %7628 = vpow2.f32 %v1569_v41  ;;  %v10190_v4 = vadd.f32 %v9930_v26, %v4519_v55 }
 0x53e   :  { %1988 = vadd.xlane.f32.xlu1 %v1987_v40  ;;  %v1585_v40 = vsel %vm1529_vm9, %v10176_v33, 0.0 }
 0x53f   :  { %v4529_v62 = vpop.f32.mrb[106].mxu0  ;;  %1583 = vadd.xlane.f32.xlu0 %v1582_v60  ;;  %v1551_v60 = vpop.xlane.xlu0 %1550  ;;  %7630 = vpow2.f32 %v1965_v38 }
 0x540   :  { %v6875_v57 = vpop.f32.mrb[107].mxu0 }
 0x543   :  { %v4534_v24 = vpop.f32.mrb[108].mxu0  ;;  %4547 = vmax.xlane.f32.xlu0 %v4546_v0  ;;  %v1558_v0 = vsub.f32 %v9805_v20, %v1551_v60  ;;  %v2397_v20 = vsub.f32 %v9846_v47, %v10148_v18  ;;  %v7893_v18 = vld [vmem:[#allocation2 + $0x69] sm:$0xff] }
 0x544   :  { %v6878_v11 = vpop.f32.mrb[109].mxu0  ;;  %v10180_v30 = vpop.eup %7624 }
 0x545   :  { %11746 = vst [vmem:[#allocation61_spill] sm:$0xff] %v10180_v30  ;;  %v2421_v48 = vsel %vm1529_vm9, %v10180_v30, 0.0  ;;  %v10186_v36 = vpop.eup %7626  ;;  %v2387_v11 = vpop.xlane.xlu1 %2386  ;;  %v1571_v17 = vmul.f32 1.442695, %v1558_v0  ;;  %v4549_v30 = vsel %vm1529_vm9, %v10190_v4, -inf }
 0x546   :  { %2422 = vadd.xlane.f32.xlu1 %v2421_v48  ;;  %v1981_v41 = vsel %vm1529_vm9, %v10186_v36, 0.0  ;;  %v2404_v38 = vmul.f32 1.442695, %v2397_v20  ;;  %v10205_v48 = vadd.f32 %v9940_v35, %v4524_v6 }
 0x547   :  { %v4539_v13 = vpop.f32.mrb[110].mxu0  ;;  %1586 = vadd.xlane.f32.xlu0 %v1585_v40  ;;  %v10196_v31 = vpop.eup %7628  ;;  %7632 = vpow2.f32 %v1571_v17  ;;  %v10211_v17 = vpack.i.bf16 %v9666_v1, %v9659_v53 }
 0x548   :  { %v6881_v57 = vpop.f32.mrb[111].mxu0  ;;  %v1588_v26 = vsel %vm1529_vm9, %v10196_v31, 0.0  ;;  %7634 = vpow2.f32 %v2404_v38  ;;  %v4552_v47 = vsel %vm1529_vm9, %v10205_v48, -inf }
 0x549   :  { %v2390_v40 = vpop.xlane.xlu1 %2389  ;;  %v10202_v55 = vpop.eup %7630 }
 0x54a   :  { %v1984_v57 = vsel %vm1529_vm9, %v10202_v55, 0.0 }
 0x54b   :  { %1982 = vadd.xlane.f32.xlu0 %v1981_v41  ;;  %v10224_v41 = vadd.f32 %v9950_v9, %v4529_v62  ;;  %v10239_v9 = vadd.f32 %v9960_v5, %v4534_v24  ;;  %v2399_v5 = vsub.f32 %v9866_v34, %v10178_v22 }
 0x54d   :  { %v2393_v60 = vpop.xlane.xlu1 %2392  ;;  %11747 = vst [vmem:[#allocation60_spill] sm:$0xff] %v10224_v41  ;;  %11748 = vst [vmem:[#allocation69_spill] sm:$0xff] %v10239_v9  ;;  %v4558_v53 = vsel %vm1529_vm9, %v10239_v9, -inf }
 0x54f   :  { %4550 = vmax.xlane.f32.xlu0 %v4549_v30  ;;  %v7894_v30 = vld [vmem:[#allocation2 + $0x61] sm:$0xff] }
 0x550   :  { %v10217_v0 = vpack.i.bf16 %v7893_v18, %v7894_v30  ;;  %v5948_v18 = vld [vmem:[%s11496_s5 + $0xd8] sm:$0x1]  ;;  %s7908_s5 = smov 16  }
 0x551   :  { %v10219_v35 = vpop.eup %7632  ;;  %v2827_v6 = vpop.xlane.xlu1 %2826 }
 0x552   :  { %v1591_v20 = vsel %vm1548_vm10, %v10219_v35, 0.0 }
 0x553   :  { %1589 = vadd.xlane.f32.xlu0 %v1588_v26  ;;  %v10230_v26 = vpack.i.bf16 %v9661_v7, %v9656_v28  ;;  %v2400_v28 = vsub.f32 %v9879_v8, %v2387_v11  ;;  %v2846_v8 = vsub.f32 %v9913_v37, %v2827_v6  ;;  %v3734_v37 = vld [vmem:[#allocation2 + $0x71] sm:$0x1] }
 0x555   :  { %v2830_v38 = vpop.xlane.xlu1 %2829 }
 0x557   :  { %1985 = vadd.xlane.f32.xlu0 %v1984_v57  ;;  %7511 = vrot.lane.b32.xlu1 %v10211_v17, %s7901_s21  ;;  %v4555_v57 = vsel %vm1529_vm9, %v10224_v41, -inf  ;;  %v2396_v41 = vpop.xlane.xlu0 %2395 }
 0x558   :  { %v2403_v34 = vsub.f32 %v9888_v15, %v2396_v41  ;;  %v2853_v15 = vmul.f32 1.442695, %v2846_v8 }
 0x559   :  { %v2833_v30 = vpop.xlane.xlu1 %2832 }
 0x55b   :  { %4553 = vmax.xlane.f32.xlu0 %v4552_v47  ;;  %7516 = vrot.lane.b32.xlu1 %v10217_v0, %s7901_s21  ;;  %v10236_v47 = vpop.eup %7634 }
 0x55c   :  { %v2418_v62 = vsel %vm1529_vm9, %v10236_v47, 0.0 }
 0x55d   :  { %v2836_v1 = vpop.xlane.xlu1 %2835 }
 0x55f   :  { %1592 = vadd.xlane.f32.xlu0 %v1591_v20  ;;  %7521 = vrot.lane.b32.xlu1 %v10230_v26, %s7905_s24  ;;  %v10246_v20 = vadd.f32 %v5948_v18, %v4539_v13  ;;  %v2401_v13 = vsub.f32 %v9891_v39, %v2390_v40  ;;  %v2847_v40 = vsub.f32 %v9923_v2, %v2830_v38 }
 0x561   :  { %11749 = vst [vmem:[#allocation67_spill] sm:$0xff] %v10246_v20  ;;  %v4561_v24 = vsel %vm1548_vm10, %v10246_v20, -inf  ;;  %v2839_v7 = vpop.xlane.xlu1 %2838  ;;  %v2412_v9 = vmul.f32 1.442695, %v2401_v13 }
 0x563   :  { %4556 = vmax.xlane.f32.xlu0 %v4555_v57  ;;  %v2408_v57 = vmul.f32 1.442695, %v2399_v5  ;;  %v2416_v5 = vmul.f32 1.442695, %v2403_v34 }
 0x564   :  { %v3264_v11 = vpop.xlane.xlu0 %3263 }
 0x565   :  { %7636 = vpow2.f32 %v2408_v57  ;;  %v2842_v18 = vpop.xlane.xlu1 %2841  ;;  %v11750_v57 = vld [vmem:[#allocation56_spill] sm:$0xff] }
 0x567   :  { %2419 = vadd.xlane.f32.xlu0 %v2418_v62  ;;  %v2410_v62 = vmul.f32 1.442695, %v2400_v28 }
 0x568   :  { %v3267_v13 = vpop.xlane.xlu0 %3266 }
 0x569   :  { %7638 = vpow2.f32 %v2410_v62  ;;  %v2845_v20 = vpop.xlane.xlu1 %2844  ;;  %v2848_v62 = vsub.f32 %v11750_v57, %v2833_v30 }
 0x56a   :  { %7640 = vpow2.f32 %v2412_v9  ;;  %v2855_v9 = vmul.f32 1.442695, %v2847_v40 }
 0x56b   :  { %4559 = vmax.xlane.f32.xlu0 %v4558_v53  ;;  %v2402_v53 = vsub.f32 %v9903_v63, %v2393_v60  ;;  %v2857_v34 = vmul.f32 1.442695, %v2848_v62 }
 0x56c   :  { %v3270_v40 = vpop.xlane.xlu0 %3269 }
 0x56d   :  { %v2414_v22 = vmul.f32 1.442695, %v2402_v53  ;;  %v3261_v63 = vpop.xlane.xlu1 %3260 }
 0x56f   :  { %4562 = vmax.xlane.f32.xlu0 %v4561_v24  ;;  %v10258_v24 = vpop.eup %7636  ;;  %7642 = vpow2.f32 %v2414_v22  ;;  %v11751_v22 = vld [vmem:[#allocation15_spill] sm:$0xff] }
 0x570   :  { %v2424_v28 = vsel %vm1529_vm9, %v10258_v24, 0.0  ;;  %7644 = vpow2.f32 %v2416_v5  ;;  %v2849_v5 = vsub.f32 %v11751_v22, %v2836_v1 }
 0x571   :  { %7646 = vpow2.f32 %v2853_v15  ;;  %v11752_v15 = vld [vmem:[#allocation55_spill] sm:$0xff] }
 0x572   :  { %7648 = vpow2.f32 %v2855_v9  ;;  %v2850_v30 = vsub.f32 %v11752_v15, %v2839_v7  ;;  %v3280_v7 = vsub.f32 %v9978_v51, %v3261_v63 }
 0x573   :  { %v10263_v39 = vpop.eup %7638  ;;  %7650 = vpow2.f32 %v2857_v34 }
 0x574   :  { %v2427_v60 = vsel %vm1529_vm9, %v10263_v39, 0.0  ;;  %v10270_v41 = vpop.eup %7640  ;;  %v10272_v6 = vpop.xlane.xlu1 %3275  ;;  %v2861_v1 = vmul.f32 1.442695, %v2850_v30  ;;  %v3287_v30 = vmul.f32 1.442695, %v3280_v7 }
 0x575   :  { %v2430_v53 = vsel %vm1529_vm9, %v10270_v41, 0.0 }
 0x579   :  { %v10278_v2 = vpop.eup %7642 }
 0x57a   :  { %v2433_v8 = vsel %vm1529_vm9, %v10278_v2, 0.0 }
 0x583   :  { %2425 = vadd.xlane.f32.xlu1 %v2424_v28  ;;  %v10283_v28 = vpop.eup %7644 }
 0x584   :  { %v2436_v9 = vsel %vm1548_vm10, %v10283_v28, 0.0  ;;  %v10291_v62 = vpop.eup %7646 }
 0x585   :  { %7506 = vrot.lane.b32.xlu0 %v10230_v26, %s7901_s21  ;;  %v2867_v34 = vsel %vm1529_vm9, %v10291_v62, 0.0 }
 0x587   :  { %2428 = vadd.xlane.f32.xlu1 %v2427_v60  ;;  %v2859_v60 = vmul.f32 1.442695, %v2849_v5  ;;  %v3281_v5 = vsub.f32 %v9975_v49, %v3264_v11 }
 0x589   :  { %3754 = vrot.lane.b32.xlu0 %v3734_v37, %s7901_s21  ;;  %v2851_v37 = vsub.f32 %v9963_v44, %v2842_v18  ;;  %7652 = vpow2.f32 %v2859_v60  ;;  %v10297_v44 = vpop.eup %7648  ;;  %v3289_v60 = vmul.f32 1.442695, %v3281_v5  ;;  %s7909_s21 = smov 32  }
 0x58a   :  { %7654 = vpow2.f32 %v2861_v1  ;;  %v2870_v51 = vsel %vm1529_vm9, %v10297_v44, 0.0  ;;  %v10303_v63 = vpop.eup %7650 }
 0x58b   :  { %2431 = vadd.xlane.f32.xlu1 %v2430_v53  ;;  %v2852_v53 = vsub.f32 %v9970_v23, %v2845_v20  ;;  %v2863_v22 = vmul.f32 1.442695, %v2851_v37  ;;  %v3282_v23 = vsub.f32 %v9985_v21, %v3267_v13  ;;  %v3283_v37 = vsub.f32 %v9992_v32, %v3270_v40 }
 0x58c   :  { %v3656_v38 = vpop.xlane.xlu1 %3655  ;;  %v2873_v1 = vsel %vm1529_vm9, %v10303_v63, 0.0 }
 0x58d   :  { %v2865_v18 = vmul.f32 1.442695, %v2852_v53  ;;  %7656 = vpow2.f32 %v2863_v22  ;;  %v3293_v13 = vmul.f32 1.442695, %v3283_v37  ;;  %v11753_v53 = vld [vmem:[#allocation53_spill] sm:$0xff] }
 0x58f   :  { %2434 = vadd.xlane.f32.xlu1 %v2433_v8  ;;  %v3273_v8 = vpop.xlane.xlu0 %3272  ;;  %7658 = vpow2.f32 %v2865_v18 }
 0x590   :  { %v10287_v57 = vpop.xlane.xlu1 %3658  ;;  %7660 = vpow2.f32 %v3287_v30  ;;  %v3284_v22 = vsub.f32 %v11753_v53, %v3273_v8  ;;  %v3285_v30 = vsub.f32 %v10002_v42, %v10272_v6  ;;  %v11754_v42 = vld [vmem:[#allocation32_spill] sm:$0xff] }
 0x591   :  { %7662 = vpow2.f32 %v3289_v60 }
 0x592   :  { %v3295_v5 = vmul.f32 1.442695, %v3284_v22  ;;  %v3297_v37 = vmul.f32 1.442695, %v3285_v30 }
 0x593   :  { %2437 = vadd.xlane.f32.xlu1 %v2436_v9  ;;  %v3279_v20 = vpop.xlane.xlu0 %3278  ;;  %v3291_v9 = vmul.f32 1.442695, %v3282_v23  ;;  %v10309_v21 = vpop.eup %7652 }
 0x594   :  { %v3662_v15 = vpop.xlane.xlu1 %3661  ;;  %v3286_v49 = vsub.f32 %v10009_v12, %v3279_v20  ;;  %v10313_v32 = vpop.eup %7654  ;;  %v2876_v12 = vsel %vm1529_vm9, %v10309_v21, 0.0 }
 0x595   :  { %7664 = vpow2.f32 %v3291_v9  ;;  %v3675_v20 = vsub.f32 %v10047_v54, %v3662_v15  ;;  %v11755_v54 = vld [vmem:[#allocation62_spill] sm:$0xff] }
 0x596   :  { %v3299_v7 = vmul.f32 1.442695, %v3286_v49  ;;  %7666 = vpow2.f32 %v3293_v13 }
 0x597   :  { %2868 = vadd.xlane.f32.xlu1 %v2867_v34  ;;  %v3673_v34 = vsub.f32 %v10031_v50, %v3656_v38  ;;  %v10317_v18 = vpop.eup %7656  ;;  %v3653_v8 = vpop.xlane.xlu0 %3652  ;;  %v2879_v38 = vsel %vm1529_vm9, %v10313_v32, 0.0  ;;  %v3685_v49 = vmul.f32 1.442695, %v3675_v20 }
 0x598   :  { %v3665_v11 = vpop.xlane.xlu1 %3664  ;;  %7668 = vpow2.f32 %v3299_v7  ;;  %v3672_v6 = vsub.f32 %v11754_v42, %v3653_v8  ;;  %v11757_v8 = vld [vmem:[#allocation48_spill] sm:$0xff] }
 0x599   :  { %v3681_v23 = vmul.f32 1.442695, %v3673_v34  ;;  %v10322_v50 = vpop.eup %7658  ;;  %7670 = vpow2.f32 %v3295_v5  ;;  %v3676_v15 = vsub.f32 %v11755_v54, %v3665_v11 }
 0x59a   :  { %v10328_v60 = vpop.eup %7660  ;;  %v2885_v53 = vsel %vm1548_vm10, %v10322_v50, 0.0  ;;  %v3679_v34 = vmul.f32 1.442695, %v3672_v6  ;;  %v11758_v6 = vld [vmem:[#allocation46_spill] sm:$0xff] }
 0x59b   :  { %2871 = vadd.xlane.f32.xlu1 %v2870_v51  ;;  %v2882_v51 = vsel %vm1529_vm9, %v10317_v18, 0.0  ;;  %7672 = vpow2.f32 %v3681_v23  ;;  %v3301_v13 = vsel %vm1529_vm9, %v10328_v60, 0.0  ;;  %v3687_v11 = vmul.f32 1.442695, %v3676_v15 }
 0x59c   :  { %v3668_v7 = vpop.xlane.xlu0 %3667  ;;  %7674 = vpow2.f32 %v3297_v37 }
 0x59d   :  { %7676 = vpow2.f32 %v3685_v49  ;;  %v3677_v49 = vsub.f32 %v11758_v6, %v3668_v7 }
 0x59e   :  { %7678 = vpow2.f32 %v3679_v34 }
 0x59f   :  { %2874 = vadd.xlane.f32.xlu1 %v2873_v1  ;;  %v10332_v1 = vpop.eup %7662  ;;  %7680 = vpow2.f32 %v3687_v11  ;;  %v3689_v7 = vmul.f32 1.442695, %v3677_v49 }
 0x5a0   :  { %v3671_v40 = vpop.xlane.xlu1 %3670  ;;  %v10338_v22 = vpop.eup %7664 }
 0x5a1   :  { %v3678_v23 = vsub.f32 %v11757_v8, %v3671_v40  ;;  %v10343_v20 = vpop.eup %7666 }
 0x5a2   :  { %v10349_v42 = vpop.eup %7668 }
 0x5a3   :  { %2877 = vadd.xlane.f32.xlu1 %v2876_v12  ;;  %v11756_v12 = vld [vmem:[#allocation7_spill] sm:$0xff]  ;;  %v3691_v54 = vmul.f32 1.442695, %v3678_v23  ;;  %v10352_v40 = vpop.eup %7670 }
 0x5a4   :  { %v4099_v9 = vpop.xlane.xlu1 %4098  ;;  %v3674_v5 = vsub.f32 %v11756_v12, %v10287_v57  ;;  %v3313_v23 = vsel %vm1529_vm9, %v10352_v40, 0.0 }
 0x5a5   :  { %v10358_v12 = vpop.eup %7672  ;;  %v4118_v8 = vsub.f32 %v10076_v3, %v4099_v9 }
 0x5a6   :  { %v3683_v57 = vmul.f32 1.442695, %v3674_v5  ;;  %v10362_v11 = vpop.eup %7674 }
 0x5a7   :  { %2883 = vadd.xlane.f32.xlu1 %v2882_v51  ;;  %v3304_v51 = vsel %vm1529_vm9, %v10332_v1, 0.0  ;;  %v4125_v6 = vmul.f32 1.442695, %v4118_v8  ;;  %v3316_v49 = vsel %vm1529_vm9, %v10362_v11, 0.0 }
 0x5a8   :  { %2880 = vadd.xlane.f32.xlu0 %v2879_v38  ;;  %v3307_v38 = vsel %vm1529_vm9, %v10338_v22, 0.0  ;;  %v4102_v37 = vpop.xlane.xlu0 %4101  ;;  %7682 = vpow2.f32 %v3683_v57 }
 0x5a9   :  { %7684 = vpow2.f32 %v3691_v54  ;;  %v4119_v3 = vsub.f32 %v10083_v14, %v4102_v37 }
 0x5aa   :  { %7686 = vpow2.f32 %v3689_v7 }
 0x5ab   :  { %2886 = vadd.xlane.f32.xlu1 %v2885_v53  ;;  %v3319_v53 = vsel %vm1548_vm10, %v10349_v42, 0.0 }
 0x5ac   :  { %3302 = vadd.xlane.f32.xlu0 %v3301_v13  ;;  %v4105_v30 = vpop.xlane.xlu1 %4104  ;;  %v3310_v13 = vsel %vm1529_vm9, %v10343_v20, 0.0 }
 0x5ad   :  { %v4120_v14 = vsub.f32 %v10088_v59, %v4105_v30  ;;  %v11760_v30 = vld [vmem:[#allocation59_spill] sm:$0xff] }
 0x5af   :  { %3305 = vadd.xlane.f32.xlu1 %v3304_v51  ;;  %v10368_v51 = vpop.eup %7676 }
 0x5b0   :  { %3308 = vadd.xlane.f32.xlu0 %v3307_v38  ;;  %v4108_v15 = vpop.xlane.xlu1 %4107  ;;  %v3696_v38 = vsel %vm1529_vm9, %v10358_v12, 0.0  ;;  %v3702_v54 = vsel %vm1529_vm9, %v10368_v51, 0.0 }
 0x5b1   :  { %v4121_v5 = vsub.f32 %v10095_v19, %v4108_v15  ;;  %v10371_v19 = vpop.eup %7678 }
 0x5b2   :  { %v10377_v15 = vpop.eup %7680  ;;  %v3693_v8 = vsel %vm1529_vm9, %v10371_v19, 0.0 }
 0x5b3   :  { %3320 = vadd.xlane.f32.xlu1 %v3319_v53  ;;  %v4131_v57 = vmul.f32 1.442695, %v4121_v5  ;;  %v10382_v53 = vpop.eup %7682  ;;  %v3705_v7 = vsel %vm1529_vm9, %v10377_v15, 0.0 }
 0x5b4   :  { %3311 = vadd.xlane.f32.xlu0 %v3310_v13  ;;  %v4111_v34 = vpop.xlane.xlu0 %4110  ;;  %v4127_v13 = vmul.f32 1.442695, %v4119_v3  ;;  %v10388_v5 = vpop.eup %7684  ;;  %v7463_v3 = vunpack.i.l.bf16 %v11760_v30 }
 0x5b5   :  { %11759 = vst [vmem:[#allocation64_spill] sm:$0xff] %v10388_v5 }
 0x5b7   :  { %3697 = vadd.xlane.f32.xlu1 %v3696_v38  ;;  %v4122_v38 = vsub.f32 %v10107_v58, %v4111_v34 }
 0x5b8   :  { %3314 = vadd.xlane.f32.xlu0 %v3313_v23  ;;  %v1575_v9 = vpop.xlane.xlu0 %1574  ;;  %v4129_v23 = vmul.f32 1.442695, %v4120_v14 }
 0x5b9   :  { %7688 = vrcp.f32 %v1575_v9  ;;  %v10393_v9 = vpop.eup %7686 }
 0x5ba   :  { %7690 = vpow2.f32 %v4125_v6  ;;  %v7464_v6 = vunpack.i.h.bf16 %v11760_v30 }
 0x5bb   :  { %3703 = vadd.xlane.f32.xlu1 %v3702_v54  ;;  %7692 = vpow2.f32 %v4131_v57  ;;  %v3699_v57 = vsel %vm1529_vm9, %v10382_v53, 0.0 }
 0x5bc   :  { %3317 = vadd.xlane.f32.xlu0 %v3316_v49  ;;  %v10380_v37 = vpop.xlane.xlu0 %4113  ;;  %7694 = vpow2.f32 %v4127_v13  ;;  %v3711_v49 = vsel %vm1548_vm10, %v10388_v5, 0.0  ;;  %v4133_v13 = vmul.f32 1.442695, %v4122_v38  ;;  %v3708_v5 = vsel %vm1529_vm9, %v10393_v9, 0.0 }
 0x5bf   :  { %3706 = vadd.xlane.f32.xlu1 %v3705_v7  ;;  %v11762_v7 = vld [vmem:[#allocation30_spill] sm:$0xff] }
 0x5c0   :  { %3694 = vadd.xlane.f32.xlu0 %v3693_v8  ;;  %v1578_v59 = vpop.xlane.xlu0 %1577  ;;  %v7130_v8 = vpack.c.bf16 %v7464_v6, %v7463_v3  ;;  %v7478_v30 = vunpack.i.l.bf16 %v11762_v7 }
 0x5c1   :  { %7696 = vrcp.f32 %v1578_v59  ;;  %v7479_v59 = vunpack.i.h.bf16 %v11762_v7 }
 0x5c2   :  { %7698 = vpow2.f32 %v4129_v23 }
 0x5c3   :  { %v7689_v54 = vpop.eup %7688  ;;  %3712 = vadd.xlane.f32.xlu1 %v3711_v49  ;;  %7700 = vpow2.f32 %v4133_v13  ;;  %v7133_v49 = vpack.c.bf16 %v7479_v59, %v7478_v30 }
 0x5c4   :  { %3700 = vadd.xlane.f32.xlu0 %v3699_v57  ;;  %v10399_v58 = vpop.xlane.xlu0 %4116  ;;  %v1601_v34 = vmul.f32 %v7689_v54, %v10112_v10  ;;  %v10402_v14 = vpop.eup %7690  ;;  %v11764_v57 = vmov 0.0|0.0   ;;  %v11765_v10 = vmov 0.0   ;;  %v11766_v54 = vld [vmem:[#allocation6_spill] sm:$0xff] }
 0x5c5   :  { %11761 = vst [vmem:[#allocation34_spill] sm:$0xff] %v10402_v14  ;;  %v10409_v23 = vpop.eup %7692  ;;  %v4139_v6 = vsel %vm1529_vm9, %v10402_v14, 0.0  ;;  %v7493_v7 = vunpack.i.l.bf16 %v11766_v54 }
 0x5c6   :  { %6407 = vmatmul.mubr.msk.f32.vlgmr.msra.gmra.mrb[26].mxu1 %vm1529_vm9, %v1601_v34  ;;  %11763 = vst [vmem:[#allocation68_spill] sm:$0xff] %v10409_v23  ;;  %v10416_v3 = vpop.eup %7694  ;;  %v7494_v34 = vunpack.i.h.bf16 %v11766_v54 }
 0x5c7   :  { %7131 = vmatpush3.bf16.msra.mxu1 %v7130_v8  ;;  %6409 = vmatprep.mubr.msk.f32.mxu1 %vm7896_vm2, %v11765_v10  ;;  %v4142_v59 = vsel %vm1529_vm9, %v10416_v3, 0.0 }
 0x5c8   :  { %3709 = vadd.xlane.f32.xlu0 %v3708_v5  ;;  %v1581_v38 = vpop.xlane.xlu0 %1580  ;;  %7132 = vmatprep.subr.bf16.mxu1 %v11764_v57  ;;  %v4148_v5 = vsel %vm1529_vm9, %v10409_v23, 0.0  ;;  %v7136_v54 = vpack.c.bf16 %v7494_v34, %v7493_v7 }
 0x5c9   :  { %7702 = vrcp.f32 %v1581_v38  ;;  %4140 = vadd.xlane.f32.xlu1 %v4139_v6 }
 0x5cb   :  { %v7697_v13 = vpop.eup %7696  ;;  %7134 = vmatpush3.bf16.msra.mxu1 %v7133_v49 }
 0x5cc   :  { %4149 = vadd.xlane.f32.xlu0 %v4148_v5  ;;  %v1584_v8 = vpop.xlane.xlu0 %1583  ;;  %7135 = vmatprep.subr.bf16.mxu1 %v11764_v57  ;;  %v1602_v14 = vmul.f32 %v7697_v13, %v10130_v29  ;;  %v10426_v30 = vpop.eup %7698  ;;  %v11769_v5 = vld [vmem:[#allocation52_spill] sm:$0xff] }
 0x5cd   :  { %7704 = vrcp.f32 %v1584_v8  ;;  %11767 = vst [vmem:[#allocation70_spill] sm:$0xff] %v10426_v30  ;;  %4143 = vadd.xlane.f32.xlu1 %v4142_v59  ;;  %v4145_v29 = vsel %vm1529_vm9, %v10426_v30, 0.0  ;;  %v10436_v6 = vpop.eup %7700 }
 0x5ce   :  { %6410 = vmatmul.mubr.msk.f32.gmra.mrb[28].mxu1 %vm1529_vm9, %v1602_v14  ;;  %11768 = vst [vmem:[#allocation65_spill] sm:$0xff] %v10436_v6  ;;  %v4151_v7 = vsel %vm1529_vm9, %v10436_v6, 0.0 }
 0x5cf   :  { %7137 = vmatpush3.bf16.msra.mxu1 %v7136_v54  ;;  %6412 = vmatprep.mubr.msk.f32.mxu1 %vm7896_vm2, %v11765_v10 }
 0x5d0   :  { %v10429_v38 = vpop.xlane.xlu0 %4547  ;;  %6474 = vmatprep.subr.mxu1 %v11765_v10 }
 0x5d1   :  { %4146 = vadd.xlane.f32.xlu1 %v4145_v29 }
 0x5d3   :  { %v7703_v49 = vpop.eup %7702  ;;  %6475 = vmatpush3.msk.msra.mxu1 %vm1636_vm8, %v11769_v5 }
 0x5d4   :  { %v1587_v34 = vpop.xlane.xlu0 %1586  ;;  %v1603_v14 = vmul.f32 %v7703_v49, %v10155_v61  ;;  %7150 = vmatprep.subr.bf16.mxu1 %v11764_v57  ;;  %v1971_v61 = vpop.xlane.xlu1 %1970 }
 0x5d5   :  { %7706 = vrcp.f32 %v1587_v34  ;;  %4152 = vadd.xlane.f32.xlu1 %v4151_v7 }
 0x5d6   :  { %6413 = vmatmul.mubr.msk.f32.gmra.mrb[30].mxu1 %vm1529_vm9, %v1603_v14 }
 0x5d7   :  { %v7705_v13 = vpop.eup %7704  ;;  %6415 = vmatprep.mubr.msk.f32.mxu1 %vm7896_vm2, %v11765_v10 }
 0x5d8   :  { %v1983_v8 = vpop.xlane.xlu0 %1982  ;;  %v1604_v59 = vmul.f32 %v7705_v13, %v10160_v46  ;;  %v1974_v34 = vpop.xlane.xlu1 %1973 }
 0x5da   :  { %6416 = vmatmul.mubr.msk.f32.gmra.mrb[32].mxu1 %vm1529_vm9, %v1604_v59 }
 0x5db   :  { %6418 = vmatprep.mubr.msk.f32.mxu1 %vm7896_vm2, %v11765_v10 }
 0x5dc   :  { %v4551_v54 = vpop.xlane.xlu0 %4550  ;;  %v1977_v46 = vpop.xlane.xlu1 %1976 }
 0x5df   :  { %v7707_v29 = vpop.eup %7706 }
 0x5e0   :  { %v1590_v49 = vpop.xlane.xlu0 %1589  ;;  %v1605_v5 = vmul.f32 %v7707_v29, %v10176_v33  ;;  %v4123_v33 = vsub.f32 %v10120_v45, %v10380_v37  ;;  %v10463_v29 = vpop.xlane.xlu1 %4544  ;;  %v4124_v45 = vsub.f32 %v10142_v56, %v10399_v58 }
 0x5e1   :  { %7708 = vrcp.f32 %v1590_v49 }
 0x5e2   :  { %7526 = vrot.lane.b32.xlu0 %v10211_v17, %s7905_s24  ;;  %6419 = vmatmul.mubr.msk.f32.gmra.mrb[34].mxu1 %vm1529_vm9, %v1605_v5  ;;  %v4135_v5 = vmul.f32 1.442695, %v4123_v33  ;;  %v4137_v30 = vmul.f32 1.442695, %v4124_v45 }
 0x5e3   :  { %6421 = vmatprep.mubr.msk.f32.mxu1 %vm7896_vm2, %v11765_v10 }
 0x5e4   :  { %v1986_v14 = vpop.xlane.xlu0 %1985  ;;  %v1980_v6 = vpop.xlane.xlu1 %1979 }
 0x5e6   :  { %7531 = vrot.lane.b32.xlu1 %v10217_v0, %s7905_s24 }
 0x5e8   :  { %v10459_v7 = vpop.xlane.xlu0 %4553  ;;  %v1989_v37 = vpop.xlane.xlu1 %1988 }
 0x5eb   :  { %v7709_v13 = vpop.eup %7708 }
 0x5ec   :  { %v1593_v59 = vpop.xlane.xlu0 %1592  ;;  %v1606_v49 = vmul.f32 %v7709_v13, %v10196_v31  ;;  %v4565_v31 = vsub.f32 %v10167_v52, %v10429_v38 }
 0x5ed   :  { %7710 = vrcp.f32 %v1593_v59 }
 0x5ee   :  { %6422 = vmatmul.mubr.msk.f32.gmra.mrb[36].mxu1 %vm1529_vm9, %v1606_v49  ;;  %7712 = vrcp.f32 %v1971_v61  ;;  %v11770_v61 = vld [vmem:[#allocation58_spill] sm:$0xff]  ;;  %v4573_v52 = vmul.f32 1.442695, %v4565_v31 }
 0x5ef   :  { %6424 = vmatprep.mubr.msk.f32.mxu1 %vm7896_vm2, %v11765_v10  ;;  %7714 = vpow2.f32 %v4135_v5  ;;  %v7469_v59 = vunpack.i.h.bf16 %v11770_v61  ;;  %v7468_v49 = vunpack.i.l.bf16 %v11770_v61  ;;  %v10476_v5 = vpop.xlane.xlu1 %2422  ;;  %v4567_v61 = vsub.f32 %v10205_v48, %v10459_v7 }
 0x5f0   :  { %7716 = vrcp.f32 %v1974_v34  ;;  %v11771_v34 = vld [vmem:[#allocation25_spill] sm:$0xff] }
 0x5f1   :  { %7718 = vrcp.f32 %v1977_v46  ;;  %v7151_v38 = vpack.c.bf16 %v7469_v59, %v7468_v49  ;;  %v7484_v46 = vunpack.i.h.bf16 %v11771_v34  ;;  %v7483_v45 = vunpack.i.l.bf16 %v11771_v34  ;;  %v10500_v59 = vpop.xlane.xlu0 %4556 }
 0x5f2   :  { %7720 = vrcp.f32 %v1980_v6 }
 0x5f3   :  { %7722 = vpow2.f32 %v4137_v30  ;;  %v10492_v30 = vpop.permute.xlu1 %7511  ;;  %v7154_v31 = vpack.c.bf16 %v7484_v46, %v7483_v45 }
 0x5f4   :  { %7724 = vrcp.f32 %v1983_v8 }
 0x5f5   :  { %7726 = vpow2.f32 %v4573_v52  ;;  %v4577_v52 = vmul.f32 1.442695, %v4567_v61  ;;  %v11775_v61 = vld [vmem:[#allocation20_spill] sm:$0xff] }
 0x5f6   :  { %7728 = vrcp.f32 %v1986_v14  ;;  %v2420_v14 = vpop.xlane.xlu0 %2419 }
 0x5f7   :  { %v7711_v23 = vpop.eup %7710  ;;  %v10509_v48 = vpop.permute.xlu1 %7516 }
 0x5f8   :  { %v1607_v33 = vmul.f32 %v7711_v23, %v10219_v35  ;;  %v7713_v13 = vpop.eup %7712  ;;  %v4566_v35 = vsub.f32 %v10190_v4, %v4551_v54 }
 0x5f9   :  { %v10481_v56 = vpop.eup %7714  ;;  %v1997_v58 = vmul.f32 %v7713_v13, %v10097_v27 }
 0x5fa   :  { %6425 = vmatmul.mubr.msk.f32.gmra.mrb[38].mxu1 %vm1529_vm9, %v1607_v33  ;;  %v7717_v23 = vpop.eup %7716  ;;  %v4154_v6 = vsel %vm1529_vm9, %v10481_v56, 0.0  ;;  %v4575_v27 = vmul.f32 1.442695, %v4566_v35  ;;  %v11772_v33 = vld [vmem:[#allocation43_spill] sm:$0xff] }
 0x5fb   :  { %6476 = vmatprep.mubr.msk.f32.mxu1 %vm7896_vm2, %v11765_v10  ;;  %v1998_v4 = vmul.f32 %v7717_v23, %v10104_v43  ;;  %v7719_v54 = vpop.eup %7718  ;;  %v7499_v8 = vunpack.i.h.bf16 %v11772_v33  ;;  %v7498_v13 = vunpack.i.l.bf16 %v11772_v33  ;;  %v10525_v34 = vpop.permute.xlu1 %7521 }
 0x5fc   :  { %7730 = vpow2.f32 %v4575_v27  ;;  %v1999_v43 = vmul.f32 %v7719_v54, %v10116_v25  ;;  %v7721_v49 = vpop.eup %7720 }
 0x5fd   :  { %v10507_v35 = vpop.eup %7722  ;;  %7732 = vrcp.f32 %v1989_v37  ;;  %v2000_v7 = vmul.f32 %v7721_v49, %v10139_v16  ;;  %v11773_v37 = vld [vmem:[#allocation44_spill] sm:$0xff]  ;;  %v4180_v49 = vld [vmem:[#allocation2 + $0x71] sm:$0x1] }
 0x5fe   :  { %6477 = vmatmul.mubr.msk.f32.vlgmr.msra.gmra.mrb[40].mxu1 %vm1529_vm9, %v1997_v58  ;;  %v7157_v58 = vpack.c.bf16 %v7499_v8, %v7498_v13  ;;  %v7725_v25 = vpop.eup %7724  ;;  %7734 = vpow2.f32 %v4577_v52  ;;  %v4157_v23 = vsel %vm1548_vm10, %v10507_v35, 0.0 }
 0x5ff   :  { %7152 = vmatpush3.bf16.msra.mxu1 %v7151_v38  ;;  %6479 = vmatprep.mubr.msk.f32.mxu1 %vm7896_vm2, %v11765_v10  ;;  %v10518_v38 = vpop.eup %7726  ;;  %7736 = vrcp.f32 %v2420_v14  ;;  %v2001_v16 = vmul.f32 %v7725_v25, %v10186_v36 }
 0x600   :  { %7153 = vmatprep.subr.bf16.mxu1 %v11764_v57  ;;  %v7729_v46 = vpop.eup %7728  ;;  %v4588_v45 = vsel %vm1529_vm9, %v10518_v38, 0.0  ;;  %7738 = vrcp.f32 %v10476_v5  ;;  %v11774_v5 = vld [vmem:[#allocation50_spill] sm:$0xff] }
 0x601   :  { %4155 = vadd.xlane.f32.xlu0 %v4154_v6  ;;  %v2002_v27 = vmul.f32 %v7729_v46, %v10202_v55  ;;  %v7474_v55 = vunpack.i.h.bf16 %v11775_v61 }
 0x602   :  { %6480 = vmatmul.mubr.msk.f32.gmra.mrb[42].mxu1 %vm1529_vm9, %v1998_v4 }
 0x603   :  { %7155 = vmatpush3.bf16.msra.mxu1 %v7154_v31  ;;  %6482 = vmatprep.mubr.msk.f32.mxu1 %vm7896_vm2, %v11765_v10 }
 0x604   :  { %7156 = vmatprep.subr.bf16.mxu1 %v11764_v57 }
 0x606   :  { %6483 = vmatmul.mubr.msk.f32.gmra.mrb[44].mxu1 %vm1529_vm9, %v1999_v43  ;;  %v10531_v6 = vpop.eup %7730  ;;  %v7473_v43 = vunpack.i.l.bf16 %v11775_v61  ;;  %v11779_v61 = vld [vmem:[#allocation9_spill] sm:$0xff] }
 0x607   :  { %7158 = vmatpush3.bf16.msra.mxu1 %v7157_v58  ;;  %6485 = vmatprep.mubr.msk.f32.mxu1 %vm7896_vm2, %v11765_v10  ;;  %v7733_v36 = vpop.eup %7732  ;;  %v4591_v54 = vsel %vm1529_vm9, %v10531_v6, 0.0 }
 0x608   :  { %6544 = vmatprep.subr.mxu1 %v11765_v10  ;;  %v10541_v31 = vpop.eup %7734  ;;  %v2003_v33 = vmul.f32 %v7733_v36, %v11774_v5  ;;  %v7172_v25 = vpack.c.bf16 %v7474_v55, %v7473_v43  ;;  %v11778_v36 = vld [vmem:[#allocation45_spill] sm:$0xff]  ;;  %v4564_v55 = vsub.f32 %v11779_v61, %v10463_v29 }
 0x609   :  { %v7737_v13 = vpop.eup %7736  ;;  %v4594_v58 = vsel %vm1529_vm9, %v10541_v31, 0.0  ;;  %v7503_v5 = vunpack.i.l.bf16 %v11778_v36 }
 0x60a   :  { %6486 = vmatmul.mubr.msk.f32.gmra.mrb[46].mxu1 %vm1529_vm9, %v2000_v7  ;;  %4158 = vadd.xlane.f32.xlu1 %v4157_v23  ;;  %v2446_v52 = vmul.f32 %v7737_v13, %v10236_v47  ;;  %v7739_v7 = vpop.eup %7738  ;;  %v11776_v23 = vld [vmem:[#allocation8_spill] sm:$0xff] }
 0x60b   :  { %6545 = vmatpush3.msk.msra.mxu1 %vm1636_vm8, %v11773_v37  ;;  %6488 = vmatprep.mubr.msk.f32.mxu1 %vm7896_vm2, %v11765_v10  ;;  %v7489_v37 = vunpack.i.h.bf16 %v11776_v23 }
 0x60c   :  { %7171 = vmatprep.subr.bf16.mxu1 %v11764_v57 }
 0x60e   :  { %6489 = vmatmul.mubr.msk.f32.gmra.mrb[48].mxu1 %vm1529_vm9, %v2001_v16  ;;  %4589 = vadd.xlane.f32.xlu1 %v4588_v45  ;;  %v7488_v16 = vunpack.i.l.bf16 %v11776_v23  ;;  %v11777_v45 = vld [vmem:[#allocation61_spill] sm:$0xff] }
 0x60f   :  { %6491 = vmatprep.mubr.msk.f32.mxu1 %vm7896_vm2, %v11765_v10  ;;  %v11780_v23 = vld [vmem:[#allocation5_spill] sm:$0xff] }
 0x610   :  { %v2426_v4 = vpop.xlane.xlu1 %2425 }
 0x611   :  { %7740 = vrcp.f32 %v2426_v4  ;;  %v7175_v4 = vpack.c.bf16 %v7489_v37, %v7488_v16 }
 0x612   :  { %6492 = vmatmul.mubr.msk.f32.gmra.mrb[50].mxu1 %vm1529_vm9, %v2002_v27  ;;  %4592 = vadd.xlane.f32.xlu1 %v4591_v54  ;;  %v2447_v27 = vmul.f32 %v7739_v7, %v11777_v45  ;;  %v7504_v54 = vunpack.i.h.bf16 %v11778_v36 }
 0x613   :  { %6494 = vmatprep.mubr.msk.f32.mxu1 %vm7896_vm2, %v11765_v10 }
 0x614   :  { %v2429_v8 = vpop.xlane.xlu1 %2428 }
 0x615   :  { %7742 = vrcp.f32 %v2429_v8 }
 0x616   :  { %6495 = vmatmul.mubr.msk.f32.gmra.mrb[52].mxu1 %vm1529_vm9, %v2003_v33  ;;  %4595 = vadd.xlane.f32.xlu1 %v4594_v58  ;;  %v10564_v33 = vpop.xlane.xlu0 %4559 }
 0x617   :  { %4200 = vrot.lane.b32.xlu0 %v4180_v49, %s7905_s24  ;;  %6546 = vmatprep.mubr.msk.f32.mxu1 %vm7896_vm2, %v11765_v10  ;;  %v7178_v49 = vpack.c.bf16 %v7504_v54, %v7503_v5 }
 0x618   :  { %v2432_v14 = vpop.xlane.xlu1 %2431 }
 0x619   :  { %7744 = vrcp.f32 %v2432_v14  ;;  %v4571_v14 = vmul.f32 1.442695, %v4564_v55  ;;  %v11782_v55 = vld [vmem:[#allocation10_spill] sm:$0xff] }
 0x61a   :  { %6547 = vmatmul.mubr.msk.f32.vlgmr.msra.gmra.mrb[54].mxu1 %vm1529_vm9, %v2446_v52 }
 0x61b   :  { %v7741_v46 = vpop.eup %7740  ;;  %7173 = vmatpush3.bf16.msra.mxu1 %v7172_v25  ;;  %6549 = vmatprep.mubr.msk.f32.mxu1 %vm7896_vm2, %v11765_v10 }
 0x61c   :  { %7174 = vmatprep.subr.bf16.mxu1 %v11764_v57  ;;  %v2435_v47 = vpop.xlane.xlu1 %2434  ;;  %v2448_v8 = vmul.f32 %v7741_v46, %v10258_v24  ;;  %v10577_v24 = vpop.xlane.xlu0 %4562 }
 0x61d   :  { %7746 = vrcp.f32 %v2435_v47 }
 0x61e   :  { %6550 = vmatmul.mubr.msk.f32.gmra.mrb[56].mxu1 %vm1529_vm9, %v2447_v27 }
 0x61f   :  { %v7743_v13 = vpop.eup %7742  ;;  %7176 = vmatpush3.bf16.msra.mxu1 %v7175_v4  ;;  %6552 = vmatprep.mubr.msk.f32.mxu1 %vm7896_vm2, %v11765_v10 }
 0x620   :  { %7177 = vmatprep.subr.bf16.mxu1 %v11764_v57  ;;  %v2438_v43 = vpop.xlane.xlu1 %2437  ;;  %v2449_v58 = vmul.f32 %v7743_v13, %v10263_v39  ;;  %v10589_v37 = vpop.permute.xlu0 %7506 }
 0x621   :  { %7748 = vrcp.f32 %v2438_v43  ;;  %v11783_v43 = vld [vmem:[#allocation49_spill] sm:$0xff] }
 0x622   :  { %6553 = vmatmul.mubr.msk.f32.gmra.mrb[58].mxu1 %vm1529_vm9, %v2448_v8  ;;  %v11781_v8 = vld [vmem:[#allocation60_spill] sm:$0xff] }
 0x623   :  { %v7745_v52 = vpop.eup %7744  ;;  %7179 = vmatpush3.bf16.msra.mxu1 %v7178_v49  ;;  %6555 = vmatprep.mubr.msk.f32.mxu1 %vm7896_vm2, %v11765_v10  ;;  %v4568_v13 = vsub.f32 %v11781_v8, %v10500_v59  ;;  %v11784_v49 = vpack.c.bf16 %v11782_v55, %v11783_v43 }
 0x624   :  { %6614 = vmatprep.subr.mxu1 %v11765_v10  ;;  %v2869_v29 = vpop.xlane.xlu1 %2868  ;;  %v2450_v7 = vmul.f32 %v7745_v52, %v10270_v41  ;;  %v10599_v27 = vpop.permute.xlu0 %3754 }
 0x625   :  { %7750 = vrcp.f32 %v2869_v29 }
 0x626   :  { %6556 = vmatmul.mubr.msk.f32.gmra.mrb[60].mxu1 %vm1529_vm9, %v2449_v58  ;;  %7752 = vpow2.f32 %v4571_v14  ;;  %v4579_v14 = vmul.f32 1.442695, %v4568_v13 }
 0x627   :  { %v7747_v25 = vpop.eup %7746  ;;  %6615 = vmatpush3.msk.msra.mxu1 %vm1636_vm8, %v11780_v23  ;;  %6558 = vmatprep.mubr.msk.f32.mxu1 %vm7896_vm2, %v11765_v10 }
 0x628   :  { %7536 = vrot.lane.b32.xlu1 %v10230_v26, %s7907_s26  ;;  %v2872_v39 = vpop.xlane.xlu1 %2871  ;;  %7192 = vmatprep.subr.bf16.mxu1 %v11764_v57  ;;  %v2451_v41 = vmul.f32 %v7747_v25, %v10278_v2 }
 0x629   :  { %7754 = vrcp.f32 %v2872_v39 }
 0x62a   :  { %6559 = vmatmul.mubr.msk.f32.gmra.mrb[62].mxu1 %vm1529_vm9, %v2450_v7  ;;  %v11786_v7 = vld [vmem:[#allocation47_spill] sm:$0xff] }
 0x62b   :  { %v7749_v16 = vpop.eup %7748  ;;  %6561 = vmatprep.mubr.msk.f32.mxu1 %vm7896_vm2, %v11765_v10 }
 0x62c   :  { %v2875_v46 = vpop.xlane.xlu1 %2874  ;;  %v2452_v26 = vmul.f32 %v7749_v16, %v10283_v28  ;;  %v11789_v16 = vld [vmem:[#allocation51_spill] sm:$0xff] }
 0x62d   :  { %7756 = vrcp.f32 %v2875_v46 }
 0x62e   :  { %6562 = vmatmul.mubr.msk.f32.gmra.mrb[64].mxu1 %vm1529_vm9, %v2451_v41 }
 0x62f   :  { %v7751_v45 = vpop.eup %7750  ;;  %6564 = vmatprep.mubr.msk.f32.mxu1 %vm7896_vm2, %v11765_v10 }
 0x630   :  { %v2878_v47 = vpop.xlane.xlu1 %2877  ;;  %v10601_v4 = vpop.eup %7752  ;;  %v2895_v2 = vmul.f32 %v7751_v45, %v10291_v62 }
 0x631   :  { %7758 = vrcp.f32 %v2878_v47  ;;  %v4585_v28 = vsel %vm1529_vm9, %v10601_v4, 0.0 }
 0x632   :  { %6565 = vmatmul.mubr.msk.f32.gmra.mrb[66].mxu1 %vm1529_vm9, %v2452_v26 }
 0x633   :  { %v7755_v36 = vpop.eup %7754  ;;  %6616 = vmatprep.mubr.msk.f32.mxu1 %vm7896_vm2, %v11765_v10 }
 0x634   :  { %v2884_v5 = vpop.xlane.xlu1 %2883  ;;  %v2896_v61 = vmul.f32 %v7755_v36, %v10297_v44  ;;  %v11785_v44 = vld [vmem:[#allocation57_spill] sm:$0xff] }
 0x635   :  { %v2881_v54 = vpop.xlane.xlu0 %2880  ;;  %v11787_v25 = vpack.c.bf16 %v11785_v44, %v11786_v7 }
 0x636   :  { %4586 = vadd.xlane.f32.xlu0 %v4585_v28  ;;  %6617 = vmatmul.mubr.msk.f32.vlgmr.msra.gmra.mrb[68].mxu1 %vm1529_vm9, %v2895_v2  ;;  %7760 = vrcp.f32 %v2881_v54  ;;  %v3342_v2 = vld [vmem:[#allocation2 + $0x71] sm:$0x1] }
 0x637   :  { %v7757_v62 = vpop.eup %7756  ;;  %7194 = vmatpush3.bf16.msra.mxu1 %v11784_v49  ;;  %6619 = vmatprep.mubr.msk.f32.mxu1 %vm7896_vm2, %v11765_v10  ;;  %7762 = vrcp.f32 %v2884_v5  ;;  %v7509_v49 = vunpack.i.h.bf16 %v10589_v37 }
 0x638   :  { %7195 = vmatprep.subr.bf16.mxu1 %v11764_v57  ;;  %v2887_v52 = vpop.xlane.xlu1 %2886  ;;  %v2897_v59 = vmul.f32 %v7757_v62, %v10303_v63  ;;  %7764 = vpow2.f32 %v4579_v14  ;;  %v11788_v63 = vld [vmem:[#allocation19_spill] sm:$0xff] }
 0x639   :  { %v3303_v58 = vpop.xlane.xlu0 %3302  ;;  %7766 = vrcp.f32 %v2887_v52  ;;  %v11790_v46 = vpack.c.bf16 %v11788_v63, %v11789_v16 }
 0x63a   :  { %6620 = vmatmul.mubr.msk.f32.gmra.mrb[70].mxu1 %vm1529_vm9, %v2896_v61  ;;  %7768 = vrcp.f32 %v3303_v58  ;;  %v7508_v58 = vunpack.i.l.bf16 %v10589_v37  ;;  %v11791_v37 = vld [vmem:[#allocation69_spill] sm:$0xff] }
 0x63b   :  { %v7759_v29 = vpop.eup %7758  ;;  %7197 = vmatpush3.bf16.msra.mxu1 %v11787_v25  ;;  %6622 = vmatprep.mubr.msk.f32.mxu1 %vm7896_vm2, %v11765_v10  ;;  %v4569_v7 = vsub.f32 %v11791_v37, %v10564_v33 }
 0x63c   :  { %7198 = vmatprep.subr.bf16.mxu1 %v11764_v57  ;;  %v3306_v39 = vpop.xlane.xlu1 %3305  ;;  %v2898_v41 = vmul.f32 %v7759_v29, %v10309_v21  ;;  %v7214_v29 = vpack.c.bf16 %v7509_v49, %v7508_v58 }
 0x63d   :  { %v3309_v23 = vpop.xlane.xlu0 %3308  ;;  %7770 = vrcp.f32 %v3306_v39  ;;  %v7518_v39 = vunpack.i.l.bf16 %v10509_v48  ;;  %v4581_v33 = vmul.f32 1.442695, %v4569_v7 }
 0x63e   :  { %6623 = vmatmul.mubr.msk.f32.gmra.mrb[72].mxu1 %vm1529_vm9, %v2897_v59  ;;  %7772 = vrcp.f32 %v3309_v23  ;;  %v7513_v59 = vunpack.i.l.bf16 %v10492_v30 }
 0x63f   :  { %7200 = vmatpush3.bf16.msra.mxu1 %v11790_v46  ;;  %6625 = vmatprep.mubr.msk.f32.mxu1 %vm7896_vm2, %v11765_v10 }
 0x640   :  { %6684 = vmatprep.subr.mxu1 %v11765_v10  ;;  %v10635_v45 = vpop.xlane.xlu1 %3320  ;;  %v7761_v47 = vpop.eup %7760 }
 0x641   :  { %v3312_v26 = vpop.xlane.xlu0 %3311  ;;  %v2899_v21 = vmul.f32 %v7761_v47, %v10313_v32  ;;  %v7763_v54 = vpop.eup %7762 }
 0x642   :  { %6626 = vmatmul.mubr.msk.f32.gmra.mrb[74].mxu1 %vm1529_vm9, %v2898_v41  ;;  %v10648_v5 = vpop.eup %7764  ;;  %v2900_v8 = vmul.f32 %v7763_v54, %v10317_v18  ;;  %7774 = vrcp.f32 %v3312_v26 }
 0x643   :  { %6685 = vmatpush3.msk.msra.mxu1 %vm1636_vm8, %v3342_v2  ;;  %6628 = vmatprep.mubr.msk.f32.mxu1 %vm7896_vm2, %v11765_v10  ;;  %v7767_v61 = vpop.eup %7766  ;;  %v4597_v32 = vsel %vm1529_vm9, %v10648_v5, 0.0 }
 0x644   :  { %v10642_v36 = vpop.xlane.xlu1 %3697  ;;  %7213 = vmatprep.subr.bf16.mxu1 %v11764_v57  ;;  %v2901_v55 = vmul.f32 %v7767_v61, %v10322_v50  ;;  %v7769_v43 = vpop.eup %7768  ;;  %v7514_v50 = vunpack.i.h.bf16 %v10492_v30  ;;  %v7519_v30 = vunpack.i.h.bf16 %v10509_v48  ;;  %v7523_v61 = vunpack.i.l.bf16 %v10525_v34 }
 0x645   :  { %v3315_v28 = vpop.xlane.xlu0 %3314 }
 0x646   :  { %6629 = vmatmul.mubr.msk.f32.gmra.mrb[76].mxu1 %vm1529_vm9, %v2899_v21  ;;  %7776 = vrcp.f32 %v3315_v28  ;;  %v7217_v23 = vpack.c.bf16 %v7514_v50, %v7513_v59  ;;  %v7220_v46 = vpack.c.bf16 %v7519_v30, %v7518_v39 }
 0x647   :  { %6631 = vmatprep.mubr.msk.f32.mxu1 %vm7896_vm2, %v11765_v10  ;;  %v7771_v14 = vpop.eup %7770 }
 0x648   :  { %v10651_v13 = vpop.xlane.xlu1 %3703  ;;  %v7773_v25 = vpop.eup %7772 }
 0x649   :  { %v3318_v62 = vpop.xlane.xlu0 %3317 }
 0x64a   :  { %6632 = vmatmul.mubr.msk.f32.gmra.mrb[78].mxu1 %vm1529_vm9, %v2900_v8  ;;  %7778 = vrcp.f32 %v3318_v62  ;;  %v7524_v8 = vunpack.i.h.bf16 %v10525_v34 }
 0x64b   :  { %6634 = vmatprep.mubr.msk.f32.mxu1 %vm7896_vm2, %v11765_v10  ;;  %7780 = vrcp.f32 %v10635_v45 }
 0x64c   :  { %7541 = vrot.lane.b32.xlu0 %v10211_v17, %s7907_s26  ;;  %4598 = vadd.xlane.f32.xlu1 %v4597_v32  ;;  %v10661_v18 = vpop.xlane.xlu1 %3706  ;;  %v3329_v17 = vmul.f32 %v7769_v43, %v10328_v60  ;;  %v3330_v60 = vmul.f32 %v7771_v14, %v10332_v1  ;;  %v3331_v1 = vmul.f32 %v7773_v25, %v10338_v22  ;;  %v7775_v16 = vpop.eup %7774  ;;  %7782 = vpow2.f32 %v4581_v33  ;;  %v11792_v32 = vld [vmem:[#allocation67_spill] sm:$0xff]  ;;  %v11794_v33 = vld [vmem:[#allocation34_spill] sm:$0xff] }
 0x64d   :  { %v3695_v44 = vpop.xlane.xlu0 %3694  ;;  %v3332_v26 = vmul.f32 %v7775_v16, %v10343_v20  ;;  %v4570_v62 = vsub.f32 %v11792_v32, %v10577_v24  ;;  %v7235_v49 = vpack.c.bf16 %v7524_v8, %v7523_v61 }
 0x64e   :  { %6635 = vmatmul.mubr.msk.f32.gmra.mrb[80].mxu1 %vm1529_vm9, %v2901_v55  ;;  %7784 = vrcp.f32 %v3695_v44 }
 0x64f   :  { %6686 = vmatprep.mubr.msk.f32.mxu1 %vm7896_vm2, %v11765_v10  ;;  %7786 = vrcp.f32 %v10642_v36 }
 0x650   :  { %v10669_v52 = vpop.xlane.xlu1 %3712  ;;  %v7777_v47 = vpop.eup %7776 }
 0x651   :  { %v3701_v63 = vpop.xlane.xlu0 %3700  ;;  %v3333_v45 = vmul.f32 %v7777_v47, %v10352_v40  ;;  %v11795_v47 = vld [vmem:[#allocation70_spill] sm:$0xff] }
 0x652   :  { %6687 = vmatmul.mubr.msk.f32.vlgmr.msra.gmra.mrb[82].mxu1 %vm1529_vm9, %v3329_v17  ;;  %7788 = vrcp.f32 %v3701_v63  ;;  %v4583_v17 = vmul.f32 1.442695, %v4570_v62 }
 0x653   :  { %7215 = vmatpush3.bf16.msra.mxu1 %v7214_v29  ;;  %6689 = vmatprep.mubr.msk.f32.mxu1 %vm7896_vm2, %v11765_v10  ;;  %7790 = vrcp.f32 %v10651_v13 }
 0x654   :  { %7216 = vmatprep.subr.bf16.mxu1 %v11764_v57  ;;  %v7779_v2 = vpop.eup %7778  ;;  %7792 = vrcp.f32 %v10661_v18 }
 0x655   :  { %v3710_v22 = vpop.xlane.xlu0 %3709  ;;  %v7781_v21 = vpop.eup %7780  ;;  %7794 = vpow2.f32 %v4583_v17 }
 0x656   :  { %6690 = vmatmul.mubr.msk.f32.gmra.mrb[84].mxu1 %vm1529_vm9, %v3330_v60  ;;  %v10683_v41 = vpop.xlane.xlu1 %4140  ;;  %v10715_v54 = vpop.eup %7782  ;;  %v3335_v36 = vmul.f32 %v7781_v21, %v10349_v42  ;;  %7796 = vrcp.f32 %v3710_v22 }
 0x657   :  { %7218 = vmatpush3.bf16.msra.mxu1 %v7217_v23  ;;  %6692 = vmatprep.mubr.msk.f32.mxu1 %vm7896_vm2, %v11765_v10  ;;  %7798 = vrcp.f32 %v10669_v52  ;;  %v4626_v52 = vld [vmem:[#allocation2 + $0x71] sm:$0x1] }
 0x658   :  { %7219 = vmatprep.subr.bf16.mxu1 %v11764_v57  ;;  %v7785_v28 = vpop.eup %7784  ;;  %7800 = vrcp.f32 %v10683_v41 }
 0x659   :  { %v3721_v42 = vmul.f32 %v7785_v28, %v10371_v19  ;;  %v7787_v43 = vpop.eup %7786 }
 0x65a   :  { %6693 = vmatmul.mubr.msk.f32.gmra.mrb[86].mxu1 %vm1529_vm9, %v3331_v1  ;;  %v10693_v48 = vpop.xlane.xlu1 %4143  ;;  %v3722_v24 = vmul.f32 %v7787_v43, %v10358_v12 }
 0x65b   :  { %7221 = vmatpush3.bf16.msra.mxu1 %v7220_v46  ;;  %6695 = vmatprep.mubr.msk.f32.mxu1 %vm7896_vm2, %v11765_v10  ;;  %7802 = vrcp.f32 %v10693_v48 }
 0x65c   :  { %6754 = vmatprep.subr.mxu1 %v11765_v10  ;;  %v7789_v13 = vpop.eup %7788 }
 0x65d   :  { %7546 = vrot.lane.b32.xlu1 %v10217_v0, %s7907_s26  ;;  %v10712_v0 = vpop.xlane.xlu0 %4149  ;;  %v3723_v18 = vmul.f32 %v7789_v13, %v10382_v53  ;;  %v7791_v29 = vpop.eup %7790 }
 0x65e   :  { %6696 = vmatmul.mubr.msk.f32.gmra.mrb[88].mxu1 %vm1529_vm9, %v3332_v26  ;;  %v10706_v20 = vpop.xlane.xlu1 %4146  ;;  %v3724_v12 = vmul.f32 %v7791_v29, %v10368_v51  ;;  %v7793_v37 = vpop.eup %7792 }
 0x65f   :  { %6755 = vmatpush3.msk.msra.mxu1 %vm1636_vm8, %v10599_v27  ;;  %6698 = vmatprep.mubr.msk.f32.mxu1 %vm7896_vm2, %v11765_v10  ;;  %v3334_v27 = vmul.f32 %v7779_v2, %v10362_v11  ;;  %v4600_v11 = vsel %vm1529_vm9, %v10715_v54, 0.0  ;;  %v10754_v53 = vpop.eup %7794  ;;  %v3725_v7 = vmul.f32 %v7793_v37, %v10377_v15  ;;  %v11793_v15 = vld [vmem:[#allocation64_spill] sm:$0xff]  ;;  %7804 = vrcp.f32 %v10706_v20 }
 0x660   :  { %7234 = vmatprep.subr.bf16.mxu1 %v11764_v57  ;;  %v7797_v60 = vpop.eup %7796  ;;  %v4603_v51 = vsel %vm1548_vm10, %v10754_v53, 0.0  ;;  %7806 = vrcp.f32 %v10712_v0  ;;  %v11796_v20 = vld [vmem:[#allocation68_spill] sm:$0xff] }
 0x661   :  { %v7527_v55 = vpop.permute.xlu0 %7526  ;;  %v3726_v25 = vmul.f32 %v7797_v60, %v10393_v9  ;;  %v7799_v23 = vpop.eup %7798 }
 0x662   :  { %6699 = vmatmul.mubr.msk.f32.gmra.mrb[90].mxu1 %vm1529_vm9, %v3333_v45  ;;  %v10720_v40 = vpop.xlane.xlu1 %4152  ;;  %v7529_v34 = vunpack.i.h.bf16 %v7527_v55  ;;  %v7528_v58 = vunpack.i.l.bf16 %v7527_v55  ;;  %v3727_v30 = vmul.f32 %v7799_v23, %v11793_v15  ;;  %v7801_v39 = vpop.eup %7800 }
 0x663   :  { %6701 = vmatprep.mubr.msk.f32.mxu1 %vm7896_vm2, %v11765_v10  ;;  %v4167_v63 = vmul.f32 %v7801_v39, %v11794_v33  ;;  %7808 = vrcp.f32 %v10720_v40 }
 0x664   :  { %v7238_v19 = vpack.c.bf16 %v7529_v34, %v7528_v58 }
 0x665   :  { %v7803_v16 = vpop.eup %7802 }
 0x666   :  { %6702 = vmatmul.mubr.msk.f32.gmra.mrb[92].mxu1 %vm1529_vm9, %v3334_v27  ;;  %v7532_v14 = vpop.permute.xlu1 %7531  ;;  %v4168_v41 = vmul.f32 %v7803_v16, %v10416_v3 }
 0x667   :  { %6704 = vmatprep.mubr.msk.f32.mxu1 %vm7896_vm2, %v11765_v10  ;;  %v7534_v50 = vunpack.i.h.bf16 %v7532_v14  ;;  %v7533_v59 = vunpack.i.l.bf16 %v7532_v14 }
 0x669   :  { %v7241_v44 = vpack.c.bf16 %v7534_v50, %v7533_v59  ;;  %v7805_v46 = vpop.eup %7804 }
 0x66a   :  { %6705 = vmatmul.mubr.msk.f32.gmra.mrb[94].mxu1 %vm1529_vm9, %v3335_v36  ;;  %v4169_v22 = vmul.f32 %v7805_v46, %v11795_v47  ;;  %v7807_v45 = vpop.eup %7806  ;;  %v11797_v36 = vld [vmem:[#allocation65_spill] sm:$0xff] }
 0x66b   :  { %4601 = vadd.xlane.f32.xlu0 %v4600_v11  ;;  %6756 = vmatprep.mubr.msk.f32.mxu1 %vm7896_vm2, %v11765_v10  ;;  %v4170_v0 = vmul.f32 %v7807_v45, %v11796_v20 }
 0x66d   :  { %v7809_v27 = vpop.eup %7808 }
 0x66e   :  { %6757 = vmatmul.mubr.msk.f32.vlgmr.msra.gmra.mrb[96].mxu1 %vm1529_vm9, %v3721_v42  ;;  %v4171_v28 = vmul.f32 %v7809_v27, %v11797_v36 }
 0x66f   :  { %7236 = vmatpush3.bf16.msra.mxu1 %v7235_v49  ;;  %6759 = vmatprep.mubr.msk.f32.mxu1 %vm7896_vm2, %v11765_v10 }
 0x670   :  { %7237 = vmatprep.subr.bf16.mxu1 %v11764_v57 }
 0x672   :  { %6760 = vmatmul.mubr.msk.f32.gmra.mrb[98].mxu1 %vm1529_vm9, %v3722_v24 }
 0x673   :  { %7239 = vmatpush3.bf16.msra.mxu1 %v7238_v19  ;;  %6762 = vmatprep.mubr.msk.f32.mxu1 %vm7896_vm2, %v11765_v10 }
 0x674   :  { %7240 = vmatprep.subr.bf16.mxu1 %v11764_v57 }
 0x676   :  { %6763 = vmatmul.mubr.msk.f32.gmra.mrb[100].mxu1 %vm1529_vm9, %v3723_v18 }
 0x677   :  { %7242 = vmatpush3.bf16.msra.mxu1 %v7241_v44  ;;  %6765 = vmatprep.mubr.msk.f32.mxu1 %vm7896_vm2, %v11765_v10 }
 0x678   :  { %6824 = vmatprep.subr.mxu1 %v11765_v10 }
 0x67a   :  { %6766 = vmatmul.mubr.msk.f32.gmra.mrb[102].mxu1 %vm1529_vm9, %v3724_v12 }
 0x67b   :  { %6768 = vmatprep.mubr.msk.f32.mxu1 %vm7896_vm2, %v11765_v10 }
 0x67e   :  { %6769 = vmatmul.mubr.msk.f32.gmra.mrb[104].mxu1 %vm1529_vm9, %v3725_v7 }
 0x67f   :  { %6771 = vmatprep.mubr.msk.f32.mxu1 %vm7896_vm2, %v11765_v10 }
 0x681   :  { %4646 = vrot.lane.b32.xlu0 %v4626_v52, %s7907_s26  ;;  %4604 = vadd.xlane.f32.xlu1 %v4603_v51 }
 0x682   :  { %6772 = vmatmul.mubr.msk.f32.gmra.mrb[106].mxu1 %vm1529_vm9, %v3726_v25 }
 0x683   :  { %6774 = vmatprep.mubr.msk.f32.mxu1 %vm7896_vm2, %v11765_v10 }
 0x686   :  { %6775 = vmatmul.mubr.msk.f32.gmra.mrb[108].mxu1 %vm1529_vm9, %v3727_v30 }
 0x687   :  { %6826 = vmatprep.mubr.msk.f32.mxu1 %vm7896_vm2, %v11765_v10 }
 0x68e   :  { %v4156_v9 = vpop.xlane.xlu0 %4155 }
 0x68f   :  { %7810 = vrcp.f32 %v4156_v9 }
 0x692   :  { %v4201_v1 = vpop.permute.xlu0 %4200 }
 0x693   :  { %6825 = vmatpush3.msk.msra.mxu1 %vm1636_vm8, %v4201_v1 }
 0x694   :  { %6827 = vmatmul.mubr.msk.f32.vlgmr.msra.gmra.mrb[110].mxu1 %vm1529_vm9, %v4167_v63  ;;  %7255 = vmatprep.subr.bf16.mxu1 %v11764_v57 }
 0x695   :  { %6829 = vmatprep.mubr.msk.f32.mxu1 %vm7896_vm2, %v11765_v10 }
 0x697   :  { %v4159_v48 = vpop.xlane.xlu1 %4158 }
 0x698   :  { %6830 = vmatmul.mubr.msk.f32.gmra.mrb[112].mxu1 %vm1529_vm9, %v4168_v41  ;;  %7812 = vrcp.f32 %v4159_v48 }
 0x699   :  { %6832 = vmatprep.mubr.msk.f32.mxu1 %vm7896_vm2, %v11765_v10  ;;  %v1706_v26 = vpop.f32.mrb[26].mxu1  ;;  %v7811_v8 = vpop.eup %7810 }
 0x69a   :  { %1741 = vst.msk [vmem:[#allocation4] sm:$0xff] %vm1740_vm11, %v1706_v26  ;;  %v6408_v2 = vpop.f32.mrb[27].mxu1  ;;  %v4172_v62 = vmul.f32 %v7811_v8, %v10481_v56 }
 0x69b   :  { %v10789_v3 = vpop.xlane.xlu1 %4589 }
 0x69c   :  { %6833 = vmatmul.mubr.msk.f32.gmra.mrb[114].mxu1 %vm1529_vm9, %v4169_v22 }
 0x69d   :  { %6835 = vmatprep.mubr.msk.f32.mxu1 %vm7896_vm2, %v11765_v10 }
 0x69f   :  { %v10795_v21 = vpop.xlane.xlu1 %4592 }
 0x6a0   :  { %6836 = vmatmul.mubr.msk.f32.gmra.mrb[116].mxu1 %vm1529_vm9, %v4170_v0 }
 0x6a1   :  { %6838 = vmatprep.mubr.msk.f32.mxu1 %vm7896_vm2, %v11765_v10  ;;  %v1711_v40 = vpop.f32.mrb[28].mxu1 }
 0x6a2   :  { %1742 = vst.msk [vmem:[#allocation4 + $0x8] sm:$0xff] %vm1740_vm11, %v1711_v40  ;;  %v6411_v61 = vpop.f32.mrb[29].mxu1  ;;  %v7813_v11 = vpop.eup %7812 }
 0x6a3   :  { %v10804_v32 = vpop.xlane.xlu1 %4595  ;;  %v4173_v55 = vmul.f32 %v7813_v11, %v10507_v35 }
 0x6a4   :  { %6839 = vmatmul.mubr.msk.f32.gmra.mrb[118].mxu1 %vm1529_vm9, %v4171_v28 }
 0x6a5   :  { %6841 = vmatprep.mubr.msk.f32.mxu1 %vm7896_vm2, %v11765_v10 }
 0x6a7   :  { %v7537_v42 = vpop.permute.xlu1 %7536 }
 0x6a8   :  { %6842 = vmatmul.mubr.msk.f32.gmra.mrb[120].mxu1 %vm1529_vm9, %v4172_v62  ;;  %v7539_v49 = vunpack.i.h.bf16 %v7537_v42  ;;  %v7538_v34 = vunpack.i.l.bf16 %v7537_v42  ;;  %v4839_v62 = vld [vmem:[%s11497_s6 + $0x8] sm:$0xff]  ;;  %v4840_v42 = vld [vmem:[%s11497_s6 + $0x10] sm:$0xff] }
 0x6a9   :  { %6844 = vmatprep.mubr.msk.f32.mxu1 %vm7896_vm2, %v11765_v10  ;;  %v1716_v43 = vpop.f32.mrb[30].mxu1 }
 0x6aa   :  { %1743 = vst.msk [vmem:[#allocation4 + $0x10] sm:$0xff] %vm1740_vm11, %v1716_v43  ;;  %v6414_v58 = vpop.f32.mrb[31].mxu1  ;;  %v7256_v17 = vpack.c.bf16 %v7539_v49, %v7538_v34  ;;  %v4841_v43 = vld [vmem:[%s11497_s6 + $0x18] sm:$0xff] }
 0x6ab   :  { %v7268_v34 = vpack.c.bf16 %v4841_v43, %v4840_v42 }
 0x6ac   :  { %6845 = vmatmul.mubr.msk.f32.gmra.mrb[122].mxu1 %vm1529_vm9, %v4173_v55 }
 0x6ad   :  { %6896 = vmatprep.mubr.msk.f32.mxu1 %vm7896_vm2, %v11765_v10  ;;  %v1721_v56 = vpop.f32.mrb[32].mxu1  ;;  %7257 = vmatpush3.bf16.msra.mxu1 %v7256_v17  ;;  %v4842_v17 = vld [vmem:[%s11497_s6 + $0x20] sm:$0xff] }
 0x6ae   :  { %1744 = vst.msk [vmem:[#allocation4 + $0x18] sm:$0xff] %vm1740_vm11, %v1721_v56  ;;  %v6417_v35 = vpop.f32.mrb[33].mxu1  ;;  %7258 = vmatprep.subr.bf16.mxu1 %v11764_v57  ;;  %v4843_v56 = vld [vmem:[%s11497_s6 + $0x28] sm:$0xff] }
 0x6b5   :  { %v1726_v14 = vpop.f32.mrb[34].mxu1 }
 0x6b6   :  { %1745 = vst.msk [vmem:[#allocation4 + $0x20] sm:$0xff] %vm1740_vm11, %v1726_v14  ;;  %v6420_v24 = vpop.f32.mrb[35].mxu1 }
 0x6b7   :  { %v7271_v24 = vpack.c.bf16 %v4843_v56, %v4842_v17 }
 0x6c1   :  { %v1731_v13 = vpop.f32.mrb[36].mxu1 }
 0x6c2   :  { %1746 = vst.msk [vmem:[#allocation4 + $0x28] sm:$0xff] %vm1740_vm11, %v1731_v13  ;;  %v6423_v19 = vpop.f32.mrb[37].mxu1 }
 0x6c3   :  { %v4587_v50 = vpop.xlane.xlu0 %4586  ;;  %v4844_v19 = vld [vmem:[%s11497_s6 + $0x30] sm:$0xff] }
 0x6c4   :  { %7814 = vrcp.f32 %v4587_v50  ;;  %v4845_v50 = vld [vmem:[%s11497_s6 + $0x38] sm:$0xff] }
 0x6c5   :  { %7816 = vrcp.f32 %v10789_v3 }
 0x6c6   :  { %7818 = vrcp.f32 %v10795_v21  ;;  %v4838_v21 = vld [vmem:[%s11497_s6] sm:$0xff]  ;;  %s7910_s6 = smov 48  }
 0x6c7   :  { %v7542_v59 = vpop.permute.xlu0 %7541  ;;  %7820 = vrcp.f32 %v10804_v32  ;;  %v7265_v55 = vpack.c.bf16 %v4839_v62, %v4838_v21 }
 0x6c8   :  { %v7544_v18 = vunpack.i.h.bf16 %v7542_v59  ;;  %v7543_v29 = vunpack.i.l.bf16 %v7542_v59 }
 0x6c9   :  { %7266 = vmatpush3.bf16.msra.mxu0 %v7265_v55 }
 0x6ca   :  { %v7259_v44 = vpack.c.bf16 %v7544_v18, %v7543_v29  ;;  %7267 = vmatprep.subr.bf16.mxu0 %v11764_v57  ;;  %v7274_v29 = vpack.c.bf16 %v4845_v50, %v4844_v19 }
 0x6cc   :  { %7260 = vmatpush3.bf16.msra.mxu1 %v7259_v44 }
 0x6cd   :  { %7261 = vmatprep.subr.bf16.mxu1 %v11764_v57  ;;  %v1736_v12 = vpop.f32.mrb[38].mxu1  ;;  %7269 = vmatpush3.bf16.msra.mxu0 %v7268_v34 }
 0x6ce   :  { %1748 = vst.msk [vmem:[#allocation4 + $0x30] sm:$0x1] %vm1747_vm12, %v1736_v12  ;;  %v6426_v37 = vpop.f32.mrb[39].mxu1  ;;  %v7815_v36 = vpop.eup %7814  ;;  %7270 = vmatprep.subr.bf16.mxu0 %v11764_v57 }
 0x6cf   :  { %v4613_v61 = vmul.f32 %v7815_v36, %v10601_v4  ;;  %v7817_v11 = vpop.eup %7816 }
 0x6d0   :  { %v4614_v49 = vmul.f32 %v7817_v11, %v10518_v38  ;;  %v7819_v58 = vpop.eup %7818 }
 0x6d1   :  { %v2127_v7 = vpop.f32.mrb[40].mxu1  ;;  %v4615_v14 = vmul.f32 %v7819_v58, %v10531_v6  ;;  %v7821_v13 = vpop.eup %7820  ;;  %7272 = vmatpush3.bf16.msra.mxu0 %v7271_v24 }
 0x6d2   :  { %2168 = vrot.lane.b32.xlu0 %v2127_v7, %s7908_s5  ;;  %v6478_v60 = vpop.f32.mrb[41].mxu1  ;;  %v4616_v18 = vmul.f32 %v7821_v13, %v10541_v31  ;;  %7273 = vmatprep.subr.bf16.mxu0 %v11764_v57 }
 0x6d5   :  { %v2132_v52 = vpop.f32.mrb[42].mxu1  ;;  %7275 = vmatpush3.bf16.msra.mxu0 %v7274_v29 }
 0x6d6   :  { %2170 = vrot.lane.b32.xlu0 %v2132_v52, %s7908_s5  ;;  %v6481_v51 = vpop.f32.mrb[43].mxu1  ;;  %7282 = vmatprep.subr.bf16.mxu0 %v11764_v57 }
 0x6d9   :  { %v2137_v25 = vpop.f32.mrb[44].mxu1  ;;  %v4599_v23 = vpop.xlane.xlu1 %4598 }
 0x6da   :  { %2172 = vrot.lane.b32.xlu0 %v2137_v25, %s7908_s5  ;;  %v6484_v15 = vpop.f32.mrb[45].mxu1  ;;  %7822 = vrcp.f32 %v4599_v23 }
 0x6dd   :  { %v2142_v30 = vpop.f32.mrb[46].mxu1  ;;  %v7547_v9 = vpop.permute.xlu1 %7546 }
 0x6de   :  { %2174 = vrot.lane.b32.xlu1 %v2142_v30, %s7908_s5  ;;  %v6487_v39 = vpop.f32.mrb[47].mxu1  ;;  %v7549_v33 = vunpack.i.h.bf16 %v7547_v9  ;;  %v7548_v63 = vunpack.i.l.bf16 %v7547_v9 }
 0x6e0   :  { %v7262_v1 = vpack.c.bf16 %v7549_v33, %v7548_v63 }
 0x6e1   :  { %v2147_v16 = vpop.f32.mrb[48].mxu1 }
 0x6e2   :  { %2176 = vrot.lane.b32.xlu0 %v2147_v16, %s7908_s5  ;;  %v6490_v41 = vpop.f32.mrb[49].mxu1  ;;  %7263 = vmatpush3.bf16.msra.mxu1 %v7262_v1 }
 0x6e3   :  { %6894 = vmatprep.subr.mxu1 %v11765_v10 }
 0x6e4   :  { %v7823_v44 = vpop.eup %7822 }
 0x6e5   :  { %v2152_v46 = vpop.f32.mrb[50].mxu1  ;;  %v4617_v7 = vmul.f32 %v7823_v44, %v10648_v5 }
 0x6e6   :  { %2178 = vrot.lane.b32.xlu1 %v2152_v46, %s7908_s5  ;;  %v6493_v48 = vpop.f32.mrb[51].mxu1 }
 0x6e9   :  { %v2157_v26 = vpop.f32.mrb[52].mxu1 }
 0x6ea   :  { %2180 = vrot.lane.b32.xlu0 %v2157_v26, %s7908_s5  ;;  %v6496_v47 = vpop.f32.mrb[53].mxu1 }
 0x6ed   :  { %v2576_v22 = vpop.f32.mrb[54].mxu1 }
 0x6ee   :  { %2617 = vrot.lane.b32.xlu0 %v2576_v22, %s7909_s21  ;;  %v6548_v45 = vpop.f32.mrb[55].mxu1 }
 0x6f1   :  { %v2581_v2 = vpop.f32.mrb[56].mxu1 }
 0x6f2   :  { %2619 = vrot.lane.b32.xlu1 %v2581_v2, %s7909_s21  ;;  %v6551_v20 = vpop.f32.mrb[57].mxu1 }
 0x6f5   :  { %v2586_v0 = vpop.f32.mrb[58].mxu1 }
 0x6f6   :  { %2621 = vrot.lane.b32.xlu0 %v2586_v0, %s7909_s21  ;;  %v6554_v27 = vpop.f32.mrb[59].mxu1 }
 0x6f8   :  { %v4602_v40 = vpop.xlane.xlu0 %4601 }
 0x6f9   :  { %v2591_v28 = vpop.f32.mrb[60].mxu1  ;;  %7824 = vrcp.f32 %v4602_v40 }
 0x6fa   :  { %2623 = vrot.lane.b32.xlu0 %v2591_v28, %s7909_s21  ;;  %v6557_v8 = vpop.f32.mrb[61].mxu1 }
 0x6fc   :  { %v4647_v3 = vpop.permute.xlu0 %4646 }
 0x6fd   :  { %6895 = vmatpush3.msk.msra.mxu1 %vm1636_vm8, %v4647_v3  ;;  %v2596_v32 = vpop.f32.mrb[62].mxu1 }
 0x6fe   :  { %6897 = vmatmul.mubr.msk.f32.vlgmr.msra.gmra.mrb[124].mxu1 %vm1529_vm9, %v4613_v61  ;;  %7276 = vmatprep.subr.bf16.mxu1 %v11764_v57  ;;  %v6560_v4 = vpop.f32.mrb[63].mxu1 }
 0x6ff   :  { %6899 = vmatprep.mubr.msk.f32.mxu1 %vm7896_vm2, %v11765_v10  ;;  %2625 = vrot.lane.b32.xlu1 %v2596_v32, %s7909_s21 }
 0x701   :  { %v2601_v35 = vpop.f32.mrb[64].mxu1 }
 0x702   :  { %6900 = vmatmul.mubr.msk.f32.gmra.mrb[126].mxu1 %vm1529_vm9, %v4614_v49  ;;  %2627 = vrot.lane.b32.xlu0 %v2601_v35, %s7909_s21  ;;  %v6563_v38 = vpop.f32.mrb[65].mxu1 }
 0x703   :  { %6902 = vmatprep.mubr.msk.f32.mxu1 %vm7896_vm2, %v11765_v10  ;;  %v7825_v60 = vpop.eup %7824 }
 0x704   :  { %v4618_v25 = vmul.f32 %v7825_v60, %v10715_v54 }
 0x705   :  { %v2606_v59 = vpop.f32.mrb[66].mxu1 }
 0x706   :  { %6903 = vmatmul.mubr.msk.f32.gmra.mrb[128].mxu1 %vm1529_vm9, %v4615_v14  ;;  %2629 = vrot.lane.b32.xlu0 %v2606_v59, %s7909_s21  ;;  %v6566_v6 = vpop.f32.mrb[67].mxu1 }
 0x707   :  { %6905 = vmatprep.mubr.msk.f32.mxu1 %vm7896_vm2, %v11765_v10 }
 0x709   :  { %v3025_v12 = vpop.f32.mrb[68].mxu1 }
 0x70a   :  { %6906 = vmatmul.mubr.msk.f32.gmra.mrb[130].mxu1 %vm1529_vm9, %v4616_v18  ;;  %3066 = vrot.lane.b32.xlu0 %v3025_v12, %s7910_s6  ;;  %v6618_v37 = vpop.f32.mrb[69].mxu1 }
 0x70b   :  { %6908 = vmatprep.mubr.msk.f32.mxu1 %vm7896_vm2, %v11765_v10 }
 0x70d   :  { %v3030_v31 = vpop.f32.mrb[70].mxu1 }
 0x70e   :  { %6909 = vmatmul.mubr.msk.f32.gmra.mrb[132].mxu1 %vm1529_vm9, %v4617_v7  ;;  %3068 = vrot.lane.b32.xlu0 %v3030_v31, %s7910_s6  ;;  %v6621_v52 = vpop.f32.mrb[71].mxu1  ;;  %v4605_v51 = vpop.xlane.xlu1 %4604 }
 0x70f   :  { %6911 = vmatprep.mubr.msk.f32.mxu1 %vm7896_vm2, %v11765_v10  ;;  %7826 = vrcp.f32 %v4605_v51 }
 0x711   :  { %v3035_v5 = vpop.f32.mrb[72].mxu1 }
 0x712   :  { %6912 = vmatmul.mubr.msk.f32.gmra.mrb[134].mxu1 %vm1529_vm9, %v4618_v25  ;;  %3070 = vrot.lane.b32.xlu0 %v3035_v5, %s7910_s6  ;;  %v6624_v23 = vpop.f32.mrb[73].mxu1 }
 0x713   :  { %6914 = vmatprep.mubr.msk.f32.mxu1 %vm7896_vm2, %v11765_v10 }
 0x715   :  { %v3040_v15 = vpop.f32.mrb[74].mxu1 }
 0x716   :  { %3072 = vrot.lane.b32.xlu1 %v3040_v15, %s7910_s6  ;;  %v6627_v30 = vpop.f32.mrb[75].mxu1 }
 0x719   :  { %v7827_v9 = vpop.eup %7826  ;;  %v3045_v39 = vpop.f32.mrb[76].mxu1 }
 0x71a   :  { %3074 = vrot.lane.b32.xlu0 %v3045_v39, %s7910_s6  ;;  %v6630_v33 = vpop.f32.mrb[77].mxu1  ;;  %v4619_v54 = vmul.f32 %v7827_v9, %v10754_v53 }
 0x71c   :  { %6915 = vmatmul.mubr.msk.f32.gmra.mrb[136].mxu1 %vm1529_vm9, %v4619_v54 }
 0x71d   :  { %v3050_v63 = vpop.f32.mrb[78].mxu1  ;;  %6980 = vmatprep.mubr.msk.f32.mxu1 %vm7896_vm2, %v11765_v10 }
 0x71e   :  { %3076 = vrot.lane.b32.xlu1 %v3050_v63, %s7910_s6  ;;  %v6633_v1 = vpop.f32.mrb[79].mxu1 }
 0x721   :  { %v3055_v16 = vpop.f32.mrb[80].mxu1 }
 0x722   :  { %3078 = vrot.lane.b32.xlu0 %v3055_v16, %s7910_s6  ;;  %v6636_v41 = vpop.f32.mrb[81].mxu1 }
 0x725   :  { %v3433_v46 = vpop.f32.mrb[82].mxu1 }
 0x726   :  { %3467 = vst.msk [vmem:[#allocation4 + $0x31] sm:$0xff] %vm1740_vm11, %v3433_v46  ;;  %v6688_v48 = vpop.f32.mrb[83].mxu1 }
 0x729   :  { %v3438_v26 = vpop.f32.mrb[84].mxu1 }
 0x72a   :  { %3468 = vst.msk [vmem:[#allocation4 + $0x39] sm:$0xff] %vm1740_vm11, %v3438_v26  ;;  %v6691_v53 = vpop.f32.mrb[85].mxu1 }
 0x72d   :  { %v3443_v47 = vpop.f32.mrb[86].mxu1 }
 0x72e   :  { %3469 = vst.msk [vmem:[#allocation4 + $0x41] sm:$0xff] %vm1740_vm11, %v3443_v47  ;;  %v6694_v22 = vpop.f32.mrb[87].mxu1 }
 0x731   :  { %v3448_v45 = vpop.f32.mrb[88].mxu1 }
 0x732   :  { %3470 = vst.msk [vmem:[#allocation4 + $0x49] sm:$0xff] %vm1740_vm11, %v3448_v45  ;;  %v6697_v2 = vpop.f32.mrb[89].mxu1 }
 0x735   :  { %v3453_v20 = vpop.f32.mrb[90].mxu1 }
 0x736   :  { %3471 = vst.msk [vmem:[#allocation4 + $0x51] sm:$0xff] %vm1740_vm11, %v3453_v20  ;;  %v6700_v0 = vpop.f32.mrb[91].mxu1 }
 0x739   :  { %v3458_v27 = vpop.f32.mrb[92].mxu1 }
 0x73a   :  { %3472 = vst.msk [vmem:[#allocation4 + $0x59] sm:$0xff] %vm1740_vm11, %v3458_v27  ;;  %v6703_v40 = vpop.f32.mrb[93].mxu1 }
 0x73d   :  { %v3463_v36 = vpop.f32.mrb[94].mxu1 }
 0x73e   :  { %3473 = vst.msk [vmem:[#allocation4 + $0x61] sm:$0x1] %vm1747_vm12, %v3463_v36  ;;  %v6706_v28 = vpop.f32.mrb[95].mxu1 }
 0x741   :  { %v3851_v8 = vpop.f32.mrb[96].mxu1 }
 0x742   :  { %3892 = vrot.lane.b32.xlu1 %v3851_v8, %s7908_s5  ;;  %v6758_v61 = vpop.f32.mrb[97].mxu1 }
 0x744   :  { %v2169_v3 = vpop.permute.xlu0 %2168 }
 0x745   :  { %2190 = vst.msk [vmem:[#allocation4] sm:$0xff] %vm2189_vm13, %v2169_v3  ;;  %v3856_v11 = vpop.f32.mrb[98].mxu1 }
 0x746   :  { %3894 = vrot.lane.b32.xlu0 %v3856_v11, %s7908_s5  ;;  %v6761_v21 = vpop.f32.mrb[99].mxu1 }
 0x748   :  { %v2171_v62 = vpop.permute.xlu0 %2170 }
 0x749   :  { %2191 = vst.msk [vmem:[#allocation4 + $0x8] sm:$0xff] %vm2189_vm13, %v2171_v62  ;;  %v3861_v32 = vpop.f32.mrb[100].mxu1 }
 0x74a   :  { %3896 = vrot.lane.b32.xlu1 %v3861_v32, %s7908_s5  ;;  %v6764_v55 = vpop.f32.mrb[101].mxu1 }
 0x74c   :  { %v2173_v4 = vpop.permute.xlu0 %2172 }
 0x74d   :  { %2192 = vst.msk [vmem:[#allocation4 + $0x10] sm:$0xff] %vm2189_vm13, %v2173_v4  ;;  %v3866_v42 = vpop.f32.mrb[102].mxu1 }
 0x74e   :  { %3898 = vrot.lane.b32.xlu0 %v3866_v42, %s7908_s5  ;;  %v6767_v43 = vpop.f32.mrb[103].mxu1 }
 0x750   :  { %v2175_v49 = vpop.permute.xlu1 %2174 }
 0x751   :  { %2193 = vst.msk [vmem:[#allocation4 + $0x18] sm:$0xff] %vm2189_vm13, %v2175_v49  ;;  %v10919_v34 = vpop.f32.mrb[104].mxu1 }
 0x752   :  { %v6770_v58 = vpop.f32.mrb[105].mxu1 }
 0x754   :  { %v2177_v17 = vpop.permute.xlu0 %2176 }
 0x755   :  { %2194 = vst.msk [vmem:[#allocation4 + $0x20] sm:$0xff] %vm2189_vm13, %v2177_v17  ;;  %v10922_v56 = vpop.f32.mrb[106].mxu1 }
 0x756   :  { %v6773_v35 = vpop.f32.mrb[107].mxu1 }
 0x758   :  { %v2179_v38 = vpop.permute.xlu1 %2178 }
 0x759   :  { %2195 = vst.msk [vmem:[#allocation4 + $0x28] sm:$0xff] %vm2189_vm13, %v2179_v38  ;;  %v10925_v14 = vpop.f32.mrb[108].mxu1 }
 0x75a   :  { %v6776_v24 = vpop.f32.mrb[109].mxu1 }
 0x75c   :  { %v2181_v13 = vpop.permute.xlu0 %2180 }
 0x75d   :  { %2197 = vst.msk [vmem:[#allocation4 + $0x30] sm:$0x1] %vm2196_vm14, %v2181_v13 }
 0x760   :  { %v2618_v19 = vpop.permute.xlu0 %2617 }
 0x761   :  { %2639 = vst.msk [vmem:[#allocation4] sm:$0xff] %vm2638_vm15, %v2618_v19 }
 0x764   :  { %v2620_v50 = vpop.permute.xlu1 %2619 }
 0x765   :  { %2640 = vst.msk [vmem:[#allocation4 + $0x8] sm:$0xff] %vm2638_vm15, %v2620_v50 }
 0x767   :  { %v4297_v59 = vpop.f32.mrb[110].mxu1 }
 0x768   :  { %4338 = vrot.lane.b32.xlu1 %v4297_v59, %s7909_s21  ;;  %v6828_v6 = vpop.f32.mrb[111].mxu1  ;;  %v2622_v18 = vpop.permute.xlu0 %2621 }
 0x769   :  { %2641 = vst.msk [vmem:[#allocation4 + $0x10] sm:$0xff] %vm2638_vm15, %v2622_v18 }
 0x76b   :  { %v4302_v29 = vpop.f32.mrb[112].mxu1 }
 0x76c   :  { %4340 = vrot.lane.b32.xlu1 %v4302_v29, %s7909_s21  ;;  %v6831_v44 = vpop.f32.mrb[113].mxu1  ;;  %v2624_v12 = vpop.permute.xlu0 %2623 }
 0x76d   :  { %2642 = vst.msk [vmem:[#allocation4 + $0x18] sm:$0xff] %vm2638_vm15, %v2624_v12  ;;  %v4812_v44 = vld [vmem:[%s11491_s0] sm:$0xff] }
 0x76f   :  { %v4307_v37 = vpop.f32.mrb[114].mxu1 }
 0x770   :  { %4342 = vrot.lane.b32.xlu0 %v4307_v37, %s7909_s21  ;;  %v6834_v7 = vpop.f32.mrb[115].mxu1 }
 0x771   :  { %v2626_v60 = vpop.permute.xlu1 %2625 }
 0x772   :  { %2643 = vst.msk [vmem:[#allocation4 + $0x20] sm:$0xff] %vm2638_vm15, %v2626_v60  ;;  %v11018_v60 = vld [vmem:[%s11493_s1 + $0x4] ss:$0 sm:$0xff] }
 0x773   :  { %v4312_v31 = vpop.f32.mrb[116].mxu1 }
 0x774   :  { %4344 = vrot.lane.b32.xlu1 %v4312_v31, %s7909_s21  ;;  %v6837_v52 = vpop.f32.mrb[117].mxu1  ;;  %v2628_v51 = vpop.permute.xlu0 %2627 }
 0x775   :  { %2644 = vst.msk [vmem:[#allocation4 + $0x28] sm:$0xff] %vm2638_vm15, %v2628_v51 }
 0x777   :  { %v4317_v25 = vpop.f32.mrb[118].mxu1 }
 0x778   :  { %v6840_v5 = vpop.f32.mrb[119].mxu1  ;;  %v2630_v23 = vpop.permute.xlu0 %2629 }
 0x779   :  { %2646 = vst.msk [vmem:[#allocation4 + $0x30] sm:$0x1] %vm2645_vm4, %v2630_v23 }
 0x77b   :  { %v4322_v15 = vpop.f32.mrb[120].mxu1 }
 0x77c   :  { %v6843_v30 = vpop.f32.mrb[121].mxu1  ;;  %v3067_v9 = vpop.permute.xlu0 %3066 }
 0x77d   :  { %3088 = vst.msk [vmem:[#allocation4] sm:$0xff] %vm3087_vm5, %v3067_v9 }
 0x77f   :  { %v10940_v39 = vpop.f32.mrb[122].mxu1 }
 0x780   :  { %v6846_v33 = vpop.f32.mrb[123].mxu1  ;;  %v3069_v54 = vpop.permute.xlu0 %3068 }
 0x781   :  { %3089 = vst.msk [vmem:[#allocation4 + $0x8] sm:$0xff] %vm3087_vm5, %v3069_v54  ;;  %v4814_v54 = vld [vmem:[%s11491_s0 + $0x10] sm:$0xff] }
 0x784   :  { %v3071_v63 = vpop.permute.xlu0 %3070  ;;  %v4825_v1 = vld [vmem:[#allocation4] sm:$0xff] }
 0x785   :  { %3090 = vst.msk [vmem:[#allocation4 + $0x10] sm:$0xff] %vm3087_vm5, %v3071_v63  ;;  %6934 = vmatmul.mubr.msk.f32.vlgmr.msra.gmra.mrb[112].mxu0 %vm450_vm3, %v4825_v1 }
 0x786   :  { %6936 = vmatprep.mubr.msk.f32.mxu0 %vm7896_vm2, %v11765_v10 }
 0x788   :  { %v3073_v16 = vpop.permute.xlu1 %3072  ;;  %v4826_v41 = vld [vmem:[#allocation4 + $0x8] sm:$0xff] }
 0x789   :  { %3091 = vst.msk [vmem:[#allocation4 + $0x18] sm:$0xff] %vm3087_vm5, %v3073_v16  ;;  %6937 = vmatmul.mubr.msk.f32.gmra.mrb[114].mxu0 %vm450_vm3, %v4826_v41 }
 0x78a   :  { %6939 = vmatprep.mubr.msk.f32.mxu0 %vm7896_vm2, %v11765_v10 }
 0x78c   :  { %v3075_v46 = vpop.permute.xlu0 %3074  ;;  %v4827_v48 = vld [vmem:[#allocation4 + $0x10] sm:$0xff] }
 0x78d   :  { %3092 = vst.msk [vmem:[#allocation4 + $0x20] sm:$0xff] %vm3087_vm5, %v3075_v46  ;;  %6940 = vmatmul.mubr.msk.f32.gmra.mrb[116].mxu0 %vm450_vm3, %v4827_v48 }
 0x78e   :  { %6942 = vmatprep.mubr.msk.f32.mxu0 %vm7896_vm2, %v11765_v10 }
 0x790   :  { %v3077_v26 = vpop.permute.xlu1 %3076  ;;  %v4828_v53 = vld [vmem:[#allocation4 + $0x18] sm:$0xff] }
 0x791   :  { %3093 = vst.msk [vmem:[#allocation4 + $0x28] sm:$0xff] %vm3087_vm5, %v3077_v26  ;;  %6943 = vmatmul.mubr.msk.f32.gmra.mrb[118].mxu0 %vm450_vm3, %v4828_v53  ;;  %v4815_v53 = vld [vmem:[%s11491_s0 + $0x18] sm:$0xff] }
 0x792   :  { %6945 = vmatprep.mubr.msk.f32.mxu0 %vm7896_vm2, %v11765_v10 }
 0x794   :  { %v3079_v47 = vpop.permute.xlu0 %3078  ;;  %v4829_v22 = vld [vmem:[#allocation4 + $0x20] sm:$0xff] }
 0x795   :  { %3095 = vst.msk [vmem:[#allocation4 + $0x30] sm:$0x1] %vm3094_vm6, %v3079_v47  ;;  %6946 = vmatmul.mubr.msk.f32.gmra.mrb[120].mxu0 %vm450_vm3, %v4829_v22 }
 0x796   :  { %6948 = vmatprep.mubr.msk.f32.mxu0 %vm7896_vm2, %v11765_v10 }
 0x798   :  { %v4830_v45 = vld [vmem:[#allocation4 + $0x28] sm:$0xff] }
 0x799   :  { %6949 = vmatmul.mubr.msk.f32.gmra.mrb[122].mxu0 %vm450_vm3, %v4830_v45 }
 0x79a   :  { %6951 = vmatprep.mubr.msk.f32.mxu0 %vm7896_vm2, %v11765_v10 }
 0x7b4   :  { %v3893_v2 = vpop.permute.xlu1 %3892 }
 0x7b5   :  { %3913 = vst.msk [vmem:[#allocation4 + $0x31] sm:$0xff] %vm2189_vm13, %v3893_v2 }
 0x7b8   :  { %v3895_v20 = vpop.permute.xlu0 %3894 }
 0x7b9   :  { %3914 = vst.msk [vmem:[#allocation4 + $0x39] sm:$0xff] %vm2189_vm13, %v3895_v20 }
 0x7bc   :  { %v3897_v0 = vpop.permute.xlu1 %3896 }
 0x7bd   :  { %3915 = vst.msk [vmem:[#allocation4 + $0x41] sm:$0xff] %vm2189_vm13, %v3897_v0  ;;  %v4816_v0 = vld [vmem:[%s11491_s0 + $0x20] sm:$0xff] }
 0x7c0   :  { %v3899_v27 = vpop.permute.xlu0 %3898 }
 0x7c1   :  { %3916 = vst.msk [vmem:[#allocation4 + $0x49] sm:$0xff] %vm2189_vm13, %v3899_v27 }
 0x7d1   :  { %v4743_v40 = vpop.f32.mrb[124].mxu1 }
 0x7d2   :  { %4784 = vrot.lane.b32.xlu1 %v4743_v40, %s7910_s6  ;;  %v6898_v36 = vpop.f32.mrb[125].mxu1 }
 0x7d5   :  { %v4748_v28 = vpop.f32.mrb[126].mxu1 }
 0x7d6   :  { %3900 = vrot.lane.b32.xlu1 %v10919_v34, %s7908_s5  ;;  %4786 = vrot.lane.b32.xlu0 %v4748_v28, %s7910_s6  ;;  %v6901_v8 = vpop.f32.mrb[127].mxu1 }
 0x7d9   :  { %v4753_v61 = vpop.f32.mrb[128].mxu1 }
 0x7da   :  { %4346 = vrot.lane.b32.xlu0 %v4317_v25, %s7909_s21  ;;  %4788 = vrot.lane.b32.xlu1 %v4753_v61, %s7910_s6  ;;  %v6904_v3 = vpop.f32.mrb[129].mxu1  ;;  %v4339_v11 = vpop.permute.xlu1 %4338  ;;  %v4813_v25 = vld [vmem:[%s11491_s0 + $0x8] sm:$0xff] }
 0x7db   :  { %4359 = vst.msk [vmem:[#allocation4 + $0x31] sm:$0xff] %vm2638_vm15, %v4339_v11  ;;  %v4817_v61 = vld [vmem:[%s11491_s0 + $0x28] sm:$0xff] }
 0x7dd   :  { %v4758_v21 = vpop.f32.mrb[130].mxu1 }
 0x7de   :  { %4348 = vrot.lane.b32.xlu1 %v4322_v15, %s7909_s21  ;;  %4790 = vrot.lane.b32.xlu0 %v4758_v21, %s7910_s6  ;;  %v6907_v62 = vpop.f32.mrb[131].mxu1  ;;  %v4341_v32 = vpop.permute.xlu1 %4340 }
 0x7df   :  { %4360 = vst.msk [vmem:[#allocation4 + $0x39] sm:$0xff] %vm2638_vm15, %v4341_v32 }
 0x7e1   :  { %v4763_v55 = vpop.f32.mrb[132].mxu1 }
 0x7e2   :  { %3902 = vrot.lane.b32.xlu0 %v10922_v56, %s7908_s5  ;;  %4792 = vrot.lane.b32.xlu1 %v4763_v55, %s7910_s6  ;;  %v6910_v4 = vpop.f32.mrb[133].mxu1  ;;  %v4343_v42 = vpop.permute.xlu0 %4342 }
 0x7e3   :  { %4361 = vst.msk [vmem:[#allocation4 + $0x41] sm:$0xff] %vm2638_vm15, %v4343_v42 }
 0x7e5   :  { %v4768_v43 = vpop.f32.mrb[134].mxu1 }
 0x7e6   :  { %3904 = vrot.lane.b32.xlu1 %v10925_v14, %s7908_s5  ;;  %4794 = vrot.lane.b32.xlu0 %v4768_v43, %s7910_s6  ;;  %v6913_v49 = vpop.f32.mrb[135].mxu1  ;;  %v4345_v34 = vpop.permute.xlu1 %4344  ;;  %v4818_v43 = vld [vmem:[%s11491_s0 + $0x30] sm:$0xff] }
 0x7e7   :  { %4362 = vst.msk [vmem:[#allocation4 + $0x49] sm:$0xff] %vm2638_vm15, %v4345_v34 }
 0x7ea   :  { %4350 = vrot.lane.b32.xlu0 %v10940_v39, %s7909_s21 }
 0x7ef   :  { %v4773_v58 = vpop.f32.mrb[136].mxu1 }
 0x7f0   :  { %4796 = vrot.lane.b32.xlu1 %v4773_v58, %s7910_s6  ;;  %v6916_v17 = vpop.f32.mrb[137].mxu1 }
 0x7f1   :  { %v4819_v17 = vld [vmem:[%s11491_s0 + $0x38] sm:$0xff] }
 0x844   :  { %v4785_v56 = vpop.permute.xlu1 %4784 }
 0x845   :  { %4805 = vst.msk [vmem:[#allocation4 + $0x31] sm:$0xff] %vm3087_vm5, %v4785_v56 }
 0x848   :  { %v3901_v35 = vpop.permute.xlu1 %3900  ;;  %v4787_v38 = vpop.permute.xlu0 %4786 }
 0x849   :  { %3917 = vst.msk [vmem:[#allocation4 + $0x51] sm:$0xff] %vm2189_vm13, %v3901_v35 }
 0x84a   :  { %4806 = vst.msk [vmem:[#allocation4 + $0x39] sm:$0xff] %vm3087_vm5, %v4787_v38 }
 0x84c   :  { %v4347_v14 = vpop.permute.xlu0 %4346  ;;  %v4789_v24 = vpop.permute.xlu1 %4788  ;;  %v4831_v13 = vld [vmem:[#allocation4 + $0x30] sm:$0xff] }
 0x84d   :  { %4363 = vst.msk [vmem:[#allocation4 + $0x51] sm:$0xff] %vm2638_vm15, %v4347_v14  ;;  %6952 = vmatmul.mubr.msk.f32.gmra.mrb[124].mxu0 %vm450_vm3, %v4831_v13  ;;  %v4820_v13 = vld [vmem:[%s11491_s0 + $0x40] sm:$0xff] }
 0x84e   :  { %4807 = vst.msk [vmem:[#allocation4 + $0x41] sm:$0xff] %vm3087_vm5, %v4789_v24  ;;  %6954 = vmatprep.mubr.msk.f32.mxu0 %vm7896_vm2, %v11765_v10 }
 0x850   :  { %v4349_v19 = vpop.permute.xlu1 %4348  ;;  %v4791_v50 = vpop.permute.xlu0 %4790 }
 0x851   :  { %v4832_v59 = vld [vmem:[#allocation4 + $0x38] sm:$0xff]  ;;  %4808 = vst.msk [vmem:[#allocation4 + $0x49] sm:$0xff] %vm3087_vm5, %v4791_v50 }
 0x852   :  { %6955 = vmatmul.mubr.msk.f32.gmra.mrb[126].mxu0 %vm450_vm3, %v4832_v59 }
 0x853   :  { %6957 = vmatprep.mubr.msk.f32.mxu0 %vm7896_vm2, %v11765_v10 }
 0x854   :  { %v3903_v6 = vpop.permute.xlu0 %3902  ;;  %v4793_v18 = vpop.permute.xlu1 %4792 }
 0x855   :  { %v4833_v29 = vld [vmem:[#allocation4 + $0x40] sm:$0xff]  ;;  %3918 = vst.msk [vmem:[#allocation4 + $0x59] sm:$0xff] %vm2189_vm13, %v3903_v6 }
 0x856   :  { %4809 = vst.msk [vmem:[#allocation4 + $0x51] sm:$0xff] %vm3087_vm5, %v4793_v18  ;;  %6958 = vmatmul.mubr.msk.f32.gmra.mrb[128].mxu0 %vm450_vm3, %v4833_v29  ;;  %v4821_v29 = vld [vmem:[%s11491_s0 + $0x48] sm:$0xff] }
 0x857   :  { %4364 = vst.msk [vmem:[#allocation4 + $0x59] sm:$0xff] %vm2638_vm15, %v4349_v19  ;;  %6960 = vmatprep.mubr.msk.f32.mxu0 %vm7896_vm2, %v11765_v10 }
 0x858   :  { %v3905_v12 = vpop.permute.xlu1 %3904  ;;  %v4795_v37 = vpop.permute.xlu0 %4794  ;;  %v4834_v7 = vld [vmem:[#allocation4 + $0x48] sm:$0xff] }
 0x859   :  { %3919 = vst.msk [vmem:[#allocation4 + $0x61] sm:$0x1] %vm2196_vm14, %v3905_v12  ;;  %v4951_v31 = vpop.f32.mrb[112].mxu0 }
 0x85a   :  { %4810 = vst.msk [vmem:[#allocation4 + $0x59] sm:$0xff] %vm3087_vm5, %v4795_v37  ;;  %6961 = vmatmul.mubr.msk.f32.gmra.mrb[130].mxu0 %vm450_vm3, %v4834_v7  ;;  %v5015_v52 = vadd.f32 %v4951_v31, %v4812_v44  ;;  %v6935_v51 = vpop.f32.mrb[113].mxu0 }
 0x85b   :  { %6963 = vmatprep.mubr.msk.f32.mxu0 %vm7896_vm2, %v11765_v10  ;;  %v4822_v51 = vld [vmem:[%s11491_s0 + $0x50] sm:$0xff] }
 0x85c   :  { %v4351_v5 = vpop.permute.xlu0 %4350  ;;  %v11026_v15 = vadd.f32 %v11018_v60, %v5015_v52  ;;  %v4956_v30 = vpop.f32.mrb[114].mxu0 }
 0x85d   :  { %v4835_v23 = vld [vmem:[#allocation4 + $0x50] sm:$0xff]  ;;  %4365 = vst.msk [vmem:[#allocation4 + $0x61] sm:$0x1] %vm2645_vm4, %v4351_v5  ;;  %v5016_v9 = vadd.f32 %v4956_v30, %v4813_v25  ;;  %v6938_v39 = vpop.f32.mrb[115].mxu0 }
 0x85e   :  { %6964 = vmatmul.mubr.msk.f32.gmra.mrb[132].mxu0 %vm450_vm3, %v4835_v23  ;;  %v5045_v33 = vsel %vm54_vm0, %v11026_v15, 0.0 }
 0x85f   :  { %6966 = vmatprep.mubr.msk.f32.mxu0 %vm7896_vm2, %v11765_v10  ;;  %5046 = vadd.xlane.f32.xlu0 %v5045_v33  ;;  %v11038_v1 = vadd.f32 %v11018_v60, %v5016_v9 }
 0x860   :  { %v4961_v16 = vpop.f32.mrb[116].mxu0 }
 0x861   :  { %v4836_v63 = vld [vmem:[#allocation4 + $0x58] sm:$0xff]  ;;  %v5017_v41 = vadd.f32 %v4961_v16, %v4814_v54  ;;  %v6941_v46 = vpop.f32.mrb[117].mxu0  ;;  %v5048_v48 = vsel %vm54_vm0, %v11038_v1, 0.0 }
 0x862   :  { %6967 = vmatmul.mubr.msk.f32.gmra.mrb[134].mxu0 %vm450_vm3, %v4836_v63  ;;  %5049 = vadd.xlane.f32.xlu1 %v5048_v48  ;;  %v4797_v26 = vpop.permute.xlu1 %4796  ;;  %v4823_v63 = vld [vmem:[%s11491_s0 + $0x58] sm:$0xff] }
 0x863   :  { %6969 = vmatprep.mubr.msk.f32.mxu0 %vm7896_vm2, %v11765_v10  ;;  %v11049_v47 = vadd.f32 %v11018_v60, %v5017_v41  ;;  %4811 = vst.msk [vmem:[#allocation4 + $0x61] sm:$0x1] %vm3094_vm6, %v4797_v26 }
 0x864   :  { %v4966_v22 = vpop.f32.mrb[118].mxu0 }
 0x865   :  { %v5018_v45 = vadd.f32 %v4966_v22, %v4815_v53  ;;  %v6944_v2 = vpop.f32.mrb[119].mxu0  ;;  %v5051_v20 = vsel %vm54_vm0, %v11049_v47, 0.0 }
 0x866   :  { %5052 = vadd.xlane.f32.xlu0 %v5051_v20 }
 0x867   :  { %v11058_v27 = vadd.f32 %v11018_v60, %v5018_v45 }
 0x868   :  { %v4971_v40 = vpop.f32.mrb[120].mxu0 }
 0x869   :  { %v5019_v36 = vadd.f32 %v4971_v40, %v4816_v0  ;;  %v6947_v28 = vpop.f32.mrb[121].mxu0  ;;  %v5054_v8 = vsel %vm54_vm0, %v11058_v27, 0.0 }
 0x86a   :  { %5055 = vadd.xlane.f32.xlu0 %v5054_v8  ;;  %v4837_v3 = vld [vmem:[#allocation4 + $0x60] sm:$0x3] }
 0x86b   :  { %v11066_v11 = vadd.f32 %v11018_v60, %v5019_v36  ;;  %6970 = vmatmul.mubr.msk.f32.gmra.mrb[136].mxu0 %vm450_vm3, %v4837_v3 }
 0x86c   :  { %v4976_v21 = vpop.f32.mrb[122].mxu0  ;;  %7051 = vmatprep.mubr.msk.f32.mxu0 %vm7896_vm2, %v11765_v10 }
 0x86d   :  { %v5020_v62 = vadd.f32 %v4976_v21, %v4817_v61  ;;  %v6950_v32 = vpop.f32.mrb[123].mxu0  ;;  %v5057_v55 = vsel %vm54_vm0, %v11066_v11, 0.0 }
 0x86e   :  { %5058 = vadd.xlane.f32.xlu1 %v5057_v55 }
 0x86f   :  { %v11074_v4 = vadd.f32 %v11018_v60, %v5020_v62  ;;  %v4824_v62 = vld [vmem:[%s11491_s0 + $0x60] sm:$0x3] }
 0x871   :  { %v5060_v42 = vsel %vm54_vm0, %v11074_v4, 0.0 }
 0x872   :  { %5061 = vadd.xlane.f32.xlu0 %v5060_v42 }
 0x8ec   :  { %v5047_v52 = vpop.xlane.xlu0 %5046 }
 0x8ed   :  { %v5084_v23 = vmul.f32 0.03125, %v5047_v52 }
 0x8ef   :  { %v5050_v33 = vpop.xlane.xlu1 %5049  ;;  %v11120_v46 = vsub.f32 %v11026_v15, %v5084_v23 }
 0x8f0   :  { %v5085_v28 = vmul.f32 0.03125, %v5050_v33 }
 0x8f1   :  { %v5110_v36 = vmul.f32 %v11120_v46, %v11120_v46 }
 0x8f2   :  { %v11144_v55 = vsub.f32 %v11038_v1, %v5085_v28 }
 0x8f3   :  { %v5053_v54 = vpop.xlane.xlu0 %5052  ;;  %v5123_v3 = vsel %vm54_vm0, %v5110_v36, 0.0 }
 0x8f4   :  { %v5086_v48 = vmul.f32 0.03125, %v5053_v54 }
 0x8f6   :  { %v11128_v20 = vsub.f32 %v11049_v47, %v5086_v48 }
 0x8f7   :  { %v5056_v8 = vpop.xlane.xlu0 %5055 }
 0x8f8   :  { %v5112_v21 = vmul.f32 %v11128_v20, %v11128_v20  ;;  %v5087_v42 = vmul.f32 0.03125, %v5056_v8 }
 0x8fb   :  { %v5059_v45 = vpop.xlane.xlu1 %5058 }
 0x8fc   :  { %v5088_v0 = vmul.f32 0.03125, %v5059_v45 }
 0x8fe   :  { %v11135_v61 = vsub.f32 %v11066_v11, %v5088_v0 }
 0x920   :  { %v4981_v49 = vpop.f32.mrb[124].mxu0 }
 0x921   :  { %v5021_v34 = vadd.f32 %v4981_v49, %v4818_v43  ;;  %v6953_v58 = vpop.f32.mrb[125].mxu0 }
 0x922   :  { %v5129_v58 = vsel %vm54_vm0, %v5112_v21, 0.0 }
 0x923   :  { %v11085_v56 = vadd.f32 %v11018_v60, %v5021_v34  ;;  %v5062_v34 = vpop.xlane.xlu0 %5061 }
 0x925   :  { %v4986_v35 = vpop.f32.mrb[126].mxu0  ;;  %v5063_v24 = vsel %vm54_vm0, %v11085_v56, 0.0 }
 0x926   :  { %v5022_v38 = vadd.f32 %v4986_v35, %v4819_v17  ;;  %v6956_v14 = vpop.f32.mrb[127].mxu0  ;;  %5064 = vadd.xlane.f32.xlu1 %v5063_v24  ;;  %v5114_v17 = vmul.f32 %v11135_v61, %v11135_v61 }
 0x927   :  { %v5089_v14 = vmul.f32 0.03125, %v5062_v34 }
 0x928   :  { %v11093_v19 = vadd.f32 %v11018_v60, %v5022_v38  ;;  %v11153_v38 = vsub.f32 %v11058_v27, %v5087_v42 }
 0x929   :  { %v4991_v50 = vpop.f32.mrb[128].mxu0 }
 0x92a   :  { %v5023_v59 = vadd.f32 %v4991_v50, %v4820_v13  ;;  %v6959_v6 = vpop.f32.mrb[129].mxu0  ;;  %v5066_v18 = vsel %vm54_vm0, %v11093_v19, 0.0  ;;  %v5111_v13 = vmul.f32 %v11144_v55, %v11144_v55  ;;  %v5135_v50 = vsel %vm54_vm0, %v5114_v17, 0.0 }
 0x92b   :  { %5067 = vadd.xlane.f32.xlu0 %v5066_v18  ;;  %v5113_v6 = vmul.f32 %v11153_v38, %v11153_v38 }
 0x92c   :  { %v11101_v44 = vadd.f32 %v11018_v60, %v5023_v59  ;;  %v11161_v59 = vsub.f32 %v11074_v4, %v5089_v14 }
 0x92d   :  { %v4996_v12 = vpop.f32.mrb[130].mxu0  ;;  %v5132_v18 = vsel %vm54_vm0, %v5113_v6, 0.0 }
 0x92e   :  { %v5024_v37 = vadd.f32 %v4996_v12, %v4821_v29  ;;  %v6962_v7 = vpop.f32.mrb[131].mxu0  ;;  %v5069_v31 = vsel %vm54_vm0, %v11101_v44, 0.0  ;;  %v5115_v29 = vmul.f32 %v11161_v59, %v11161_v59 }
 0x92f   :  { %5070 = vadd.xlane.f32.xlu1 %v5069_v31  ;;  %v5249_v7 = vld [vmem:[%s11498_s7 + $0x8] sm:$0xff]  ;;  %v5250_v31 = vld [vmem:[%s11498_s7 + $0x10] sm:$0xff] }
 0x930   :  { %v11109_v25 = vadd.f32 %v11018_v60, %v5024_v37  ;;  %v5138_v12 = vsel %vm54_vm0, %v5115_v29, 0.0  ;;  %v5248_v37 = vld [vmem:[%s11498_s7] sm:$0xff] }
 0x931   :  { %v5001_v5 = vpop.f32.mrb[132].mxu0  ;;  %v7277_v52 = vpack.c.bf16 %v5249_v7, %v5248_v37 }
 0x932   :  { %v5025_v30 = vadd.f32 %v5001_v5, %v4822_v51  ;;  %v6965_v9 = vpop.f32.mrb[133].mxu0  ;;  %v5072_v39 = vsel %vm54_vm0, %v11109_v25, 0.0  ;;  %v5251_v51 = vld [vmem:[%s11498_s7 + $0x18] sm:$0xff] }
 0x933   :  { %5073 = vadd.xlane.f32.xlu0 %v5072_v39  ;;  %7278 = vmatpush3.bf16.msra.mxu1 %v7277_v52  ;;  %v7280_v5 = vpack.c.bf16 %v5251_v51, %v5250_v31 }
 0x934   :  { %v11117_v16 = vadd.f32 %v11018_v60, %v5025_v30  ;;  %7279 = vmatprep.subr.bf16.mxu1 %v11764_v57 }
 0x935   :  { %v5006_v41 = vpop.f32.mrb[134].mxu0 }
 0x936   :  { %v5026_v26 = vadd.f32 %v5006_v41, %v4823_v63  ;;  %v6968_v53 = vpop.f32.mrb[135].mxu0  ;;  %v5075_v22 = vsel %vm54_vm0, %v11117_v16, 0.0 }
 0x937   :  { %5076 = vadd.xlane.f32.xlu1 %v5075_v22  ;;  %7281 = vmatpush3.bf16.msra.mxu1 %v7280_v5 }
 0x938   :  { %v11125_v2 = vadd.f32 %v11018_v60, %v5026_v26 }
 0x93a   :  { %v5078_v40 = vsel %vm54_vm0, %v11125_v2, 0.0 }
 0x93b   :  { %5079 = vadd.xlane.f32.xlu0 %v5078_v40 }
 0x93e   :  { %v5011_v32 = vpop.f32.mrb[136].mxu0 }
 0x93f   :  { %5124 = vadd.xlane.f32.xlu0 %v5123_v3  ;;  %v5027_v43 = vadd.f32 %v5011_v32, %v4824_v62  ;;  %v6971_v49 = vpop.f32.mrb[137].mxu0 }
 0x941   :  { %v11150_v35 = vadd.f32 %v11018_v60, %v5027_v43  ;;  %v5126_v60 = vsel %vm54_vm0, %v5111_v13, 0.0 }
 0x943   :  { %5130 = vadd.xlane.f32.xlu0 %v5129_v58  ;;  %v5081_v24 = vsel %vm91_vm1, %v11150_v35, 0.0 }
 0x944   :  { %5082 = vadd.xlane.f32.xlu1 %v5081_v24 }
 0x947   :  { %5136 = vadd.xlane.f32.xlu0 %v5135_v50 }
 0x948   :  { %5127 = vadd.xlane.f32.xlu1 %v5126_v60 }
 0x94c   :  { %5133 = vadd.xlane.f32.xlu1 %v5132_v18 }
 0x950   :  { %5139 = vadd.xlane.f32.xlu1 %v5138_v12 }
 0x9b3   :  { %v5065_v23 = vpop.xlane.xlu1 %5064 }
 0x9b4   :  { %v5090_v30 = vmul.f32 0.03125, %v5065_v23 }
 0x9b6   :  { %v11184_v9 = vsub.f32 %v11085_v56, %v5090_v30 }
 0x9b8   :  { %v5068_v39 = vpop.xlane.xlu0 %5067  ;;  %v5116_v54 = vmul.f32 %v11184_v9, %v11184_v9 }
 0x9b9   :  { %v5091_v33 = vmul.f32 0.03125, %v5068_v39 }
 0x9ba   :  { %v5141_v41 = vsel %vm54_vm0, %v5116_v54, 0.0  ;;  %v11228_v54 = vld [vmem:[%s11493_s1 + $0x5] ss:$0 sm:$0xff] }
 0x9bb   :  { %v11189_v63 = vsub.f32 %v11093_v19, %v5091_v33  ;;  %5142 = vadd.xlane.f32.xlu0 %v5141_v41 }
 0x9bc   :  { %v5071_v48 = vpop.xlane.xlu1 %5070 }
 0x9bd   :  { %v5092_v26 = vmul.f32 0.03125, %v5071_v48  ;;  %v5117_v53 = vmul.f32 %v11189_v63, %v11189_v63 }
 0x9bf   :  { %v11195_v22 = vsub.f32 %v11101_v44, %v5092_v26  ;;  %v5144_v45 = vsel %vm54_vm0, %v5117_v53, 0.0  ;;  %v11234_v53 = vld [vmem:[%s11493_s1 + $0x6] ss:$0 sm:$0xff] }
 0x9c0   :  { %v5074_v0 = vpop.xlane.xlu0 %5073  ;;  %5145 = vadd.xlane.f32.xlu1 %v5144_v45 }
 0x9c1   :  { %v5093_v40 = vmul.f32 0.03125, %v5074_v0  ;;  %v5118_v36 = vmul.f32 %v11195_v22, %v11195_v22 }
 0x9c3   :  { %v11201_v28 = vsub.f32 %v11109_v25, %v5093_v40  ;;  %v5147_v8 = vsel %vm54_vm0, %v5118_v36, 0.0 }
 0x9c4   :  { %5148 = vadd.xlane.f32.xlu0 %v5147_v8  ;;  %v5077_v3 = vpop.xlane.xlu1 %5076 }
 0x9c5   :  { %v5094_v21 = vmul.f32 0.03125, %v5077_v3  ;;  %v5119_v62 = vmul.f32 %v11201_v28, %v11201_v28 }
 0x9c7   :  { %v11207_v32 = vsub.f32 %v11117_v16, %v5094_v21  ;;  %v5150_v42 = vsel %vm54_vm0, %v5119_v62, 0.0 }
 0x9c8   :  { %v5080_v43 = vpop.xlane.xlu0 %5079  ;;  %5151 = vadd.xlane.f32.xlu1 %v5150_v42 }
 0x9c9   :  { %v5095_v49 = vmul.f32 0.03125, %v5080_v43  ;;  %v5120_v34 = vmul.f32 %v11207_v32, %v11207_v32 }
 0x9cb   :  { %v11213_v58 = vsub.f32 %v11125_v2, %v5095_v49  ;;  %v5153_v17 = vsel %vm54_vm0, %v5120_v34, 0.0 }
 0x9cc   :  { %v5125_v14 = vpop.xlane.xlu0 %5124  ;;  %5154 = vadd.xlane.f32.xlu0 %v5153_v17 }
 0x9cd   :  { %v5162_v24 = vmul.f32 0.03125, %v5125_v14  ;;  %v5121_v13 = vmul.f32 %v11213_v58, %v11213_v58 }
 0x9cf   :  { %v5175_v50 = vadd.f32 1e-06, %v5162_v24  ;;  %v5156_v60 = vsel %vm54_vm0, %v5121_v13, 0.0 }
 0x9d0   :  { %v5131_v6 = vpop.xlane.xlu0 %5130  ;;  %5157 = vadd.xlane.f32.xlu1 %v5156_v60 }
 0x9d1   :  { %7828 = vrsqrt.f32 %v5175_v50  ;;  %v5164_v18 = vmul.f32 0.03125, %v5131_v6  ;;  %v5083_v29 = vpop.xlane.xlu1 %5082 }
 0x9d2   :  { %v5096_v12 = vmul.f32 0.03125, %v5083_v29 }
 0x9d3   :  { %v5177_v37 = vadd.f32 1e-06, %v5164_v18 }
 0x9d4   :  { %v11220_v7 = vsub.f32 %v11150_v35, %v5096_v12  ;;  %v5137_v31 = vpop.xlane.xlu0 %5136 }
 0x9d5   :  { %v5128_v52 = vpop.xlane.xlu1 %5127  ;;  %7830 = vrsqrt.f32 %v5177_v37  ;;  %v5166_v23 = vmul.f32 0.03125, %v5137_v31  ;;  %v5543_v37 = vld [vmem:[%s11499_s8 + $0x8] sm:$0xff] }
 0x9d6   :  { %v5163_v51 = vmul.f32 0.03125, %v5128_v52  ;;  %v5122_v5 = vmul.f32 %v11220_v7, %v11220_v7  ;;  %v5544_v52 = vld [vmem:[%s11499_s8 + $0x10] sm:$0xff] }
 0x9d7   :  { %v5179_v0 = vadd.f32 1e-06, %v5166_v23 }
 0x9d8   :  { %v5176_v30 = vadd.f32 1e-06, %v5163_v51  ;;  %v5159_v39 = vsel %vm91_vm1, %v5122_v5, 0.0  ;;  %v5545_v51 = vld [vmem:[%s11499_s8 + $0x18] sm:$0xff]  ;;  %v5546_v5 = vld [vmem:[%s11499_s8 + $0x20] sm:$0xff] }
 0x9d9   :  { %5160 = vadd.xlane.f32.xlu0 %v5159_v39  ;;  %v5134_v41 = vpop.xlane.xlu1 %5133  ;;  %v7286_v23 = vpack.c.bf16 %v5545_v51, %v5544_v52 }
 0x9da   :  { %7832 = vrsqrt.f32 %v5176_v30  ;;  %v5165_v26 = vmul.f32 0.03125, %v5134_v41  ;;  %v5547_v30 = vld [vmem:[%s11499_s8 + $0x28] sm:$0xff]  ;;  %v5549_v41 = vld [vmem:[%s11499_s8 + $0x38] sm:$0xff] }
 0x9db   :  { %v7829_v33 = vpop.eup %7828  ;;  %v7289_v39 = vpack.c.bf16 %v5547_v30, %v5546_v5 }
 0x9dc   :  { %v5201_v48 = vmul.f32 %v7829_v33, %v11120_v46  ;;  %v5178_v40 = vadd.f32 1e-06, %v5165_v26  ;;  %v5548_v33 = vld [vmem:[%s11499_s8 + $0x30] sm:$0xff] }
 0x9dd   :  { %v5140_v36 = vpop.xlane.xlu1 %5139  ;;  %v7292_v26 = vpack.c.bf16 %v5549_v41, %v5548_v33 }
 0x9de   :  { %v5218_v45 = vmul.f32 %v11228_v54, %v5201_v48  ;;  %7834 = vrsqrt.f32 %v5178_v40  ;;  %v5167_v3 = vmul.f32 0.03125, %v5140_v36  ;;  %v5551_v40 = vld [vmem:[%s11499_s8 + $0x48] sm:$0xff] }
 0x9df   :  { %7836 = vrsqrt.f32 %v5179_v0  ;;  %v7831_v21 = vpop.eup %7830  ;;  %v5550_v0 = vld [vmem:[%s11499_s8 + $0x40] sm:$0xff] }
 0x9e0   :  { %v5235_v8 = vadd.f32 %v11234_v53, %v5218_v45  ;;  %v5180_v46 = vadd.f32 1e-06, %v5167_v3  ;;  %v5203_v43 = vmul.f32 %v7831_v21, %v11128_v20  ;;  %v7295_v3 = vpack.c.bf16 %v5551_v40, %v5550_v0  ;;  %v5552_v21 = vld [vmem:[%s11499_s8 + $0x50] sm:$0xff] }
 0x9e2   :  { %6981 = vmatmul.mubr.msk.f32.vlgmr.msra.gmra.mrb[138].mxu1 %vm54_vm0, %v5235_v8  ;;  %7838 = vrsqrt.f32 %v5180_v46  ;;  %v5220_v14 = vmul.f32 %v11228_v54, %v5203_v43 }
 0x9e3   :  { %6983 = vmatprep.mubr.msk.f32.mxu1 %vm7896_vm2, %v11765_v10 }
 0x9e4   :  { %v7833_v62 = vpop.eup %7832  ;;  %v5237_v50 = vadd.f32 %v11234_v53, %v5220_v14  ;;  %v5555_v14 = vld [vmem:[%s11499_s8 + $0x68] sm:$0xff] }
 0x9e5   :  { %v5202_v42 = vmul.f32 %v7833_v62, %v11144_v55  ;;  %v5553_v62 = vld [vmem:[%s11499_s8 + $0x58] sm:$0xff] }
 0x9e7   :  { %v5219_v49 = vmul.f32 %v11228_v54, %v5202_v42 }
 0x9e8   :  { %v7835_v34 = vpop.eup %7834 }
 0x9e9   :  { %v5236_v17 = vadd.f32 %v11234_v53, %v5219_v49  ;;  %v5204_v24 = vmul.f32 %v7835_v34, %v11153_v38  ;;  %v7837_v13 = vpop.eup %7836  ;;  %v7298_v49 = vpack.c.bf16 %v5553_v62, %v5552_v21 }
 0x9ea   :  { %v5205_v20 = vmul.f32 %v7837_v13, %v11135_v61 }
 0x9eb   :  { %6984 = vmatmul.mubr.msk.f32.gmra.mrb[140].mxu1 %vm54_vm0, %v5236_v17  ;;  %v5221_v55 = vmul.f32 %v11228_v54, %v5204_v24  ;;  %v5554_v17 = vld [vmem:[%s11499_s8 + $0x60] sm:$0xff] }
 0x9ec   :  { %6986 = vmatprep.mubr.msk.f32.mxu1 %vm7896_vm2, %v11765_v10  ;;  %v7839_v60 = vpop.eup %7838  ;;  %v5222_v6 = vmul.f32 %v11228_v54, %v5205_v20  ;;  %v5556_v20 = vld [vmem:[%s11499_s8 + $0x70] sm:$0xff] }
 0x9ed   :  { %v5238_v38 = vadd.f32 %v11234_v53, %v5221_v55  ;;  %v5206_v18 = vmul.f32 %v7839_v60, %v11161_v59  ;;  %v5542_v59 = vld [vmem:[%s11499_s8] sm:$0xff]  ;;  %v5557_v60 = vld [vmem:[%s11499_s8 + $0x78] sm:$0xff] }
 0x9ee   :  { %v5239_v29 = vadd.f32 %v11234_v53, %v5222_v6  ;;  %v7283_v31 = vpack.c.bf16 %v5543_v37, %v5542_v59 }
 0x9ef   :  { %6987 = vmatmul.mubr.msk.f32.gmra.mrb[142].mxu1 %vm54_vm0, %v5237_v50  ;;  %v5223_v61 = vmul.f32 %v11228_v54, %v5206_v18  ;;  %v7301_v50 = vpack.c.bf16 %v5555_v14, %v5554_v17  ;;  %v11369_v17 = vld [vmem:[%s11493_s1 + $0x7] ss:$0 sm:$0xff] }
 0x9f0   :  { %6989 = vmatprep.mubr.msk.f32.mxu1 %vm7896_vm2, %v11765_v10  ;;  %7284 = vmatpush3.bf16.msra.mxu0 %v7283_v31 }
 0x9f1   :  { %v5240_v12 = vadd.f32 %v11234_v53, %v5223_v61  ;;  %7285 = vmatprep.subr.bf16.mxu0 %v11764_v57  ;;  %v7304_v61 = vpack.c.bf16 %v5557_v60, %v5556_v20 }
 0x9f3   :  { %6990 = vmatmul.mubr.msk.f32.gmra.mrb[144].mxu1 %vm54_vm0, %v5238_v38 }
 0x9f4   :  { %6992 = vmatprep.mubr.msk.f32.mxu1 %vm7896_vm2, %v11765_v10  ;;  %7287 = vmatpush3.bf16.msra.mxu0 %v7286_v23 }
 0x9f5   :  { %7288 = vmatprep.subr.bf16.mxu0 %v11764_v57 }
 0x9f7   :  { %6993 = vmatmul.mubr.msk.f32.gmra.mrb[146].mxu1 %vm54_vm0, %v5239_v29 }
 0x9f8   :  { %6995 = vmatprep.mubr.msk.f32.mxu1 %vm7896_vm2, %v11765_v10  ;;  %7290 = vmatpush3.bf16.msra.mxu0 %v7289_v39 }
 0x9f9   :  { %7291 = vmatprep.subr.bf16.mxu0 %v11764_v57 }
 0x9fb   :  { %6996 = vmatmul.mubr.msk.f32.gmra.mrb[148].mxu1 %vm54_vm0, %v5240_v12 }
 0x9fc   :  { %6998 = vmatprep.mubr.msk.f32.mxu1 %vm7896_vm2, %v11765_v10  ;;  %7293 = vmatpush3.bf16.msra.mxu0 %v7292_v26 }
 0x9fd   :  { %7294 = vmatprep.subr.bf16.mxu0 %v11764_v57 }
 0xa00   :  { %7296 = vmatpush3.bf16.msra.mxu0 %v7295_v3 }
 0xa01   :  { %7297 = vmatprep.subr.bf16.mxu0 %v11764_v57 }
 0xa04   :  { %7299 = vmatpush3.bf16.msra.mxu0 %v7298_v49 }
 0xa05   :  { %7300 = vmatprep.subr.bf16.mxu0 %v11764_v57 }
 0xa08   :  { %7302 = vmatpush3.bf16.msra.mxu0 %v7301_v50 }
 0xa09   :  { %7303 = vmatprep.subr.bf16.mxu0 %v11764_v57 }
 0xa0c   :  { %7305 = vmatpush3.bf16.msra.mxu0 %v7304_v61 }
 0xa48   :  { %v5143_v48 = vpop.xlane.xlu0 %5142 }
 0xa49   :  { %v5168_v45 = vmul.f32 0.03125, %v5143_v48 }
 0xa4b   :  { %v5181_v36 = vadd.f32 1e-06, %v5168_v45 }
 0xa4d   :  { %v5146_v8 = vpop.xlane.xlu1 %5145  ;;  %7840 = vrsqrt.f32 %v5181_v36 }
 0xa4e   :  { %v5169_v46 = vmul.f32 0.03125, %v5146_v8 }
 0xa50   :  { %v5182_v42 = vadd.f32 1e-06, %v5169_v46 }
 0xa51   :  { %v5149_v43 = vpop.xlane.xlu0 %5148 }
 0xa52   :  { %7842 = vrsqrt.f32 %v5182_v42  ;;  %v5170_v34 = vmul.f32 0.03125, %v5149_v43 }
 0xa54   :  { %v5183_v24 = vadd.f32 1e-06, %v5170_v34 }
 0xa55   :  { %v5152_v13 = vpop.xlane.xlu1 %5151 }
 0xa56   :  { %7844 = vrsqrt.f32 %v5183_v24  ;;  %v5171_v55 = vmul.f32 0.03125, %v5152_v13 }
 0xa57   :  { %v7841_v38 = vpop.eup %7840 }
 0xa58   :  { %v5184_v6 = vadd.f32 1e-06, %v5171_v55  ;;  %v5207_v29 = vmul.f32 %v7841_v38, %v11184_v9 }
 0xa59   :  { %v5155_v18 = vpop.xlane.xlu0 %5154 }
 0xa5a   :  { %7846 = vrsqrt.f32 %v5184_v6  ;;  %v5172_v12 = vmul.f32 0.03125, %v5155_v18  ;;  %v5224_v59 = vmul.f32 %v11228_v54, %v5207_v29 }
 0xa5c   :  { %v7843_v37 = vpop.eup %7842  ;;  %v5185_v31 = vadd.f32 1e-06, %v5172_v12  ;;  %v5241_v51 = vadd.f32 %v11234_v53, %v5224_v59 }
 0xa5d   :  { %v5158_v52 = vpop.xlane.xlu1 %5157  ;;  %v5208_v5 = vmul.f32 %v7843_v37, %v11189_v63 }
 0xa5e   :  { %7848 = vrsqrt.f32 %v5185_v31  ;;  %v5173_v23 = vmul.f32 0.03125, %v5158_v52  ;;  %6999 = vmatmul.mubr.msk.f32.gmra.mrb[150].mxu1 %vm54_vm0, %v5241_v51 }
 0xa5f   :  { %v5225_v9 = vmul.f32 %v11228_v54, %v5208_v5  ;;  %7001 = vmatprep.mubr.msk.f32.mxu1 %vm7896_vm2, %v11765_v10 }
 0xa60   :  { %v7845_v30 = vpop.eup %7844  ;;  %v5186_v39 = vadd.f32 1e-06, %v5173_v23 }
 0xa61   :  { %v5242_v57 = vadd.f32 %v11234_v53, %v5225_v9  ;;  %v5209_v33 = vmul.f32 %v7845_v30, %v11195_v22 }
 0xa62   :  { %7850 = vrsqrt.f32 %v5186_v39 }
 0xa63   :  { %7002 = vmatmul.mubr.msk.f32.gmra.mrb[152].mxu1 %vm54_vm0, %v5242_v57  ;;  %v5226_v63 = vmul.f32 %v11228_v54, %v5209_v33 }
 0xa64   :  { %v7847_v41 = vpop.eup %7846  ;;  %7004 = vmatprep.mubr.msk.f32.mxu1 %vm7896_vm2, %v11765_v10 }
 0xa65   :  { %v5243_v48 = vadd.f32 %v11234_v53, %v5226_v63  ;;  %v5210_v26 = vmul.f32 %v7847_v41, %v11201_v28 }
 0xa66   :  { %v5161_v22 = vpop.xlane.xlu0 %5160 }
 0xa67   :  { %7005 = vmatmul.mubr.msk.f32.gmra.mrb[154].mxu1 %vm54_vm0, %v5243_v48  ;;  %v5227_v45 = vmul.f32 %v11228_v54, %v5210_v26  ;;  %v5174_v8 = vmul.f32 0.03125, %v5161_v22 }
 0xa68   :  { %v7849_v0 = vpop.eup %7848  ;;  %7007 = vmatprep.mubr.msk.f32.mxu1 %vm7896_vm2, %v11765_v10 }
 0xa69   :  { %v5244_v40 = vadd.f32 %v11234_v53, %v5227_v45  ;;  %v5211_v36 = vmul.f32 %v7849_v0, %v11207_v32  ;;  %v5187_v46 = vadd.f32 1e-06, %v5174_v8 }
 0xa6b   :  { %7008 = vmatmul.mubr.msk.f32.gmra.mrb[156].mxu1 %vm54_vm0, %v5244_v40  ;;  %v5228_v3 = vmul.f32 %v11228_v54, %v5211_v36  ;;  %7852 = vrsqrt.f32 %v5187_v46 }
 0xa6c   :  { %v7851_v28 = vpop.eup %7850  ;;  %7010 = vmatprep.mubr.msk.f32.mxu1 %vm7896_vm2, %v11765_v10 }
 0xa6d   :  { %v5245_v21 = vadd.f32 %v11234_v53, %v5228_v3  ;;  %v5212_v62 = vmul.f32 %v7851_v28, %v11213_v58 }
 0xa6f   :  { %7011 = vmatmul.mubr.msk.f32.gmra.mrb[158].mxu1 %vm54_vm0, %v5245_v21  ;;  %v5229_v42 = vmul.f32 %v11228_v54, %v5212_v62 }
 0xa70   :  { %7013 = vmatprep.mubr.msk.f32.mxu1 %vm7896_vm2, %v11765_v10 }
 0xa71   :  { %v5246_v32 = vadd.f32 %v11234_v53, %v5229_v42 }
 0xa73   :  { %7014 = vmatmul.mubr.msk.f32.gmra.mrb[160].mxu1 %vm54_vm0, %v5246_v32 }
 0xa74   :  { %7016 = vmatprep.mubr.msk.f32.mxu1 %vm7896_vm2, %v11765_v10 }
 0xa75   :  { %v7853_v43 = vpop.eup %7852 }
 0xa76   :  { %v5213_v49 = vmul.f32 %v7853_v43, %v11220_v7 }
 0xa78   :  { %v5230_v34 = vmul.f32 %v11228_v54, %v5213_v49 }
 0xa7a   :  { %v5247_v58 = vadd.f32 %v11234_v53, %v5230_v34 }
 0xa7c   :  { %7017 = vmatmul.mubr.msk.f32.gmra.mrb[162].mxu1 %vm54_vm0, %v5247_v58 }
 0xab5   :  { %v5361_v14 = vpop.f32.mrb[138].mxu1 }
 0xab6   :  { %v5362_v24 = vadd.f32 %v11369_v17, %v5361_v14  ;;  %v6982_v13 = vpop.f32.mrb[139].mxu1 }
 0xab8   :  { %v5438_v50 = vmul.f32 0.044715, %v5362_v24  ;;  %v5425_v33 = vmul.f32 0.5, %v5362_v24 }
 0xaba   :  { %v5451_v55 = vmul.f32 %v5438_v50, %v5362_v24 }
 0xabc   :  { %v5464_v20 = vmul.f32 %v5451_v55, %v5362_v24 }
 0xabe   :  { %v5477_v60 = vadd.f32 %v5464_v20, %v5362_v24  ;;  %v5366_v38 = vpop.f32.mrb[140].mxu1 }
 0xabf   :  { %v5367_v54 = vadd.f32 %v11369_v17, %v5366_v38  ;;  %v6985_v53 = vpop.f32.mrb[141].mxu1 }
 0xac0   :  { %v5490_v7 = vmul.f32 0.7978846, %v5477_v60 }
 0xac1   :  { %v5439_v6 = vmul.f32 0.044715, %v5367_v54  ;;  %v5426_v13 = vmul.f32 0.5, %v5367_v54 }
 0xac2   :  { %7854 = vtanh.f32 %v5490_v7  ;;  %v5371_v18 = vpop.f32.mrb[142].mxu1 }
 0xac3   :  { %v5452_v29 = vmul.f32 %v5439_v6, %v5367_v54  ;;  %v5372_v61 = vadd.f32 %v11369_v17, %v5371_v18  ;;  %v6988_v12 = vpop.f32.mrb[143].mxu1 }
 0xac5   :  { %v5440_v59 = vmul.f32 0.044715, %v5372_v61  ;;  %v5465_v37 = vmul.f32 %v5452_v29, %v5367_v54  ;;  %v5427_v38 = vmul.f32 0.5, %v5372_v61 }
 0xac6   :  { %v5376_v31 = vpop.f32.mrb[144].mxu1 }
 0xac7   :  { %v5453_v52 = vmul.f32 %v5440_v59, %v5372_v61  ;;  %v5377_v51 = vadd.f32 %v11369_v17, %v5376_v31  ;;  %v6991_v5 = vpop.f32.mrb[145].mxu1  ;;  %v5478_v23 = vadd.f32 %v5465_v37, %v5367_v54 }
 0xac9   :  { %v5441_v9 = vmul.f32 0.044715, %v5377_v51  ;;  %v5491_v30 = vmul.f32 0.7978846, %v5478_v23  ;;  %v5466_v39 = vmul.f32 %v5453_v52, %v5372_v61  ;;  %v5428_v29 = vmul.f32 0.5, %v5377_v51 }
 0xaca   :  { %v5381_v63 = vpop.f32.mrb[146].mxu1 }
 0xacb   :  { %v5454_v48 = vmul.f32 %v5441_v9, %v5377_v51  ;;  %v5382_v26 = vadd.f32 %v11369_v17, %v5381_v63  ;;  %v6994_v45 = vpop.f32.mrb[147].mxu1  ;;  %7856 = vtanh.f32 %v5491_v30  ;;  %v5479_v0 = vadd.f32 %v5466_v39, %v5372_v61 }
 0xacc   :  { %v7855_v57 = vpop.eup %7854 }
 0xacd   :  { %v5516_v41 = vadd.f32 1.0, %v7855_v57  ;;  %v5442_v40 = vmul.f32 0.044715, %v5382_v26  ;;  %v5467_v36 = vmul.f32 %v5454_v48, %v5377_v51  ;;  %v5492_v3 = vmul.f32 0.7978846, %v5479_v0 }
 0xace   :  { %v5386_v8 = vpop.f32.mrb[148].mxu1  ;;  %v5429_v37 = vmul.f32 0.5, %v5382_v26 }
 0xacf   :  { %v5529_v22 = vmul.f32 %v5516_v41, %v5425_v33  ;;  %v5455_v46 = vmul.f32 %v5442_v40, %v5382_v26  ;;  %v5387_v28 = vadd.f32 %v11369_v17, %v5386_v8  ;;  %v6997_v21 = vpop.f32.mrb[149].mxu1  ;;  %v5480_v62 = vadd.f32 %v5467_v36, %v5377_v51 }
 0xad0   :  { %7858 = vtanh.f32 %v5492_v3 }
 0xad1   :  { %7052 = vmatmul.mubr.f32.vlgmr.msra.gmra.mrb[138].mxu0 %v5529_v22  ;;  %v5443_v42 = vmul.f32 0.044715, %v5387_v28  ;;  %v5493_v32 = vmul.f32 0.7978846, %v5480_v62  ;;  %v5468_v43 = vmul.f32 %v5455_v46, %v5382_v26  ;;  %v5430_v5 = vmul.f32 0.5, %v5387_v28 }
 0xad2   :  { %7054 = vmatprep.mubr.msk.f32.mxu0 %vm7896_vm2, %v11765_v10 }
 0xad3   :  { %v5456_v49 = vmul.f32 %v5443_v42, %v5387_v28  ;;  %7860 = vtanh.f32 %v5493_v32  ;;  %v5481_v34 = vadd.f32 %v5468_v43, %v5382_v26 }
 0xad5   :  { %v7857_v58 = vpop.eup %7856  ;;  %v5494_v14 = vmul.f32 0.7978846, %v5481_v34  ;;  %v5469_v24 = vmul.f32 %v5456_v49, %v5387_v28 }
 0xad6   :  { %v5517_v50 = vadd.f32 1.0, %v7857_v58 }
 0xad7   :  { %7862 = vtanh.f32 %v5494_v14  ;;  %v5482_v55 = vadd.f32 %v5469_v24, %v5387_v28 }
 0xad8   :  { %v5530_v20 = vmul.f32 %v5517_v50, %v5426_v13 }
 0xad9   :  { %v5495_v60 = vmul.f32 0.7978846, %v5482_v55 }
 0xada   :  { %v7859_v7 = vpop.eup %7858  ;;  %7055 = vmatmul.mubr.f32.gmra.mrb[140].mxu0 %v5530_v20 }
 0xadb   :  { %7057 = vmatprep.mubr.msk.f32.mxu0 %vm7896_vm2, %v11765_v10  ;;  %v5518_v53 = vadd.f32 1.0, %v7859_v7  ;;  %7864 = vtanh.f32 %v5495_v60 }
 0xadd   :  { %v7861_v6 = vpop.eup %7860  ;;  %v5531_v18 = vmul.f32 %v5518_v53, %v5427_v38 }
 0xade   :  { %v5519_v12 = vadd.f32 1.0, %v7861_v6 }
 0xadf   :  { %7058 = vmatmul.mubr.f32.gmra.mrb[142].mxu0 %v5531_v18 }
 0xae0   :  { %7060 = vmatprep.mubr.msk.f32.mxu0 %vm7896_vm2, %v11765_v10  ;;  %v5532_v54 = vmul.f32 %v5519_v12, %v5428_v29 }
 0xae1   :  { %v7863_v59 = vpop.eup %7862 }
 0xae2   :  { %v5520_v31 = vadd.f32 1.0, %v7863_v59 }
 0xae3   :  { %7061 = vmatmul.mubr.f32.gmra.mrb[144].mxu0 %v5532_v54 }
 0xae4   :  { %7063 = vmatprep.mubr.msk.f32.mxu0 %vm7896_vm2, %v11765_v10  ;;  %v5533_v52 = vmul.f32 %v5520_v31, %v5429_v37 }
 0xae5   :  { %v7865_v61 = vpop.eup %7864 }
 0xae6   :  { %v5521_v23 = vadd.f32 1.0, %v7865_v61 }
 0xae7   :  { %7064 = vmatmul.mubr.f32.gmra.mrb[146].mxu0 %v5533_v52 }
 0xae8   :  { %7066 = vmatprep.mubr.msk.f32.mxu0 %vm7896_vm2, %v11765_v10  ;;  %v5534_v51 = vmul.f32 %v5521_v23, %v5430_v5 }
 0xaeb   :  { %7067 = vmatmul.mubr.f32.gmra.mrb[148].mxu0 %v5534_v51 }
 0xaec   :  { %7069 = vmatprep.mubr.msk.f32.mxu0 %vm7896_vm2, %v11765_v10 }
 0xb31   :  { %v5391_v9 = vpop.f32.mrb[150].mxu1 }
 0xb32   :  { %v5392_v30 = vadd.f32 %v11369_v17, %v5391_v9  ;;  %v7000_v39 = vpop.f32.mrb[151].mxu1 }
 0xb34   :  { %v5444_v57 = vmul.f32 0.044715, %v5392_v30  ;;  %v5431_v31 = vmul.f32 0.5, %v5392_v30 }
 0xb36   :  { %v5396_v33 = vpop.f32.mrb[152].mxu1  ;;  %v5457_v63 = vmul.f32 %v5444_v57, %v5392_v30 }
 0xb37   :  { %v5397_v41 = vadd.f32 %v11369_v17, %v5396_v33  ;;  %v7003_v48 = vpop.f32.mrb[153].mxu1 }
 0xb38   :  { %v5470_v45 = vmul.f32 %v5457_v63, %v5392_v30 }
 0xb39   :  { %v5445_v26 = vmul.f32 0.044715, %v5397_v41  ;;  %v5432_v57 = vmul.f32 0.5, %v5397_v41 }
 0xb3a   :  { %v5401_v0 = vpop.f32.mrb[154].mxu1  ;;  %v5483_v8 = vadd.f32 %v5470_v45, %v5392_v30 }
 0xb3b   :  { %v5458_v22 = vmul.f32 %v5445_v26, %v5397_v41  ;;  %v5402_v40 = vadd.f32 %v11369_v17, %v5401_v0  ;;  %v7006_v36 = vpop.f32.mrb[155].mxu1 }
 0xb3c   :  { %v5496_v46 = vmul.f32 0.7978846, %v5483_v8 }
 0xb3d   :  { %v5446_v3 = vmul.f32 0.044715, %v5402_v40  ;;  %v5471_v28 = vmul.f32 %v5458_v22, %v5397_v41  ;;  %v5433_v0 = vmul.f32 0.5, %v5402_v40 }
 0xb3e   :  { %v5406_v21 = vpop.f32.mrb[156].mxu1  ;;  %7866 = vtanh.f32 %v5496_v46 }
 0xb3f   :  { %v5459_v62 = vmul.f32 %v5446_v3, %v5402_v40  ;;  %v5407_v42 = vadd.f32 %v11369_v17, %v5406_v21  ;;  %v7009_v32 = vpop.f32.mrb[157].mxu1  ;;  %v5484_v43 = vadd.f32 %v5471_v28, %v5397_v41 }
 0xb41   :  { %v5447_v49 = vmul.f32 0.044715, %v5407_v42  ;;  %v5497_v34 = vmul.f32 0.7978846, %v5484_v43  ;;  %v5472_v58 = vmul.f32 %v5459_v62, %v5402_v40  ;;  %v5434_v28 = vmul.f32 0.5, %v5407_v42 }
 0xb42   :  { %v5411_v14 = vpop.f32.mrb[158].mxu1 }
 0xb43   :  { %v5460_v24 = vmul.f32 %v5447_v49, %v5407_v42  ;;  %v5412_v13 = vadd.f32 %v11369_v17, %v5411_v14  ;;  %v7012_v50 = vpop.f32.mrb[159].mxu1  ;;  %7868 = vtanh.f32 %v5497_v34  ;;  %v5485_v55 = vadd.f32 %v5472_v58, %v5402_v40 }
 0xb45   :  { %v5448_v20 = vmul.f32 0.044715, %v5412_v13  ;;  %v5498_v60 = vmul.f32 0.7978846, %v5485_v55  ;;  %v5473_v7 = vmul.f32 %v5460_v24, %v5407_v42 }
 0xb46   :  { %v5416_v38 = vpop.f32.mrb[160].mxu1 }
 0xb47   :  { %v5461_v53 = vmul.f32 %v5448_v20, %v5412_v13  ;;  %v5417_v6 = vadd.f32 %v11369_v17, %v5416_v38  ;;  %v7015_v18 = vpop.f32.mrb[161].mxu1  ;;  %7870 = vtanh.f32 %v5498_v60  ;;  %v5486_v29 = vadd.f32 %v5473_v7, %v5407_v42  ;;  %v11411_v38 = vld [vmem:[%s11493_s1 + $0x8] ss:$0 sm:$0xff] }
 0xb48   :  { %v7867_v12 = vpop.eup %7866 }
 0xb49   :  { %v5449_v54 = vmul.f32 0.044715, %v5417_v6  ;;  %v5499_v59 = vmul.f32 0.7978846, %v5486_v29  ;;  %v5474_v37 = vmul.f32 %v5461_v53, %v5412_v13  ;;  %v5522_v52 = vadd.f32 1.0, %v7867_v12 }
 0xb4a   :  { %v5436_v42 = vmul.f32 0.5, %v5417_v6 }
 0xb4b   :  { %v5462_v61 = vmul.f32 %v5449_v54, %v5417_v6  ;;  %7872 = vtanh.f32 %v5499_v59  ;;  %v5487_v5 = vadd.f32 %v5474_v37, %v5412_v13  ;;  %v5535_v23 = vmul.f32 %v5522_v52, %v5431_v31 }
 0xb4d   :  { %v7869_v51 = vpop.eup %7868  ;;  %v5500_v9 = vmul.f32 0.7978846, %v5487_v5  ;;  %v5475_v39 = vmul.f32 %v5462_v61, %v5417_v6  ;;  %7070 = vmatmul.mubr.f32.gmra.mrb[150].mxu0 %v5535_v23 }
 0xb4e   :  { %v5523_v33 = vadd.f32 1.0, %v7869_v51  ;;  %7072 = vmatprep.mubr.msk.f32.mxu0 %vm7896_vm2, %v11765_v10 }
 0xb4f   :  { %7874 = vtanh.f32 %v5500_v9  ;;  %v5488_v63 = vadd.f32 %v5475_v39, %v5417_v6  ;;  %v5421_v45 = vpop.f32.mrb[162].mxu1 }
 0xb50   :  { %v5536_v48 = vmul.f32 %v5523_v33, %v5432_v57  ;;  %v5422_v36 = vadd.f32 %v11369_v17, %v5421_v45  ;;  %v7018_v8 = vpop.f32.mrb[163].mxu1  ;;  %v5435_v17 = vmul.f32 0.5, %v5412_v13 }
 0xb51   :  { %v7871_v26 = vpop.eup %7870  ;;  %v5501_v30 = vmul.f32 0.7978846, %v5488_v63 }
 0xb52   :  { %7073 = vmatmul.mubr.f32.gmra.mrb[152].mxu0 %v5536_v48  ;;  %v5524_v22 = vadd.f32 1.0, %v7871_v26  ;;  %v5450_v3 = vmul.f32 0.044715, %v5422_v36  ;;  %v5437_v20 = vmul.f32 0.5, %v5422_v36 }
 0xb53   :  { %7075 = vmatprep.mubr.msk.f32.mxu0 %vm7896_vm2, %v11765_v10  ;;  %7876 = vtanh.f32 %v5501_v30 }
 0xb54   :  { %v5537_v41 = vmul.f32 %v5524_v22, %v5433_v0  ;;  %v5463_v62 = vmul.f32 %v5450_v3, %v5422_v36 }
 0xb55   :  { %v7873_v46 = vpop.eup %7872 }
 0xb56   :  { %7076 = vmatmul.mubr.f32.gmra.mrb[154].mxu0 %v5537_v41  ;;  %v5525_v21 = vadd.f32 1.0, %v7873_v46  ;;  %v5476_v40 = vmul.f32 %v5463_v62, %v5422_v36 }
 0xb57   :  { %7078 = vmatprep.mubr.msk.f32.mxu0 %vm7896_vm2, %v11765_v10 }
 0xb58   :  { %v5538_v32 = vmul.f32 %v5525_v21, %v5434_v28  ;;  %v5489_v34 = vadd.f32 %v5476_v40, %v5422_v36 }
 0xb59   :  { %v7875_v43 = vpop.eup %7874 }
 0xb5a   :  { %7079 = vmatmul.mubr.f32.gmra.mrb[156].mxu0 %v5538_v32  ;;  %v5526_v49 = vadd.f32 1.0, %v7875_v43  ;;  %v5502_v14 = vmul.f32 0.7978846, %v5489_v34 }
 0xb5b   :  { %7081 = vmatprep.mubr.msk.f32.mxu0 %vm7896_vm2, %v11765_v10 }
 0xb5c   :  { %v5539_v58 = vmul.f32 %v5526_v49, %v5435_v17  ;;  %7878 = vtanh.f32 %v5502_v14 }
 0xb5d   :  { %v7877_v24 = vpop.eup %7876 }
 0xb5e   :  { %7082 = vmatmul.mubr.f32.gmra.mrb[158].mxu0 %v5539_v58  ;;  %v5527_v50 = vadd.f32 1.0, %v7877_v24 }
 0xb5f   :  { %7084 = vmatprep.mubr.msk.f32.mxu0 %vm7896_vm2, %v11765_v10 }
 0xb60   :  { %v5540_v55 = vmul.f32 %v5527_v50, %v5436_v42 }
 0xb62   :  { %7085 = vmatmul.mubr.f32.gmra.mrb[160].mxu0 %v5540_v55 }
 0xb63   :  { %7087 = vmatprep.mubr.msk.f32.mxu0 %vm7896_vm2, %v11765_v10 }
 0xb66   :  { %v7879_v13 = vpop.eup %7878 }
 0xb67   :  { %v5528_v60 = vadd.f32 1.0, %v7879_v13 }
 0xb69   :  { %v5541_v7 = vmul.f32 %v5528_v60, %v5437_v20 }
 0xb6b   :  { %7088 = vmatmul.mubr.f32.gmra.mrb[162].mxu0 %v5541_v7 }
 0xba4   :  { %v5624_v53 = vpop.f32.mrb[138].mxu0 }
 0xba5   :  { %v5688_v6 = vadd.f32 %v5624_v53, %v11026_v15  ;;  %v7053_v18 = vpop.f32.mrb[139].mxu0 }
 0xba7   :  { %v5705_v29 = vadd.f32 %v11411_v38, %v5688_v6 }
 0xba9   :  { %5718 = vst.msk [vmem:[%s11500_s9] sm:$0xff] %vm54_vm0, %v5705_v29 }
 0xbad   :  { %v5629_v10 = vpop.f32.mrb[140].mxu0 }
 0xbae   :  { %v5689_v12 = vadd.f32 %v5629_v10, %v11038_v1  ;;  %v7056_v54 = vpop.f32.mrb[141].mxu0 }
 0xbb0   :  { %v5706_v59 = vadd.f32 %v11411_v38, %v5689_v12 }
 0xbb2   :  { %5719 = vst.msk [vmem:[%s11500_s9 + $0x8] sm:$0xff] %vm54_vm0, %v5706_v59  ;;  %v5634_v15 = vpop.f32.mrb[142].mxu0 }
 0xbb3   :  { %v5690_v37 = vadd.f32 %v5634_v15, %v11049_v47  ;;  %v7059_v31 = vpop.f32.mrb[143].mxu0 }
 0xbb5   :  { %v5707_v52 = vadd.f32 %v11411_v38, %v5690_v37 }
 0xbb6   :  { %v5639_v61 = vpop.f32.mrb[144].mxu0 }
 0xbb7   :  { %5720 = vst.msk [vmem:[%s11500_s9 + $0x10] sm:$0xff] %vm54_vm0, %v5707_v52  ;;  %v5691_v1 = vadd.f32 %v5639_v61, %v11058_v27  ;;  %v7062_v5 = vpop.f32.mrb[145].mxu0 }
 0xbb9   :  { %v5708_v23 = vadd.f32 %v11411_v38, %v5691_v1 }
 0xbba   :  { %v5644_v51 = vpop.f32.mrb[146].mxu0 }
 0xbbb   :  { %5721 = vst.msk [vmem:[%s11500_s9 + $0x18] sm:$0xff] %vm54_vm0, %v5708_v23  ;;  %v5692_v47 = vadd.f32 %v5644_v51, %v11066_v11  ;;  %v7065_v9 = vpop.f32.mrb[147].mxu0 }
 0xbbd   :  { %v5709_v39 = vadd.f32 %v11411_v38, %v5692_v47 }
 0xbbe   :  { %v5649_v57 = vpop.f32.mrb[148].mxu0 }
 0xbbf   :  { %5722 = vst.msk [vmem:[%s11500_s9 + $0x20] sm:$0xff] %vm54_vm0, %v5709_v39  ;;  %v5693_v27 = vadd.f32 %v5649_v57, %v11074_v4  ;;  %v7068_v33 = vpop.f32.mrb[149].mxu0 }
 0xbc1   :  { %v5710_v63 = vadd.f32 %v11411_v38, %v5693_v27 }
 0xbc3   :  { %5723 = vst.msk [vmem:[%s11500_s9 + $0x28] sm:$0xff] %vm54_vm0, %v5710_v63 }
 0xc20   :  { %v5654_v11 = vpop.f32.mrb[150].mxu0 }
 0xc21   :  { %v5694_v48 = vadd.f32 %v5654_v11, %v11085_v56  ;;  %v7071_v26 = vpop.f32.mrb[151].mxu0 }
 0xc23   :  { %v5711_v45 = vadd.f32 %v11411_v38, %v5694_v48 }
 0xc25   :  { %v5659_v30 = vpop.f32.mrb[152].mxu0  ;;  %5724 = vst.msk [vmem:[%s11500_s9 + $0x30] sm:$0xff] %vm54_vm0, %v5711_v45 }
 0xc26   :  { %v5695_v4 = vadd.f32 %v5659_v30, %v11093_v19  ;;  %v7074_v0 = vpop.f32.mrb[153].mxu0 }
 0xc28   :  { %v5712_v22 = vadd.f32 %v11411_v38, %v5695_v4 }
 0xc29   :  { %v5664_v36 = vpop.f32.mrb[154].mxu0 }
 0xc2a   :  { %5725 = vst.msk [vmem:[%s11500_s9 + $0x38] sm:$0xff] %vm54_vm0, %v5712_v22  ;;  %v5696_v56 = vadd.f32 %v5664_v36, %v11101_v44  ;;  %v7077_v8 = vpop.f32.mrb[155].mxu0 }
 0xc2c   :  { %v5713_v41 = vadd.f32 %v11411_v38, %v5696_v56 }
 0xc2d   :  { %v5669_v3 = vpop.f32.mrb[156].mxu0 }
 0xc2e   :  { %5726 = vst.msk [vmem:[%s11500_s9 + $0x40] sm:$0xff] %vm54_vm0, %v5713_v41  ;;  %v5697_v19 = vadd.f32 %v5669_v3, %v11109_v25  ;;  %v7080_v46 = vpop.f32.mrb[157].mxu0 }
 0xc30   :  { %v5714_v28 = vadd.f32 %v11411_v38, %v5697_v19 }
 0xc31   :  { %v5674_v21 = vpop.f32.mrb[158].mxu0 }
 0xc32   :  { %5727 = vst.msk [vmem:[%s11500_s9 + $0x48] sm:$0xff] %vm54_vm0, %v5714_v28  ;;  %v5698_v44 = vadd.f32 %v5674_v21, %v11117_v16  ;;  %v7083_v62 = vpop.f32.mrb[159].mxu0 }
 0xc34   :  { %v5715_v32 = vadd.f32 %v11411_v38, %v5698_v44 }
 0xc35   :  { %v5679_v40 = vpop.f32.mrb[160].mxu0 }
 0xc36   :  { %5728 = vst.msk [vmem:[%s11500_s9 + $0x50] sm:$0xff] %vm54_vm0, %v5715_v32  ;;  %v5699_v25 = vadd.f32 %v5679_v40, %v11125_v2  ;;  %v7086_v43 = vpop.f32.mrb[161].mxu0 }
 0xc38   :  { %v5716_v17 = vadd.f32 %v11411_v38, %v5699_v25 }
 0xc3a   :  { %5729 = vst.msk [vmem:[%s11500_s9 + $0x58] sm:$0xff] %vm54_vm0, %v5716_v17 }
 0xc3e   :  { %v5684_v16 = vpop.f32.mrb[162].mxu0 }
 0xc3f   :  { %v5700_v49 = vadd.f32 %v5684_v16, %v11150_v35  ;;  %v7089_v34 = vpop.f32.mrb[163].mxu0 }
 0xc41   :  { %v5717_v58 = vadd.f32 %v11411_v38, %v5700_v49 }
 0xc43   :  { %5730 = vst.msk [vmem:[%s11500_s9 + $0x60] sm:$0x3] %vm91_vm1, %v5717_v58 }

</bundles_post_ra>
